<compile_context>
chip_gen: v7x
topology: tpu7x:2x2x1
jax: 0.10.0
libtpu: 0.0.40
codegen_flags: <defaults>
</compile_context>

<pallas_src>
import math

import jax
import jax.numpy as jnp
from jax.experimental import pallas as pl
from jax.experimental.pallas import tpu as pltpu

Z_DIM = 32
HIDDEN_DIMS = [128, 256, 512, 1024]
OUTPUT_SHAPE = (1, 28, 28)
OUT_DIM = math.prod(OUTPUT_SHAPE)  # 784
ALPHA = 0.2                        # LeakyReLU negative slope
N_F32_LAYERS = 2                   # first two (tiny) layers stay in f32


def _round_up(x, m):
    return (x + m - 1) // m * m


def _device_config():
    """Per-generation tile / pad / VMEM-limit choices (safe defaults otherwise)."""
    kind = jax.devices()[0].device_kind.lower()
    if "v5 lite" in kind or "v5e" in kind or "v5lite" in kind:
        # v5e: 128-wide MXU, 128 MiB VMEM, single TC -> big tile, 896-wide pad.
        return dict(tb=1024, out_pad=896, vmem=64 << 20, multi_core=False)
    if "v6" in kind:
        # v6e: 256-wide MXU, 128 MiB VMEM, single TC -> big tile, keep 1024 pad.
        return dict(tb=1024, out_pad=1024, vmem=64 << 20, multi_core=False)
    # v7x (64 MiB VMEM per TC, 2 TCs) and unknown chips: conservative sizes.
    return dict(tb=512, out_pad=1024, vmem=32 << 20, multi_core=True)


def generator_mlp_kernel(z_ref, *refs):
    """Full MLP forward for one batch tile; weights stay resident in VMEM.

    refs = (w0, b0, w1, b1, ..., w4, b4, out_ref)
    Hidden layers: Linear -> (Dropout = identity at eval) -> LeakyReLU(0.2)
    Output layer : Linear (padded to out_pad) -> Tanh -> bf16 store
    """
    out_ref = refs[-1]
    param_refs = refs[:-1]
    n_layers = len(param_refs) // 2

    x = z_ref[...]                                # f32 (TB, z_dim)
    for i in range(n_layers):
        w = param_refs[2 * i][...]                # f32 (tiny layers) / bf16 (wide)
        b = param_refs[2 * i + 1][...]            # f32 (1, out), broadcasts over TB
        acc = jnp.dot(x.astype(w.dtype), w,
                      preferred_element_type=jnp.float32) + b
        if i < n_layers - 1:
            x = jnp.where(acc >= 0, acc, ALPHA * acc)          # LeakyReLU(0.2)
        else:
            out_ref[...] = jnp.tanh(acc).astype(out_ref.dtype)  # bf16 store


def init_params(key, z_dim=Z_DIM, hidden_dims=HIDDEN_DIMS, out_dim=OUT_DIM):
    """Deterministic PyTorch-style Linear init: U(-1/sqrt(fan_in), 1/sqrt(fan_in))."""
    dims = [z_dim] + list(hidden_dims) + [out_dim]
    params = []
    for fan_in, fan_out in zip(dims[:-1], dims[1:]):
        key, kw, kb = jax.random.split(key, 3)
        bound = 1.0 / math.sqrt(fan_in)
        w = jax.random.uniform(kw, (fan_in, fan_out), jnp.float32, -bound, bound)
        b = jax.random.uniform(kb, (1, fan_out), jnp.float32, -bound, bound)
        params.append((w, b))
    return params


def generator_mlp_forward(z, params):
    """z: [B, z_dim] float32 -> image [B, 1, 28, 28] (NCHW, values in (-1, 1))."""
    cfg = _device_config()
    tb, out_pad = cfg["tb"], cfg["out_pad"]

    B = z.shape[0]
    # Small-batch path: clamp the tile so tiny batches don't pay for padding.
    tb = min(tb, max(128, _round_up(B, 128)))
    n_tiles = pl.cdiv(B, tb)
    # Megacore: give the "parallel" batch axis >= 2 grid steps on 2-TC chips.
    if cfg["multi_core"] and n_tiles == 1 and tb % 256 == 0:
        tb //= 2
        n_tiles = 2
    B_pad = n_tiles * tb

    z_p = jnp.zeros((B_pad, Z_DIM), jnp.float32).at[:B].set(z.astype(jnp.float32))

    flat = []
    in_specs = [pl.BlockSpec((tb, Z_DIM), lambda i: (i, 0))]
    n_layers = len(params)
    for li, (w, b) in enumerate(params):
        if li == n_layers - 1:
            # Zero-pad the 784-wide output layer for full MXU tiles and
            # lane-dense (unmasked) output stores.
            w = jnp.pad(w, ((0, 0), (0, out_pad - w.shape[1])))
            b = jnp.pad(b, ((0, 0), (0, out_pad - b.shape[1])))
        w_c = w.astype(jnp.float32 if li < N_F32_LAYERS else jnp.bfloat16)
        b_c = b.astype(jnp.float32)
        flat.extend([w_c, b_c])
        # Constant index_map => weights/biases loaded once and kept resident.
        in_specs.append(pl.BlockSpec(w_c.shape, lambda i: (0, 0)))
        in_specs.append(pl.BlockSpec(b_c.shape, lambda i: (0, 0)))

    out = pl.pallas_call(
        generator_mlp_kernel,
        out_shape=jax.ShapeDtypeStruct((B_pad, out_pad), jnp.bfloat16),
        grid_spec=pltpu.PrefetchScalarGridSpec(
            num_scalar_prefetch=0,
            grid=(n_tiles,),
            in_specs=in_specs,
            out_specs=pl.BlockSpec((tb, out_pad), lambda i: (i, 0)),
        ),
        compiler_params=pltpu.CompilerParams(
            dimension_semantics=("parallel",),
            vmem_limit_bytes=cfg["vmem"],
        ),
    )(z_p, *flat)

    # Module returns float32 images; drop batch/lane padding and cast back.
    return out[:B, :OUT_DIM].astype(jnp.float32).reshape(B, *OUTPUT_SHAPE)


def generator_mlp_reference(z, params):
    """Pure-JAX f32 reference matching the PyTorch forward (eval mode)."""
    x = z
    n = len(params)
    for i, (w, b) in enumerate(params):
        x = x @ w + b
        if i < n - 1:
            x = jnp.where(x >= 0, x, ALPHA * x)
        else:
            x = jnp.tanh(x)
    return x.reshape(-1, *OUTPUT_SHAPE)


if __name__ == "__main__":
    key = jax.random.PRNGKey(0)
    key, kz = jax.random.split(key)

    B = 8
    z = jax.random.normal(kz, (B, Z_DIM), jnp.float32)
    params = init_params(key)

    out = generator_mlp_forward(z, params)
    out = jax.block_until_ready(out)

    ref = generator_mlp_reference(z, params)
    assert out.shape == (B, *OUTPUT_SHAPE), out.shape
    # bf16 wide layers + bf16 output store (f32 accumulation) vs f32 reference
    # -> relaxed tolerance (bf16 output rounding alone contributes ~4e-3).
    max_diff = float(jnp.max(jnp.abs(out - ref)))
    assert max_diff < 2.5e-2, f"mismatch vs reference: max abs diff = {max_diff}"

    print("KERNEL_OK")
</pallas_src>

<mosaic_0001>
module attributes {stable_mosaic.version = 11 : i64} {
  func.func @generator_mlp_kernel(%arg0: i32, %arg1: memref<128x32xf32, #tpu.memory_space<vmem>>, %arg2: memref<32x128xf32, #tpu.memory_space<vmem>>, %arg3: memref<1x128xf32, #tpu.memory_space<vmem>>, %arg4: memref<128x256xf32, #tpu.memory_space<vmem>>, %arg5: memref<1x256xf32, #tpu.memory_space<vmem>>, %arg6: memref<256x512xbf16, #tpu.memory_space<vmem>>, %arg7: memref<1x512xf32, #tpu.memory_space<vmem>>, %arg8: memref<512x1024xbf16, #tpu.memory_space<vmem>>, %arg9: memref<1x1024xf32, #tpu.memory_space<vmem>>, %arg10: memref<1024x1024xbf16, #tpu.memory_space<vmem>>, %arg11: memref<1x1024xf32, #tpu.memory_space<vmem>>, %arg12: memref<128x1024xbf16, #tpu.memory_space<vmem>>) attributes {dimension_semantics = [#tpu.dimension_semantics<parallel>], iteration_bounds = array<i64: 1>, scalar_prefetch = 0 : i64, scratch_operands = 0 : i64, tpu.core_type = #tpu.core_type<tc>, window_params = [{transform_indices = @transform_0, window_bounds = array<i64: 128, 32>}, {pipeline_mode = #tpu.pipeline_mode<synchronous>, transform_indices = @transform_1, window_bounds = array<i64: 32, 128>}, {pipeline_mode = #tpu.pipeline_mode<synchronous>, transform_indices = @transform_2, window_bounds = array<i64: 1, 128>}, {pipeline_mode = #tpu.pipeline_mode<synchronous>, transform_indices = @transform_3, window_bounds = array<i64: 128, 256>}, {pipeline_mode = #tpu.pipeline_mode<synchronous>, transform_indices = @transform_4, window_bounds = array<i64: 1, 256>}, {pipeline_mode = #tpu.pipeline_mode<synchronous>, transform_indices = @transform_5, window_bounds = array<i64: 256, 512>}, {pipeline_mode = #tpu.pipeline_mode<synchronous>, transform_indices = @transform_6, window_bounds = array<i64: 1, 512>}, {pipeline_mode = #tpu.pipeline_mode<synchronous>, transform_indices = @transform_7, window_bounds = array<i64: 512, 1024>}, {pipeline_mode = #tpu.pipeline_mode<synchronous>, transform_indices = @transform_8, window_bounds = array<i64: 1, 1024>}, {pipeline_mode = #tpu.pipeline_mode<synchronous>, transform_indices = @transform_9, window_bounds = array<i64: 1024, 1024>}, {pipeline_mode = #tpu.pipeline_mode<synchronous>, transform_indices = @transform_10, window_bounds = array<i64: 1, 1024>}, {transform_indices = @transform_11, window_bounds = array<i64: 128, 1024>}]} {
    %c0 = arith.constant 0 : index
    %c0_0 = arith.constant 0 : index
    %0 = vector.load %arg1[%c0, %c0_0] : memref<128x32xf32, #tpu.memory_space<vmem>>, vector<128x32xf32>
    %c0_1 = arith.constant 0 : index
    %c0_2 = arith.constant 0 : index
    %1 = vector.load %arg2[%c0_1, %c0_2] : memref<32x128xf32, #tpu.memory_space<vmem>>, vector<32x128xf32>
    %c0_3 = arith.constant 0 : index
    %c0_4 = arith.constant 0 : index
    %2 = vector.load %arg3[%c0_3, %c0_4] : memref<1x128xf32, #tpu.memory_space<vmem>>, vector<1x128xf32>
    %cst = arith.constant dense<0.000000e+00> : vector<128x128xf32>
    %3 = tpu.matmul %0, %1, %cst {dimension_numbers = #tpu.dot_dimension_numbers<[1], [0], [0], [1], [0, 0, 1, 1], [], []>} : vector<128x32xf32>, vector<32x128xf32>, vector<128x128xf32> -> vector<128x128xf32>
    %4 = vector.broadcast %2 : vector<1x128xf32> to vector<128x128xf32>
    %5 = arith.addf %3, %4 : vector<128x128xf32>
    %cst_5 = arith.constant 0.000000e+00 : f32
    %6 = vector.broadcast %cst_5 : f32 to vector<128x128xf32>
    %7 = arith.cmpf oge, %5, %6 : vector<128x128xf32>
    %cst_6 = arith.constant 2.000000e-01 : f32
    %8 = vector.broadcast %cst_6 : f32 to vector<128x128xf32>
    %9 = arith.mulf %8, %5 : vector<128x128xf32>
    %10 = arith.select %7, %5, %9 : vector<128x128xi1>, vector<128x128xf32>
    %c0_7 = arith.constant 0 : index
    %c0_8 = arith.constant 0 : index
    %11 = vector.load %arg4[%c0_7, %c0_8] : memref<128x256xf32, #tpu.memory_space<vmem>>, vector<128x256xf32>
    %c0_9 = arith.constant 0 : index
    %c0_10 = arith.constant 0 : index
    %12 = vector.load %arg5[%c0_9, %c0_10] : memref<1x256xf32, #tpu.memory_space<vmem>>, vector<1x256xf32>
    %cst_11 = arith.constant dense<0.000000e+00> : vector<128x256xf32>
    %13 = tpu.matmul %10, %11, %cst_11 {dimension_numbers = #tpu.dot_dimension_numbers<[1], [0], [0], [1], [0, 0, 1, 1], [], []>} : vector<128x128xf32>, vector<128x256xf32>, vector<128x256xf32> -> vector<128x256xf32>
    %14 = vector.broadcast %12 : vector<1x256xf32> to vector<128x256xf32>
    %15 = arith.addf %13, %14 : vector<128x256xf32>
    %cst_12 = arith.constant 0.000000e+00 : f32
    %16 = vector.broadcast %cst_12 : f32 to vector<128x256xf32>
    %17 = arith.cmpf oge, %15, %16 : vector<128x256xf32>
    %cst_13 = arith.constant 2.000000e-01 : f32
    %18 = vector.broadcast %cst_13 : f32 to vector<128x256xf32>
    %19 = arith.mulf %18, %15 : vector<128x256xf32>
    %20 = arith.select %17, %15, %19 : vector<128x256xi1>, vector<128x256xf32>
    %c0_14 = arith.constant 0 : index
    %c0_15 = arith.constant 0 : index
    %21 = vector.load %arg6[%c0_14, %c0_15] : memref<256x512xbf16, #tpu.memory_space<vmem>>, vector<256x512xbf16>
    %c0_16 = arith.constant 0 : index
    %c0_17 = arith.constant 0 : index
    %22 = vector.load %arg7[%c0_16, %c0_17] : memref<1x512xf32, #tpu.memory_space<vmem>>, vector<1x512xf32>
    %23 = arith.truncf %20 : vector<128x256xf32> to vector<128x256xbf16>
    %cst_18 = arith.constant dense<0.000000e+00> : vector<128x512xf32>
    %24 = tpu.matmul %23, %21, %cst_18 {dimension_numbers = #tpu.dot_dimension_numbers<[1], [0], [0], [1], [0, 0, 1, 1], [], []>} : vector<128x256xbf16>, vector<256x512xbf16>, vector<128x512xf32> -> vector<128x512xf32>
    %25 = vector.broadcast %22 : vector<1x512xf32> to vector<128x512xf32>
    %26 = arith.addf %24, %25 : vector<128x512xf32>
    %cst_19 = arith.constant 0.000000e+00 : f32
    %27 = vector.broadcast %cst_19 : f32 to vector<128x512xf32>
    %28 = arith.cmpf oge, %26, %27 : vector<128x512xf32>
    %cst_20 = arith.constant 2.000000e-01 : f32
    %29 = vector.broadcast %cst_20 : f32 to vector<128x512xf32>
    %30 = arith.mulf %29, %26 : vector<128x512xf32>
    %31 = arith.select %28, %26, %30 : vector<128x512xi1>, vector<128x512xf32>
    %c0_21 = arith.constant 0 : index
    %c0_22 = arith.constant 0 : index
    %32 = vector.load %arg8[%c0_21, %c0_22] : memref<512x1024xbf16, #tpu.memory_space<vmem>>, vector<512x1024xbf16>
    %c0_23 = arith.constant 0 : index
    %c0_24 = arith.constant 0 : index
    %33 = vector.load %arg9[%c0_23, %c0_24] : memref<1x1024xf32, #tpu.memory_space<vmem>>, vector<1x1024xf32>
    %34 = arith.truncf %31 : vector<128x512xf32> to vector<128x512xbf16>
    %cst_25 = arith.constant dense<0.000000e+00> : vector<128x1024xf32>
    %35 = tpu.matmul %34, %32, %cst_25 {dimension_numbers = #tpu.dot_dimension_numbers<[1], [0], [0], [1], [0, 0, 1, 1], [], []>} : vector<128x512xbf16>, vector<512x1024xbf16>, vector<128x1024xf32> -> vector<128x1024xf32>
    %36 = vector.broadcast %33 : vector<1x1024xf32> to vector<128x1024xf32>
    %37 = arith.addf %35, %36 : vector<128x1024xf32>
    %cst_26 = arith.constant 0.000000e+00 : f32
    %38 = vector.broadcast %cst_26 : f32 to vector<128x1024xf32>
    %39 = arith.cmpf oge, %37, %38 : vector<128x1024xf32>
    %cst_27 = arith.constant 2.000000e-01 : f32
    %40 = vector.broadcast %cst_27 : f32 to vector<128x1024xf32>
    %41 = arith.mulf %40, %37 : vector<128x1024xf32>
    %42 = arith.select %39, %37, %41 : vector<128x1024xi1>, vector<128x1024xf32>
    %c0_28 = arith.constant 0 : index
    %c0_29 = arith.constant 0 : index
    %43 = vector.load %arg10[%c0_28, %c0_29] : memref<1024x1024xbf16, #tpu.memory_space<vmem>>, vector<1024x1024xbf16>
    %c0_30 = arith.constant 0 : index
    %c0_31 = arith.constant 0 : index
    %44 = vector.load %arg11[%c0_30, %c0_31] : memref<1x1024xf32, #tpu.memory_space<vmem>>, vector<1x1024xf32>
    %45 = arith.truncf %42 : vector<128x1024xf32> to vector<128x1024xbf16>
    %cst_32 = arith.constant dense<0.000000e+00> : vector<128x1024xf32>
    %46 = tpu.matmul %45, %43, %cst_32 {dimension_numbers = #tpu.dot_dimension_numbers<[1], [0], [0], [1], [0, 0, 1, 1], [], []>} : vector<128x1024xbf16>, vector<1024x1024xbf16>, vector<128x1024xf32> -> vector<128x1024xf32>
    %47 = vector.broadcast %44 : vector<1x1024xf32> to vector<128x1024xf32>
    %48 = arith.addf %46, %47 : vector<128x1024xf32>
    %49 = math.tanh %48 : vector<128x1024xf32>
    %50 = arith.truncf %49 : vector<128x1024xf32> to vector<128x1024xbf16>
    %c0_33 = arith.constant 0 : index
    %c0_34 = arith.constant 0 : index
    %51 = vector.load %arg12[%c0_33, %c0_34] : memref<128x1024xbf16, #tpu.memory_space<vmem>>, vector<128x1024xbf16>
    tpu.vector_store %arg12[%c0_33, %c0_34], %50 {strides = array<i32>} : memref<128x1024xbf16, #tpu.memory_space<vmem>>, vector<128x1024xbf16>,
    return
  }
  func.func @transform_0(%arg0: i32) -> (i32, i32) {
    %c0_i32 = arith.constant 0 : i32
    %c0_i32_0 = arith.constant 0 : i32
    return %arg0, %c0_i32 : i32, i32
  }
  func.func @transform_1(%arg0: i32) -> (i32, i32) {
    %c0_i32 = arith.constant 0 : i32
    %c0_i32_0 = arith.constant 0 : i32
    %c0_i32_1 = arith.constant 0 : i32
    return %c0_i32, %c0_i32_0 : i32, i32
  }
  func.func @transform_2(%arg0: i32) -> (i32, i32) {
    %c0_i32 = arith.constant 0 : i32
    %c0_i32_0 = arith.constant 0 : i32
    %c0_i32_1 = arith.constant 0 : i32
    return %c0_i32, %c0_i32_0 : i32, i32
  }
  func.func @transform_3(%arg0: i32) -> (i32, i32) {
    %c0_i32 = arith.constant 0 : i32
    %c0_i32_0 = arith.constant 0 : i32
    %c0_i32_1 = arith.constant 0 : i32
    return %c0_i32, %c0_i32_0 : i32, i32
  }
  func.func @transform_4(%arg0: i32) -> (i32, i32) {
    %c0_i32 = arith.constant 0 : i32
    %c0_i32_0 = arith.constant 0 : i32
    %c0_i32_1 = arith.constant 0 : i32
    return %c0_i32, %c0_i32_0 : i32, i32
  }
  func.func @transform_5(%arg0: i32) -> (i32, i32) {
    %c0_i32 = arith.constant 0 : i32
    %c0_i32_0 = arith.constant 0 : i32
    %c0_i32_1 = arith.constant 0 : i32
    return %c0_i32, %c0_i32_0 : i32, i32
  }
  func.func @transform_6(%arg0: i32) -> (i32, i32) {
    %c0_i32 = arith.constant 0 : i32
    %c0_i32_0 = arith.constant 0 : i32
    %c0_i32_1 = arith.constant 0 : i32
    return %c0_i32, %c0_i32_0 : i32, i32
  }
  func.func @transform_7(%arg0: i32) -> (i32, i32) {
    %c0_i32 = arith.constant 0 : i32
    %c0_i32_0 = arith.constant 0 : i32
    %c0_i32_1 = arith.constant 0 : i32
    return %c0_i32, %c0_i32_0 : i32, i32
  }
  func.func @transform_8(%arg0: i32) -> (i32, i32) {
    %c0_i32 = arith.constant 0 : i32
    %c0_i32_0 = arith.constant 0 : i32
    %c0_i32_1 = arith.constant 0 : i32
    return %c0_i32, %c0_i32_0 : i32, i32
  }
  func.func @transform_9(%arg0: i32) -> (i32, i32) {
    %c0_i32 = arith.constant 0 : i32
    %c0_i32_0 = arith.constant 0 : i32
    %c0_i32_1 = arith.constant 0 : i32
    return %c0_i32, %c0_i32_0 : i32, i32
  }
  func.func @transform_10(%arg0: i32) -> (i32, i32) {
    %c0_i32 = arith.constant 0 : i32
    %c0_i32_0 = arith.constant 0 : i32
    %c0_i32_1 = arith.constant 0 : i32
    return %c0_i32, %c0_i32_0 : i32, i32
  }
  func.func @transform_11(%arg0: i32) -> (i32, i32) {
    %c0_i32 = arith.constant 0 : i32
    %c0_i32_0 = arith.constant 0 : i32
    return %arg0, %c0_i32 : i32, i32
  }
}

</mosaic_0001>

<bundles_post_ra>
// kernel: tpu_custom_call.1
= control target key start
LH: loop header
LB: loop body
LE: loop exit
PB: predicated region body
PF: predicated region fallthrough
CT: control target
= control target key end

     0   :  { %16 = vsyncpa [#allocation3], 0  ;;  %s15760_s0 = inlined_call_operand.vmem [shape: f32[128,32], index: 0, kind: input, shape index: {}]   ;;  %s15761_s1 = inlined_call_operand.hbm [shape: f32[32,128], index: 1, kind: input, shape index: {}]   ;;  %s15762_s2 = inlined_call_operand.hbm [shape: f32[1,128], index: 2, kind: input, shape index: {}]   ;;  %s15763_s3 = inlined_call_operand.hbm [shape: f32[128,256], index: 3, kind: input, shape index: {}]   ;;  %s15764_s4 = inlined_call_operand.hbm [shape: f32[1,256], index: 4, kind: input, shape index: {}]   ;;  %s15765_s5 = inlined_call_operand.hbm [shape: bf16[256,512], index: 5, kind: input, shape index: {}]   ;;  %s15766_s6 = inlined_call_operand.hbm [shape: f32[1,512], index: 6, kind: input, shape index: {}]   ;;  %s15767_s7 = inlined_call_operand.hbm [shape: bf16[512,1024], index: 7, kind: input, shape index: {}]   ;;  %s15768_s8 = inlined_call_operand.hbm [shape: f32[1,1024], index: 8, kind: input, shape index: {}]   ;;  %s15769_s9 = inlined_call_operand.hbm [shape: bf16[1024,1024], index: 9, kind: input, shape index: {}]   ;;  %s15770_s10 = inlined_call_operand.hbm [shape: f32[1,1024], index: 10, kind: input, shape index: {}]   ;;  %s15771_s11 = inlined_call_operand.hbm [shape: bf16[128,1024], index: 11, kind: output, shape index: {}]  }
   0x1   :  { %17 = vsyncpa [#allocation6], 0 }
   0x2   :  { %18 = vsyncpa [#allocation9], 0 }
   0x3   :  { %19 = vsyncpa [#allocation12], 0 }
   0x4   :  { %20 = vsyncpa [#allocation15], 0 }
   0x5   :  { %21 = vsyncpa [#allocation18], 0 }
   0x6   :  { %22 = vsyncpa [#allocation4], 0  ;;  %s12554_s17 = smov [#allocation5]   ;;  %s12555_s19 = smov [#allocation8]  }
   0x7   :  { %s43_s18 = sshll.u32 %s12554_s17, 4  ;;  %s65_s20 = sshll.u32 %s12555_s19, 4  ;;  %s44_s18 = int_to_ptr.vmem [resolvable:$true] %s43_s18  ;;  %s66_s20 = int_to_ptr.vmem [resolvable:$true] %s65_s20 }
   0x8   :  { %s12298_s23 = scalar_lea.hbm %s15762_s2, 16 }
   0x9   :  { %p12299_p0 = scmp.ne.s32.totalorder %s15762_s2, %s12298_s23  ;;  %p12302_p1 = scmp.lt.u32.totalorder %s12298_s23, %s15762_s2 }
   0xb   :  { %p12304_p2 = pnand %p12302_p1, %p12299_p0 }
   0xd   :  { %12307 = shalt.err (!%p12304_p2)
}
   0xe   :  { %s12308_s28 = scalar_lea.vmem %s44_s18, 16  ;;  %s12312_s29 = scalar_lea.vmem %s44_s18, 32 }
   0xf   :  { %p12309_p3 = scmp.ne.s32.totalorder %s44_s18, %s12308_s28  ;;  %p12313_p4 = scmp.lt.s32.totalorder %s44_s18, %s44_s18 }
  0x10   :  { %p12314_p5 = scmp.lt.s32.totalorder %s12312_s29, %s12308_s28 }
  0x12   :  { %p12315_p6 = por %p12314_p5, %p12313_p4 }
  0x14   :  { %p12316_p7 = pnand %p12315_p6, %p12309_p3 }
  0x16   :  { %12319 = shalt.err (!%p12316_p7)
}
  0x17   :  { %46 = dma.hbm_to_vmem [thread:$0]  %s15762_s2, 16, %s44_s18, [#allocation6]  }
  0x18   :  { %s12320_s15 = scalar_lea.hbm %s15764_s4, 32 }
  0x19   :  { %p12321_p8 = scmp.ne.s32.totalorder %s15764_s4, %s12320_s15  ;;  %p12324_p9 = scmp.lt.u32.totalorder %s12320_s15, %s15764_s4 }
  0x1b   :  { %p12326_p10 = pnand %p12324_p9, %p12321_p8 }
  0x1d   :  { %12329 = shalt.err (!%p12326_p10)
}
  0x1e   :  { %s12330_s22 = scalar_lea.vmem %s66_s20, 32  ;;  %p12335_p12 = scmp.lt.s32.totalorder %s66_s20, %s66_s20 }
  0x1f   :  { %p12331_p11 = scmp.ne.s32.totalorder %s66_s20, %s12330_s22  ;;  %p12336_p13 = scmp.lt.s32.totalorder %s12330_s22, %s12330_s22 }
  0x21   :  { %p12337_p0 = por %p12336_p13, %p12335_p12 }
  0x23   :  { %p12338_p1 = pnand %p12337_p0, %p12331_p11 }
  0x25   :  { %12341 = shalt.err (!%p12338_p1)
}
  0x26   :  { %68 = dma.hbm_to_vmem [thread:$0]  %s15764_s4, 32, %s66_s20, [#allocation9]  }
  0x27   :  { %s12556_s23 = smov [#allocation11]   ;;  %s12557_s25 = smov [#allocation14]  }
  0x28   :  { %s87_s24 = sshll.u32 %s12556_s23, 4  ;;  %s109_s26 = sshll.u32 %s12557_s25, 4  ;;  %s88_s24 = int_to_ptr.vmem [resolvable:$true] %s87_s24  ;;  %s110_s26 = int_to_ptr.vmem [resolvable:$true] %s109_s26 }
  0x29   :  { %s12342_s29 = scalar_lea.hbm %s15766_s6, 64 }
  0x2a   :  { %p12343_p2 = scmp.ne.s32.totalorder %s15766_s6, %s12342_s29  ;;  %p12346_p3 = scmp.lt.u32.totalorder %s12342_s29, %s15766_s6 }
  0x2c   :  { %p12348_p4 = pnand %p12346_p3, %p12343_p2 }
  0x2e   :  { %12351 = shalt.err (!%p12348_p4)
}
  0x2f   :  { %s12352_s4 = scalar_lea.vmem %s88_s24, 64  ;;  %p12357_p6 = scmp.lt.s32.totalorder %s88_s24, %s88_s24 }
  0x30   :  { %p12353_p5 = scmp.ne.s32.totalorder %s88_s24, %s12352_s4  ;;  %p12358_p7 = scmp.lt.s32.totalorder %s12352_s4, %s12352_s4 }
  0x32   :  { %p12359_p8 = por %p12358_p7, %p12357_p6 }
  0x34   :  { %p12360_p9 = pnand %p12359_p8, %p12353_p5 }
  0x36   :  { %12363 = shalt.err (!%p12360_p9)
}
  0x37   :  { %90 = dma.hbm_to_vmem [thread:$0]  %s15766_s6, 64, %s88_s24, [#allocation12]  }
  0x38   :  { %s12364_s19 = scalar_lea.hbm %s15768_s8, 128 }
  0x39   :  { %p12365_p10 = scmp.ne.s32.totalorder %s15768_s8, %s12364_s19  ;;  %p12368_p11 = scmp.lt.u32.totalorder %s12364_s19, %s15768_s8 }
  0x3b   :  { %p12370_p12 = pnand %p12368_p11, %p12365_p10 }
  0x3d   :  { %12373 = shalt.err (!%p12370_p12)
}
  0x3e   :  { %s12374_s23 = scalar_lea.vmem %s110_s26, 128  ;;  %p12379_p0 = scmp.lt.s32.totalorder %s110_s26, %s110_s26 }
  0x3f   :  { %p12375_p13 = scmp.ne.s32.totalorder %s110_s26, %s12374_s23  ;;  %p12380_p1 = scmp.lt.s32.totalorder %s12374_s23, %s12374_s23 }
  0x41   :  { %p12381_p2 = por %p12380_p1, %p12379_p0 }
  0x43   :  { %p12382_p3 = pnand %p12381_p2, %p12375_p13 }
  0x45   :  { %12385 = shalt.err (!%p12382_p3)
}
  0x46   :  { %112 = dma.hbm_to_vmem [thread:$0]  %s15768_s8, 128, %s110_s26, [#allocation15]  }
  0x47   :  { %s12558_s25 = smov [#allocation2]   ;;  %s12386_s30 = scalar_lea.hbm %s15761_s1, 512 }
  0x48   :  { %s30_s27 = sshll.u32 %s12558_s25, 4  ;;  %p12387_p4 = scmp.ne.s32.totalorder %s15761_s1, %s12386_s30  ;;  %s31_s27 = int_to_ptr.vmem [resolvable:$true] %s30_s27 }
  0x49   :  { %p12390_p5 = scmp.lt.u32.totalorder %s12386_s30, %s15761_s1 }
  0x4b   :  { %p12392_p6 = pnand %p12390_p5, %p12387_p4 }
  0x4d   :  { %12395 = shalt.err (!%p12392_p6)
}
  0x4e   :  { %s12396_s20 = scalar_lea.vmem %s31_s27, 512  ;;  %p12401_p8 = scmp.lt.s32.totalorder %s31_s27, %s31_s27 }
  0x4f   :  { %p12397_p7 = scmp.ne.s32.totalorder %s31_s27, %s12396_s20  ;;  %p12402_p9 = scmp.lt.s32.totalorder %s12396_s20, %s12396_s20 }
  0x51   :  { %p12403_p10 = por %p12402_p9, %p12401_p8 }
  0x53   :  { %p12404_p11 = pnand %p12403_p10, %p12397_p7 }
  0x55   :  { %12407 = shalt.err (!%p12404_p11)
}
  0x56   :  { %s12559_s8 = smov 128   ;;  %s12560_s26 = smov 8  }
  0x57   :  { %36 = dma.hbm_to_vmem [thread:$0]  %s15761_s1, 512, %s31_s27, [#allocation3], %s12559_s8, %s12559_s8, %s12560_s26  }
  0x58   :  { %s12561_s17 = smov [#allocation7]   ;;  %s12408_s2 = scalar_lea.hbm %s15763_s3, 4096 }
  0x59   :  { %s52_s19 = sshll.u32 %s12561_s17, 4  ;;  %p12409_p12 = scmp.ne.s32.totalorder %s15763_s3, %s12408_s2  ;;  %s53_s19 = int_to_ptr.vmem [resolvable:$true] %s52_s19 }
  0x5a   :  { %p12412_p13 = scmp.lt.u32.totalorder %s12408_s2, %s15763_s3 }
  0x5c   :  { %p12414_p0 = pnand %p12412_p13, %p12409_p12 }
  0x5e   :  { %12417 = shalt.err (!%p12414_p0)
}
  0x5f   :  { %s12418_s25 = scalar_lea.vmem %s53_s19, 4096  ;;  %p12423_p2 = scmp.lt.s32.totalorder %s53_s19, %s53_s19 }
  0x60   :  { %p12419_p1 = scmp.ne.s32.totalorder %s53_s19, %s12418_s25  ;;  %p12424_p3 = scmp.lt.s32.totalorder %s12418_s25, %s12418_s25 }
  0x62   :  { %p12425_p4 = por %p12424_p3, %p12423_p2 }
  0x64   :  { %p12426_p5 = pnand %p12425_p4, %p12419_p1 }
  0x66   :  { %12429 = shalt.err (!%p12426_p5)
}
  0x67   :  { %s12562_s1 = smov 256   ;;  %s12563_s27 = smov 16  }
  0x68   :  { %58 = dma.hbm_to_vmem [thread:$0]  %s15763_s3, 4096, %s53_s19, [#allocation6], %s12562_s1, %s12562_s1, %s12563_s27  }
  0x69   :  { %s12564_s30 = smov [#allocation10]   ;;  %s12565_s13 = smov [#allocation13]  }
  0x6a   :  { %s74_s12 = sshll.u32 %s12564_s30, 4  ;;  %s96_s14 = sshll.u32 %s12565_s13, 4  ;;  %s75_s12 = int_to_ptr.vmem [resolvable:$true] %s74_s12  ;;  %s12704_s14 = int_to_ptr.vmem [resolvable:$true] %s96_s14 }
  0x6b   :  { %s12430_s8 = scalar_lea.hbm %s15765_s5, 8192 }
  0x6c   :  { %p12431_p6 = scmp.ne.s32.totalorder %s15765_s5, %s12430_s8  ;;  %p12434_p7 = scmp.lt.u32.totalorder %s12430_s8, %s15765_s5 }
  0x6e   :  { %p12436_p8 = pnand %p12434_p7, %p12431_p6 }
  0x70   :  { %12439 = shalt.err (!%p12436_p8)
}
  0x71   :  { %s12440_s3 = scalar_lea.vmem %s75_s12, 8192  ;;  %p12445_p10 = scmp.lt.s32.totalorder %s75_s12, %s75_s12 }
  0x72   :  { %p12441_p9 = scmp.ne.s32.totalorder %s75_s12, %s12440_s3  ;;  %p12446_p11 = scmp.lt.s32.totalorder %s12440_s3, %s12440_s3 }
  0x74   :  { %p12447_p12 = por %p12446_p11, %p12445_p10 }
  0x76   :  { %p12448_p13 = pnand %p12447_p12, %p12441_p9 }
  0x78   :  { %12451 = shalt.err (!%p12448_p13)
}
  0x79   :  { %80 = dma.hbm_to_vmem [thread:$0]  %s15765_s5, 8192, %s75_s12, [#allocation9], %s12562_s1, %s12562_s1, %s12563_s27  }
  0x7a   :  { %s12452_s18 = scalar_lea.hbm %s15767_s7, 32768 }
  0x7b   :  { %p12453_p0 = scmp.ne.s32.totalorder %s15767_s7, %s12452_s18  ;;  %p12456_p1 = scmp.lt.u32.totalorder %s12452_s18, %s15767_s7 }
  0x7d   :  { %p12458_p2 = pnand %p12456_p1, %p12453_p0 }
  0x7f   :  { %12461 = shalt.err (!%p12458_p2)
}
  0x80   :  { %s12462_s28 = scalar_lea.vmem %s12704_s14, 32768  ;;  %p12467_p4 = scmp.lt.s32.totalorder %s12704_s14, %s12704_s14 }
  0x81   :  { %p12463_p3 = scmp.ne.s32.totalorder %s12704_s14, %s12462_s28  ;;  %p12468_p5 = scmp.lt.s32.totalorder %s12462_s28, %s12462_s28 }
  0x83   :  { %p12469_p6 = por %p12468_p5, %p12467_p4 }
  0x85   :  { %p12470_p7 = pnand %p12469_p6, %p12463_p3 }
  0x87   :  { %12473 = shalt.err (!%p12470_p7)
}
  0x88   :  { %s12566_s5 = smov 512   ;;  %s12567_s1 = smov 32  }
  0x89   :  { %102 = dma.hbm_to_vmem [thread:$0]  %s15767_s7, 32768, %s12704_s14, [#allocation12], %s12566_s5, %s12566_s5, %s12567_s1  }
  0x8a   :  { %s12568_s30 = smov [#allocation16]   ;;  %s12569_s13 = smov [#allocation17]  }
  0x8b   :  { %s118_s12 = sshll.u32 %s12568_s30, 4  ;;  %s131_s4 = sshll.u32 %s12569_s13, 4  ;;  %s119_s12 = int_to_ptr.vmem [resolvable:$true] %s118_s12  ;;  %s132_s4 = int_to_ptr.vmem [resolvable:$true] %s131_s4 }
  0x8c   :  { %s12474_s26 = scalar_lea.hbm %s15769_s9, 65536 }
  0x8d   :  { %p12475_p8 = scmp.ne.s32.totalorder %s15769_s9, %s12474_s26  ;;  %p12478_p9 = scmp.lt.u32.totalorder %s12474_s26, %s15769_s9 }
  0x8f   :  { %p12480_p10 = pnand %p12478_p9, %p12475_p8 }
  0x91   :  { %12483 = shalt.err (!%p12480_p10)
}
  0x92   :  { %s12484_s7 = scalar_lea.vmem %s119_s12, 65536  ;;  %p12489_p12 = scmp.lt.s32.totalorder %s119_s12, %s119_s12 }
  0x93   :  { %p12485_p11 = scmp.ne.s32.totalorder %s119_s12, %s12484_s7  ;;  %p12490_p13 = scmp.lt.s32.totalorder %s12484_s7, %s12484_s7 }
  0x95   :  { %p12491_p0 = por %p12490_p13, %p12489_p12 }
  0x97   :  { %p12492_p1 = pnand %p12491_p0, %p12485_p11 }
  0x99   :  { %12495 = shalt.err (!%p12492_p1)
}
  0x9a   :  { %124 = dma.hbm_to_vmem [thread:$0]  %s15769_s9, 65536, %s119_s12, [#allocation15], %s12566_s5, %s12566_s5, %s12567_s1  }
  0x9b   :  { %s12496_s2 = scalar_lea.hbm %s15770_s10, 128 }
  0x9c   :  { %p12497_p2 = scmp.ne.s32.totalorder %s15770_s10, %s12496_s2  ;;  %p12500_p3 = scmp.lt.u32.totalorder %s12496_s2, %s15770_s10 }
  0x9e   :  { %p12502_p4 = pnand %p12500_p3, %p12497_p2 }
  0xa0   :  { %12505 = shalt.err (!%p12502_p4)
}
  0xa1   :  { %s12506_s25 = scalar_lea.vmem %s132_s4, 128  ;;  %p12511_p6 = scmp.lt.s32.totalorder %s132_s4, %s132_s4 }
  0xa2   :  { %p12507_p5 = scmp.ne.s32.totalorder %s132_s4, %s12506_s25  ;;  %p12512_p7 = scmp.lt.s32.totalorder %s12506_s25, %s12506_s25 }
  0xa4   :  { %p12513_p8 = por %p12512_p7, %p12511_p6 }
  0xa6   :  { %p12514_p9 = pnand %p12513_p8, %p12507_p5 }
  0xa8   :  { %12517 = shalt.err (!%p12514_p9)
}
  0xa9   :  { %134 = dma.hbm_to_vmem [thread:$0]  %s15770_s10, 128, %s132_s4, [#allocation18]  }
  0xaa   :  { %12540 = dma.done.wait [#allocation3], 512  }
  0xab   :  { %12541 = vsyncadd [#allocation3], 4294966784 }
  0xac   :  { %12542 = dma.done.wait [#allocation6], 4112  }
  0xad   :  { %12543 = vsyncadd [#allocation6], 4294963184 }
  0xae   :  { %12544 = dma.done.wait [#allocation9], 8224  }
  0xaf   :  { %12545 = vsyncadd [#allocation9], 4294959072 }
  0xb0   :  { %12546 = dma.done.wait [#allocation12], 32832  }
  0xb1   :  { %12547 = vsyncadd [#allocation12], 4294934464 }
  0xb2   :  { %12548 = dma.done.wait [#allocation15], 65664  }
  0xb3   :  { %12549 = vsyncadd [#allocation15], 4294901632 }
  0xb4   :  { %12550 = dma.done.wait [#allocation18], 128  }
  0xb5   :  { %12551 = vsyncadd [#allocation18], 4294967168  ;;  %vm192_vm0 = vcmask 261120   ;;  %v181_v0 = vld [vmem:[#allocation2] sm:$0xff]  ;;  %v182_v1 = vld [vmem:[#allocation2 + $0x8] sm:$0xff] }
  0xb6   :  { %v183_v2 = vld [vmem:[#allocation2 + $0x10] sm:$0xff]  ;;  %v11086_v3 = vpack.c.bf16 %v182_v1, %v181_v0  ;;  %v184_v4 = vld [vmem:[#allocation2 + $0x18] sm:$0xff]  ;;  %v165_v5 = vld [vmem:[%s15760_s0] sm:$0xff] }
  0xb7   :  { %v11090_v6 = vpack.c.bf16 %v184_v4, %v183_v2  ;;  %11062 = vmatprep.mubr.msk.f32.mxu0 %vm192_vm0, %v165_v5  ;;  %v166_v7 = vld [vmem:[%s15760_s0 + $0x8] sm:$0xff]  ;;  %v167_v9 = vld [vmem:[%s15760_s0 + $0x10] sm:$0xff]  ;;  %v437_v10 = vld [vmem:[#allocation7 + $0x18] sm:$0xff] }
  0xb8   :  { %11087 = vmatprep.subr.bf16.mxu0 %v11086_v3  ;;  %v435_v8 = vld [vmem:[#allocation7 + $0x8] sm:$0xff]  ;;  %v434_v11 = vld [vmem:[#allocation7] sm:$0xff]  ;;  %v436_v12 = vld [vmem:[#allocation7 + $0x10] sm:$0xff] }
  0xb9   :  { %11089 = vmatpush3.bf16.msra.mxu0 %v11086_v3  ;;  %v11094_v13 = vpack.c.bf16 %v437_v10, %v435_v8  ;;  %v11096_v14 = vpack.c.bf16 %v436_v12, %v434_v11  ;;  %v439_v15 = vld [vmem:[#allocation7 + $0x28] sm:$0xff]  ;;  %v441_v16 = vld [vmem:[#allocation7 + $0x38] sm:$0xff]  ;;  %v438_v17 = vld [vmem:[#allocation7 + $0x20] sm:$0xff] }
  0xba   :  { %11091 = vmatprep.subr.bf16.mxu0 %v11090_v6  ;;  %v11098_v18 = vpack.c.bf16 %v441_v16, %v439_v15  ;;  %v440_v19 = vld [vmem:[#allocation7 + $0x30] sm:$0xff]  ;;  %v443_v20 = vld [vmem:[#allocation7 + $0x48] sm:$0xff]  ;;  %v445_v21 = vld [vmem:[#allocation7 + $0x58] sm:$0xff] }
  0xbb   :  { %11095 = vmatprep.subr.bf16.mxu1 %v11094_v13  ;;  %v11100_v22 = vpack.c.bf16 %v440_v19, %v438_v17  ;;  %v168_v23 = vld [vmem:[%s15760_s0 + $0x18] sm:$0xff]  ;;  %v11102_v24 = vpack.c.bf16 %v445_v21, %v443_v20  ;;  %v442_v25 = vld [vmem:[#allocation7 + $0x40] sm:$0xff]  ;;  %v447_v28 = vld [vmem:[#allocation7 + $0x68] sm:$0xff] }
  0xbc   :  { %11097 = vmatpush1.bf16.msra.mxu1 %v11096_v14  ;;  %v444_v26 = vld [vmem:[#allocation7 + $0x50] sm:$0xff]  ;;  %v169_v27 = vld [vmem:[%s15760_s0 + $0x20] sm:$0xff]  ;;  %v170_v30 = vld [vmem:[%s15760_s0 + $0x28] sm:$0xff] }
  0xbd   :  { %11093 = vmatpush3.bf16.msra.mxu0 %v11090_v6  ;;  %11099 = vmatprep.subr.bf16.mxu1 %v11098_v18  ;;  %v449_v29 = vld [vmem:[#allocation7 + $0x78] sm:$0xff]  ;;  %v446_v31 = vld [vmem:[#allocation7 + $0x60] sm:$0xff]  ;;  %v448_v32 = vld [vmem:[#allocation7 + $0x70] sm:$0xff]  ;;  %v11104_v34 = vpack.c.bf16 %v444_v26, %v442_v25  ;;  %v12570_v6 = vmov 0.0  }
  0xbe   :  { %v171_v33 = vld [vmem:[%s15760_s0 + $0x30] sm:$0xff]  ;;  %v453_v36 = vld [vmem:[#allocation7 + $0x98] sm:$0xff]  ;;  %v11106_v37 = vpack.c.bf16 %v449_v29, %v447_v28  ;;  %v450_v39 = vld [vmem:[#allocation7 + $0x80] sm:$0xff]  ;;  %v11108_v42 = vpack.c.bf16 %v448_v32, %v446_v31  ;;  %542 = vmatprep.mubr.f32.mxu1 %v12570_v6 }
  0xbf   :  { %v451_v35 = vld [vmem:[#allocation7 + $0x88] sm:$0xff]  ;;  %v172_v38 = vld [vmem:[%s15760_s0 + $0x38] sm:$0xff]  ;;  %v173_v41 = vld [vmem:[%s15760_s0 + $0x40] sm:$0xff] }
  0xc0   :  { %11063 = vmatmul.mubr.msk.f32.vlgmr.msra.gmra.mrb[0].mxu0 %vm192_vm0, %v166_v7  ;;  %11101 = vmatpush1.bf16.msra.mxu1 %v11100_v22  ;;  %v452_v40 = vld [vmem:[#allocation7 + $0x90] sm:$0xff]  ;;  %v455_v43 = vld [vmem:[#allocation7 + $0xa8] sm:$0xff]  ;;  %v457_v44 = vld [vmem:[#allocation7 + $0xb8] sm:$0xff]  ;;  %v11110_v45 = vpack.c.bf16 %v453_v36, %v451_v35 }
  0xc1   :  { %11065 = vmatprep.mubr.msk.f32.mxu0 %vm192_vm0, %v167_v9  ;;  %11103 = vmatprep.subr.bf16.mxu1 %v11102_v24  ;;  %v174_v46 = vld [vmem:[%s15760_s0 + $0x48] sm:$0xff]  ;;  %v456_v48 = vld [vmem:[#allocation7 + $0xb0] sm:$0xff]  ;;  %v11112_v50 = vpack.c.bf16 %v452_v40, %v450_v39  ;;  %v461_v52 = vld [vmem:[#allocation7 + $0xd8] sm:$0xff]  ;;  %v11114_v53 = vpack.c.bf16 %v457_v44, %v455_v43 }
  0xc2   :  { %v454_v47 = vld [vmem:[#allocation7 + $0xa0] sm:$0xff]  ;;  %v175_v49 = vld [vmem:[%s15760_s0 + $0x50] sm:$0xff]  ;;  %v176_v54 = vld [vmem:[%s15760_s0 + $0x58] sm:$0xff] }
  0xc3   :  { %v459_v51 = vld [vmem:[#allocation7 + $0xc8] sm:$0xff]  ;;  %v177_v55 = vld [vmem:[%s15760_s0 + $0x60] sm:$0xff]  ;;  %v11116_v56 = vpack.c.bf16 %v456_v48, %v454_v47  ;;  %v180_v60 = vld [vmem:[%s15760_s0 + $0x78] sm:$0xff] }
  0xc4   :  { %11066 = vmatmul.mubr.msk.f32.gmra.mrb[2].mxu0 %vm192_vm0, %v168_v23  ;;  %11105 = vmatpush1.bf16.msra.mxu1 %v11104_v34  ;;  %v11118_v57 = vpack.c.bf16 %v461_v52, %v459_v51  ;;  %v178_v58 = vld [vmem:[%s15760_s0 + $0x68] sm:$0xff]  ;;  %v179_v59 = vld [vmem:[%s15760_s0 + $0x70] sm:$0xff]  ;;  %v465_v1 = vld [vmem:[#allocation7 + $0xf8] sm:$0xff]  ;;  %s12571_s0 = smov [#allocation19]  }
  0xc5   :  { %11068 = vmatprep.mubr.msk.f32.mxu0 %vm192_vm0, %v169_v27  ;;  %11107 = vmatprep.subr.bf16.mxu1 %v11106_v37  ;;  %v458_v61 = vld [vmem:[#allocation7 + $0xc0] sm:$0xff]  ;;  %v460_v62 = vld [vmem:[#allocation7 + $0xd0] sm:$0xff]  ;;  %v463_v0 = vld [vmem:[#allocation7 + $0xe8] sm:$0xff]  ;;  %s10040_s13 = sshll.u32 %s12571_s0, 4  ;;  %s10041_s13 = int_to_ptr.vmem [resolvable:$true] %s10040_s13 }
  0xc6   :  { %v11120_v63 = vpack.c.bf16 %v460_v62, %v458_v61  ;;  %v11122_v2 = vpack.c.bf16 %v465_v1, %v463_v0  ;;  %v462_v3 = vld [vmem:[#allocation7 + $0xe0] sm:$0xff]  ;;  %v464_v4 = vld [vmem:[#allocation7 + $0xf0] sm:$0xff]  ;;  %v12830_v34 = vld [vmem:[#allocation5] ss:$0 sm:$0xff]  ;;  %s12518_s4 = scalar_lea.vmem %s10041_s13, 8192  ;;  %p12523_p11 = scmp.lt.s32.totalorder %s10041_s13, %s10041_s13 }
  0xc7   :  { %v11124_v5 = vpack.c.bf16 %v464_v4, %v462_v3  ;;  %v11944_v7 = vld [vmem:[#allocation10] ss:$16 sps:$4 sm:$0xff]   ;;  %v11946_v8 = vld [vmem:[#allocation10 + $0x4] ss:$16 sps:$4 sm:$0xff]   ;;  %v11949_v9 = vld [vmem:[#allocation10 + $0xc] ss:$16 sps:$4 sm:$0xff]   ;;  %p12519_p10 = scmp.ne.s32.totalorder %s10041_s13, %s12518_s4  ;;  %p12524_p12 = scmp.lt.s32.totalorder %s12518_s4, %s12518_s4 }
  0xc8   :  { %11069 = vmatmul.mubr.msk.f32.gmra.mrb[4].mxu0 %vm192_vm0, %v170_v30  ;;  %11109 = vmatpush1.bf16.msra.mxu1 %v11108_v42  ;;  %v11952_v10 = vld [vmem:[#allocation10 + $0x24] ss:$16 sps:$4 sm:$0xff]   ;;  %v11950_v11 = vld [vmem:[#allocation10 + $0x20] ss:$16 sps:$4 sm:$0xff]   ;;  %v11955_v43 = vld [vmem:[#allocation10 + $0x2c] ss:$16 sps:$4 sm:$0xff]  }
  0xc9   :  { %11071 = vmatprep.mubr.msk.f32.mxu0 %vm192_vm0, %v171_v33  ;;  %11111 = vmatprep.subr.bf16.mxu1 %v11110_v45  ;;  %v11958_v12 = vld [vmem:[#allocation10 + $0x44] ss:$16 sps:$4 sm:$0xff]   ;;  %v11956_v13 = vld [vmem:[#allocation10 + $0x40] ss:$16 sps:$4 sm:$0xff]   ;;  %v11953_v48 = vld [vmem:[#allocation10 + $0x28] ss:$16 sps:$4 sm:$0xff]   ;;  %p12525_p13 = por %p12524_p12, %p12523_p11 }
  0xca   :  { %1157 = vmatprep.subr.bf16.mxu0 %v11946_v8  ;;  %v11964_v14 = vld [vmem:[#allocation10 + $0x64] ss:$16 sps:$4 sm:$0xff]   ;;  %v11962_v15 = vld [vmem:[#allocation10 + $0x60] ss:$16 sps:$4 sm:$0xff]   ;;  %v11965_v62 = vld [vmem:[#allocation10 + $0x68] ss:$16 sps:$4 sm:$0xff]  }
  0xcb   :  { %1158 = vmatpush1.bf16.msra.mxu0 %v11944_v7  ;;  %v11970_v16 = vld [vmem:[#allocation10 + $0x84] ss:$16 sps:$4 sm:$0xff]   ;;  %v11968_v17 = vld [vmem:[#allocation10 + $0x80] ss:$16 sps:$4 sm:$0xff]   ;;  %v11973_v0 = vld [vmem:[#allocation10 + $0x8c] ss:$16 sps:$4 sm:$0xff]   ;;  %p12526_p0 = pnand %p12525_p13, %p12519_p10 }
  0xcc   :  { %11072 = vmatmul.mubr.msk.f32.gmra.mrb[6].mxu0 %vm192_vm0, %v172_v38  ;;  %11113 = vmatpush1.bf16.msra.mxu1 %v11112_v50  ;;  %v11976_v18 = vld [vmem:[#allocation10 + $0xa4] ss:$16 sps:$4 sm:$0xff]   ;;  %v11974_v19 = vld [vmem:[#allocation10 + $0xa0] ss:$16 sps:$4 sm:$0xff]   ;;  %v11961_v50 = vld [vmem:[#allocation10 + $0x4c] ss:$16 sps:$4 sm:$0xff]  }
  0xcd   :  { %11074 = vmatprep.mubr.msk.f32.mxu0 %vm192_vm0, %v173_v41  ;;  %11115 = vmatprep.subr.bf16.mxu1 %v11114_v53  ;;  %v11982_v20 = vld [vmem:[#allocation10 + $0xc4] ss:$16 sps:$4 sm:$0xff]   ;;  %v11980_v21 = vld [vmem:[#allocation10 + $0xc0] ss:$16 sps:$4 sm:$0xff]   ;;  %v11947_v41 = vld [vmem:[#allocation10 + $0x8] ss:$16 sps:$4 sm:$0xff]  }
  0xce   :  { %1159 = vmatprep.subr.bf16.mxu0 %v11952_v10  ;;  %v11988_v22 = vld [vmem:[#allocation10 + $0xe4] ss:$16 sps:$4 sm:$0xff]   ;;  %v11986_v23 = vld [vmem:[#allocation10 + $0xe0] ss:$16 sps:$4 sm:$0xff]   ;;  %v11979_v8 = vld [vmem:[#allocation10 + $0xac] ss:$16 sps:$4 sm:$0xff]  }
  0xcf   :  { %1160 = vmatpush1.bf16.msra.mxu0 %v11950_v11  ;;  %v11994_v24 = vld [vmem:[#allocation10 + $0x104] ss:$16 sps:$4 sm:$0xff]   ;;  %v11992_v25 = vld [vmem:[#allocation10 + $0x100] ss:$16 sps:$4 sm:$0xff]  }
  0xd0   :  { %11075 = vmatmul.mubr.msk.f32.gmra.mrb[8].mxu0 %vm192_vm0, %v174_v46  ;;  %11117 = vmatpush1.bf16.msra.mxu1 %v11116_v56  ;;  %v12000_v26 = vld [vmem:[#allocation10 + $0x124] ss:$16 sps:$4 sm:$0xff]   ;;  %v11998_v27 = vld [vmem:[#allocation10 + $0x120] ss:$16 sps:$4 sm:$0xff]  }
  0xd1   :  { %11077 = vmatprep.mubr.msk.f32.mxu0 %vm192_vm0, %v175_v49  ;;  %11119 = vmatprep.subr.bf16.mxu1 %v11118_v57  ;;  %v12006_v28 = vld [vmem:[#allocation10 + $0x144] ss:$16 sps:$4 sm:$0xff]   ;;  %v12004_v29 = vld [vmem:[#allocation10 + $0x140] ss:$16 sps:$4 sm:$0xff]   ;;  %v11967_v57 = vld [vmem:[#allocation10 + $0x6c] ss:$16 sps:$4 sm:$0xff]  }
  0xd2   :  { %1161 = vmatprep.subr.bf16.mxu0 %v11958_v12  ;;  %v12012_v30 = vld [vmem:[#allocation10 + $0x164] ss:$16 sps:$4 sm:$0xff]   ;;  %v12010_v31 = vld [vmem:[#allocation10 + $0x160] ss:$16 sps:$4 sm:$0xff]  }
  0xd3   :  { %1162 = vmatpush1.bf16.msra.mxu0 %v11956_v13  ;;  %v12018_v32 = vld [vmem:[#allocation10 + $0x184] ss:$16 sps:$4 sm:$0xff]   ;;  %v12016_v33 = vld [vmem:[#allocation10 + $0x180] ss:$16 sps:$4 sm:$0xff]   ;;  %v11977_v13 = vld [vmem:[#allocation10 + $0xa8] ss:$16 sps:$4 sm:$0xff]  }
  0xd4   :  { %11078 = vmatmul.mubr.msk.f32.gmra.mrb[10].mxu0 %vm192_vm0, %v176_v54  ;;  %11121 = vmatpush1.bf16.msra.mxu1 %v11120_v63 }
  0xd5   :  { %11080 = vmatprep.mubr.msk.f32.mxu0 %vm192_vm0, %v177_v55  ;;  %11123 = vmatprep.subr.bf16.mxu1 %v11122_v2  ;;  %v11959_v55 = vld [vmem:[#allocation10 + $0x48] ss:$16 sps:$4 sm:$0xff]  }
  0xd6   :  { %1163 = vmatprep.subr.bf16.mxu0 %v11964_v14 }
  0xd7   :  { %1164 = vmatpush1.bf16.msra.mxu0 %v11962_v15  ;;  %v11985_v15 = vld [vmem:[#allocation10 + $0xcc] ss:$16 sps:$4 sm:$0xff]  }
  0xd8   :  { %11081 = vmatmul.mubr.msk.f32.gmra.mrb[12].mxu0 %vm192_vm0, %v178_v58  ;;  %11125 = vmatpush1.bf16.msra.mxu1 %v11124_v5  ;;  %v11971_v5 = vld [vmem:[#allocation10 + $0x88] ss:$16 sps:$4 sm:$0xff]  }
  0xd9   :  { %11083 = vmatprep.mubr.msk.f32.mxu0 %vm192_vm0, %v179_v59  ;;  %1270 = vmatprep.subr.bf16.mxu1 %v11949_v9 }
  0xda   :  { %1165 = vmatprep.subr.bf16.mxu0 %v11970_v16 }
  0xdb   :  { %1166 = vmatpush1.bf16.msra.mxu0 %v11968_v17 }
  0xdc   :  { %11084 = vmatmul.mubr.msk.f32.gmra.mrb[14].mxu0 %vm192_vm0, %v180_v60  ;;  %1167 = vmatprep.subr.bf16.mxu0 %v11976_v18 }
  0xdf   :  { %1168 = vmatpush1.bf16.msra.mxu0 %v11974_v19 }
  0xe0   :  { %1169 = vmatprep.subr.bf16.mxu0 %v11982_v20  ;;  %v11983_v20 = vld [vmem:[#allocation10 + $0xc8] ss:$16 sps:$4 sm:$0xff]  }
  0xe3   :  { %1170 = vmatpush1.bf16.msra.mxu0 %v11980_v21 }
  0xe4   :  { %1171 = vmatprep.subr.bf16.mxu0 %v11988_v22  ;;  %v11991_v22 = vld [vmem:[#allocation10 + $0xec] ss:$16 sps:$4 sm:$0xff]  }
  0xe7   :  { %1172 = vmatpush1.bf16.msra.mxu0 %v11986_v23 }
  0xe8   :  { %1173 = vmatprep.subr.bf16.mxu0 %v11994_v24 }
  0xeb   :  { %1174 = vmatpush1.bf16.msra.mxu0 %v11992_v25 }
  0xec   :  { %1175 = vmatprep.subr.bf16.mxu0 %v12000_v26  ;;  %v11989_v26 = vld [vmem:[#allocation10 + $0xe8] ss:$16 sps:$4 sm:$0xff]  }
  0xef   :  { %1176 = vmatpush1.bf16.msra.mxu0 %v11998_v27  ;;  %v11997_v27 = vld [vmem:[#allocation10 + $0x10c] ss:$16 sps:$4 sm:$0xff]  }
  0xf0   :  { %1177 = vmatprep.subr.bf16.mxu0 %v12006_v28 }
  0xf3   :  { %1178 = vmatpush1.bf16.msra.mxu0 %v12004_v29 }
  0xf4   :  { %1179 = vmatprep.subr.bf16.mxu0 %v12012_v30 }
  0xf7   :  { %1180 = vmatpush1.bf16.msra.mxu0 %v12010_v31  ;;  %v11995_v31 = vld [vmem:[#allocation10 + $0x108] ss:$16 sps:$4 sm:$0xff]  }
  0xf8   :  { %1181 = vmatprep.subr.bf16.mxu0 %v12018_v32  ;;  %v12003_v32 = vld [vmem:[#allocation10 + $0x12c] ss:$16 sps:$4 sm:$0xff]  }
  0xfb   :  { %1182 = vmatpush1.bf16.msra.mxu0 %v12016_v33 }
 0x193   :  { %v11064_v35 = vpop.f32.mrb[0].mxu0 }
 0x194   :  { %v307_v36 = vpop.f32.mrb[1].mxu0  ;;  %v313_v37 = vadd.f32 %v11064_v35, %v12830_v34 }
 0x195   :  { %v308_v38 = vadd.f32 %v12830_v34, %v307_v36 }
 0x196   :  { %v403_v44 = vmul.f32 0.2, %v313_v37  ;;  %vm387_vm2 = vcmp.ge.f32.partialorder %v313_v37, 0.0 }
 0x197   :  { %v402_v39 = vmul.f32 0.2, %v308_v38  ;;  %v11067_v40 = vpop.f32.mrb[2].mxu0  ;;  %vm386_vm1 = vcmp.ge.f32.partialorder %v308_v38, 0.0 }
 0x198   :  { %v317_v42 = vpop.f32.mrb[3].mxu0  ;;  %v323_v51 = vadd.f32 %v11067_v40, %v12830_v34  ;;  %v419_v53 = vsel %vm387_vm2, %v313_v37, %v403_v44  ;;  %v12001_v37 = vld [vmem:[#allocation10 + $0x128] ss:$16 sps:$4 sm:$0xff]  }
 0x199   :  { %v318_v45 = vadd.f32 %v12830_v34, %v317_v42  ;;  %v418_v46 = vsel %vm386_vm1, %v308_v38, %v402_v39  ;;  %v12009_v38 = vld [vmem:[#allocation10 + $0x14c] ss:$16 sps:$4 sm:$0xff]   ;;  %v12007_v42 = vld [vmem:[#allocation10 + $0x148] ss:$16 sps:$4 sm:$0xff]  }
 0x19a   :  { %543 = vmatmul.mubr.f32.vlgmr.msra.gmra.mrb[0].mxu1 %v418_v46  ;;  %v405_v58 = vmul.f32 0.2, %v323_v51  ;;  %vm389_vm4 = vcmp.ge.f32.partialorder %v323_v51, 0.0 }
 0x19b   :  { %548 = vmatprep.mubr.f32.mxu1 %v12570_v6  ;;  %v11070_v47 = vpop.f32.mrb[4].mxu0  ;;  %1271 = vmatpush1.bf16.msra.mxu1 %v11947_v41  ;;  %v404_v52 = vmul.f32 0.2, %v318_v45  ;;  %vm388_vm3 = vcmp.ge.f32.partialorder %v318_v45, 0.0 }
 0x19c   :  { %v327_v49 = vpop.f32.mrb[5].mxu0  ;;  %1272 = vmatprep.subr.bf16.mxu1 %v11955_v43  ;;  %v333_v1 = vadd.f32 %v11070_v47, %v12830_v34  ;;  %v421_v3 = vsel %vm389_vm4, %v323_v51, %v405_v58  ;;  %v12015_v43 = vld [vmem:[#allocation10 + $0x16c] ss:$16 sps:$4 sm:$0xff]   ;;  %v12013_v47 = vld [vmem:[#allocation10 + $0x168] ss:$16 sps:$4 sm:$0xff]  }
 0x19d   :  { %v328_v59 = vadd.f32 %v12830_v34, %v327_v49  ;;  %v420_v60 = vsel %vm388_vm3, %v318_v45, %v404_v52  ;;  %v12019_v52 = vld [vmem:[#allocation10 + $0x188] ss:$16 sps:$4 sm:$0xff]  }
 0x19e   :  { %549 = vmatmul.mubr.f32.gmra.mrb[2].mxu1 %v419_v53  ;;  %v407_v9 = vmul.f32 0.2, %v333_v1  ;;  %vm391_vm6 = vcmp.ge.f32.partialorder %v333_v1, 0.0 }
 0x19f   :  { %554 = vmatprep.mubr.f32.mxu1 %v12570_v6  ;;  %v11073_v54 = vpop.f32.mrb[6].mxu0  ;;  %1273 = vmatpush1.bf16.msra.mxu1 %v11953_v48  ;;  %v406_v2 = vmul.f32 0.2, %v328_v59  ;;  %vm390_vm5 = vcmp.ge.f32.partialorder %v328_v59, 0.0  ;;  %v12021_v48 = vld [vmem:[#allocation10 + $0x18c] ss:$16 sps:$4 sm:$0xff]  }
 0x1a0   :  { %v337_v56 = vpop.f32.mrb[7].mxu0  ;;  %1274 = vmatprep.subr.bf16.mxu1 %v11961_v50  ;;  %v343_v16 = vadd.f32 %v11073_v54, %v12830_v34  ;;  %v423_v18 = vsel %vm391_vm6, %v333_v1, %v407_v9  ;;  %v12025_v1 = vld [vmem:[#allocation10 + $0x1a8] ss:$16 sps:$4 sm:$0xff]  }
 0x1a1   :  { %v338_v10 = vadd.f32 %v12830_v34, %v337_v56  ;;  %v422_v11 = vsel %vm390_vm5, %v328_v59, %v406_v2  ;;  %v12033_v2 = vld [vmem:[#allocation10 + $0x1cc] ss:$16 sps:$4 sm:$0xff]   ;;  %v12872_v9 = vld [vmem:[#allocation13] sm:$0xff] }
 0x1a2   :  { %555 = vmatmul.mubr.f32.gmra.mrb[4].mxu1 %v420_v60  ;;  %v409_v23 = vmul.f32 0.2, %v343_v16  ;;  %vm393_vm8 = vcmp.ge.f32.partialorder %v343_v16, 0.0 }
 0x1a3   :  { %560 = vmatprep.mubr.f32.mxu1 %v12570_v6  ;;  %v11076_v61 = vpop.f32.mrb[8].mxu0  ;;  %1275 = vmatpush1.bf16.msra.mxu1 %v11959_v55  ;;  %v408_v17 = vmul.f32 0.2, %v338_v10  ;;  %vm392_vm7 = vcmp.ge.f32.partialorder %v338_v10, 0.0 }
 0x1a4   :  { %v347_v63 = vpop.f32.mrb[9].mxu0  ;;  %1276 = vmatprep.subr.bf16.mxu1 %v11967_v57  ;;  %v353_v28 = vadd.f32 %v11076_v61, %v12830_v34  ;;  %v425_v30 = vsel %vm393_vm8, %v343_v16, %v409_v23 }
 0x1a5   :  { %v348_v24 = vadd.f32 %v12830_v34, %v347_v63  ;;  %v424_v25 = vsel %vm392_vm7, %v338_v10, %v408_v17  ;;  %v12027_v63 = vld [vmem:[#allocation10 + $0x1ac] ss:$16 sps:$4 sm:$0xff]   ;;  %v12874_v10 = vld [vmem:[#allocation13 + $0x20] sm:$0xff]  ;;  %v468_v17 = vlaneseq }
 0x1a6   :  { %561 = vmatmul.mubr.f32.gmra.mrb[6].mxu1 %v421_v3  ;;  %v411_v33 = vmul.f32 0.2, %v353_v28  ;;  %vm395_vm10 = vcmp.ge.f32.partialorder %v353_v28, 0.0  ;;  %v12028_v3 = vld [vmem:[#allocation10 + $0x1c0] ss:$16 sps:$4 sm:$0xff]  }
 0x1a7   :  { %566 = vmatprep.mubr.f32.mxu1 %v12570_v6  ;;  %v11079_v4 = vpop.f32.mrb[10].mxu0  ;;  %1277 = vmatpush1.bf16.msra.mxu1 %v11965_v62  ;;  %v410_v29 = vmul.f32 0.2, %v348_v24  ;;  %vm394_vm9 = vcmp.ge.f32.partialorder %v348_v24, 0.0  ;;  %v12024_v62 = vld [vmem:[#allocation10 + $0x1a4] ss:$16 sps:$4 sm:$0xff]  }
 0x1a8   :  { %v357_v7 = vpop.f32.mrb[11].mxu0  ;;  %1278 = vmatprep.subr.bf16.mxu1 %v11973_v0  ;;  %v363_v39 = vadd.f32 %v11079_v4, %v12830_v34  ;;  %v427_v41 = vsel %vm395_vm10, %v353_v28, %v411_v33  ;;  %v12022_v0 = vld [vmem:[#allocation10 + $0x1a0] ss:$16 sps:$4 sm:$0xff]   ;;  %1183 = vmatprep.subr.bf16.mxu0 %v12024_v62  ;;  %v12031_v4 = vld [vmem:[#allocation10 + $0x1c8] ss:$16 sps:$4 sm:$0xff]  }
 0x1a9   :  { %v358_v35 = vadd.f32 %v12830_v34, %v357_v7  ;;  %v426_v36 = vsel %vm394_vm9, %v348_v24, %v410_v29  ;;  %1184 = vmatpush1.bf16.msra.mxu0 %v12022_v0  ;;  %v12034_v7 = vld [vmem:[#allocation10 + $0x1e0] ss:$16 sps:$4 sm:$0xff]  }
 0x1aa   :  { %567 = vmatmul.mubr.f32.gmra.mrb[8].mxu1 %v422_v11  ;;  %v413_v44 = vmul.f32 0.2, %v363_v39  ;;  %vm397_vm12 = vcmp.ge.f32.partialorder %v363_v39, 0.0  ;;  %v12876_v11 = vld [vmem:[#allocation13 + $0x8] sm:$0xff] }
 0x1ab   :  { %572 = vmatprep.mubr.f32.mxu1 %v12570_v6  ;;  %v12844_v12 = vpop.f32.mrb[12].mxu0  ;;  %1279 = vmatpush1.bf16.msra.mxu1 %v11971_v5  ;;  %v412_v40 = vmul.f32 0.2, %v358_v35  ;;  %vm396_vm11 = vcmp.ge.f32.partialorder %v358_v35, 0.0  ;;  %v12036_v5 = vld [vmem:[#allocation10 + $0x1e4] ss:$16 sps:$4 sm:$0xff]  }
 0x1ac   :  { %v367_v14 = vpop.f32.mrb[13].mxu0  ;;  %1280 = vmatprep.subr.bf16.mxu1 %v11979_v8  ;;  %v373_v49 = vadd.f32 %v12844_v12, %v12830_v34  ;;  %v429_v51 = vsel %vm397_vm12, %v363_v39, %v413_v44  ;;  %v12037_v8 = vld [vmem:[#allocation10 + $0x1e8] ss:$16 sps:$4 sm:$0xff]   ;;  %v10138_v12 = vcombine.low %v12872_v9, %v12874_v10  ;;  %v1584_v44 = vld [vmem:[#allocation13 + $0x48] sm:$0xff] }
 0x1ad   :  { %v368_v45 = vadd.f32 %v12830_v34, %v367_v14  ;;  %v428_v46 = vsel %vm396_vm11, %v358_v35, %v412_v40  ;;  %v12882_v14 = vld [vmem:[#allocation13 + $0x28] sm:$0xff] }
 0x1ae   :  { %573 = vmatmul.mubr.f32.gmra.mrb[10].mxu1 %v423_v18  ;;  %v415_v53 = vmul.f32 0.2, %v373_v49  ;;  %vm399_vm14 = vcmp.ge.f32.partialorder %v373_v49, 0.0  ;;  %v10141_v16 = vcombine.high %v12876_v11, %v12882_v14  ;;  %v12888_v18 = vshrl.u32 %v468_v17, 7 }
 0x1af   :  { %578 = vmatprep.mubr.f32.mxu1 %v12570_v6  ;;  %v12848_v19 = vpop.f32.mrb[14].mxu0  ;;  %1281 = vmatpush1.bf16.msra.mxu1 %v11977_v13  ;;  %v414_v50 = vmul.f32 0.2, %v368_v45  ;;  %vm398_vm13 = vcmp.ge.f32.partialorder %v368_v45, 0.0  ;;  %v10139_v13 = vcombine.high %v12872_v9, %v12874_v10  ;;  %v1603_v10 = vld [vmem:[#allocation13 + $0xe0] sm:$0xff] }
 0x1b0   :  { %v12850_v21 = vpop.f32.mrb[15].mxu0  ;;  %1282 = vmatprep.subr.bf16.mxu1 %v11985_v15  ;;  %v383_v56 = vadd.f32 %v12848_v19, %v12830_v34  ;;  %v431_v58 = vsel %vm399_vm14, %v373_v49, %v415_v53  ;;  %v10140_v15 = vcombine.low %v12876_v11, %v12882_v14  ;;  %16030 = vst [vmem:[#allocation27_spill] sm:$0xff] %v12888_v18  ;;  %v12891_v19 = vsub.s32 0, %v12888_v18  ;;  %v1600_v11 = vld [vmem:[#allocation13 + $0xc8] sm:$0xff] }
 0x1b1   :  { %v378_v54 = vadd.f32 %v12830_v34, %v12850_v21  ;;  %v430_v55 = vsel %vm398_vm13, %v368_v45, %v414_v50  ;;  %v12030_v34 = vld [vmem:[#allocation10 + $0x1c4] ss:$16 sps:$4 sm:$0xff]   ;;  %v12894_v21 = vsub.s32 1, %v12888_v18  ;;  %v1588_v45 = vld [vmem:[#allocation13 + $0x68] sm:$0xff] }
 0x1b2   :  { %579 = vmatmul.mubr.f32.gmra.mrb[12].mxu1 %v424_v25  ;;  %v417_v59 = vmul.f32 0.2, %v383_v56  ;;  %vm401_vm0 = vcmp.ge.f32.partialorder %v383_v56, 0.0  ;;  %1185 = vmatprep.subr.bf16.mxu0 %v12030_v34  ;;  %16031 = vst [vmem:[#allocation28_spill] sm:$0xff] %v12891_v19  ;;  %v10149_v53 = vcombine.high %v1584_v44, %v1588_v45 }
 0x1b3   :  { %584 = vmatprep.mubr.f32.mxu1 %v12570_v6  ;;  %1283 = vmatpush1.bf16.msra.mxu1 %v11983_v20  ;;  %v416_v57 = vmul.f32 0.2, %v378_v54  ;;  %vm400_vm15 = vcmp.ge.f32.partialorder %v378_v54, 0.0  ;;  %v466_v20 = vld [vmem:[#allocation8] sm:$0x3]  ;;  %16032 = vst [vmem:[#allocation29_spill] sm:$0xff] %v12894_v21 }
 0x1b4   :  { %1284 = vmatprep.subr.bf16.mxu1 %v11991_v22  ;;  %v433_v61 = vsel %vm401_vm0, %v383_v56, %v417_v59  ;;  %1186 = vmatpush1.bf16.msra.mxu0 %v12028_v3  ;;  %v12897_v22 = vrot.slane %v466_v20, %v12891_v19  ;;  %v12900_v23 = vrot.slane %v466_v20, %v12894_v21  ;;  %v1592_v59 = vld [vmem:[#allocation13 + $0x88] sm:$0xff] }
 0x1b5   :  { %v432_v60 = vsel %vm400_vm15, %v378_v54, %v416_v57  ;;  %1187 = vmatprep.subr.bf16.mxu0 %v12036_v5  ;;  %v12909_v54 = vld [vmem:[#allocation13 + $0x80] sm:$0xff] }
 0x1b6   :  { %585 = vmatmul.mubr.f32.gmra.mrb[14].mxu1 %v425_v30  ;;  %v12917_v5 = vld [vmem:[#allocation13 + $0xc0] sm:$0xff] }
 0x1b7   :  { %590 = vmatprep.mubr.f32.mxu1 %v12570_v6  ;;  %1285 = vmatpush1.bf16.msra.mxu1 %v11989_v26 }
 0x1b8   :  { %1286 = vmatprep.subr.bf16.mxu1 %v11997_v27  ;;  %1188 = vmatpush1.bf16.msra.mxu0 %v12034_v7 }
 0x1b9   :  { %3185 = vmatprep.subr.bf16.mxu0 %v10139_v13 }
 0x1ba   :  { %591 = vmatmul.mubr.f32.gmra.mrb[16].mxu1 %v426_v36 }
 0x1bb   :  { %596 = vmatprep.mubr.f32.mxu1 %v12570_v6  ;;  %1287 = vmatpush1.bf16.msra.mxu1 %v11995_v31 }
 0x1bc   :  { %1288 = vmatprep.subr.bf16.mxu1 %v12003_v32 }
 0x1be   :  { %597 = vmatmul.mubr.f32.gmra.mrb[18].mxu1 %v427_v41 }
 0x1bf   :  { %602 = vmatprep.mubr.f32.mxu1 %v12570_v6  ;;  %1289 = vmatpush1.bf16.msra.mxu1 %v12001_v37 }
 0x1c0   :  { %1290 = vmatprep.subr.bf16.mxu1 %v12009_v38  ;;  %v1583_v38 = vld [vmem:[#allocation13 + $0x40] sm:$0xff] }
 0x1c2   :  { %603 = vmatmul.mubr.f32.gmra.mrb[20].mxu1 %v428_v46 }
 0x1c3   :  { %608 = vmatprep.mubr.f32.mxu1 %v12570_v6  ;;  %1291 = vmatpush1.bf16.msra.mxu1 %v12007_v42 }
 0x1c4   :  { %1292 = vmatprep.subr.bf16.mxu1 %v12015_v43  ;;  %v1587_v43 = vld [vmem:[#allocation13 + $0x60] sm:$0xff] }
 0x1c6   :  { %609 = vmatmul.mubr.f32.gmra.mrb[22].mxu1 %v429_v51 }
 0x1c7   :  { %614 = vmatprep.mubr.f32.mxu1 %v12570_v6  ;;  %1293 = vmatpush1.bf16.msra.mxu1 %v12013_v47 }
 0x1c8   :  { %1294 = vmatprep.subr.bf16.mxu1 %v12021_v48 }
 0x1ca   :  { %615 = vmatmul.mubr.f32.gmra.mrb[24].mxu1 %v430_v55 }
 0x1cb   :  { %620 = vmatprep.mubr.f32.mxu1 %v12570_v6  ;;  %1295 = vmatpush1.bf16.msra.mxu1 %v12019_v52  ;;  %v10147_v52 = vcombine.high %v1583_v38, %v1587_v43 }
 0x1cc   :  { %1296 = vmatprep.subr.bf16.mxu1 %v12027_v63  ;;  %v10146_v63 = vcombine.low %v1583_v38, %v1587_v43  ;;  %v10162_v38 = vcombine.low %v12917_v5, %v1603_v10 }
 0x1ce   :  { %621 = vmatmul.mubr.f32.gmra.mrb[26].mxu1 %v431_v58  ;;  %v1595_v58 = vld [vmem:[#allocation13 + $0xa0] sm:$0xff] }
 0x1cf   :  { %626 = vmatprep.mubr.f32.mxu1 %v12570_v6  ;;  %1297 = vmatpush1.bf16.msra.mxu1 %v12025_v1  ;;  %v10148_v1 = vcombine.low %v1584_v44, %v1588_v45  ;;  %v10155_v3 = vcombine.high %v12909_v54, %v1595_v58  ;;  %v10154_v20 = vcombine.low %v12909_v54, %v1595_v58  ;;  %v12933_v45 = vld [vmem:[#allocation13 + $0x140] sm:$0xff] }
 0x1d0   :  { %1298 = vmatprep.subr.bf16.mxu1 %v12033_v2 }
 0x1d2   :  { %627 = vmatmul.mubr.f32.gmra.mrb[28].mxu1 %v432_v60  ;;  %v1596_v60 = vld [vmem:[#allocation13 + $0xa8] sm:$0xff] }
 0x1d3   :  { %632 = vmatprep.mubr.f32.mxu1 %v12570_v6  ;;  %1299 = vmatpush1.bf16.msra.mxu1 %v12031_v4  ;;  %v12039_v6 = vld [vmem:[#allocation10 + $0x1ec] ss:$16 sps:$4 sm:$0xff]   ;;  %v10157_v4 = vcombine.high %v1592_v59, %v1596_v60 }
 0x1d4   :  { %1300 = vmatprep.subr.bf16.mxu1 %v12039_v6 }
 0x1d6   :  { %633 = vmatmul.mubr.f32.gmra.mrb[30].mxu1 %v433_v61 }
 0x1d7   :  { %1301 = vmatpush1.bf16.msra.mxu1 %v12037_v8 }
 0x1d8   :  { %3411 = vmatprep.subr.bf16.mxu1 %v10141_v16 }
 0x26d   :  { %v544_v24 = vpop.f32.mrb[0].mxu1 }
 0x26e   :  { %v545_v25 = vadd.f32 %v544_v24, %v12897_v22  ;;  %v546_v26 = vpop.f32.mrb[1].mxu1  ;;  %v10156_v24 = vcombine.low %v1592_v59, %v1596_v60 }
 0x26f   :  { %v547_v27 = vadd.f32 %v546_v26, %v12900_v23  ;;  %v10163_v26 = vcombine.high %v12917_v5, %v1603_v10 }
 0x270   :  { %v671_v29 = vmul.f32 0.2, %v545_v25  ;;  %vm639_vm1 = vcmp.ge.f32.partialorder %v545_v25, 0.0 }
 0x271   :  { %v550_v28 = vpop.f32.mrb[2].mxu1  ;;  %v672_v32 = vmul.f32 0.2, %v547_v27  ;;  %vm640_vm2 = vcmp.ge.f32.partialorder %v547_v27, 0.0 }
 0x272   :  { %v551_v30 = vadd.f32 %v550_v28, %v12897_v22  ;;  %v552_v31 = vpop.f32.mrb[3].mxu1  ;;  %v703_v39 = vsel %vm639_vm1, %v545_v25, %v671_v29  ;;  %v12927_v28 = vld [vmem:[#allocation13 + $0x100] sm:$0xff] }
 0x273   :  { %v553_v33 = vadd.f32 %v552_v31, %v12900_v23  ;;  %v704_v48 = vsel %vm640_vm2, %v547_v27, %v672_v32  ;;  %v1611_v32 = vld [vmem:[#allocation13 + $0x120] sm:$0xff] }
 0x274   :  { %vm641_vm3 = vcmp.ge.f32.partialorder %v551_v30, 0.0  ;;  %v673_v35 = vmul.f32 0.2, %v551_v30  ;;  %v10171_v43 = vcombine.high %v12927_v28, %v1611_v32  ;;  %v10170_v58 = vcombine.low %v12927_v28, %v1611_v32 }
 0x275   :  { %vm642_vm4 = vcmp.ge.f32.partialorder %v553_v33, 0.0  ;;  %v674_v36 = vmul.f32 0.2, %v553_v33  ;;  %v556_v37 = vpop.f32.mrb[4].mxu1 }
 0x276   :  { %v705_v40 = vsel %vm641_vm3, %v551_v30, %v673_v35  ;;  %v557_v41 = vadd.f32 %v556_v37, %v12897_v22  ;;  %v558_v42 = vpop.f32.mrb[5].mxu1  ;;  %v1612_v35 = vld [vmem:[#allocation13 + $0x128] sm:$0xff] }
 0x277   :  { %v800_v46 = vpack.c.bf16 %v705_v40, %v703_v39  ;;  %v559_v47 = vadd.f32 %v558_v42, %v12900_v23  ;;  %v706_v49 = vsel %vm642_vm4, %v553_v33, %v674_v36  ;;  %v1608_v33 = vld [vmem:[#allocation13 + $0x108] sm:$0xff] }
 0x278   :  { %v801_v50 = vpack.c.bf16 %v706_v49, %v704_v48  ;;  %v675_v55 = vmul.f32 0.2, %v557_v41  ;;  %vm643_vm5 = vcmp.ge.f32.partialorder %v557_v41, 0.0  ;;  %v10173_v44 = vcombine.high %v1608_v33, %v1612_v35 }
 0x279   :  { %v562_v51 = vpop.f32.mrb[6].mxu1  ;;  %v676_v61 = vmul.f32 0.2, %v559_v47  ;;  %vm644_vm6 = vcmp.ge.f32.partialorder %v559_v47, 0.0  ;;  %v10172_v59 = vcombine.low %v1608_v33, %v1612_v35 }
 0x27a   :  { %v563_v56 = vadd.f32 %v562_v51, %v12897_v22  ;;  %v564_v57 = vpop.f32.mrb[7].mxu1  ;;  %1189 = vmatprep.mubr.bf16.mxu0 %v801_v50  ;;  %1302 = vmatprep.mubr.bf16.mxu1 %v801_v50  ;;  %v707_v8 = vsel %vm643_vm5, %v557_v41, %v675_v55  ;;  %v1619_v50 = vld [vmem:[#allocation13 + $0x160] sm:$0xff]  ;;  %v1616_v51 = vld [vmem:[#allocation13 + $0x148] sm:$0xff] }
 0x27b   :  { %v565_v62 = vadd.f32 %v564_v57, %v12900_v23  ;;  %1190 = vmatmul.mubr.bf16.vlgmr.msra.gmra.mrb[16].mxu0 %v800_v46  ;;  %1303 = vmatmul.mubr.bf16.vlgmr.msra.gmra.mrb[32].mxu1 %v800_v46  ;;  %v708_v14 = vsel %vm644_vm6, %v559_v47, %v676_v61  ;;  %v10179_v61 = vcombine.high %v12933_v45, %v1619_v50 }
 0x27c   :  { %vm645_vm7 = vcmp.ge.f32.partialorder %v563_v56, 0.0  ;;  %v677_v0 = vmul.f32 0.2, %v563_v56  ;;  %3186 = vmatpush1.bf16.msra.mxu0 %v10138_v12  ;;  %3412 = vmatpush1.bf16.msra.mxu1 %v10140_v15  ;;  %v1604_v12 = vld [vmem:[#allocation13 + $0xe8] sm:$0xff] }
 0x27d   :  { %vm646_vm8 = vcmp.ge.f32.partialorder %v565_v62, 0.0  ;;  %v678_v34 = vmul.f32 0.2, %v565_v62  ;;  %v568_v2 = vpop.f32.mrb[8].mxu1  ;;  %3187 = vmatprep.subr.bf16.mxu0 %v10147_v52  ;;  %3413 = vmatprep.subr.bf16.mxu1 %v10149_v53  ;;  %v10165_v27 = vcombine.high %v1600_v11, %v1604_v12  ;;  %v10164_v40 = vcombine.low %v1600_v11, %v1604_v12  ;;  %v1620_v52 = vld [vmem:[#allocation13 + $0x168] sm:$0xff] }
 0x27e   :  { %v569_v6 = vadd.f32 %v568_v2, %v12897_v22  ;;  %v570_v7 = vpop.f32.mrb[9].mxu1  ;;  %v709_v9 = vsel %vm645_vm7, %v563_v56, %v677_v0  ;;  %v1627_v2 = vld [vmem:[#allocation13 + $0x1a0] sm:$0xff] }
 0x27f   :  { %v571_v13 = vadd.f32 %v570_v7, %v12900_v23  ;;  %v710_v15 = vsel %vm646_vm8, %v565_v62, %v678_v34  ;;  %v802_v16 = vpack.c.bf16 %v709_v9, %v707_v8  ;;  %v10181_v62 = vcombine.high %v1616_v51, %v1620_v52 }
 0x280   :  { %v803_v17 = vpack.c.bf16 %v710_v15, %v708_v14  ;;  %3188 = vmatpush1.bf16.msra.mxu0 %v10146_v63  ;;  %3414 = vmatpush1.bf16.msra.mxu1 %v10148_v1  ;;  %v679_v29 = vmul.f32 0.2, %v569_v6  ;;  %vm647_vm9 = vcmp.ge.f32.partialorder %v569_v6, 0.0  ;;  %v12943_v63 = vld [vmem:[#allocation13 + $0x180] sm:$0xff]  ;;  %v10178_v7 = vcombine.low %v12933_v45, %v1619_v50 }
 0x281   :  { %v574_v25 = vpop.f32.mrb[10].mxu1  ;;  %3189 = vmatprep.subr.bf16.mxu0 %v10155_v3  ;;  %3415 = vmatprep.subr.bf16.mxu1 %v10157_v4  ;;  %v680_v36 = vmul.f32 0.2, %v571_v13  ;;  %vm648_vm10 = vcmp.ge.f32.partialorder %v571_v13, 0.0  ;;  %v1624_v3 = vld [vmem:[#allocation13 + $0x188] sm:$0xff]  ;;  %v10180_v9 = vcombine.low %v1616_v51, %v1620_v52  ;;  %v10187_v12 = vcombine.high %v12943_v63, %v1627_v2  ;;  %v12949_v14 = vld [vmem:[#allocation13 + $0x1c0] sm:$0xff] }
 0x282   :  { %v575_v30 = vadd.f32 %v574_v25, %v12897_v22  ;;  %v576_v31 = vpop.f32.mrb[11].mxu1  ;;  %1199 = vmatprep.mubr.bf16.mxu0 %v803_v17  ;;  %1312 = vmatprep.mubr.bf16.mxu1 %v803_v17  ;;  %v711_v48 = vsel %vm647_vm9, %v569_v6, %v679_v29  ;;  %v1628_v4 = vld [vmem:[#allocation13 + $0x1a8] sm:$0xff]  ;;  %v10186_v32 = vcombine.low %v12943_v63, %v1627_v2 }
 0x283   :  { %v577_v37 = vadd.f32 %v576_v31, %v12900_v23  ;;  %1200 = vmatmul.mubr.bf16.gmra.mrb[20].mxu0 %v802_v16  ;;  %1313 = vmatmul.mubr.bf16.gmra.mrb[36].mxu1 %v802_v16  ;;  %v712_v54 = vsel %vm648_vm10, %v571_v13, %v680_v36  ;;  %v10189_v13 = vcombine.high %v1624_v3, %v1628_v4  ;;  %v1632_v25 = vld [vmem:[#allocation13 + $0x1c8] sm:$0xff] }
 0x284   :  { %vm649_vm11 = vcmp.ge.f32.partialorder %v575_v30, 0.0  ;;  %v681_v39 = vmul.f32 0.2, %v575_v30  ;;  %3190 = vmatpush1.bf16.msra.mxu0 %v10154_v20  ;;  %3416 = vmatpush1.bf16.msra.mxu1 %v10156_v24  ;;  %v1635_v24 = vld [vmem:[#allocation13 + $0x1e0] sm:$0xff]  ;;  %v10188_v33 = vcombine.low %v1624_v3, %v1628_v4 }
 0x285   :  { %vm650_vm12 = vcmp.ge.f32.partialorder %v577_v37, 0.0  ;;  %v682_v41 = vmul.f32 0.2, %v577_v37  ;;  %v580_v42 = vpop.f32.mrb[12].mxu1  ;;  %3191 = vmatprep.subr.bf16.mxu0 %v10163_v26  ;;  %3417 = vmatprep.subr.bf16.mxu1 %v10165_v27  ;;  %v1636_v26 = vld [vmem:[#allocation13 + $0x1e8] sm:$0xff]  ;;  %v10195_v36 = vcombine.high %v12949_v14, %v1635_v24 }
 0x286   :  { %v581_v46 = vadd.f32 %v580_v42, %v12897_v22  ;;  %v582_v47 = vpop.f32.mrb[13].mxu1  ;;  %v713_v49 = vsel %vm649_vm11, %v575_v30, %v681_v39  ;;  %v1643_v42 = vld [vmem:[#allocation13 + $0x220] sm:$0xff] }
 0x287   :  { %v583_v53 = vadd.f32 %v582_v47, %v12900_v23  ;;  %v714_v55 = vsel %vm650_vm12, %v577_v37, %v682_v41  ;;  %v804_v56 = vpack.c.bf16 %v713_v49, %v711_v48  ;;  %v10197_v37 = vcombine.high %v1632_v25, %v1636_v26 }
 0x288   :  { %v805_v57 = vpack.c.bf16 %v714_v55, %v712_v54  ;;  %3192 = vmatpush1.bf16.msra.mxu0 %v10162_v38  ;;  %3418 = vmatpush1.bf16.msra.mxu1 %v10164_v40  ;;  %v683_v0 = vmul.f32 0.2, %v581_v46  ;;  %vm651_vm13 = vcmp.ge.f32.partialorder %v581_v46, 0.0  ;;  %v12959_v38 = vld [vmem:[#allocation13 + $0x200] sm:$0xff]  ;;  %v10194_v47 = vcombine.low %v12949_v14, %v1635_v24 }
 0x289   :  { %v586_v60 = vpop.f32.mrb[14].mxu1  ;;  %3193 = vmatprep.subr.bf16.mxu0 %v10171_v43  ;;  %3419 = vmatprep.subr.bf16.mxu1 %v10173_v44  ;;  %v684_v5 = vmul.f32 0.2, %v583_v53  ;;  %vm652_vm14 = vcmp.ge.f32.partialorder %v583_v53, 0.0  ;;  %v1640_v43 = vld [vmem:[#allocation13 + $0x208] sm:$0xff]  ;;  %v10196_v49 = vcombine.low %v1632_v25, %v1636_v26  ;;  %v10203_v52 = vcombine.high %v12959_v38, %v1643_v42  ;;  %v12965_v54 = vld [vmem:[#allocation13 + $0x240] sm:$0xff] }
 0x28a   :  { %v587_v1 = vadd.f32 %v586_v60, %v12897_v22  ;;  %v588_v34 = vpop.f32.mrb[15].mxu1  ;;  %1209 = vmatprep.mubr.bf16.mxu0 %v805_v57  ;;  %1322 = vmatprep.mubr.bf16.mxu1 %v805_v57  ;;  %v715_v17 = vsel %vm651_vm13, %v581_v46, %v683_v0  ;;  %v1644_v44 = vld [vmem:[#allocation13 + $0x228] sm:$0xff]  ;;  %v10202_v2 = vcombine.low %v12959_v38, %v1643_v42 }
 0x28b   :  { %v589_v6 = vadd.f32 %v588_v34, %v12900_v23  ;;  %1210 = vmatmul.mubr.bf16.gmra.mrb[24].mxu0 %v804_v56  ;;  %1323 = vmatmul.mubr.bf16.gmra.mrb[40].mxu1 %v804_v56  ;;  %v716_v28 = vsel %vm652_vm14, %v583_v53, %v684_v5  ;;  %v10205_v53 = vcombine.high %v1640_v43, %v1644_v44  ;;  %v1648_v60 = vld [vmem:[#allocation13 + $0x248] sm:$0xff] }
 0x28c   :  { %vm653_vm15 = vcmp.ge.f32.partialorder %v587_v1, 0.0  ;;  %v685_v8 = vmul.f32 0.2, %v587_v1  ;;  %3194 = vmatpush1.bf16.msra.mxu0 %v10170_v58  ;;  %3420 = vmatpush1.bf16.msra.mxu1 %v10172_v59  ;;  %v1651_v59 = vld [vmem:[#allocation13 + $0x260] sm:$0xff]  ;;  %v10204_v3 = vcombine.low %v1640_v43, %v1644_v44 }
 0x28d   :  { %vm654_vm0 = vcmp.ge.f32.partialorder %v589_v6, 0.0  ;;  %v686_v10 = vmul.f32 0.2, %v589_v6  ;;  %v592_v11 = vpop.f32.mrb[16].mxu1  ;;  %3195 = vmatprep.subr.bf16.mxu0 %v10179_v61  ;;  %3421 = vmatprep.subr.bf16.mxu1 %v10181_v62  ;;  %v1652_v61 = vld [vmem:[#allocation13 + $0x268] sm:$0xff]  ;;  %v10211_v5 = vcombine.high %v12965_v54, %v1651_v59 }
 0x28e   :  { %v593_v15 = vadd.f32 %v592_v11, %v12897_v22  ;;  %v594_v16 = vpop.f32.mrb[17].mxu1  ;;  %v717_v20 = vsel %vm653_vm15, %v587_v1, %v685_v8  ;;  %v1659_v11 = vld [vmem:[#allocation13 + $0x2a0] sm:$0xff] }
 0x28f   :  { %v595_v27 = vadd.f32 %v594_v16, %v12900_v23  ;;  %v718_v29 = vsel %vm654_vm0, %v589_v6, %v686_v10  ;;  %v806_v30 = vpack.c.bf16 %v717_v20, %v715_v17  ;;  %v10213_v6 = vcombine.high %v1648_v60, %v1652_v61 }
 0x290   :  { %v807_v31 = vpack.c.bf16 %v718_v29, %v716_v28  ;;  %3196 = vmatpush1.bf16.msra.mxu0 %v10178_v7  ;;  %3422 = vmatpush1.bf16.msra.mxu1 %v10180_v9  ;;  %v687_v39 = vmul.f32 0.2, %v593_v15  ;;  %vm655_vm1 = vcmp.ge.f32.partialorder %v593_v15, 0.0  ;;  %v12975_v7 = vld [vmem:[#allocation13 + $0x280] sm:$0xff]  ;;  %v10210_v16 = vcombine.low %v12965_v54, %v1651_v59 }
 0x291   :  { %v598_v35 = vpop.f32.mrb[18].mxu1  ;;  %3197 = vmatprep.subr.bf16.mxu0 %v10187_v12  ;;  %3423 = vmatprep.subr.bf16.mxu1 %v10189_v13  ;;  %v688_v45 = vmul.f32 0.2, %v595_v27  ;;  %vm656_vm2 = vcmp.ge.f32.partialorder %v595_v27, 0.0  ;;  %v1656_v12 = vld [vmem:[#allocation13 + $0x288] sm:$0xff]  ;;  %v10212_v20 = vcombine.low %v1648_v60, %v1652_v61  ;;  %v10219_v26 = vcombine.high %v12975_v7, %v1659_v11  ;;  %v1663_v28 = vld [vmem:[#allocation13 + $0x2c0] sm:$0xff] }
 0x292   :  { %v599_v40 = vadd.f32 %v598_v35, %v12897_v22  ;;  %v600_v41 = vpop.f32.mrb[19].mxu1  ;;  %1219 = vmatprep.mubr.bf16.mxu0 %v807_v31  ;;  %1332 = vmatprep.mubr.bf16.mxu1 %v807_v31  ;;  %v719_v57 = vsel %vm655_vm1, %v593_v15, %v687_v39  ;;  %v1660_v13 = vld [vmem:[#allocation13 + $0x2a8] sm:$0xff]  ;;  %v10218_v42 = vcombine.low %v12975_v7, %v1659_v11 }
 0x293   :  { %v601_v46 = vadd.f32 %v600_v41, %v12900_v23  ;;  %1220 = vmatmul.mubr.bf16.gmra.mrb[28].mxu0 %v806_v30  ;;  %1333 = vmatmul.mubr.bf16.gmra.mrb[44].mxu1 %v806_v30  ;;  %v720_v63 = vsel %vm656_vm2, %v595_v27, %v688_v45  ;;  %v10221_v27 = vcombine.high %v1656_v12, %v1660_v13  ;;  %v1664_v35 = vld [vmem:[#allocation13 + $0x2c8] sm:$0xff] }
 0x294   :  { %vm657_vm3 = vcmp.ge.f32.partialorder %v599_v40, 0.0  ;;  %v689_v48 = vmul.f32 0.2, %v599_v40  ;;  %3198 = vmatpush1.bf16.msra.mxu0 %v10186_v32  ;;  %3424 = vmatpush1.bf16.msra.mxu1 %v10188_v33  ;;  %v1667_v33 = vld [vmem:[#allocation13 + $0x2e0] sm:$0xff]  ;;  %v10220_v43 = vcombine.low %v1656_v12, %v1660_v13 }
 0x295   :  { %vm658_vm4 = vcmp.ge.f32.partialorder %v601_v46, 0.0  ;;  %v690_v50 = vmul.f32 0.2, %v601_v46  ;;  %v604_v51 = vpop.f32.mrb[20].mxu1  ;;  %3199 = vmatprep.subr.bf16.mxu0 %v10195_v36  ;;  %3425 = vmatprep.subr.bf16.mxu1 %v10197_v37  ;;  %v1668_v36 = vld [vmem:[#allocation13 + $0x2e8] sm:$0xff]  ;;  %v10227_v45 = vcombine.high %v1663_v28, %v1667_v33 }
 0x296   :  { %v605_v55 = vadd.f32 %v604_v51, %v12897_v22  ;;  %v606_v56 = vpop.f32.mrb[21].mxu1  ;;  %v721_v58 = vsel %vm657_vm3, %v599_v40, %v689_v48  ;;  %v1675_v51 = vld [vmem:[#allocation13 + $0x320] sm:$0xff] }
 0x297   :  { %v607_v62 = vadd.f32 %v606_v56, %v12900_v23  ;;  %v722_v0 = vsel %vm658_vm4, %v601_v46, %v690_v50  ;;  %v808_v1 = vpack.c.bf16 %v721_v58, %v719_v57  ;;  %v10229_v46 = vcombine.high %v1664_v35, %v1668_v36 }
 0x298   :  { %v809_v34 = vpack.c.bf16 %v722_v0, %v720_v63  ;;  %3200 = vmatpush1.bf16.msra.mxu0 %v10194_v47  ;;  %3426 = vmatpush1.bf16.msra.mxu1 %v10196_v49  ;;  %v691_v8 = vmul.f32 0.2, %v605_v55  ;;  %vm659_vm5 = vcmp.ge.f32.partialorder %v605_v55, 0.0  ;;  %v1671_v47 = vld [vmem:[#allocation13 + $0x300] sm:$0xff]  ;;  %v10226_v56 = vcombine.low %v1663_v28, %v1667_v33 }
 0x299   :  { %v610_v4 = vpop.f32.mrb[22].mxu1  ;;  %3201 = vmatprep.subr.bf16.mxu0 %v10203_v52  ;;  %3427 = vmatprep.subr.bf16.mxu1 %v10205_v53  ;;  %v692_v14 = vmul.f32 0.2, %v607_v62  ;;  %vm660_vm6 = vcmp.ge.f32.partialorder %v607_v62, 0.0  ;;  %v1672_v52 = vld [vmem:[#allocation13 + $0x308] sm:$0xff]  ;;  %v10228_v58 = vcombine.low %v1664_v35, %v1668_v36  ;;  %v10235_v61 = vcombine.high %v1671_v47, %v1675_v51  ;;  %v1687_v35 = vld [vmem:[#allocation13 + $0x380] sm:$0xff] }
 0x29a   :  { %v611_v9 = vadd.f32 %v610_v4, %v12897_v22  ;;  %v612_v10 = vpop.f32.mrb[23].mxu1  ;;  %1229 = vmatprep.mubr.bf16.mxu0 %v809_v34  ;;  %1342 = vmatprep.mubr.bf16.mxu1 %v809_v34  ;;  %v723_v31 = vsel %vm659_vm5, %v605_v55, %v691_v8  ;;  %v1676_v53 = vld [vmem:[#allocation13 + $0x328] sm:$0xff]  ;;  %v1691_v36 = vld [vmem:[#allocation13 + $0x3a0] sm:$0xff] }
 0x29b   :  { %v613_v15 = vadd.f32 %v612_v10, %v12900_v23  ;;  %1230 = vmatmul.mubr.bf16.gmra.mrb[32].mxu0 %v808_v1  ;;  %1343 = vmatmul.mubr.bf16.gmra.mrb[48].mxu1 %v808_v1  ;;  %v724_v38 = vsel %vm660_vm6, %v607_v62, %v692_v14  ;;  %v10237_v62 = vcombine.high %v1672_v52, %v1676_v53 }
 0x29c   :  { %vm661_vm7 = vcmp.ge.f32.partialorder %v611_v9, 0.0  ;;  %v693_v17 = vmul.f32 0.2, %v611_v9  ;;  %3202 = vmatpush1.bf16.msra.mxu0 %v10202_v2  ;;  %3428 = vmatpush1.bf16.msra.mxu1 %v10204_v3  ;;  %v1679_v2 = vld [vmem:[#allocation13 + $0x340] sm:$0xff]  ;;  %v10236_v10 = vcombine.low %v1672_v52, %v1676_v53  ;;  %v13000_v53 = vld [vmem:[#allocation13 + $0x408] sm:$0xff] }
 0x29d   :  { %vm662_vm8 = vcmp.ge.f32.partialorder %v613_v15, 0.0  ;;  %v694_v24 = vmul.f32 0.2, %v613_v15  ;;  %v616_v25 = vpop.f32.mrb[24].mxu1  ;;  %3203 = vmatprep.subr.bf16.mxu0 %v10211_v5  ;;  %3429 = vmatprep.subr.bf16.mxu1 %v10213_v6  ;;  %v1683_v3 = vld [vmem:[#allocation13 + $0x360] sm:$0xff] }
 0x29e   :  { %v617_v29 = vadd.f32 %v616_v25, %v12897_v22  ;;  %v618_v30 = vpop.f32.mrb[25].mxu1  ;;  %v725_v32 = vsel %vm661_vm7, %v611_v9, %v693_v17  ;;  %v10234_v9 = vcombine.low %v1671_v47, %v1675_v51  ;;  %v10243_v12 = vcombine.high %v1679_v2, %v1683_v3  ;;  %v1700_v47 = vld [vmem:[#allocation13 + $0x3e8] sm:$0xff]  ;;  %v12996_v51 = vld [vmem:[#allocation13 + $0x400] sm:$0xff] }
 0x29f   :  { %v619_v37 = vadd.f32 %v618_v30, %v12900_v23  ;;  %v726_v39 = vsel %vm662_vm8, %v613_v15, %v694_v24  ;;  %v810_v40 = vpack.c.bf16 %v725_v32, %v723_v31  ;;  %v10242_v24 = vcombine.low %v1679_v2, %v1683_v3  ;;  %v1684_v31 = vld [vmem:[#allocation13 + $0x368] sm:$0xff]  ;;  %v12998_v52 = vld [vmem:[#allocation13 + $0x420] sm:$0xff] }
 0x2a0   :  { %v811_v41 = vpack.c.bf16 %v726_v39, %v724_v38  ;;  %3204 = vmatpush1.bf16.msra.mxu0 %v10210_v16  ;;  %3430 = vmatpush1.bf16.msra.mxu1 %v10212_v20  ;;  %v695_v48 = vmul.f32 0.2, %v617_v29  ;;  %vm663_vm9 = vcmp.ge.f32.partialorder %v617_v29, 0.0  ;;  %v10251_v38 = vcombine.high %v1687_v35, %v1691_v36  ;;  %v1692_v39 = vld [vmem:[#allocation13 + $0x3a8] sm:$0xff]  ;;  %v13028_v2 = vld [vmem:[#allocation13 + $0x4a0] sm:$0xff] }
 0x2a1   :  { %v622_v44 = vpop.f32.mrb[26].mxu1  ;;  %3205 = vmatprep.subr.bf16.mxu0 %v10219_v26  ;;  %3431 = vmatprep.subr.bf16.mxu1 %v10221_v27  ;;  %v696_v54 = vmul.f32 0.2, %v619_v37  ;;  %vm664_vm10 = vcmp.ge.f32.partialorder %v619_v37, 0.0  ;;  %v13030_v3 = vld [vmem:[#allocation13 + $0x488] sm:$0xff] }
 0x2a2   :  { %v623_v49 = vadd.f32 %v622_v44, %v12897_v22  ;;  %v624_v50 = vpop.f32.mrb[27].mxu1  ;;  %1239 = vmatprep.mubr.bf16.mxu0 %v811_v41  ;;  %1352 = vmatprep.mubr.bf16.mxu1 %v811_v41  ;;  %v727_v1 = vsel %vm663_vm9, %v617_v29, %v695_v48  ;;  %v1699_v44 = vld [vmem:[#allocation13 + $0x3e0] sm:$0xff] }
 0x2a3   :  { %v625_v55 = vadd.f32 %v624_v50, %v12900_v23  ;;  %1240 = vmatmul.mubr.bf16.gmra.mrb[36].mxu0 %v810_v40  ;;  %1353 = vmatmul.mubr.bf16.gmra.mrb[52].mxu1 %v810_v40  ;;  %v728_v5 = vsel %vm664_vm10, %v619_v37, %v696_v54  ;;  %v1688_v37 = vld [vmem:[#allocation13 + $0x388] sm:$0xff]  ;;  %v10250_v40 = vcombine.low %v1687_v35, %v1691_v36  ;;  %v13092_v36 = vld [vmem:[#allocation13 + $0x5c0] sm:$0xff] }
 0x2a4   :  { %vm665_vm11 = vcmp.ge.f32.partialorder %v623_v49, 0.0  ;;  %v697_v57 = vmul.f32 0.2, %v623_v49  ;;  %3206 = vmatpush1.bf16.msra.mxu0 %v10218_v42  ;;  %3432 = vmatpush1.bf16.msra.mxu1 %v10220_v43  ;;  %v10252_v41 = vcombine.low %v1688_v37, %v1692_v39  ;;  %v10253_v42 = vcombine.high %v1688_v37, %v1692_v39  ;;  %v1695_v43 = vld [vmem:[#allocation13 + $0x3c0] sm:$0xff] }
 0x2a5   :  { %vm666_vm12 = vcmp.ge.f32.partialorder %v625_v55, 0.0  ;;  %v698_v59 = vmul.f32 0.2, %v625_v55  ;;  %v628_v60 = vpop.f32.mrb[28].mxu1  ;;  %3207 = vmatprep.subr.bf16.mxu0 %v10227_v45  ;;  %3433 = vmatprep.subr.bf16.mxu1 %v10229_v46  ;;  %v1696_v45 = vld [vmem:[#allocation13 + $0x3c8] sm:$0xff]  ;;  %v10259_v46 = vcombine.high %v1695_v43, %v1699_v44  ;;  %v10258_v48 = vcombine.low %v1695_v43, %v1699_v44  ;;  %v13094_v37 = vld [vmem:[#allocation13 + $0x5e0] sm:$0xff] }
 0x2a6   :  { %v629_v63 = vadd.f32 %v628_v60, %v12897_v22  ;;  %v630_v0 = vpop.f32.mrb[29].mxu1  ;;  %v729_v34 = vsel %vm665_vm11, %v623_v49, %v697_v57  ;;  %v10260_v49 = vcombine.low %v1696_v45, %v1700_v47  ;;  %v10261_v50 = vcombine.high %v1696_v45, %v1700_v47  ;;  %v13106_v43 = vld [vmem:[#allocation13 + $0x5e8] sm:$0xff]  ;;  %v13108_v44 = vld [vmem:[#allocation13 + $0x600] sm:$0xff] }
 0x2a7   :  { %v631_v4 = vadd.f32 %v630_v0, %v12900_v23  ;;  %v730_v6 = vsel %vm666_vm12, %v625_v55, %v698_v59  ;;  %v812_v7 = vpack.c.bf16 %v729_v34, %v727_v1  ;;  %v10267_v54 = vcombine.high %v12996_v51, %v12998_v52  ;;  %v13004_v55 = vld [vmem:[#allocation13 + $0x428] sm:$0xff]  ;;  %v799_v59 = vld [vmem:[#allocation11] sm:$0xf]  ;;  %v13026_v34 = vld [vmem:[#allocation13 + $0x480] sm:$0xff]  ;;  %16035 = vst [vmem:[#allocation32_spill] sm:$0xff] %v13108_v44 }
 0x2a8   :  { %v813_v8 = vpack.c.bf16 %v730_v6, %v728_v5  ;;  %3208 = vmatpush1.bf16.msra.mxu0 %v10226_v56  ;;  %3434 = vmatpush1.bf16.msra.mxu1 %v10228_v58  ;;  %v699_v13 = vmul.f32 0.2, %v629_v63  ;;  %vm667_vm13 = vcmp.ge.f32.partialorder %v629_v63, 0.0  ;;  %v10269_v58 = vcombine.high %v13000_v53, %v13004_v55  ;;  %v13021_v0 = vld [vmem:[#allocation13 + $0x468] sm:$0xff]  ;;  %v13034_v5 = vld [vmem:[#allocation13 + $0x4c0] sm:$0xff] }
 0x2a9   :  { %v634_v11 = vpop.f32.mrb[30].mxu1  ;;  %3209 = vmatprep.subr.bf16.mxu0 %v10235_v61  ;;  %3435 = vmatprep.subr.bf16.mxu1 %v10237_v62  ;;  %v700_v16 = vmul.f32 0.2, %v631_v4  ;;  %vm668_vm14 = vcmp.ge.f32.partialorder %v631_v4, 0.0  ;;  %v13013_v60 = vsub.s32 2, %v12888_v18  ;;  %v13015_v61 = vld [vmem:[#allocation13 + $0x440] sm:$0xff] }
 0x2aa   :  { %v635_v14 = vadd.f32 %v634_v11, %v12897_v22  ;;  %v636_v15 = vpop.f32.mrb[31].mxu1  ;;  %1249 = vmatprep.mubr.bf16.mxu0 %v813_v8  ;;  %1362 = vmatprep.mubr.bf16.mxu1 %v813_v8  ;;  %v731_v26 = vsel %vm667_vm13, %v629_v63, %v699_v13  ;;  %v13017_v62 = vld [vmem:[#allocation13 + $0x460] sm:$0xff]  ;;  %v13019_v63 = vld [vmem:[#allocation13 + $0x448] sm:$0xff]  ;;  %v13024_v1 = vsub.s32 3, %v12888_v18  ;;  %v13051_v13 = vrot.slane %v799_v59, %v12891_v19 }
 0x2ab   :  { %v637_v17 = vadd.f32 %v636_v15, %v12900_v23  ;;  %1250 = vmatmul.mubr.bf16.gmra.mrb[40].mxu0 %v812_v7  ;;  %1363 = vmatmul.mubr.bf16.gmra.mrb[56].mxu1 %v812_v7  ;;  %v732_v27 = vsel %vm668_vm14, %v631_v4, %v700_v16  ;;  %v1680_v23 = vld [vmem:[#allocation13 + $0x348] sm:$0xff]  ;;  %16033 = vst [vmem:[#allocation30_spill] sm:$0xff] %v13013_v60  ;;  %v13036_v6 = vld [vmem:[#allocation13 + $0x4e0] sm:$0xff] }
 0x2ac   :  { %vm669_vm15 = vcmp.ge.f32.partialorder %v635_v14, 0.0  ;;  %v701_v20 = vmul.f32 0.2, %v635_v14  ;;  %3210 = vmatpush1.bf16.msra.mxu0 %v10234_v9  ;;  %3436 = vmatpush1.bf16.msra.mxu1 %v10236_v10  ;;  %v10245_v32 = vcombine.high %v1680_v23, %v1684_v31  ;;  %v10244_v33 = vcombine.low %v1680_v23, %v1684_v31  ;;  %16034 = vst [vmem:[#allocation31_spill] sm:$0xff] %v13024_v1  ;;  %v13032_v4 = vld [vmem:[#allocation13 + $0x4a8] sm:$0xff]  ;;  %v13042_v9 = vld [vmem:[#allocation13 + $0x500] sm:$0xff] }
 0x2ad   :  { %vm670_vm0 = vcmp.ge.f32.partialorder %v637_v17, 0.0  ;;  %v702_v25 = vmul.f32 0.2, %v637_v17  ;;  %3211 = vmatprep.subr.bf16.mxu0 %v10243_v12  ;;  %v13038_v7 = vld [vmem:[#allocation13 + $0x4c8] sm:$0xff]  ;;  %v13044_v10 = vld [vmem:[#allocation13 + $0x520] sm:$0xff]  ;;  %v13057_v15 = vrot.slane %v799_v59, %v12894_v21 }
 0x2ae   :  { %v733_v22 = vsel %vm669_vm15, %v635_v14, %v701_v20  ;;  %3437 = vmatprep.subr.bf16.mxu1 %v10245_v32  ;;  %v13040_v8 = vld [vmem:[#allocation13 + $0x4e8] sm:$0xff]  ;;  %v13054_v14 = vrot.slane %v799_v59, %v13013_v60  ;;  %v13059_v16 = vld [vmem:[#allocation13 + $0x540] sm:$0xff] }
 0x2af   :  { %v734_v28 = vsel %vm670_vm0, %v637_v17, %v702_v25  ;;  %v814_v29 = vpack.c.bf16 %v733_v22, %v731_v26  ;;  %v13046_v11 = vld [vmem:[#allocation13 + $0x508] sm:$0xff]  ;;  %v13061_v17 = vld [vmem:[#allocation13 + $0x560] sm:$0xff]  ;;  %v13068_v25 = vrot.slane %v799_v59, %v13024_v1 }
 0x2b0   :  { %v815_v30 = vpack.c.bf16 %v734_v28, %v732_v27  ;;  %3212 = vmatpush1.bf16.msra.mxu0 %v10242_v24  ;;  %3438 = vmatpush1.bf16.msra.mxu1 %v10244_v33  ;;  %v13048_v12 = vld [vmem:[#allocation13 + $0x528] sm:$0xff]  ;;  %v13076_v28 = vld [vmem:[#allocation13 + $0x580] sm:$0xff] }
 0x2b1   :  { %3213 = vmatprep.subr.bf16.mxu0 %v10251_v38  ;;  %3439 = vmatprep.subr.bf16.mxu1 %v10253_v42  ;;  %v13063_v20 = vld [vmem:[#allocation13 + $0x548] sm:$0xff]  ;;  %v13110_v45 = vld [vmem:[#allocation13 + $0x620] sm:$0xff] }
 0x2b2   :  { %1259 = vmatprep.mubr.bf16.mxu0 %v815_v30  ;;  %1372 = vmatprep.mubr.bf16.mxu1 %v815_v30  ;;  %v13065_v24 = vld [vmem:[#allocation13 + $0x568] sm:$0xff]  ;;  %16036 = vst [vmem:[#allocation33_spill] sm:$0xff] %v13110_v45  ;;  %v13148_v35 = vld [vmem:[#allocation13 + $0x680] sm:$0xff] }
 0x2b3   :  { %1260 = vmatmul.mubr.bf16.gmra.mrb[44].mxu0 %v814_v29  ;;  %1373 = vmatmul.mubr.bf16.gmra.mrb[60].mxu1 %v814_v29  ;;  %v13078_v29 = vld [vmem:[#allocation13 + $0x5a0] sm:$0xff]  ;;  %v13080_v30 = vld [vmem:[#allocation13 + $0x588] sm:$0xff]  ;;  %16043 = vst [vmem:[#allocation40_spill] sm:$0xff] %v13148_v35 }
 0x2b4   :  { %3214 = vmatpush1.bf16.msra.mxu0 %v10250_v40  ;;  %3440 = vmatpush1.bf16.msra.mxu1 %v10252_v41  ;;  %v13082_v23 = vld [vmem:[#allocation13 + $0x5a8] sm:$0xff]  ;;  %v13164_v47 = vld [vmem:[#allocation13 + $0x6c0] sm:$0xff] }
 0x2b5   :  { %3215 = vmatprep.subr.bf16.mxu0 %v10259_v46  ;;  %3441 = vmatprep.subr.bf16.mxu1 %v10261_v50  ;;  %v13096_v38 = vld [vmem:[#allocation13 + $0x5c8] sm:$0xff]  ;;  %v13134_v46 = vld [vmem:[#allocation13 + $0x660] sm:$0xff]  ;;  %16047 = vst [vmem:[#allocation44_spill] sm:$0xff] %v13164_v47 }
 0x2b6   :  { %v13120_v50 = vld [vmem:[#allocation13 + $0x608] sm:$0xff]  ;;  %16040 = vst [vmem:[#allocation37_spill] sm:$0xff] %v13134_v46  ;;  %v13166_v27 = vld [vmem:[#allocation13 + $0x6e0] sm:$0xff] }
 0x2b7   :  { %16037 = vst [vmem:[#allocation34_spill] sm:$0xff] %v13120_v50  ;;  %v13138_v40 = vld [vmem:[#allocation13 + $0x668] sm:$0xff]  ;;  %16048 = vst [vmem:[#allocation45_spill] sm:$0xff] %v13166_v27  ;;  %v13180_v22 = vld [vmem:[#allocation13 + $0x700] sm:$0xff] }
 0x2b8   :  { %3216 = vmatpush1.bf16.msra.mxu0 %v10258_v48  ;;  %3442 = vmatpush1.bf16.msra.mxu1 %v10260_v49  ;;  %v13136_v49 = vld [vmem:[#allocation13 + $0x648] sm:$0xff]  ;;  %16042 = vst [vmem:[#allocation39_spill] sm:$0xff] %v13138_v40  ;;  %v13150_v48 = vld [vmem:[#allocation13 + $0x6a0] sm:$0xff]  ;;  %16051 = vst [vmem:[#allocation48_spill] sm:$0xff] %v13180_v22 }
 0x2b9   :  { %3298 = vmatprep.subr.bf16.mxu0 %v10267_v54  ;;  %3524 = vmatprep.subr.bf16.mxu1 %v10269_v58  ;;  %v13122_v54 = vld [vmem:[#allocation13 + $0x628] sm:$0xff]  ;;  %v13124_v58 = vld [vmem:[#allocation13 + $0x640] sm:$0xff]  ;;  %16041 = vst [vmem:[#allocation38_spill] sm:$0xff] %v13136_v49  ;;  %16044 = vst [vmem:[#allocation41_spill] sm:$0xff] %v13150_v48 }
 0x2ba   :  { %16038 = vst [vmem:[#allocation35_spill] sm:$0xff] %v13122_v54  ;;  %16039 = vst [vmem:[#allocation36_spill] sm:$0xff] %v13124_v58  ;;  %v13152_v32 = vld [vmem:[#allocation13 + $0x688] sm:$0xff]  ;;  %v13190_v56 = vld [vmem:[#allocation13 + $0x720] sm:$0xff] }
 0x2bb   :  { %16045 = vst [vmem:[#allocation42_spill] sm:$0xff] %v13152_v32  ;;  %v13162_v33 = vld [vmem:[#allocation13 + $0x6a8] sm:$0xff]  ;;  %16052 = vst [vmem:[#allocation49_spill] sm:$0xff] %v13190_v56  ;;  %v13204_v21 = vld [vmem:[#allocation13 + $0x740] sm:$0xff] }
 0x2bc   :  { %16046 = vst [vmem:[#allocation43_spill] sm:$0xff] %v13162_v33  ;;  %v13176_v31 = vld [vmem:[#allocation13 + $0x6c8] sm:$0xff]  ;;  %16055 = vst [vmem:[#allocation52_spill] sm:$0xff] %v13204_v21  ;;  %v13206_v41 = vld [vmem:[#allocation13 + $0x760] sm:$0xff] }
 0x2bd   :  { %16049 = vst [vmem:[#allocation46_spill] sm:$0xff] %v13176_v31  ;;  %v13178_v42 = vld [vmem:[#allocation13 + $0x6e8] sm:$0xff]  ;;  %16056 = vst [vmem:[#allocation53_spill] sm:$0xff] %v13206_v41  ;;  %v13236_v60 = vld [vmem:[#allocation13 + $0x7a0] sm:$0xff] }
 0x2be   :  { %16050 = vst [vmem:[#allocation47_spill] sm:$0xff] %v13178_v42  ;;  %v13192_v59 = vld [vmem:[#allocation13 + $0x708] sm:$0xff]  ;;  %v13234_v42 = vld [vmem:[#allocation13 + $0x780] sm:$0xff]  ;;  %16060 = vst [vmem:[#allocation57_spill] sm:$0xff] %v13236_v60 }
 0x2bf   :  { %16053 = vst [vmem:[#allocation50_spill] sm:$0xff] %v13192_v59  ;;  %v13194_v18 = vld [vmem:[#allocation13 + $0x728] sm:$0xff]  ;;  %16059 = vst [vmem:[#allocation56_spill] sm:$0xff] %v13234_v42 }
 0x2c0   :  { %16054 = vst [vmem:[#allocation51_spill] sm:$0xff] %v13194_v18  ;;  %v13216_v26 = vld [vmem:[#allocation13 + $0x748] sm:$0xff] }
 0x2c1   :  { %16057 = vst [vmem:[#allocation54_spill] sm:$0xff] %v13216_v26  ;;  %v13218_v48 = vld [vmem:[#allocation13 + $0x768] sm:$0xff] }
 0x2c2   :  { %16058 = vst [vmem:[#allocation55_spill] sm:$0xff] %v13218_v48 }
 0x34e   :  { %v1191_v39 = vpop.f32.mrb[16].mxu0  ;;  %v1304_v35 = vpop.f32.mrb[32].mxu1 }
 0x34f   :  { %v1192_v57 = vadd.f32 %v1191_v39, %v13051_v13  ;;  %v1305_v27 = vadd.f32 %v1304_v35, %v13054_v14  ;;  %v1193_v47 = vpop.f32.mrb[17].mxu0  ;;  %v1306_v33 = vpop.f32.mrb[33].mxu1 }
 0x350   :  { %v1194_v19 = vadd.f32 %v1193_v47, %v13057_v15  ;;  %v1307_v1 = vadd.f32 %v1306_v33, %v13068_v25  ;;  %v1195_v31 = vpop.f32.mrb[18].mxu0  ;;  %v1308_v39 = vpop.f32.mrb[34].mxu1 }
 0x351   :  { %vm1383_vm1 = vcmp.ge.f32.partialorder %v1192_v57, 0.0  ;;  %v1447_v32 = vmul.f32 0.2, %v1192_v57  ;;  %vm1385_vm2 = vcmp.ge.f32.partialorder %v1305_v27, 0.0  ;;  %v1449_v40 = vmul.f32 0.2, %v1305_v27 }
 0x352   :  { %vm1384_vm3 = vcmp.ge.f32.partialorder %v1194_v19, 0.0  ;;  %v1448_v18 = vmul.f32 0.2, %v1194_v19  ;;  %vm1386_vm4 = vcmp.ge.f32.partialorder %v1307_v1, 0.0  ;;  %v1450_v47 = vmul.f32 0.2, %v1307_v1 }
 0x353   :  { %v1196_v22 = vadd.f32 %v1195_v31, %v13051_v13  ;;  %v1309_v35 = vadd.f32 %v1308_v39, %v13054_v14  ;;  %v1197_v41 = vpop.f32.mrb[19].mxu0  ;;  %v1310_v56 = vpop.f32.mrb[35].mxu1  ;;  %v1511_v21 = vsel %vm1383_vm1, %v1192_v57, %v1447_v32  ;;  %v1513_v49 = vsel %vm1385_vm2, %v1305_v27, %v1449_v40 }
 0x354   :  { %v1198_v46 = vadd.f32 %v1197_v41, %v13057_v15  ;;  %v1311_v58 = vadd.f32 %v1310_v56, %v13068_v25  ;;  %v1512_v31 = vsel %vm1384_vm3, %v1194_v19, %v1448_v18  ;;  %v1514_v39 = vsel %vm1386_vm4, %v1307_v1, %v1450_v47 }
 0x355   :  { %vm1387_vm5 = vcmp.ge.f32.partialorder %v1196_v22, 0.0  ;;  %v1451_v54 = vmul.f32 0.2, %v1196_v22  ;;  %vm1389_vm6 = vcmp.ge.f32.partialorder %v1309_v35, 0.0  ;;  %v1453_v59 = vmul.f32 0.2, %v1309_v35 }
 0x356   :  { %vm1388_vm7 = vcmp.ge.f32.partialorder %v1198_v46, 0.0  ;;  %v1452_v33 = vmul.f32 0.2, %v1198_v46  ;;  %vm1390_vm8 = vcmp.ge.f32.partialorder %v1311_v58, 0.0  ;;  %v1454_v48 = vmul.f32 0.2, %v1311_v58 }
 0x357   :  { %v1515_v26 = vsel %vm1387_vm5, %v1196_v22, %v1451_v54  ;;  %v1517_v42 = vsel %vm1389_vm6, %v1309_v35, %v1453_v59  ;;  %v1201_v57 = vpop.f32.mrb[20].mxu0  ;;  %v1314_v27 = vpop.f32.mrb[36].mxu1  ;;  %v16061_v47 = vcombine.low %v12996_v51, %v12998_v52 }
 0x358   :  { %v13254_v32 = vpack.c.bf16 %v1515_v26, %v1511_v21  ;;  %v13256_v40 = vpack.c.bf16 %v1517_v42, %v1513_v49  ;;  %v1516_v56 = vsel %vm1388_vm7, %v1198_v46, %v1452_v33  ;;  %v1518_v41 = vsel %vm1390_vm8, %v1311_v58, %v1454_v48  ;;  %v1203_v60 = vpop.f32.mrb[21].mxu0  ;;  %v1316_v50 = vpop.f32.mrb[37].mxu1 }
 0x359   :  { %v13258_v45 = vpack.c.bf16 %v1516_v56, %v1512_v31  ;;  %v13260_v44 = vpack.c.bf16 %v1518_v41, %v1514_v39  ;;  %v1202_v18 = vadd.f32 %v1201_v57, %v13051_v13  ;;  %v1315_v19 = vadd.f32 %v1314_v27, %v13054_v14  ;;  %v1205_v1 = vpop.f32.mrb[22].mxu0  ;;  %v1318_v22 = vpop.f32.mrb[38].mxu1 }
 0x35a   :  { %v1204_v54 = vadd.f32 %v1203_v60, %v13057_v15  ;;  %v1317_v21 = vadd.f32 %v1316_v50, %v13068_v25  ;;  %v1206_v26 = vadd.f32 %v1205_v1, %v13051_v13  ;;  %v1319_v42 = vadd.f32 %v1318_v22, %v13054_v14  ;;  %v1207_v46 = vpop.f32.mrb[23].mxu0  ;;  %v1320_v48 = vpop.f32.mrb[39].mxu1 }
 0x35b   :  { %vm1391_vm9 = vcmp.ge.f32.partialorder %v1202_v18, 0.0  ;;  %v1455_v49 = vmul.f32 0.2, %v1202_v18  ;;  %vm1393_vm10 = vcmp.ge.f32.partialorder %v1315_v19, 0.0  ;;  %v1457_v58 = vmul.f32 0.2, %v1315_v19  ;;  %3217 = vmatprep.mubr.bf16.mxu0 %v13258_v45  ;;  %3443 = vmatprep.mubr.bf16.mxu1 %v13258_v45 }
 0x35c   :  { %vm1392_vm11 = vcmp.ge.f32.partialorder %v1204_v54, 0.0  ;;  %v1456_v59 = vmul.f32 0.2, %v1204_v54  ;;  %vm1394_vm12 = vcmp.ge.f32.partialorder %v1317_v21, 0.0  ;;  %v1458_v60 = vmul.f32 0.2, %v1317_v21  ;;  %3218 = vmatmul.mubr.bf16.vlgmr.msra.gmra.mrb[48].mxu0 %v13254_v32  ;;  %3444 = vmatmul.mubr.bf16.vlgmr.msra.gmra.mrb[64].mxu1 %v13254_v32 }
 0x35d   :  { %v1519_v50 = vsel %vm1391_vm9, %v1202_v18, %v1455_v49  ;;  %v1521_v35 = vsel %vm1393_vm10, %v1315_v19, %v1457_v58  ;;  %vm1395_vm13 = vcmp.ge.f32.partialorder %v1206_v26, 0.0  ;;  %v1459_v33 = vmul.f32 0.2, %v1206_v26  ;;  %3299 = vmatpush1.bf16.msra.mxu0 %v16061_v47 }
 0x35e   :  { %v16062_v31 = vcombine.low %v13000_v53, %v13004_v55  ;;  %v1520_v39 = vsel %vm1392_vm11, %v1204_v54, %v1456_v59  ;;  %v1522_v57 = vsel %vm1394_vm12, %v1317_v21, %v1458_v60  ;;  %vm1397_vm14 = vcmp.ge.f32.partialorder %v1319_v42, 0.0  ;;  %v1211_v41 = vpop.f32.mrb[24].mxu0  ;;  %v1324_v18 = vpop.f32.mrb[40].mxu1 }
 0x35f   :  { %v1461_v27 = vmul.f32 0.2, %v1319_v42  ;;  %v16063_v56 = vcombine.high %v13015_v61, %v13017_v62  ;;  %v16064_v19 = vcombine.high %v13019_v63, %v13021_v0  ;;  %v1523_v51 = vsel %vm1395_vm13, %v1206_v26, %v1459_v33  ;;  %v1213_v1 = vpop.f32.mrb[25].mxu0  ;;  %v1326_v22 = vpop.f32.mrb[41].mxu1 }
 0x360   :  { %3525 = vmatpush1.bf16.msra.mxu1 %v16062_v31  ;;  %v1208_v52 = vadd.f32 %v1207_v46, %v13057_v15  ;;  %v1321_v53 = vadd.f32 %v1320_v48, %v13068_v25  ;;  %v1212_v55 = vadd.f32 %v1211_v41, %v13051_v13  ;;  %v13287_v54 = vpack.c.bf16 %v1523_v51, %v1519_v50  ;;  %v1215_v59 = vpop.f32.mrb[26].mxu0  ;;  %v1328_v60 = vpop.f32.mrb[42].mxu1 }
 0x361   :  { %3300 = vmatprep.subr.bf16.mxu0 %v16063_v56  ;;  %3526 = vmatprep.subr.bf16.mxu1 %v16064_v19  ;;  %v1525_v21 = vsel %vm1397_vm14, %v1319_v42, %v1461_v27  ;;  %v1325_v49 = vadd.f32 %v1324_v18, %v13054_v14  ;;  %v1214_v58 = vadd.f32 %v1213_v1, %v13057_v15  ;;  %v1217_v42 = vpop.f32.mrb[27].mxu0  ;;  %v1330_v50 = vpop.f32.mrb[43].mxu1 }
 0x362   :  { %v13291_v47 = vpack.c.bf16 %v1525_v21, %v1521_v35  ;;  %vm1396_vm15 = vcmp.ge.f32.partialorder %v1208_v52, 0.0  ;;  %v1460_v26 = vmul.f32 0.2, %v1208_v52  ;;  %vm1398_vm0 = vcmp.ge.f32.partialorder %v1321_v53, 0.0 }
 0x363   :  { %v16065_v46 = vcombine.low %v13015_v61, %v13017_v62  ;;  %v16066_v48 = vcombine.low %v13019_v63, %v13021_v0  ;;  %v1462_v33 = vmul.f32 0.2, %v1321_v53  ;;  %vm1399_vm1 = vcmp.ge.f32.partialorder %v1212_v55, 0.0 }
 0x364   :  { %v1463_v31 = vmul.f32 0.2, %v1212_v55  ;;  %vm1401_vm2 = vcmp.ge.f32.partialorder %v1325_v49, 0.0  ;;  %v16067_v35 = vcombine.high %v13026_v34, %v13028_v2  ;;  %v16068_v27 = vcombine.high %v13030_v3, %v13032_v4 }
 0x365   :  { %3301 = vmatpush1.bf16.msra.mxu0 %v16065_v46  ;;  %3527 = vmatpush1.bf16.msra.mxu1 %v16066_v48  ;;  %v1524_v61 = vsel %vm1396_vm15, %v1208_v52, %v1460_v26  ;;  %v1465_v62 = vmul.f32 0.2, %v1325_v49  ;;  %vm1400_vm3 = vcmp.ge.f32.partialorder %v1214_v58, 0.0  ;;  %v1464_v56 = vmul.f32 0.2, %v1214_v58 }
 0x366   :  { %3302 = vmatprep.subr.bf16.mxu0 %v16067_v35  ;;  %3528 = vmatprep.subr.bf16.mxu1 %v16068_v27  ;;  %v13305_v63 = vpack.c.bf16 %v1524_v61, %v1520_v39  ;;  %v1526_v0 = vsel %vm1398_vm0, %v1321_v53, %v1462_v33  ;;  %v1527_v41 = vsel %vm1399_vm1, %v1212_v55, %v1463_v31  ;;  %v1334_v53 = vpop.f32.mrb[44].mxu1 }
 0x367   :  { %v1327_v18 = vadd.f32 %v1326_v22, %v13068_v25  ;;  %v13309_v19 = vpack.c.bf16 %v1526_v0, %v1522_v57  ;;  %v1529_v51 = vsel %vm1401_vm2, %v1325_v49, %v1465_v62  ;;  %v1528_v1 = vsel %vm1400_vm3, %v1214_v58, %v1464_v56  ;;  %v1221_v57 = vpop.f32.mrb[28].mxu0  ;;  %v1336_v49 = vpop.f32.mrb[45].mxu1 }
 0x368   :  { %v1216_v21 = vadd.f32 %v1215_v59, %v13051_v13  ;;  %v16069_v46 = vcombine.low %v13026_v34, %v13028_v2  ;;  %v1329_v39 = vadd.f32 %v1328_v60, %v13054_v14  ;;  %v1218_v26 = vadd.f32 %v1217_v42, %v13057_v15  ;;  %3227 = vmatprep.mubr.bf16.mxu0 %v13305_v63  ;;  %v1223_v2 = vpop.f32.mrb[29].mxu0 }
 0x369   :  { %vm1402_vm4 = vcmp.ge.f32.partialorder %v1327_v18, 0.0  ;;  %v1466_v52 = vmul.f32 0.2, %v1327_v18  ;;  %3453 = vmatprep.mubr.bf16.mxu1 %v13305_v63  ;;  %v1331_v22 = vadd.f32 %v1330_v50, %v13068_v25  ;;  %3228 = vmatmul.mubr.bf16.gmra.mrb[52].mxu0 %v13287_v54  ;;  %v1222_v34 = vadd.f32 %v1221_v57, %v13051_v13  ;;  %v1225_v42 = vpop.f32.mrb[30].mxu0  ;;  %v1338_v50 = vpop.f32.mrb[46].mxu1 }
 0x36a   :  { %3303 = vmatpush1.bf16.msra.mxu0 %v16069_v46  ;;  %vm1403_vm5 = vcmp.ge.f32.partialorder %v1216_v21, 0.0  ;;  %v1467_v55 = vmul.f32 0.2, %v1216_v21  ;;  %3454 = vmatmul.mubr.bf16.gmra.mrb[68].mxu1 %v13287_v54  ;;  %vm1405_vm6 = vcmp.ge.f32.partialorder %v1329_v39, 0.0  ;;  %v1469_v59 = vmul.f32 0.2, %v1329_v39 }
 0x36b   :  { %v1530_v58 = vsel %vm1402_vm4, %v1327_v18, %v1466_v52  ;;  %vm1404_vm7 = vcmp.ge.f32.partialorder %v1218_v26, 0.0  ;;  %v16070_v60 = vcombine.low %v13030_v3, %v13032_v4  ;;  %v16071_v48 = vcombine.high %v13034_v5, %v13036_v6  ;;  %v1227_v3 = vpop.f32.mrb[31].mxu0  ;;  %v1340_v0 = vpop.f32.mrb[47].mxu1 }
 0x36c   :  { %v1531_v33 = vsel %vm1403_vm5, %v1216_v21, %v1467_v55  ;;  %v1468_v31 = vmul.f32 0.2, %v1218_v26  ;;  %vm1406_vm8 = vcmp.ge.f32.partialorder %v1331_v22, 0.0  ;;  %v1470_v35 = vmul.f32 0.2, %v1331_v22 }
 0x36d   :  { %3529 = vmatpush1.bf16.msra.mxu1 %v16070_v60  ;;  %3304 = vmatprep.subr.bf16.mxu0 %v16071_v48  ;;  %v16072_v27 = vcombine.low %v13034_v5, %v13036_v6  ;;  %v16073_v61 = vcombine.high %v13038_v7, %v13040_v8  ;;  %v13337_v4 = vpack.c.bf16 %v1531_v33, %v1527_v41  ;;  %vm1407_vm9 = vcmp.ge.f32.partialorder %v1222_v34, 0.0 }
 0x36e   :  { %v1533_v62 = vsel %vm1405_vm6, %v1329_v39, %v1469_v59  ;;  %v1471_v56 = vmul.f32 0.2, %v1222_v34  ;;  %v16074_v18 = vcombine.high %v13042_v9, %v13044_v10  ;;  %v1532_v5 = vsel %vm1404_vm7, %v1218_v26, %v1468_v31 }
 0x36f   :  { %3305 = vmatpush1.bf16.msra.mxu0 %v16072_v27  ;;  %3530 = vmatprep.subr.bf16.mxu1 %v16073_v61  ;;  %v13342_v21 = vpack.c.bf16 %v1533_v62, %v1529_v51  ;;  %v1534_v6 = vsel %vm1406_vm8, %v1331_v22, %v1470_v35  ;;  %v1335_v46 = vadd.f32 %v1334_v53, %v13054_v14 }
 0x370   :  { %3306 = vmatprep.subr.bf16.mxu0 %v16074_v18  ;;  %v13346_v52 = vpack.c.bf16 %v1532_v5, %v1528_v1  ;;  %v13348_v57 = vpack.c.bf16 %v1534_v6, %v1530_v58  ;;  %v1535_v41 = vsel %vm1407_vm9, %v1222_v34, %v1471_v56  ;;  %v1224_v39 = vadd.f32 %v1223_v2, %v13057_v15  ;;  %v1344_v2 = vpop.f32.mrb[48].mxu1 }
 0x371   :  { %v16075_v55 = vcombine.low %v13038_v7, %v13040_v8  ;;  %vm1409_vm10 = vcmp.ge.f32.partialorder %v1335_v46, 0.0  ;;  %v1473_v59 = vmul.f32 0.2, %v1335_v46  ;;  %v1337_v51 = vadd.f32 %v1336_v49, %v13068_v25  ;;  %v1231_v8 = vpop.f32.mrb[32].mxu0  ;;  %v1346_v58 = vpop.f32.mrb[49].mxu1 }
 0x372   :  { %v1226_v26 = vadd.f32 %v1225_v42, %v13051_v13  ;;  %v16076_v53 = vcombine.low %v13042_v9, %v13044_v10  ;;  %v16077_v1 = vcombine.high %v13046_v11, %v13048_v12  ;;  %vm1408_vm11 = vcmp.ge.f32.partialorder %v1224_v39, 0.0  ;;  %3237 = vmatprep.mubr.bf16.mxu0 %v13346_v52  ;;  %3463 = vmatprep.mubr.bf16.mxu1 %v13346_v52  ;;  %v1233_v10 = vpop.f32.mrb[33].mxu0 }
 0x373   :  { %3531 = vmatpush1.bf16.msra.mxu1 %v16075_v55  ;;  %v1472_v22 = vmul.f32 0.2, %v1224_v39  ;;  %v1339_v34 = vadd.f32 %v1338_v50, %v13054_v14  ;;  %v1228_v7 = vadd.f32 %v1227_v3, %v13057_v15  ;;  %v1537_v49 = vsel %vm1409_vm10, %v1335_v46, %v1473_v59  ;;  %3238 = vmatmul.mubr.bf16.gmra.mrb[56].mxu0 %v13337_v4  ;;  %v1235_v31 = vpop.f32.mrb[34].mxu0 }
 0x374   :  { %3307 = vmatpush1.bf16.msra.mxu0 %v16076_v53  ;;  %3532 = vmatprep.subr.bf16.mxu1 %v16077_v1  ;;  %vm1410_vm12 = vcmp.ge.f32.partialorder %v1337_v51, 0.0  ;;  %v1474_v9 = vmul.f32 0.2, %v1337_v51  ;;  %vm1411_vm13 = vcmp.ge.f32.partialorder %v1226_v26, 0.0  ;;  %v1475_v48 = vmul.f32 0.2, %v1226_v26 }
 0x375   :  { %3464 = vmatmul.mubr.bf16.gmra.mrb[72].mxu1 %v13337_v4  ;;  %v1536_v60 = vsel %vm1408_vm11, %v1224_v39, %v1472_v22  ;;  %vm1413_vm14 = vcmp.ge.f32.partialorder %v1339_v34, 0.0  ;;  %v1477_v42 = vmul.f32 0.2, %v1339_v34  ;;  %v16078_v50 = vcombine.low %v13046_v11, %v13048_v12  ;;  %v1348_v11 = vpop.f32.mrb[50].mxu1  ;;  %v1237_v12 = vpop.f32.mrb[35].mxu0 }
 0x376   :  { %v16079_v33 = vcombine.high %v13059_v16, %v13061_v17  ;;  %v1538_v35 = vsel %vm1410_vm12, %v1337_v51, %v1474_v9  ;;  %vm1412_vm15 = vcmp.ge.f32.partialorder %v1228_v7, 0.0  ;;  %v1476_v27 = vmul.f32 0.2, %v1228_v7  ;;  %v1350_v46 = vpop.f32.mrb[51].mxu1 }
 0x377   :  { %3533 = vmatpush1.bf16.msra.mxu1 %v16078_v50  ;;  %v1341_v61 = vadd.f32 %v1340_v0, %v13068_v25  ;;  %v16080_v3 = vcombine.low %v13059_v16, %v13061_v17  ;;  %v16081_v62 = vcombine.high %v13063_v20, %v13065_v24  ;;  %v1539_v56 = vsel %vm1411_vm13, %v1226_v26, %v1475_v48 }
 0x378   :  { %3308 = vmatprep.subr.bf16.mxu0 %v16079_v33  ;;  %v1541_v18 = vsel %vm1413_vm14, %v1339_v34, %v1477_v42  ;;  %v1232_v5 = vadd.f32 %v1231_v8, %v13051_v13  ;;  %v1345_v6 = vadd.f32 %v1344_v2, %v13054_v14  ;;  %v16082_v0 = vcombine.high %v13076_v28, %v13078_v29 }
 0x379   :  { %3309 = vmatpush1.bf16.msra.mxu0 %v16080_v3  ;;  %3534 = vmatprep.subr.bf16.mxu1 %v16081_v62  ;;  %v13388_v16 = vpack.c.bf16 %v1539_v56, %v1535_v41  ;;  %v13390_v17 = vpack.c.bf16 %v1541_v18, %v1537_v49  ;;  %v1540_v39 = vsel %vm1412_vm15, %v1228_v7, %v1476_v27  ;;  %vm1414_vm0 = vcmp.ge.f32.partialorder %v1341_v61, 0.0  ;;  %v1354_v49 = vpop.f32.mrb[52].mxu1 }
 0x37a   :  { %3310 = vmatprep.subr.bf16.mxu0 %v16082_v0  ;;  %v13392_v55 = vpack.c.bf16 %v1540_v39, %v1536_v60  ;;  %v1478_v59 = vmul.f32 0.2, %v1341_v61  ;;  %vm1415_vm1 = vcmp.ge.f32.partialorder %v1232_v5, 0.0  ;;  %v1479_v51 = vmul.f32 0.2, %v1232_v5  ;;  %v16091_v0 = vld [vmem:[#allocation33_spill] sm:$0xff] }
 0x37b   :  { %v16083_v26 = vcombine.low %v13063_v20, %v13065_v24  ;;  %vm1417_vm2 = vcmp.ge.f32.partialorder %v1345_v6, 0.0  ;;  %v1481_v53 = vmul.f32 0.2, %v1345_v6  ;;  %v1234_v1 = vadd.f32 %v1233_v10, %v13057_v15  ;;  %v1241_v24 = vpop.f32.mrb[36].mxu0 }
 0x37c   :  { %v1347_v41 = vadd.f32 %v1346_v58, %v13068_v25  ;;  %v16084_v22 = vcombine.low %v13076_v28, %v13078_v29  ;;  %v16085_v34 = vcombine.high %v13080_v30, %v13082_v23  ;;  %v1542_v7 = vsel %vm1414_vm0, %v1341_v61, %v1478_v59  ;;  %3247 = vmatprep.mubr.bf16.mxu0 %v13392_v55  ;;  %v1243_v29 = vpop.f32.mrb[37].mxu0  ;;  %v1356_v58 = vpop.f32.mrb[53].mxu1 }
 0x37d   :  { %3535 = vmatpush1.bf16.msra.mxu1 %v16083_v26  ;;  %v1543_v8 = vsel %vm1415_vm1, %v1232_v5, %v1479_v51  ;;  %v1236_v2 = vadd.f32 %v1235_v31, %v13051_v13  ;;  %v1349_v20 = vadd.f32 %v1348_v11, %v13054_v14  ;;  %v13408_v9 = vpack.c.bf16 %v1542_v7, %v1538_v35  ;;  %v1245_v61 = vpop.f32.mrb[38].mxu0  ;;  %v1358_v3 = vpop.f32.mrb[54].mxu1 }
 0x37e   :  { %3311 = vmatpush1.bf16.msra.mxu0 %v16084_v22  ;;  %3536 = vmatprep.subr.bf16.mxu1 %v16085_v34  ;;  %v1545_v10 = vsel %vm1417_vm2, %v1345_v6, %v1481_v53  ;;  %vm1416_vm3 = vcmp.ge.f32.partialorder %v1234_v1, 0.0  ;;  %v1480_v28 = vmul.f32 0.2, %v1234_v1  ;;  %vm1418_vm4 = vcmp.ge.f32.partialorder %v1347_v41, 0.0  ;;  %v1360_v6 = vpop.f32.mrb[55].mxu1 }
 0x37f   :  { %3473 = vmatprep.mubr.bf16.mxu1 %v13392_v55  ;;  %3248 = vmatmul.mubr.bf16.gmra.mrb[60].mxu0 %v13388_v16  ;;  %v1482_v60 = vmul.f32 0.2, %v1347_v41  ;;  %vm1419_vm5 = vcmp.ge.f32.partialorder %v1236_v2, 0.0  ;;  %v1483_v48 = vmul.f32 0.2, %v1236_v2  ;;  %v16086_v42 = vcombine.high %v13092_v36, %v13094_v37 }
 0x380   :  { %3474 = vmatmul.mubr.bf16.gmra.mrb[76].mxu1 %v13388_v16  ;;  %v1544_v50 = vsel %vm1416_vm3, %v1234_v1, %v1480_v28  ;;  %vm1421_vm6 = vcmp.ge.f32.partialorder %v1349_v20, 0.0  ;;  %v1485_v33 = vmul.f32 0.2, %v1349_v20  ;;  %v1238_v31 = vadd.f32 %v1237_v12, %v13057_v15  ;;  %v1247_v12 = vpop.f32.mrb[39].mxu0  ;;  %v1364_v28 = vpop.f32.mrb[56].mxu1 }
 0x381   :  { %3312 = vmatprep.subr.bf16.mxu0 %v16086_v42  ;;  %v16087_v35 = vcombine.low %v13080_v30, %v13082_v23  ;;  %v16088_v27 = vcombine.low %v13092_v36, %v13094_v37  ;;  %v1546_v62 = vsel %vm1418_vm4, %v1347_v41, %v1482_v60  ;;  %v1547_v11 = vsel %vm1419_vm5, %v1236_v2, %v1483_v48  ;;  %v16090_v37 = vld [vmem:[#allocation32_spill] sm:$0xff]  ;;  %v16099_v60 = vld [vmem:[#allocation37_spill] sm:$0xff] }
 0x382   :  { %v1351_v56 = vadd.f32 %v1350_v46, %v13068_v25  ;;  %v1242_v18 = vadd.f32 %v1241_v24, %v13051_v13  ;;  %v16089_v5 = vcombine.high %v13096_v38, %v13106_v43  ;;  %v13428_v30 = vpack.c.bf16 %v1547_v11, %v1543_v8  ;;  %v16096_v24 = vld [vmem:[#allocation35_spill] sm:$0xff] }
 0x383   :  { %3537 = vmatpush1.bf16.msra.mxu1 %v16087_v35  ;;  %3313 = vmatpush1.bf16.msra.mxu0 %v16088_v27  ;;  %v1549_v23 = vsel %vm1421_vm6, %v1349_v20, %v1485_v33  ;;  %vm1420_vm7 = vcmp.ge.f32.partialorder %v1238_v31, 0.0  ;;  %v1484_v36 = vmul.f32 0.2, %v1238_v31  ;;  %v16092_v39 = vcombine.high %v16090_v37, %v16091_v0  ;;  %v16095_v20 = vld [vmem:[#allocation34_spill] sm:$0xff]  ;;  %v16101_v33 = vld [vmem:[#allocation57_spill] sm:$0xff] }
 0x384   :  { %3538 = vmatprep.subr.bf16.mxu1 %v16089_v5  ;;  %v13433_v59 = vpack.c.bf16 %v1549_v23, %v1545_v10  ;;  %vm1422_vm8 = vcmp.ge.f32.partialorder %v1351_v56, 0.0  ;;  %v1486_v46 = vmul.f32 0.2, %v1351_v56  ;;  %vm1423_vm9 = vcmp.ge.f32.partialorder %v1242_v18, 0.0  ;;  %v1251_v10 = vpop.f32.mrb[40].mxu0 }
 0x385   :  { %3314 = vmatprep.subr.bf16.mxu0 %v16092_v39  ;;  %v1548_v51 = vsel %vm1420_vm7, %v1238_v31, %v1484_v36  ;;  %v1487_v26 = vmul.f32 0.2, %v1242_v18  ;;  %v1355_v53 = vadd.f32 %v1354_v49, %v13054_v14  ;;  %v1244_v1 = vadd.f32 %v1243_v29, %v13057_v15  ;;  %v1253_v42 = vpop.f32.mrb[41].mxu0 }
 0x386   :  { %v16093_v41 = vcombine.low %v13096_v38, %v13106_v43  ;;  %v16094_v22 = vcombine.low %v16090_v37, %v16091_v0  ;;  %v13443_v34 = vpack.c.bf16 %v1548_v51, %v1544_v50  ;;  %v1550_v7 = vsel %vm1422_vm8, %v1351_v56, %v1486_v46  ;;  %v16098_v43 = vld [vmem:[#allocation36_spill] sm:$0xff]  ;;  %v1366_v50 = vpop.f32.mrb[57].mxu1  ;;  %v1255_v56 = vpop.f32.mrb[42].mxu0 }
 0x387   :  { %v1357_v8 = vadd.f32 %v1356_v58, %v13068_v25  ;;  %v1246_v2 = vadd.f32 %v1245_v61, %v13051_v13  ;;  %v16097_v49 = vcombine.high %v16095_v20, %v16096_v24  ;;  %v13450_v29 = vpack.c.bf16 %v1550_v7, %v1546_v62  ;;  %v16102_v58 = vld [vmem:[#allocation56_spill] sm:$0xff]  ;;  %v1368_v5 = vpop.f32.mrb[58].mxu1  ;;  %v1257_v39 = vpop.f32.mrb[43].mxu0 }
 0x388   :  { %3539 = vmatpush1.bf16.msra.mxu1 %v16093_v41  ;;  %3315 = vmatpush1.bf16.msra.mxu0 %v16094_v22  ;;  %vm1425_vm10 = vcmp.ge.f32.partialorder %v1355_v53, 0.0  ;;  %v1489_v38 = vmul.f32 0.2, %v1355_v53  ;;  %v16100_v48 = vcombine.high %v16098_v43, %v16099_v60  ;;  %v1551_v35 = vsel %vm1423_vm9, %v1242_v18, %v1487_v26  ;;  %v1370_v46 = vpop.f32.mrb[59].mxu1  ;;  %v16109_v7 = vld [vmem:[#allocation40_spill] sm:$0xff] }
 0x389   :  { %3540 = vmatprep.subr.bf16.mxu1 %v16097_v49  ;;  %vm1424_vm11 = vcmp.ge.f32.partialorder %v1244_v1, 0.0  ;;  %v1488_v27 = vmul.f32 0.2, %v1244_v1  ;;  %v1490_v61 = vmul.f32 0.2, %v1357_v8  ;;  %3257 = vmatprep.mubr.bf16.mxu0 %v13443_v34  ;;  %vm1426_vm12 = vcmp.ge.f32.partialorder %v1357_v8, 0.0 }
 0x38a   :  { %3316 = vmatprep.subr.bf16.mxu0 %v16100_v48  ;;  %3483 = vmatprep.mubr.bf16.mxu1 %v13443_v34  ;;  %vm1427_vm13 = vcmp.ge.f32.partialorder %v1246_v2, 0.0  ;;  %v1491_v62 = vmul.f32 0.2, %v1246_v2  ;;  %v1359_v11 = vadd.f32 %v1358_v3, %v13054_v14  ;;  %v1553_v18 = vsel %vm1425_vm10, %v1355_v53, %v1489_v38  ;;  %v16105_v53 = vld [vmem:[#allocation38_spill] sm:$0xff] }
 0x38b   :  { %3258 = vmatmul.mubr.bf16.gmra.mrb[64].mxu0 %v13428_v30  ;;  %3484 = vmatmul.mubr.bf16.gmra.mrb[80].mxu1 %v13428_v30  ;;  %v1552_v23 = vsel %vm1424_vm11, %v1244_v1, %v1488_v27  ;;  %v1248_v36 = vadd.f32 %v1247_v12, %v13057_v15  ;;  %v1361_v37 = vadd.f32 %v1360_v6, %v13068_v25  ;;  %v16106_v1 = vld [vmem:[#allocation39_spill] sm:$0xff]  ;;  %v1261_v27 = vpop.f32.mrb[44].mxu0 }
 0x38c   :  { %v16103_v0 = vcombine.low %v16095_v20, %v16096_v24  ;;  %v1555_v3 = vsel %vm1427_vm13, %v1246_v2, %v1491_v62  ;;  %vm1429_vm14 = vcmp.ge.f32.partialorder %v1359_v11, 0.0  ;;  %v1493_v51 = vmul.f32 0.2, %v1359_v11  ;;  %v16110_v20 = vld [vmem:[#allocation41_spill] sm:$0xff]  ;;  %v1374_v62 = vpop.f32.mrb[60].mxu1 }
 0x38d   :  { %v1252_v26 = vadd.f32 %v1251_v10, %v13051_v13  ;;  %v16104_v41 = vcombine.low %v16098_v43, %v16099_v60  ;;  %v16107_v12 = vcombine.high %v16105_v53, %v16106_v1  ;;  %v13476_v6 = vpack.c.bf16 %v1555_v3, %v1551_v35 }
 0x38e   :  { %3541 = vmatpush1.bf16.msra.mxu1 %v16103_v0  ;;  %vm1428_vm15 = vcmp.ge.f32.partialorder %v1248_v36, 0.0  ;;  %v1492_v22 = vmul.f32 0.2, %v1248_v36  ;;  %vm1430_vm0 = vcmp.ge.f32.partialorder %v1361_v37, 0.0  ;;  %v16111_v2 = vcombine.high %v16109_v7, %v16110_v20 }
 0x38f   :  { %3317 = vmatpush1.bf16.msra.mxu0 %v16104_v41  ;;  %3542 = vmatprep.subr.bf16.mxu1 %v16107_v12  ;;  %16108 = vst [vmem:[#allocation32_spill] sm:$0xff] %v13476_v6  ;;  %v1557_v24 = vsel %vm1429_vm14, %v1359_v11, %v1493_v51  ;;  %v1494_v49 = vmul.f32 0.2, %v1361_v37  ;;  %vm1431_vm1 = vcmp.ge.f32.partialorder %v1252_v26, 0.0  ;;  %v1495_v10 = vmul.f32 0.2, %v1252_v26 }
 0x390   :  { %3318 = vmatprep.subr.bf16.mxu0 %v16111_v2  ;;  %v13481_v38 = vpack.c.bf16 %v1557_v24, %v1553_v18  ;;  %v1556_v43 = vsel %vm1428_vm15, %v1248_v36, %v1492_v22  ;;  %v1365_v60 = vadd.f32 %v1364_v28, %v13054_v14  ;;  %v1254_v48 = vadd.f32 %v1253_v42, %v13057_v15  ;;  %v1263_v28 = vpop.f32.mrb[45].mxu0  ;;  %v1376_v36 = vpop.f32.mrb[61].mxu1 }
 0x391   :  { %v16112_v35 = vcombine.low %v16105_v53, %v16106_v1  ;;  %v1554_v0 = vsel %vm1426_vm12, %v1357_v8, %v1490_v61  ;;  %v13489_v3 = vpack.c.bf16 %v1556_v43, %v1552_v23  ;;  %v1558_v11 = vsel %vm1430_vm0, %v1361_v37, %v1494_v49  ;;  %v16114_v53 = vld [vmem:[#allocation42_spill] sm:$0xff]  ;;  %v16115_v1 = vld [vmem:[#allocation43_spill] sm:$0xff]  ;;  %v16117_v8 = vld [vmem:[#allocation44_spill] sm:$0xff]  ;;  %v1378_v37 = vpop.f32.mrb[62].mxu1 }
 0x392   :  { %v1367_v51 = vadd.f32 %v1366_v50, %v13068_v25  ;;  %v16113_v18 = vcombine.low %v16109_v7, %v16110_v20  ;;  %v13495_v42 = vpack.c.bf16 %v1558_v11, %v1554_v0  ;;  %vm1433_vm2 = vcmp.ge.f32.partialorder %v1365_v60, 0.0  ;;  %v16118_v61 = vld [vmem:[#allocation45_spill] sm:$0xff]  ;;  %v1265_v50 = vpop.f32.mrb[46].mxu0  ;;  %v1380_v0 = vpop.f32.mrb[63].mxu1 }
 0x393   :  { %3543 = vmatpush1.bf16.msra.mxu1 %v16112_v35  ;;  %v1497_v41 = vmul.f32 0.2, %v1365_v60  ;;  %vm1432_vm3 = vcmp.ge.f32.partialorder %v1254_v48, 0.0  ;;  %v16116_v12 = vcombine.high %v16114_v53, %v16115_v1  ;;  %v16119_v23 = vcombine.high %v16117_v8, %v16118_v61  ;;  %3267 = vmatprep.mubr.bf16.mxu0 %v13489_v3  ;;  %v1267_v2 = vpop.f32.mrb[47].mxu0 }
 0x394   :  { %3319 = vmatpush1.bf16.msra.mxu0 %v16113_v18  ;;  %v1559_v22 = vsel %vm1431_vm1, %v1252_v26, %v1495_v10  ;;  %v1496_v7 = vmul.f32 0.2, %v1254_v48  ;;  %vm1434_vm4 = vcmp.ge.f32.partialorder %v1367_v51, 0.0  ;;  %v1256_v20 = vadd.f32 %v1255_v56, %v13051_v13  ;;  %3493 = vmatprep.mubr.bf16.mxu1 %v13489_v3  ;;  %v16122_v18 = vld [vmem:[#allocation48_spill] sm:$0xff] }
 0x395   :  { %3544 = vmatprep.subr.bf16.mxu1 %v16116_v12  ;;  %3320 = vmatprep.subr.bf16.mxu0 %v16119_v23  ;;  %v1498_v24 = vmul.f32 0.2, %v1367_v51  ;;  %v1369_v49 = vadd.f32 %v1368_v5, %v13054_v14  ;;  %v1258_v43 = vadd.f32 %v1257_v39, %v13057_v15  ;;  %v1371_v35 = vadd.f32 %v1370_v46, %v13068_v25 }
 0x396   :  { %3268 = vmatmul.mubr.bf16.gmra.mrb[68].mxu0 %v13476_v6  ;;  %v1561_v26 = vsel %vm1433_vm2, %v1365_v60, %v1497_v41  ;;  %v1560_v10 = vsel %vm1432_vm3, %v1254_v48, %v1496_v7  ;;  %vm1435_vm5 = vcmp.ge.f32.partialorder %v1256_v20, 0.0  ;;  %v1499_v56 = vmul.f32 0.2, %v1256_v20  ;;  %3494 = vmatmul.mubr.bf16.gmra.mrb[84].mxu1 %v13476_v6  ;;  %v16123_v60 = vld [vmem:[#allocation49_spill] sm:$0xff]  ;;  %v16125_v7 = vld [vmem:[#allocation46_spill] sm:$0xff] }
 0x397   :  { %v16120_v11 = vcombine.low %v16117_v8, %v16118_v61  ;;  %vm1437_vm6 = vcmp.ge.f32.partialorder %v1369_v49, 0.0  ;;  %v1501_v5 = vmul.f32 0.2, %v1369_v49  ;;  %vm1436_vm7 = vcmp.ge.f32.partialorder %v1258_v43, 0.0  ;;  %v16126_v8 = vld [vmem:[#allocation47_spill] sm:$0xff] }
 0x398   :  { %v1500_v39 = vmul.f32 0.2, %v1258_v43  ;;  %v16121_v46 = vcombine.low %v16114_v53, %v16115_v1  ;;  %v16124_v41 = vcombine.high %v16122_v18, %v16123_v60  ;;  %v1563_v48 = vsel %vm1435_vm5, %v1256_v20, %v1499_v56  ;;  %v13538_v56 = vld [vmem:[#allocation13 + $0x7c0] sm:$0xff] }
 0x399   :  { %3321 = vmatpush1.bf16.msra.mxu0 %v16120_v11  ;;  %vm1438_vm8 = vcmp.ge.f32.partialorder %v1371_v35, 0.0  ;;  %v1502_v12 = vmul.f32 0.2, %v1371_v35  ;;  %v1262_v23 = vadd.f32 %v1261_v27, %v13051_v13  ;;  %v16127_v61 = vcombine.high %v16125_v7, %v16126_v8 }
 0x39a   :  { %3545 = vmatpush1.bf16.msra.mxu1 %v16121_v46  ;;  %3322 = vmatprep.subr.bf16.mxu0 %v16124_v41  ;;  %v13527_v11 = vpack.c.bf16 %v1563_v48, %v1559_v22  ;;  %v1565_v31 = vsel %vm1437_vm6, %v1369_v49, %v1501_v5  ;;  %v1564_v6 = vsel %vm1436_vm7, %v1258_v43, %v1500_v39 }
 0x39b   :  { %3546 = vmatprep.subr.bf16.mxu1 %v16127_v61  ;;  %v1375_v53 = vadd.f32 %v1374_v62, %v13054_v14  ;;  %v1562_v1 = vsel %vm1434_vm4, %v1367_v51, %v1498_v24  ;;  %v13531_v46 = vpack.c.bf16 %v1565_v31, %v1561_v26  ;;  %v13533_v41 = vpack.c.bf16 %v1564_v6, %v1560_v10  ;;  %v13540_v61 = vld [vmem:[#allocation13 + $0x7e0] sm:$0xff]  ;;  %v16130_v6 = vld [vmem:[#allocation52_spill] sm:$0xff] }
 0x39c   :  { %v1566_v20 = vsel %vm1438_vm8, %v1371_v35, %v1502_v12  ;;  %v16128_v27 = vcombine.low %v16122_v18, %v16123_v60  ;;  %vm1439_vm9 = vcmp.ge.f32.partialorder %v1262_v23, 0.0  ;;  %v1503_v49 = vmul.f32 0.2, %v1262_v23  ;;  %v16131_v51 = vld [vmem:[#allocation53_spill] sm:$0xff] }
 0x39d   :  { %v13542_v22 = vpack.c.bf16 %v1566_v20, %v1562_v1  ;;  %v1505_v62 = vmul.f32 0.2, %v1375_v53  ;;  %v16129_v31 = vcombine.low %v16125_v7, %v16126_v8  ;;  %v16132_v24 = vcombine.high %v16130_v6, %v16131_v51  ;;  %3277 = vmatprep.mubr.bf16.mxu0 %v13533_v41  ;;  %3503 = vmatprep.mubr.bf16.mxu1 %v13533_v41  ;;  %v1820_v7 = vld [vmem:[#allocation13 + $0x7a8] sm:$0xff] }
 0x39e   :  { %3323 = vmatpush1.bf16.msra.mxu0 %v16128_v27  ;;  %v1264_v43 = vadd.f32 %v1263_v28, %v13057_v15  ;;  %v1377_v35 = vadd.f32 %v1376_v36, %v13068_v25  ;;  %v1266_v26 = vadd.f32 %v1265_v50, %v13051_v13  ;;  %v1379_v10 = vadd.f32 %v1378_v37, %v13054_v14  ;;  %v16134_v50 = vld [vmem:[#allocation51_spill] sm:$0xff]  ;;  %v16139_v27 = vld [vmem:[#allocation54_spill] sm:$0xff] }
 0x39f   :  { %3547 = vmatpush1.bf16.msra.mxu1 %v16129_v31  ;;  %3324 = vmatprep.subr.bf16.mxu0 %v16132_v24  ;;  %vm1441_vm10 = vcmp.ge.f32.partialorder %v1375_v53, 0.0  ;;  %v1268_v5 = vadd.f32 %v1267_v2, %v13057_v15  ;;  %v1381_v39 = vadd.f32 %v1380_v0, %v13068_v25  ;;  %v10387_v18 = vcombine.high %v13538_v56, %v13540_v61  ;;  %v16133_v15 = vld [vmem:[#allocation50_spill] sm:$0xff] }
 0x3a0   :  { %v1567_v60 = vsel %vm1439_vm9, %v1262_v23, %v1503_v49  ;;  %vm1440_vm11 = vcmp.ge.f32.partialorder %v1264_v43, 0.0  ;;  %v1504_v28 = vmul.f32 0.2, %v1264_v43  ;;  %v1506_v36 = vmul.f32 0.2, %v1377_v35  ;;  %3278 = vmatmul.mubr.bf16.gmra.mrb[72].mxu0 %v13527_v11  ;;  %3504 = vmatmul.mubr.bf16.gmra.mrb[88].mxu1 %v13527_v11  ;;  %v1816_v23 = vld [vmem:[#allocation13 + $0x788] sm:$0xff] }
 0x3a1   :  { %vm1443_vm12 = vcmp.ge.f32.partialorder %v1266_v26, 0.0  ;;  %v1507_v13 = vmul.f32 0.2, %v1266_v26  ;;  %vm1445_vm13 = vcmp.ge.f32.partialorder %v1379_v10, 0.0  ;;  %v1509_v14 = vmul.f32 0.2, %v1379_v10 }
 0x3a2   :  { %v16135_v25 = vcombine.high %v16133_v15, %v16134_v50  ;;  %v16136_v37 = vcombine.low %v16130_v6, %v16131_v51  ;;  %v1569_v2 = vsel %vm1441_vm10, %v1375_v53, %v1505_v62  ;;  %vm1442_vm14 = vcmp.ge.f32.partialorder %v1377_v35, 0.0  ;;  %v16140_v49 = vld [vmem:[#allocation55_spill] sm:$0xff]  ;;  %v1824_v24 = vld [vmem:[#allocation13 + $0x7c8] sm:$0xff] }
 0x3a3   :  { %vm1444_vm15 = vcmp.ge.f32.partialorder %v1268_v5, 0.0  ;;  %v1508_v0 = vmul.f32 0.2, %v1268_v5  ;;  %v16137_v48 = vcombine.low %v16133_v15, %v16134_v50  ;;  %v16138_v12 = vcombine.high %v16102_v58, %v16101_v33  ;;  %v1828_v15 = vld [vmem:[#allocation13 + $0x7e8] sm:$0xff] }
 0x3a4   :  { %3548 = vmatprep.subr.bf16.mxu1 %v16135_v25  ;;  %3325 = vmatpush1.bf16.msra.mxu0 %v16136_v37  ;;  %v1571_v8 = vsel %vm1443_vm12, %v1266_v26, %v1507_v13  ;;  %v1573_v1 = vsel %vm1445_vm13, %v1379_v10, %v1509_v14  ;;  %vm1446_vm0 = vcmp.ge.f32.partialorder %v1381_v39, 0.0  ;;  %v1510_v20 = vmul.f32 0.2, %v1381_v39  ;;  %v1577_v14 = vld [vmem:[#allocation13 + $0x10] sm:$0xff] }
 0x3a5   :  { %3549 = vmatpush1.bf16.msra.mxu1 %v16137_v48  ;;  %3326 = vmatprep.subr.bf16.mxu0 %v16138_v12  ;;  %v16141_v53 = vcombine.high %v16139_v27, %v16140_v49  ;;  %v1568_v62 = vsel %vm1440_vm11, %v1264_v43, %v1504_v28  ;;  %v13579_v31 = vpack.c.bf16 %v1571_v8, %v1567_v60  ;;  %v1581_v37 = vld [vmem:[#allocation13 + $0x30] sm:$0xff]  ;;  %v1582_v28 = vld [vmem:[#allocation13 + $0x38] sm:$0xff] }
 0x3a6   :  { %v13581_v6 = vpack.c.bf16 %v1573_v1, %v1569_v2  ;;  %v1572_v51 = vsel %vm1444_vm15, %v1268_v5, %v1508_v0  ;;  %v1570_v50 = vsel %vm1442_vm14, %v1377_v35, %v1506_v36  ;;  %v1574_v26 = vsel %vm1446_vm0, %v1381_v39, %v1510_v20  ;;  %v1578_v39 = vld [vmem:[#allocation13 + $0x18] sm:$0xff]  ;;  %v1597_v8 = vld [vmem:[#allocation13 + $0xb0] sm:$0xff] }
 0x3a7   :  { %3550 = vmatprep.subr.bf16.mxu1 %v16141_v53  ;;  %v13584_v25 = vpack.c.bf16 %v1572_v51, %v1568_v62  ;;  %v16142_v10 = vcombine.low %v16102_v58, %v16101_v33  ;;  %v10381_v13 = vcombine.high %v1816_v23, %v1820_v7  ;;  %v13589_v43 = vpack.c.bf16 %v1574_v26, %v1570_v50  ;;  %v1586_v0 = vld [vmem:[#allocation13 + $0x58] sm:$0xff] }
 0x3a8   :  { %v16143_v60 = vcombine.low %v16139_v27, %v16140_v49  ;;  %v10380_v5 = vcombine.low %v1816_v23, %v1820_v7  ;;  %v10386_v35 = vcombine.low %v13538_v56, %v13540_v61  ;;  %v10389_v33 = vcombine.high %v1824_v24, %v1828_v15  ;;  %v1585_v56 = vld [vmem:[#allocation13 + $0x50] sm:$0xff]  ;;  %v1590_v48 = vld [vmem:[#allocation13 + $0x78] sm:$0xff] }
 0x3a9   :  { %3327 = vmatpush1.bf16.msra.mxu0 %v16142_v10  ;;  %3287 = vmatprep.mubr.bf16.mxu0 %v13584_v25  ;;  %v10143_v58 = vcombine.high %v1577_v14, %v1581_v37  ;;  %v10145_v36 = vcombine.high %v1578_v39, %v1582_v28  ;;  %v1589_v61 = vld [vmem:[#allocation13 + $0x70] sm:$0xff]  ;;  %v10142_v2 = vcombine.low %v1577_v14, %v1581_v37  ;;  %v1594_v27 = vld [vmem:[#allocation13 + $0x98] sm:$0xff] }
 0x3aa   :  { %3551 = vmatpush1.bf16.msra.mxu1 %v16143_v60  ;;  %3328 = vmatprep.subr.bf16.mxu0 %v10387_v18  ;;  %v10388_v18 = vcombine.low %v1824_v24, %v1828_v15  ;;  %v10144_v12 = vcombine.low %v1578_v39, %v1582_v28  ;;  %v10151_v23 = vcombine.high %v1585_v56, %v1589_v61  ;;  %v1593_v7 = vld [vmem:[#allocation13 + $0x90] sm:$0xff]  ;;  %v1598_v49 = vld [vmem:[#allocation13 + $0xb8] sm:$0xff] }
 0x3ab   :  { %3513 = vmatprep.mubr.bf16.mxu1 %v13584_v25  ;;  %3288 = vmatmul.mubr.bf16.gmra.mrb[76].mxu0 %v13579_v31  ;;  %v10153_v1 = vcombine.high %v1586_v0, %v1590_v48  ;;  %v10150_v20 = vcombine.low %v1585_v56, %v1589_v61  ;;  %v10159_v53 = vcombine.high %v1593_v7, %v1597_v8  ;;  %v1601_v24 = vld [vmem:[#allocation13 + $0xd0] sm:$0xff]  ;;  %v1602_v26 = vld [vmem:[#allocation13 + $0xd8] sm:$0xff] }
 0x3ac   :  { %3514 = vmatmul.mubr.bf16.gmra.mrb[92].mxu1 %v13579_v31  ;;  %3552 = vmatprep.subr.bf16.mxu1 %v10381_v13  ;;  %v10152_v62 = vcombine.low %v1586_v0, %v1590_v48  ;;  %v10161_v51 = vcombine.high %v1594_v27, %v1598_v49  ;;  %v1605_v15 = vld [vmem:[#allocation13 + $0xf0] sm:$0xff]  ;;  %v10158_v50 = vcombine.low %v1593_v7, %v1597_v8  ;;  %v1606_v10 = vld [vmem:[#allocation13 + $0xf8] sm:$0xff] }
 0x3ad   :  { %3330 = vmatprep.mubr.bf16.mxu0 %v13260_v44  ;;  %3556 = vmatprep.mubr.bf16.mxu1 %v13260_v44  ;;  %v10160_v13 = vcombine.low %v1594_v27, %v1598_v49  ;;  %v10167_v14 = vcombine.high %v1601_v24, %v1605_v15  ;;  %v1609_v37 = vld [vmem:[#allocation13 + $0x110] sm:$0xff]  ;;  %v10168_v28 = vcombine.low %v1602_v26, %v1606_v10  ;;  %v1622_v0 = vld [vmem:[#allocation13 + $0x178] sm:$0xff] }
 0x3ae   :  { %3553 = vmatpush1.bf16.msra.mxu1 %v10380_v5  ;;  %3329 = vmatpush1.bf16.msra.mxu0 %v10386_v35  ;;  %v1613_v60 = vld [vmem:[#allocation13 + $0x130] sm:$0xff]  ;;  %v10169_v5 = vcombine.high %v1602_v26, %v1606_v10  ;;  %v10166_v35 = vcombine.low %v1601_v24, %v1605_v15  ;;  %v1630_v27 = vld [vmem:[#allocation13 + $0x1b8] sm:$0xff] }
 0x3af   :  { %3554 = vmatprep.subr.bf16.mxu1 %v10389_v33  ;;  %3637 = vmatprep.subr.bf16.mxu0 %v10143_v58  ;;  %v1610_v33 = vld [vmem:[#allocation13 + $0x118] sm:$0xff]  ;;  %v10175_v39 = vcombine.high %v1609_v37, %v1613_v60  ;;  %v1621_v56 = vld [vmem:[#allocation13 + $0x170] sm:$0xff]  ;;  %v10174_v61 = vcombine.low %v1609_v37, %v1613_v60 }
 0x3b0   :  { %v1614_v58 = vld [vmem:[#allocation13 + $0x138] sm:$0xff]  ;;  %v1629_v7 = vld [vmem:[#allocation13 + $0x1b0] sm:$0xff] }
 0x3b1   :  { %v10176_v48 = vcombine.low %v1610_v33, %v1614_v58  ;;  %v1637_v24 = vld [vmem:[#allocation13 + $0x1f0] sm:$0xff]  ;;  %v1638_v26 = vld [vmem:[#allocation13 + $0x1f8] sm:$0xff] }
 0x3b2   :  { %3555 = vmatpush1.bf16.msra.mxu1 %v10388_v18  ;;  %v10177_v18 = vcombine.high %v1610_v33, %v1614_v58  ;;  %v1645_v37 = vld [vmem:[#allocation13 + $0x230] sm:$0xff]  ;;  %v1646_v33 = vld [vmem:[#allocation13 + $0x238] sm:$0xff] }
 0x3b3   :  { %3863 = vmatprep.subr.bf16.mxu1 %v10145_v36  ;;  %3331 = vmatmul.mubr.bf16.vlgmr.msra.gmra.mrb[48].mxu0 %v13256_v40  ;;  %v1617_v36 = vld [vmem:[#allocation13 + $0x150] sm:$0xff] }
 0x3b4   :  { %3638 = vmatpush1.bf16.msra.mxu0 %v10142_v2  ;;  %3340 = vmatprep.mubr.bf16.mxu0 %v13309_v19  ;;  %v1618_v2 = vld [vmem:[#allocation13 + $0x158] sm:$0xff] }
 0x3b5   :  { %3557 = vmatmul.mubr.bf16.vlgmr.msra.gmra.mrb[64].mxu1 %v13256_v40  ;;  %3639 = vmatprep.subr.bf16.mxu0 %v10151_v23  ;;  %v1625_v23 = vld [vmem:[#allocation13 + $0x190] sm:$0xff]  ;;  %v10185_v8 = vcombine.high %v1618_v2, %v1622_v0 }
 0x3b6   :  { %3566 = vmatprep.mubr.bf16.mxu1 %v13309_v19  ;;  %3864 = vmatpush1.bf16.msra.mxu1 %v10144_v12  ;;  %v10183_v12 = vcombine.high %v1617_v36, %v1621_v56  ;;  %v10191_v49 = vcombine.high %v1625_v23, %v1629_v7  ;;  %v10190_v15 = vcombine.low %v1625_v23, %v1629_v7  ;;  %v1661_v23 = vld [vmem:[#allocation13 + $0x2b0] sm:$0xff] }
 0x3b7   :  { %3865 = vmatprep.subr.bf16.mxu1 %v10153_v1  ;;  %v10182_v1 = vcombine.low %v1617_v36, %v1621_v56  ;;  %v1653_v36 = vld [vmem:[#allocation13 + $0x270] sm:$0xff] }
 0x3b8   :  { %3640 = vmatpush1.bf16.msra.mxu0 %v10150_v20  ;;  %v1626_v20 = vld [vmem:[#allocation13 + $0x198] sm:$0xff] }
 0x3b9   :  { %3641 = vmatprep.subr.bf16.mxu0 %v10159_v53  ;;  %v10184_v53 = vcombine.low %v1618_v2, %v1622_v0  ;;  %v10192_v10 = vcombine.low %v1626_v20, %v1630_v27  ;;  %v1654_v2 = vld [vmem:[#allocation13 + $0x278] sm:$0xff] }
 0x3ba   :  { %3866 = vmatpush1.bf16.msra.mxu1 %v10152_v62  ;;  %v10193_v62 = vcombine.high %v1626_v20, %v1630_v27  ;;  %v1662_v20 = vld [vmem:[#allocation13 + $0x2b8] sm:$0xff] }
 0x3bb   :  { %3341 = vmatmul.mubr.bf16.gmra.mrb[52].mxu0 %v13291_v47  ;;  %3867 = vmatprep.subr.bf16.mxu1 %v10161_v51  ;;  %v1633_v51 = vld [vmem:[#allocation13 + $0x1d0] sm:$0xff] }
 0x3bc   :  { %3642 = vmatpush1.bf16.msra.mxu0 %v10158_v50  ;;  %3350 = vmatprep.mubr.bf16.mxu0 %v13348_v57  ;;  %v1634_v50 = vld [vmem:[#allocation13 + $0x1d8] sm:$0xff] }
 0x3bd   :  { %3567 = vmatmul.mubr.bf16.gmra.mrb[68].mxu1 %v13291_v47  ;;  %3643 = vmatprep.subr.bf16.mxu0 %v10167_v14  ;;  %v1641_v14 = vld [vmem:[#allocation13 + $0x210] sm:$0xff]  ;;  %v10201_v60 = vcombine.high %v1634_v50, %v1638_v26 }
 0x3be   :  { %3576 = vmatprep.mubr.bf16.mxu1 %v13348_v57  ;;  %3868 = vmatpush1.bf16.msra.mxu1 %v10160_v13  ;;  %v10199_v13 = vcombine.high %v1633_v51, %v1637_v24  ;;  %v10207_v58 = vcombine.high %v1641_v14, %v1645_v37  ;;  %v10206_v56 = vcombine.low %v1641_v14, %v1645_v37  ;;  %v1677_v14 = vld [vmem:[#allocation13 + $0x330] sm:$0xff] }
 0x3bf   :  { %3869 = vmatprep.subr.bf16.mxu1 %v10169_v5  ;;  %v10198_v5 = vcombine.low %v1633_v51, %v1637_v24  ;;  %v1669_v51 = vld [vmem:[#allocation13 + $0x2f0] sm:$0xff] }
 0x3c0   :  { %3644 = vmatpush1.bf16.msra.mxu0 %v10166_v35  ;;  %v1642_v35 = vld [vmem:[#allocation13 + $0x218] sm:$0xff] }
 0x3c1   :  { %3645 = vmatprep.subr.bf16.mxu0 %v10175_v39  ;;  %v10200_v39 = vcombine.low %v1634_v50, %v1638_v26  ;;  %v10208_v0 = vcombine.low %v1642_v35, %v1646_v33  ;;  %v1670_v50 = vld [vmem:[#allocation13 + $0x2f8] sm:$0xff] }
 0x3c2   :  { %3870 = vmatpush1.bf16.msra.mxu1 %v10168_v28  ;;  %v10209_v28 = vcombine.high %v1642_v35, %v1646_v33  ;;  %v1678_v35 = vld [vmem:[#allocation13 + $0x338] sm:$0xff] }
 0x3c3   :  { %3351 = vmatmul.mubr.bf16.gmra.mrb[56].mxu0 %v13342_v21  ;;  %3871 = vmatprep.subr.bf16.mxu1 %v10177_v18  ;;  %v1649_v18 = vld [vmem:[#allocation13 + $0x250] sm:$0xff] }
 0x3c4   :  { %3646 = vmatpush1.bf16.msra.mxu0 %v10174_v61  ;;  %3360 = vmatprep.mubr.bf16.mxu0 %v13408_v9  ;;  %v1650_v61 = vld [vmem:[#allocation13 + $0x258] sm:$0xff] }
 0x3c5   :  { %3577 = vmatmul.mubr.bf16.gmra.mrb[72].mxu1 %v13342_v21  ;;  %3647 = vmatprep.subr.bf16.mxu0 %v10183_v12  ;;  %v1657_v12 = vld [vmem:[#allocation13 + $0x290] sm:$0xff]  ;;  %v10217_v7 = vcombine.high %v1650_v61, %v1654_v2 }
 0x3c6   :  { %3586 = vmatprep.mubr.bf16.mxu1 %v13408_v9  ;;  %3872 = vmatpush1.bf16.msra.mxu1 %v10176_v48  ;;  %v10215_v48 = vcombine.high %v1649_v18, %v1653_v36  ;;  %v10223_v27 = vcombine.high %v1657_v12, %v1661_v23  ;;  %v10222_v24 = vcombine.low %v1657_v12, %v1661_v23  ;;  %v1693_v12 = vld [vmem:[#allocation13 + $0x3b0] sm:$0xff] }
 0x3c7   :  { %3873 = vmatprep.subr.bf16.mxu1 %v10185_v8  ;;  %v10214_v8 = vcombine.low %v1649_v18, %v1653_v36  ;;  %v1685_v18 = vld [vmem:[#allocation13 + $0x370] sm:$0xff] }
 0x3c8   :  { %3648 = vmatpush1.bf16.msra.mxu0 %v10182_v1  ;;  %v1658_v1 = vld [vmem:[#allocation13 + $0x298] sm:$0xff] }
 0x3c9   :  { %3649 = vmatprep.subr.bf16.mxu0 %v10191_v49  ;;  %v10216_v49 = vcombine.low %v1650_v61, %v1654_v2  ;;  %v10224_v26 = vcombine.low %v1658_v1, %v1662_v20  ;;  %v1686_v61 = vld [vmem:[#allocation13 + $0x378] sm:$0xff] }
 0x3ca   :  { %3874 = vmatpush1.bf16.msra.mxu1 %v10184_v53  ;;  %v10225_v53 = vcombine.high %v1658_v1, %v1662_v20  ;;  %v1694_v1 = vld [vmem:[#allocation13 + $0x3b8] sm:$0xff] }
 0x3cb   :  { %3361 = vmatmul.mubr.bf16.gmra.mrb[60].mxu0 %v13390_v17  ;;  %3875 = vmatprep.subr.bf16.mxu1 %v10193_v62  ;;  %v1665_v62 = vld [vmem:[#allocation13 + $0x2d0] sm:$0xff] }
 0x3cc   :  { %3650 = vmatpush1.bf16.msra.mxu0 %v10190_v15  ;;  %3370 = vmatprep.mubr.bf16.mxu0 %v13450_v29  ;;  %v1666_v15 = vld [vmem:[#allocation13 + $0x2d8] sm:$0xff] }
 0x3cd   :  { %3587 = vmatmul.mubr.bf16.gmra.mrb[76].mxu1 %v13390_v17  ;;  %3651 = vmatprep.subr.bf16.mxu0 %v10199_v13  ;;  %v1673_v13 = vld [vmem:[#allocation13 + $0x310] sm:$0xff]  ;;  %v10233_v37 = vcombine.high %v1666_v15, %v1670_v50 }
 0x3ce   :  { %3596 = vmatprep.mubr.bf16.mxu1 %v13450_v29  ;;  %3876 = vmatpush1.bf16.msra.mxu1 %v10192_v10  ;;  %v10231_v10 = vcombine.high %v1665_v62, %v1669_v51  ;;  %v10239_v33 = vcombine.high %v1673_v13, %v1677_v14  ;;  %v10238_v36 = vcombine.low %v1673_v13, %v1677_v14  ;;  %v1709_v13 = vld [vmem:[#allocation13 + $0x430] sm:$0xff] }
 0x3cf   :  { %3877 = vmatprep.subr.bf16.mxu1 %v10201_v60  ;;  %v10230_v60 = vcombine.low %v1665_v62, %v1669_v51  ;;  %v1701_v62 = vld [vmem:[#allocation13 + $0x3f0] sm:$0xff] }
 0x3d0   :  { %3652 = vmatpush1.bf16.msra.mxu0 %v10198_v5  ;;  %v1674_v5 = vld [vmem:[#allocation13 + $0x318] sm:$0xff] }
 0x3d1   :  { %3653 = vmatprep.subr.bf16.mxu0 %v10207_v58  ;;  %v10232_v58 = vcombine.low %v1666_v15, %v1670_v50  ;;  %v10240_v2 = vcombine.low %v1674_v5, %v1678_v35  ;;  %v1702_v15 = vld [vmem:[#allocation13 + $0x3f8] sm:$0xff] }
 0x3d2   :  { %3878 = vmatpush1.bf16.msra.mxu1 %v10200_v39  ;;  %v10241_v39 = vcombine.high %v1674_v5, %v1678_v35  ;;  %v1710_v5 = vld [vmem:[#allocation13 + $0x438] sm:$0xff] }
 0x3d3   :  { %3371 = vmatmul.mubr.bf16.gmra.mrb[64].mxu0 %v13433_v59  ;;  %3879 = vmatprep.subr.bf16.mxu1 %v10209_v28  ;;  %v1681_v28 = vld [vmem:[#allocation13 + $0x350] sm:$0xff] }
 0x3d4   :  { %3654 = vmatpush1.bf16.msra.mxu0 %v10206_v56  ;;  %3380 = vmatprep.mubr.bf16.mxu0 %v13495_v42  ;;  %v1682_v56 = vld [vmem:[#allocation13 + $0x358] sm:$0xff] }
 0x3d5   :  { %3597 = vmatmul.mubr.bf16.gmra.mrb[80].mxu1 %v13433_v59  ;;  %3655 = vmatprep.subr.bf16.mxu0 %v10215_v48  ;;  %v1689_v48 = vld [vmem:[#allocation13 + $0x390] sm:$0xff]  ;;  %v10249_v23 = vcombine.high %v1682_v56, %v1686_v61 }
 0x3d6   :  { %3606 = vmatprep.mubr.bf16.mxu1 %v13495_v42  ;;  %3880 = vmatpush1.bf16.msra.mxu1 %v10208_v0  ;;  %v10247_v0 = vcombine.high %v1681_v28, %v1685_v18  ;;  %v10255_v20 = vcombine.high %v1689_v48, %v1693_v12  ;;  %v10254_v51 = vcombine.low %v1689_v48, %v1693_v12  ;;  %v1725_v48 = vld [vmem:[#allocation13 + $0x4b0] sm:$0xff] }
 0x3d7   :  { %3881 = vmatprep.subr.bf16.mxu1 %v10217_v7  ;;  %v10246_v7 = vcombine.low %v1681_v28, %v1685_v18 }
 0x3d8   :  { %3656 = vmatpush1.bf16.msra.mxu0 %v10214_v8  ;;  %v1690_v8 = vld [vmem:[#allocation13 + $0x398] sm:$0xff] }
 0x3d9   :  { %3657 = vmatprep.subr.bf16.mxu0 %v10223_v27  ;;  %v10248_v27 = vcombine.low %v1682_v56, %v1686_v61  ;;  %v10256_v50 = vcombine.low %v1690_v8, %v1694_v1  ;;  %v1718_v56 = vld [vmem:[#allocation13 + $0x478] sm:$0xff] }
 0x3da   :  { %3882 = vmatpush1.bf16.msra.mxu1 %v10216_v49  ;;  %v10257_v49 = vcombine.high %v1690_v8, %v1694_v1 }
 0x3db   :  { %3381 = vmatmul.mubr.bf16.gmra.mrb[68].mxu0 %v13481_v38  ;;  %3883 = vmatprep.subr.bf16.mxu1 %v10225_v53  ;;  %v1697_v53 = vld [vmem:[#allocation13 + $0x3d0] sm:$0xff] }
 0x3dc   :  { %3658 = vmatpush1.bf16.msra.mxu0 %v10222_v24  ;;  %3390 = vmatprep.mubr.bf16.mxu0 %v13542_v22  ;;  %v1698_v24 = vld [vmem:[#allocation13 + $0x3d8] sm:$0xff] }
 0x3dd   :  { %3607 = vmatmul.mubr.bf16.gmra.mrb[84].mxu1 %v13481_v38  ;;  %3659 = vmatprep.subr.bf16.mxu0 %v10231_v10  ;;  %v1705_v10 = vld [vmem:[#allocation13 + $0x410] sm:$0xff]  ;;  %v10265_v14 = vcombine.high %v1698_v24, %v1702_v15 }
 0x3de   :  { %3616 = vmatprep.mubr.bf16.mxu1 %v13542_v22  ;;  %3884 = vmatpush1.bf16.msra.mxu1 %v10224_v26  ;;  %v10263_v26 = vcombine.high %v1697_v53, %v1701_v62  ;;  %v10271_v35 = vcombine.high %v1705_v10, %v1709_v13  ;;  %v10270_v18 = vcombine.low %v1705_v10, %v1709_v13  ;;  %v1738_v10 = vld [vmem:[#allocation13 + $0x518] sm:$0xff] }
 0x3df   :  { %3885 = vmatprep.subr.bf16.mxu1 %v10233_v37  ;;  %v10262_v37 = vcombine.low %v1697_v53, %v1701_v62  ;;  %v1730_v62 = vld [vmem:[#allocation13 + $0x4d8] sm:$0xff] }
 0x3e0   :  { %3660 = vmatpush1.bf16.msra.mxu0 %v10230_v60  ;;  %v1706_v60 = vld [vmem:[#allocation13 + $0x418] sm:$0xff] }
 0x3e1   :  { %3661 = vmatprep.subr.bf16.mxu0 %v10239_v33  ;;  %v10264_v33 = vcombine.low %v1698_v24, %v1702_v15  ;;  %v10273_v28 = vcombine.high %v1706_v60, %v1710_v5  ;;  %v1742_v13 = vld [vmem:[#allocation13 + $0x538] sm:$0xff] }
 0x3e2   :  { %3886 = vmatpush1.bf16.msra.mxu1 %v10232_v58  ;;  %v1713_v58 = vld [vmem:[#allocation13 + $0x450] sm:$0xff] }
 0x3e3   :  { %3391 = vmatmul.mubr.bf16.gmra.mrb[72].mxu0 %v13531_v46  ;;  %3887 = vmatprep.subr.bf16.mxu1 %v10241_v39  ;;  %v1717_v39 = vld [vmem:[#allocation13 + $0x470] sm:$0xff] }
 0x3e4   :  { %3662 = vmatpush1.bf16.msra.mxu0 %v10238_v36  ;;  %3400 = vmatprep.mubr.bf16.mxu0 %v13589_v43  ;;  %v1714_v36 = vld [vmem:[#allocation13 + $0x458] sm:$0xff]  ;;  %v10279_v61 = vcombine.high %v1713_v58, %v1717_v39  ;;  %v10278_v12 = vcombine.low %v1713_v58, %v1717_v39 }
 0x3e5   :  { %3617 = vmatmul.mubr.bf16.gmra.mrb[88].mxu1 %v13531_v46  ;;  %3663 = vmatprep.subr.bf16.mxu0 %v10247_v0  ;;  %v1721_v0 = vld [vmem:[#allocation13 + $0x490] sm:$0xff]  ;;  %v10280_v1 = vcombine.low %v1714_v36, %v1718_v56  ;;  %v1746_v58 = vld [vmem:[#allocation13 + $0x558] sm:$0xff] }
 0x3e6   :  { %3626 = vmatprep.mubr.bf16.mxu1 %v13589_v43  ;;  %3888 = vmatpush1.bf16.msra.mxu1 %v10240_v2  ;;  %v10272_v2 = vcombine.low %v1706_v60, %v1710_v5  ;;  %v10287_v8 = vcombine.high %v1721_v0, %v1725_v48  ;;  %v10286_v53 = vcombine.low %v1721_v0, %v1725_v48  ;;  %v1745_v60 = vld [vmem:[#allocation13 + $0x550] sm:$0xff]  ;;  %v1750_v39 = vld [vmem:[#allocation13 + $0x578] sm:$0xff] }
 0x3e7   :  { %3889 = vmatprep.subr.bf16.mxu1 %v10249_v23  ;;  %v1722_v23 = vld [vmem:[#allocation13 + $0x498] sm:$0xff]  ;;  %v1749_v5 = vld [vmem:[#allocation13 + $0x570] sm:$0xff]  ;;  %v10312_v48 = vcombine.low %v1746_v58, %v1750_v39 }
 0x3e8   :  { %3664 = vmatpush1.bf16.msra.mxu0 %v10246_v7  ;;  %v1726_v7 = vld [vmem:[#allocation13 + $0x4b8] sm:$0xff] }
 0x3e9   :  { %3665 = vmatprep.subr.bf16.mxu0 %v10255_v20  ;;  %v1729_v20 = vld [vmem:[#allocation13 + $0x4d0] sm:$0xff]  ;;  %v10288_v15 = vcombine.low %v1722_v23, %v1726_v7 }
 0x3ea   :  { %3890 = vmatpush1.bf16.msra.mxu1 %v10248_v27  ;;  %v1733_v27 = vld [vmem:[#allocation13 + $0x4f0] sm:$0xff] }
 0x3eb   :  { %3401 = vmatmul.mubr.bf16.gmra.mrb[76].mxu0 %v13581_v6  ;;  %3891 = vmatprep.subr.bf16.mxu1 %v10257_v49  ;;  %v10289_v49 = vcombine.high %v1722_v23, %v1726_v7  ;;  %v10295_v24 = vcombine.high %v1729_v20, %v1733_v27 }
 0x3ec   :  { %3666 = vmatpush1.bf16.msra.mxu0 %v10254_v51  ;;  %3669 = vmatprep.mubr.bf16.mxu0 %v13258_v45  ;;  %v1734_v51 = vld [vmem:[#allocation13 + $0x4f8] sm:$0xff] }
 0x3ed   :  { %3627 = vmatmul.mubr.bf16.gmra.mrb[92].mxu1 %v13581_v6  ;;  %3667 = vmatprep.subr.bf16.mxu0 %v10263_v26  ;;  %v10294_v26 = vcombine.low %v1729_v20, %v1733_v27 }
 0x3ee   :  { %3895 = vmatprep.mubr.bf16.mxu1 %v13258_v45  ;;  %3892 = vmatpush1.bf16.msra.mxu1 %v10256_v50  ;;  %v10281_v45 = vcombine.high %v1714_v36, %v1718_v56  ;;  %v1737_v50 = vld [vmem:[#allocation13 + $0x510] sm:$0xff]  ;;  %v10310_v56 = vcombine.low %v1745_v60, %v1749_v5 }
 0x3ef   :  { %3893 = vmatprep.subr.bf16.mxu1 %v10265_v14  ;;  %v1753_v36 = vld [vmem:[#allocation13 + $0x590] sm:$0xff] }
 0x3f0   :  { %3668 = vmatpush1.bf16.msra.mxu0 %v10262_v37  ;;  %v10296_v37 = vcombine.low %v1730_v62, %v1734_v51 }
 0x3f1   :  { %3750 = vmatprep.subr.bf16.mxu0 %v10271_v35  ;;  %v10305_v35 = vcombine.high %v1738_v10, %v1742_v13 }
 0x3f2   :  { %3894 = vmatpush1.bf16.msra.mxu1 %v10264_v33 }
 0x3f3   :  { %3670 = vmatmul.mubr.bf16.vlgmr.msra.gmra.mrb[80].mxu0 %v13254_v32  ;;  %3976 = vmatprep.subr.bf16.mxu1 %v10273_v28  ;;  %v10311_v28 = vcombine.high %v1745_v60, %v1749_v5  ;;  %v1785_v60 = vld [vmem:[#allocation13 + $0x690] sm:$0xff] }
 0x3f4   :  { %3751 = vmatpush1.bf16.msra.mxu0 %v10270_v18  ;;  %3679 = vmatprep.mubr.bf16.mxu0 %v13305_v63  ;;  %v10304_v18 = vcombine.low %v1738_v10, %v1742_v13  ;;  %v1778_v10 = vld [vmem:[#allocation13 + $0x658] sm:$0xff] }
 0x3f5   :  { %3896 = vmatmul.mubr.bf16.vlgmr.msra.gmra.mrb[96].mxu1 %v13254_v32  ;;  %3752 = vmatprep.subr.bf16.mxu0 %v10279_v61  ;;  %v1741_v32 = vld [vmem:[#allocation13 + $0x530] sm:$0xff]  ;;  %v1754_v61 = vld [vmem:[#allocation13 + $0x598] sm:$0xff] }
 0x3f6   :  { %3905 = vmatprep.mubr.bf16.mxu1 %v13305_v63  ;;  %3977 = vmatpush1.bf16.msra.mxu1 %v10272_v2  ;;  %v10297_v63 = vcombine.high %v1730_v62, %v1734_v51  ;;  %v10303_v14 = vcombine.high %v1737_v50, %v1741_v32  ;;  %v10302_v33 = vcombine.low %v1737_v50, %v1741_v32  ;;  %v1758_v2 = vld [vmem:[#allocation13 + $0x5b8] sm:$0xff]  ;;  %v1777_v50 = vld [vmem:[#allocation13 + $0x650] sm:$0xff] }
 0x3f7   :  { %3978 = vmatprep.subr.bf16.mxu1 %v10281_v45  ;;  %v1761_v45 = vld [vmem:[#allocation13 + $0x5d0] sm:$0xff]  ;;  %v10321_v23 = vcombine.high %v1754_v61, %v1758_v2  ;;  %v10320_v27 = vcombine.low %v1754_v61, %v1758_v2  ;;  %v1770_v62 = vld [vmem:[#allocation13 + $0x618] sm:$0xff] }
 0x3f8   :  { %3753 = vmatpush1.bf16.msra.mxu0 %v10278_v12  ;;  %v1765_v12 = vld [vmem:[#allocation13 + $0x5f0] sm:$0xff]  ;;  %v1774_v51 = vld [vmem:[#allocation13 + $0x638] sm:$0xff] }
 0x3f9   :  { %3754 = vmatprep.subr.bf16.mxu0 %v10287_v8  ;;  %v1762_v8 = vld [vmem:[#allocation13 + $0x5d8] sm:$0xff]  ;;  %v10327_v20 = vcombine.high %v1761_v45, %v1765_v12  ;;  %v1781_v32 = vld [vmem:[#allocation13 + $0x670] sm:$0xff] }
 0x3fa   :  { %3979 = vmatpush1.bf16.msra.mxu1 %v10280_v1  ;;  %v1766_v1 = vld [vmem:[#allocation13 + $0x5f8] sm:$0xff]  ;;  %v10342_v5 = vcombine.low %v1777_v50, %v1781_v32 }
 0x3fb   :  { %3680 = vmatmul.mubr.bf16.gmra.mrb[84].mxu0 %v13287_v54  ;;  %3980 = vmatprep.subr.bf16.mxu1 %v10289_v49  ;;  %v1769_v49 = vld [vmem:[#allocation13 + $0x610] sm:$0xff]  ;;  %v1782_v13 = vld [vmem:[#allocation13 + $0x678] sm:$0xff] }
 0x3fc   :  { %3755 = vmatpush1.bf16.msra.mxu0 %v10286_v53  ;;  %3689 = vmatprep.mubr.bf16.mxu0 %v13346_v52  ;;  %v10326_v53 = vcombine.low %v1761_v45, %v1765_v12  ;;  %v1802_v12 = vld [vmem:[#allocation13 + $0x718] sm:$0xff] }
 0x3fd   :  { %3906 = vmatmul.mubr.bf16.gmra.mrb[100].mxu1 %v13287_v54  ;;  %3756 = vmatprep.subr.bf16.mxu0 %v10295_v24  ;;  %v1757_v54 = vld [vmem:[#allocation13 + $0x5b0] sm:$0xff] }
 0x3fe   :  { %3915 = vmatprep.mubr.bf16.mxu1 %v13346_v52  ;;  %3981 = vmatpush1.bf16.msra.mxu1 %v10288_v15  ;;  %v10313_v52 = vcombine.high %v1746_v58, %v1750_v39  ;;  %v10319_v0 = vcombine.high %v1753_v36, %v1757_v54  ;;  %v10318_v7 = vcombine.low %v1753_v36, %v1757_v54 }
 0x3ff   :  { %3982 = vmatprep.subr.bf16.mxu1 %v10297_v63  ;;  %v10328_v15 = vcombine.low %v1762_v8, %v1766_v1  ;;  %v10337_v63 = vcombine.high %v1770_v62, %v1774_v51  ;;  %v10344_v39 = vcombine.low %v1778_v10, %v1782_v13 }
 0x400   :  { %3757 = vmatpush1.bf16.msra.mxu0 %v10294_v26 }
 0x401   :  { %3758 = vmatprep.subr.bf16.mxu0 %v10303_v14  ;;  %v10343_v14 = vcombine.high %v1777_v50, %v1781_v32  ;;  %v1818_v50 = vld [vmem:[#allocation13 + $0x798] sm:$0xff] }
 0x402   :  { %3983 = vmatpush1.bf16.msra.mxu1 %v10296_v37  ;;  %v10336_v37 = vcombine.low %v1770_v62, %v1774_v51  ;;  %v1817_v51 = vld [vmem:[#allocation13 + $0x790] sm:$0xff]  ;;  %v1822_v32 = vld [vmem:[#allocation13 + $0x7b8] sm:$0xff] }
 0x403   :  { %3690 = vmatmul.mubr.bf16.gmra.mrb[88].mxu0 %v13337_v4  ;;  %3984 = vmatprep.subr.bf16.mxu1 %v10305_v35  ;;  %v1786_v35 = vld [vmem:[#allocation13 + $0x698] sm:$0xff] }
 0x404   :  { %3759 = vmatpush1.bf16.msra.mxu0 %v10302_v33  ;;  %3699 = vmatprep.mubr.bf16.mxu0 %v13392_v55  ;;  %v1790_v33 = vld [vmem:[#allocation13 + $0x6b8] sm:$0xff] }
 0x405   :  { %3916 = vmatmul.mubr.bf16.gmra.mrb[104].mxu1 %v13337_v4  ;;  %3760 = vmatprep.subr.bf16.mxu0 %v10311_v28  ;;  %v1773_v4 = vld [vmem:[#allocation13 + $0x630] sm:$0xff]  ;;  %v10353_v36 = vcombine.high %v1786_v35, %v1790_v33  ;;  %v10352_v2 = vcombine.low %v1786_v35, %v1790_v33  ;;  %v4473_v35 = vld [vmem:[#allocation16] sm:$0xff] }
 0x406   :  { %3925 = vmatprep.mubr.bf16.mxu1 %v13392_v55  ;;  %3985 = vmatpush1.bf16.msra.mxu1 %v10304_v18  ;;  %v10329_v55 = vcombine.high %v1762_v8, %v1766_v1  ;;  %v10335_v24 = vcombine.high %v1769_v49, %v1773_v4  ;;  %v10334_v26 = vcombine.low %v1769_v49, %v1773_v4  ;;  %v1793_v28 = vld [vmem:[#allocation13 + $0x6d0] sm:$0xff]  ;;  %v1810_v4 = vld [vmem:[#allocation13 + $0x758] sm:$0xff] }
 0x407   :  { %3986 = vmatprep.subr.bf16.mxu1 %v10313_v52  ;;  %v1797_v18 = vld [vmem:[#allocation13 + $0x6f0] sm:$0xff]  ;;  %v1794_v52 = vld [vmem:[#allocation13 + $0x6d8] sm:$0xff] }
 0x408   :  { %3761 = vmatpush1.bf16.msra.mxu0 %v10310_v56  ;;  %v1798_v56 = vld [vmem:[#allocation13 + $0x6f8] sm:$0xff]  ;;  %v10359_v61 = vcombine.high %v1793_v28, %v1797_v18  ;;  %v10358_v45 = vcombine.low %v1793_v28, %v1797_v18  ;;  %v1809_v1 = vld [vmem:[#allocation13 + $0x750] sm:$0xff] }
 0x409   :  { %3762 = vmatprep.subr.bf16.mxu0 %v10319_v0  ;;  %v1801_v0 = vld [vmem:[#allocation13 + $0x710] sm:$0xff]  ;;  %v10360_v8 = vcombine.low %v1794_v52, %v1798_v56 }
 0x40a   :  { %3987 = vmatpush1.bf16.msra.mxu1 %v10312_v48  ;;  %v16144_v48 = vld [vmem:[#allocation32_spill] sm:$0xff] }
 0x40b   :  { %3700 = vmatmul.mubr.bf16.gmra.mrb[92].mxu0 %v13388_v16  ;;  %3988 = vmatprep.subr.bf16.mxu1 %v10321_v23  ;;  %v1806_v23 = vld [vmem:[#allocation13 + $0x738] sm:$0xff] }
 0x40c   :  { %3763 = vmatpush1.bf16.msra.mxu0 %v10318_v7  ;;  %3709 = vmatprep.mubr.bf16.mxu0 %v13443_v34  ;;  %v10368_v62 = vcombine.low %v1802_v12, %v1806_v23 }
 0x40d   :  { %3926 = vmatmul.mubr.bf16.gmra.mrb[108].mxu1 %v13388_v16  ;;  %3764 = vmatprep.subr.bf16.mxu0 %v10327_v20  ;;  %v1789_v16 = vld [vmem:[#allocation13 + $0x6b0] sm:$0xff] }
 0x40e   :  { %3935 = vmatprep.mubr.bf16.mxu1 %v13443_v34  ;;  %3989 = vmatpush1.bf16.msra.mxu1 %v10320_v27  ;;  %v10345_v34 = vcombine.high %v1778_v10, %v1782_v13  ;;  %v10351_v58 = vcombine.high %v1785_v60, %v1789_v16  ;;  %v10350_v54 = vcombine.low %v1785_v60, %v1789_v16  ;;  %v1813_v20 = vld [vmem:[#allocation13 + $0x770] sm:$0xff]  ;;  %v1826_v60 = vld [vmem:[#allocation13 + $0x7d8] sm:$0xff] }
 0x40f   :  { %3990 = vmatprep.subr.bf16.mxu1 %v10329_v55  ;;  %v10369_v27 = vcombine.high %v1802_v12, %v1806_v23  ;;  %v1814_v55 = vld [vmem:[#allocation13 + $0x778] sm:$0xff]  ;;  %v1825_v10 = vld [vmem:[#allocation13 + $0x7d0] sm:$0xff] }
 0x410   :  { %3765 = vmatpush1.bf16.msra.mxu0 %v10326_v53  ;;  %v10375_v53 = vcombine.high %v1809_v1, %v1813_v20  ;;  %v1829_v13 = vld [vmem:[#allocation13 + $0x7f0] sm:$0xff]  ;;  %v1830_v16 = vld [vmem:[#allocation13 + $0x7f8] sm:$0xff] }
 0x411   :  { %3766 = vmatprep.subr.bf16.mxu0 %v10335_v24  ;;  %v1821_v24 = vld [vmem:[#allocation13 + $0x7b0] sm:$0xff]  ;;  %v10390_v33 = vcombine.low %v1825_v10, %v1829_v13  ;;  %v10392_v18 = vcombine.low %v1826_v60, %v1830_v16 }
 0x412   :  { %3991 = vmatpush1.bf16.msra.mxu1 %v10328_v15  ;;  %v10374_v15 = vcombine.low %v1809_v1, %v1813_v20  ;;  %v4494_v12 = vld [vmem:[#allocation16 + $0xa8] sm:$0xff]  ;;  %v4501_v1 = vld [vmem:[#allocation16 + $0xe0] sm:$0xff] }
 0x413   :  { %3710 = vmatmul.mubr.bf16.gmra.mrb[96].mxu0 %v13428_v30  ;;  %3992 = vmatprep.subr.bf16.mxu1 %v10337_v63  ;;  %v10383_v63 = vcombine.high %v1817_v51, %v1821_v24 }
 0x414   :  { %3767 = vmatpush1.bf16.msra.mxu0 %v10334_v26  ;;  %3719 = vmatprep.mubr.bf16.mxu0 %v13489_v3  ;;  %v10376_v26 = vcombine.low %v1810_v4, %v1814_v55 }
 0x415   :  { %3936 = vmatmul.mubr.bf16.gmra.mrb[112].mxu1 %v13428_v30  ;;  %3768 = vmatprep.subr.bf16.mxu0 %v10343_v14  ;;  %v1805_v30 = vld [vmem:[#allocation13 + $0x730] sm:$0xff]  ;;  %v10385_v14 = vcombine.high %v1818_v50, %v1822_v32 }
 0x416   :  { %3945 = vmatprep.mubr.bf16.mxu1 %v13489_v3  ;;  %3993 = vmatpush1.bf16.msra.mxu1 %v10336_v37  ;;  %v10361_v3 = vcombine.high %v1794_v52, %v1798_v56  ;;  %v10367_v7 = vcombine.high %v1801_v0, %v1805_v30  ;;  %v10366_v49 = vcombine.low %v1801_v0, %v1805_v30 }
 0x417   :  { %3994 = vmatprep.subr.bf16.mxu1 %v10345_v34  ;;  %v10382_v37 = vcombine.low %v1817_v51, %v1821_v24  ;;  %v10391_v34 = vcombine.high %v1825_v10, %v1829_v13  ;;  %v4506_v24 = vld [vmem:[#allocation16 + $0x108] sm:$0xff] }
 0x418   :  { %3769 = vmatpush1.bf16.msra.mxu0 %v10342_v5  ;;  %v10384_v5 = vcombine.low %v1818_v50, %v1822_v32  ;;  %v4513_v32 = vld [vmem:[#allocation16 + $0x140] sm:$0xff]  ;;  %v4514_v13 = vld [vmem:[#allocation16 + $0x148] sm:$0xff] }
 0x419   :  { %3770 = vmatprep.subr.bf16.mxu0 %v10351_v58  ;;  %v4474_v58 = vld [vmem:[#allocation16 + $0x8] sm:$0xff] }
 0x41a   :  { %3995 = vmatpush1.bf16.msra.mxu1 %v10344_v39  ;;  %v4478_v39 = vld [vmem:[#allocation16 + $0x28] sm:$0xff] }
 0x41b   :  { %3720 = vmatmul.mubr.bf16.gmra.mrb[100].mxu0 %v16144_v48  ;;  %3996 = vmatprep.subr.bf16.mxu1 %v10353_v36  ;;  %v4481_v36 = vld [vmem:[#allocation16 + $0x40] sm:$0xff]  ;;  %v10397_v52 = vcombine.high %v4474_v58, %v4478_v39  ;;  %v10396_v30 = vcombine.low %v4474_v58, %v4478_v39 }
 0x41c   :  { %3771 = vmatpush1.bf16.msra.mxu0 %v10350_v54  ;;  %3729 = vmatprep.mubr.bf16.mxu0 %v13533_v41  ;;  %v4485_v54 = vld [vmem:[#allocation16 + $0x60] sm:$0xff] }
 0x41d   :  { %3946 = vmatmul.mubr.bf16.gmra.mrb[116].mxu1 %v16144_v48  ;;  %3772 = vmatprep.subr.bf16.mxu0 %v10359_v61  ;;  %v4482_v61 = vld [vmem:[#allocation16 + $0x48] sm:$0xff]  ;;  %v10403_v0 = vcombine.high %v4481_v36, %v4485_v54  ;;  %v4489_v48 = vld [vmem:[#allocation16 + $0x80] sm:$0xff] }
 0x41e   :  { %3955 = vmatprep.mubr.bf16.mxu1 %v13533_v41  ;;  %3997 = vmatpush1.bf16.msra.mxu1 %v10352_v2  ;;  %v10377_v41 = vcombine.high %v1810_v4, %v1814_v55  ;;  %v4486_v2 = vld [vmem:[#allocation16 + $0x68] sm:$0xff]  ;;  %v4533_v58 = vld [vmem:[#allocation16 + $0x1e0] sm:$0xff] }
 0x41f   :  { %3998 = vmatprep.subr.bf16.mxu1 %v10361_v3  ;;  %v10405_v3 = vcombine.high %v4482_v61, %v4486_v2  ;;  %v4502_v4 = vld [vmem:[#allocation16 + $0xe8] sm:$0xff] }
 0x420   :  { %3773 = vmatpush1.bf16.msra.mxu0 %v10358_v45  ;;  %v4490_v45 = vld [vmem:[#allocation16 + $0x88] sm:$0xff] }
 0x421   :  { %3774 = vmatprep.subr.bf16.mxu0 %v10367_v7  ;;  %v10404_v7 = vcombine.low %v4482_v61, %v4486_v2  ;;  %v10413_v20 = vcombine.high %v4490_v45, %v4494_v12  ;;  %v4538_v2 = vld [vmem:[#allocation16 + $0x208] sm:$0xff] }
 0x422   :  { %3999 = vmatpush1.bf16.msra.mxu1 %v10360_v8  ;;  %v4497_v8 = vld [vmem:[#allocation16 + $0xc0] sm:$0xff] }
 0x423   :  { %3730 = vmatmul.mubr.bf16.gmra.mrb[104].mxu0 %v13527_v11  ;;  %4000 = vmatprep.subr.bf16.mxu1 %v10369_v27  ;;  %v10419_v55 = vcombine.high %v4497_v8, %v4501_v1  ;;  %v10418_v51 = vcombine.low %v4497_v8, %v4501_v1  ;;  %v4553_v1 = vld [vmem:[#allocation16 + $0x280] sm:$0xff] }
 0x424   :  { %3775 = vmatpush1.bf16.msra.mxu0 %v10366_v49  ;;  %3739 = vmatprep.mubr.bf16.mxu0 %v13584_v25  ;;  %v4498_v49 = vld [vmem:[#allocation16 + $0xc8] sm:$0xff] }
 0x425   :  { %3956 = vmatmul.mubr.bf16.gmra.mrb[120].mxu1 %v13527_v11  ;;  %3776 = vmatprep.subr.bf16.mxu0 %v10375_v53  ;;  %v4477_v11 = vld [vmem:[#allocation16 + $0x20] sm:$0xff]  ;;  %v10412_v53 = vcombine.low %v4490_v45, %v4494_v12  ;;  %v10420_v50 = vcombine.low %v4498_v49, %v4502_v4  ;;  %v4546_v12 = vld [vmem:[#allocation16 + $0x248] sm:$0xff] }
 0x426   :  { %3965 = vmatprep.mubr.bf16.mxu1 %v13584_v25  ;;  %4001 = vmatpush1.bf16.msra.mxu1 %v10368_v62  ;;  %v10393_v25 = vcombine.high %v1826_v60, %v1830_v16  ;;  %v10395_v28 = vcombine.high %v4473_v35, %v4477_v11  ;;  %v10394_v56 = vcombine.low %v4473_v35, %v4477_v11  ;;  %v4505_v62 = vld [vmem:[#allocation16 + $0x100] sm:$0xff]  ;;  %v4526_v35 = vld [vmem:[#allocation16 + $0x1a8] sm:$0xff] }
 0x427   :  { %4002 = vmatprep.subr.bf16.mxu1 %v10377_v41  ;;  %v4510_v41 = vld [vmem:[#allocation16 + $0x128] sm:$0xff]  ;;  %v4521_v16 = vld [vmem:[#allocation16 + $0x180] sm:$0xff] }
 0x428   :  { %3777 = vmatpush1.bf16.msra.mxu0 %v10374_v15  ;;  %v10428_v60 = vcombine.low %v4506_v24, %v4510_v41 }
 0x429   :  { %3778 = vmatprep.subr.bf16.mxu0 %v10383_v63  ;;  %v4517_v63 = vld [vmem:[#allocation16 + $0x160] sm:$0xff] }
 0x42a   :  { %4003 = vmatpush1.bf16.msra.mxu1 %v10376_v26  ;;  %v10429_v26 = vcombine.high %v4506_v24, %v4510_v41  ;;  %v4566_v24 = vld [vmem:[#allocation16 + $0x2e8] sm:$0xff] }
 0x42b   :  { %3740 = vmatmul.mubr.bf16.gmra.mrb[108].mxu0 %v13579_v31  ;;  %4004 = vmatprep.subr.bf16.mxu1 %v10385_v14  ;;  %v4518_v14 = vld [vmem:[#allocation16 + $0x168] sm:$0xff] }
 0x42c   :  { %3779 = vmatpush1.bf16.msra.mxu0 %v10382_v37  ;;  %3782 = vmatprep.mubr.bf16.mxu0 %v13260_v44  ;;  %v10435_v37 = vcombine.high %v4513_v32, %v4517_v63 }
 0x42d   :  { %3966 = vmatmul.mubr.bf16.gmra.mrb[124].mxu1 %v13579_v31  ;;  %3780 = vmatprep.subr.bf16.mxu0 %v10391_v34  ;;  %v4493_v31 = vld [vmem:[#allocation16 + $0xa0] sm:$0xff]  ;;  %v10434_v34 = vcombine.low %v4513_v32, %v4517_v63  ;;  %v4570_v63 = vld [vmem:[#allocation16 + $0x308] sm:$0xff] }
 0x42e   :  { %4005 = vmatpush1.bf16.msra.mxu1 %v10384_v5  ;;  %4008 = vmatprep.mubr.bf16.mxu1 %v13260_v44  ;;  %v10402_v44 = vcombine.low %v4481_v36, %v4485_v54  ;;  %v10411_v23 = vcombine.high %v4489_v48, %v4493_v31  ;;  %v10410_v27 = vcombine.low %v4489_v48, %v4493_v31  ;;  %v4522_v5 = vld [vmem:[#allocation16 + $0x188] sm:$0xff]  ;;  %v4545_v31 = vld [vmem:[#allocation16 + $0x240] sm:$0xff] }
 0x42f   :  { %4006 = vmatprep.subr.bf16.mxu1 %v10393_v25  ;;  %v10436_v25 = vcombine.low %v4514_v13, %v4518_v14  ;;  %v10445_v39 = vcombine.high %v4522_v5, %v4526_v35  ;;  %v4534_v36 = vld [vmem:[#allocation16 + $0x1e8] sm:$0xff] }
 0x430   :  { %3781 = vmatpush1.bf16.msra.mxu0 %v10390_v33  ;;  %v4529_v33 = vld [vmem:[#allocation16 + $0x1c0] sm:$0xff] }
 0x431   :  { %7651 = vmatprep.subr.bf16.mxu0 %v10395_v28  ;;  %v10451_v54 = vcombine.high %v4529_v33, %v4533_v58  ;;  %v10450_v61 = vcombine.low %v4529_v33, %v4533_v58  ;;  %v4590_v33 = vld [vmem:[#allocation16 + $0x3a8] sm:$0xff] }
 0x432   :  { %4007 = vmatpush1.bf16.msra.mxu1 %v10392_v18  ;;  %v4530_v18 = vld [vmem:[#allocation16 + $0x1c8] sm:$0xff] }
 0x433   :  { %3783 = vmatmul.mubr.bf16.vlgmr.msra.gmra.mrb[80].mxu0 %v13256_v40  ;;  %8103 = vmatprep.subr.bf16.mxu1 %v10397_v52  ;;  %v10444_v52 = vcombine.low %v4522_v5, %v4526_v35  ;;  %v10452_v48 = vcombine.low %v4530_v18, %v4534_v36  ;;  %v4585_v35 = vld [vmem:[#allocation16 + $0x380] sm:$0xff] }
 0x434   :  { %3792 = vmatprep.mubr.bf16.mxu0 %v13309_v19  ;;  %7652 = vmatpush1.bf16.msra.mxu0 %v10394_v56  ;;  %v4537_v56 = vld [vmem:[#allocation16 + $0x200] sm:$0xff] }
 0x435   :  { %4009 = vmatmul.mubr.bf16.vlgmr.msra.gmra.mrb[96].mxu1 %v13256_v40  ;;  %7653 = vmatprep.subr.bf16.mxu0 %v10403_v0  ;;  %v4509_v40 = vld [vmem:[#allocation16 + $0x120] sm:$0xff]  ;;  %v4542_v0 = vld [vmem:[#allocation16 + $0x228] sm:$0xff] }
 0x436   :  { %4018 = vmatprep.mubr.bf16.mxu1 %v13309_v19  ;;  %8104 = vmatpush1.bf16.msra.mxu1 %v10396_v30  ;;  %v10421_v19 = vcombine.high %v4498_v49, %v4502_v4  ;;  %v10427_v15 = vcombine.high %v4505_v62, %v4509_v40  ;;  %v10426_v10 = vcombine.low %v4505_v62, %v4509_v40  ;;  %v4558_v49 = vld [vmem:[#allocation16 + $0x2a8] sm:$0xff]  ;;  %v4565_v62 = vld [vmem:[#allocation16 + $0x2e0] sm:$0xff] }
 0x437   :  { %8105 = vmatprep.subr.bf16.mxu1 %v10405_v3  ;;  %v4549_v3 = vld [vmem:[#allocation16 + $0x260] sm:$0xff]  ;;  %v10460_v8 = vcombine.low %v4538_v2, %v4542_v0 }
 0x438   :  { %7654 = vmatpush1.bf16.msra.mxu0 %v10402_v44  ;;  %v10461_v44 = vcombine.high %v4538_v2, %v4542_v0  ;;  %v13699_v0 = vld [vmem:[#allocation16 + $0x408] sm:$0xff] }
 0x439   :  { %7655 = vmatprep.subr.bf16.mxu0 %v10411_v23  ;;  %v4550_v23 = vld [vmem:[#allocation16 + $0x268] sm:$0xff] }
 0x43a   :  { %8106 = vmatpush1.bf16.msra.mxu1 %v10404_v7  ;;  %v10467_v7 = vcombine.high %v4545_v31, %v4549_v3 }
 0x43b   :  { %3793 = vmatmul.mubr.bf16.gmra.mrb[84].mxu0 %v13291_v47  ;;  %8107 = vmatprep.subr.bf16.mxu1 %v10413_v20  ;;  %v10466_v20 = vcombine.low %v4545_v31, %v4549_v3 }
 0x43c   :  { %3802 = vmatprep.mubr.bf16.mxu0 %v13348_v57  ;;  %7656 = vmatpush1.bf16.msra.mxu0 %v10410_v27  ;;  %v4554_v27 = vld [vmem:[#allocation16 + $0x288] sm:$0xff] }
 0x43d   :  { %4019 = vmatmul.mubr.bf16.gmra.mrb[100].mxu1 %v13291_v47  ;;  %7657 = vmatprep.subr.bf16.mxu0 %v10419_v55  ;;  %v4525_v47 = vld [vmem:[#allocation16 + $0x1a0] sm:$0xff]  ;;  %v10468_v55 = vcombine.low %v4546_v12, %v4550_v23  ;;  %v10477_v40 = vcombine.high %v4554_v27, %v4558_v49 }
 0x43e   :  { %4028 = vmatprep.mubr.bf16.mxu1 %v13348_v57  ;;  %8108 = vmatpush1.bf16.msra.mxu1 %v10412_v53  ;;  %v10437_v57 = vcombine.high %v4514_v13, %v4518_v14  ;;  %v10443_v11 = vcombine.high %v4521_v16, %v4525_v47  ;;  %v10442_v28 = vcombine.low %v4521_v16, %v4525_v47  ;;  %v4561_v53 = vld [vmem:[#allocation16 + $0x2c0] sm:$0xff]  ;;  %v4578_v47 = vld [vmem:[#allocation16 + $0x348] sm:$0xff] }
 0x43f   :  { %8109 = vmatprep.subr.bf16.mxu1 %v10421_v19  ;;  %v10483_v41 = vcombine.high %v4561_v53, %v4565_v62  ;;  %v10482_v32 = vcombine.low %v4561_v53, %v4565_v62  ;;  %v4577_v14 = vld [vmem:[#allocation16 + $0x340] sm:$0xff] }
 0x440   :  { %7658 = vmatpush1.bf16.msra.mxu0 %v10418_v51  ;;  %v4562_v51 = vld [vmem:[#allocation16 + $0x2c8] sm:$0xff]  ;;  %v13735_v53 = vld [vmem:[#allocation16 + $0x500] sm:$0xff] }
 0x441   :  { %7659 = vmatprep.subr.bf16.mxu0 %v10427_v15  ;;  %v10476_v15 = vcombine.low %v4554_v27, %v4558_v49  ;;  %v10484_v13 = vcombine.low %v4562_v51, %v4566_v24  ;;  %v13728_v27 = vld [vmem:[#allocation16 + $0x4c8] sm:$0xff]  ;;  %v13737_v62 = vld [vmem:[#allocation16 + $0x520] sm:$0xff] }
 0x442   :  { %8110 = vmatpush1.bf16.msra.mxu1 %v10420_v50  ;;  %v4569_v50 = vld [vmem:[#allocation16 + $0x300] sm:$0xff]  ;;  %v13730_v49 = vld [vmem:[#allocation16 + $0x4e8] sm:$0xff] }
 0x443   :  { %3803 = vmatmul.mubr.bf16.gmra.mrb[88].mxu0 %v13342_v21  ;;  %8111 = vmatprep.subr.bf16.mxu1 %v10429_v26  ;;  %v4574_v26 = vld [vmem:[#allocation16 + $0x328] sm:$0xff] }
 0x444   :  { %3812 = vmatprep.mubr.bf16.mxu0 %v13408_v9  ;;  %7660 = vmatpush1.bf16.msra.mxu0 %v10426_v10  ;;  %v10492_v5 = vcombine.low %v4570_v63, %v4574_v26 }
 0x445   :  { %4029 = vmatmul.mubr.bf16.gmra.mrb[104].mxu1 %v13342_v21  ;;  %7661 = vmatprep.subr.bf16.mxu0 %v10435_v37  ;;  %v4541_v21 = vld [vmem:[#allocation16 + $0x220] sm:$0xff] }
 0x446   :  { %4038 = vmatprep.mubr.bf16.mxu1 %v13408_v9  ;;  %8112 = vmatpush1.bf16.msra.mxu1 %v10428_v60  ;;  %v10453_v9 = vcombine.high %v4530_v18, %v4534_v36  ;;  %v10459_v30 = vcombine.high %v4537_v56, %v4541_v21  ;;  %v10458_v45 = vcombine.low %v4537_v56, %v4541_v21  ;;  %v4581_v37 = vld [vmem:[#allocation16 + $0x360] sm:$0xff]  ;;  %v4598_v56 = vld [vmem:[#allocation16 + $0x3e8] sm:$0xff] }
 0x447   :  { %8113 = vmatprep.subr.bf16.mxu1 %v10437_v57  ;;  %v10493_v60 = vcombine.high %v4570_v63, %v4574_v26  ;;  %v4582_v57 = vld [vmem:[#allocation16 + $0x368] sm:$0xff]  ;;  %v4597_v18 = vld [vmem:[#allocation16 + $0x3e0] sm:$0xff] }
 0x448   :  { %7662 = vmatpush1.bf16.msra.mxu0 %v10434_v34  ;;  %v10499_v34 = vcombine.high %v4577_v14, %v4581_v37  ;;  %v13756_v63 = vld [vmem:[#allocation16 + $0x560] sm:$0xff]  ;;  %v13758_v26 = vld [vmem:[#allocation16 + $0x548] sm:$0xff] }
 0x449   :  { %7663 = vmatprep.subr.bf16.mxu0 %v10443_v11  ;;  %v10498_v11 = vcombine.low %v4577_v14, %v4581_v37  ;;  %v13872_v14 = vld [vmem:[#allocation16 + $0x6e8] sm:$0xff]  ;;  %v13882_v37 = vld [vmem:[#allocation16 + $0x700] sm:$0xff] }
 0x44a   :  { %8114 = vmatpush1.bf16.msra.mxu1 %v10436_v25  ;;  %v4586_v25 = vld [vmem:[#allocation16 + $0x388] sm:$0xff]  ;;  %16164 = vst [vmem:[#allocation48_spill] sm:$0xff] %v13872_v14  ;;  %16165 = vst [vmem:[#allocation49_spill] sm:$0xff] %v13882_v37 }
 0x44b   :  { %3813 = vmatmul.mubr.bf16.gmra.mrb[92].mxu0 %v13390_v17  ;;  %8115 = vmatprep.subr.bf16.mxu1 %v10445_v39  ;;  %v10500_v39 = vcombine.low %v4578_v47, %v4582_v57  ;;  %v10509_v36 = vcombine.high %v4586_v25, %v4590_v33 }
 0x44c   :  { %3822 = vmatprep.mubr.bf16.mxu0 %v13450_v29  ;;  %7664 = vmatpush1.bf16.msra.mxu0 %v10442_v28  ;;  %v4593_v28 = vld [vmem:[#allocation16 + $0x3c0] sm:$0xff] }
 0x44d   :  { %4039 = vmatmul.mubr.bf16.gmra.mrb[108].mxu1 %v13390_v17  ;;  %7665 = vmatprep.subr.bf16.mxu0 %v10451_v54  ;;  %v4557_v17 = vld [vmem:[#allocation16 + $0x2a0] sm:$0xff]  ;;  %v10515_v21 = vcombine.high %v4593_v28, %v4597_v18  ;;  %v10514_v2 = vcombine.low %v4593_v28, %v4597_v18  ;;  %v13798_v18 = vld [vmem:[#allocation16 + $0x5c8] sm:$0xff] }
 0x44e   :  { %4048 = vmatprep.mubr.bf16.mxu1 %v13450_v29  ;;  %8116 = vmatpush1.bf16.msra.mxu1 %v10444_v52  ;;  %v10469_v29 = vcombine.high %v4546_v12, %v4550_v23  ;;  %v10475_v4 = vcombine.high %v4553_v1, %v4557_v17  ;;  %v10474_v19 = vcombine.low %v4553_v1, %v4557_v17  ;;  %v4594_v52 = vld [vmem:[#allocation16 + $0x3c8] sm:$0xff]  ;;  %v13710_v12 = vld [vmem:[#allocation16 + $0x460] sm:$0xff] }
 0x44f   :  { %8117 = vmatprep.subr.bf16.mxu1 %v10453_v9  ;;  %v10508_v9 = vcombine.low %v4586_v25, %v4590_v33  ;;  %v10516_v31 = vcombine.low %v4594_v52, %v4598_v56  ;;  %v13714_v23 = vld [vmem:[#allocation16 + $0x468] sm:$0xff]  ;;  %v13788_v25 = vld [vmem:[#allocation16 + $0x5e0] sm:$0xff] }
 0x450   :  { %7666 = vmatpush1.bf16.msra.mxu0 %v10450_v61  ;;  %v13694_v61 = vld [vmem:[#allocation16 + $0x400] sm:$0xff]  ;;  %v13720_v1 = vld [vmem:[#allocation16 + $0x488] sm:$0xff] }
 0x451   :  { %7667 = vmatprep.subr.bf16.mxu0 %v10459_v30  ;;  %v13701_v30 = vld [vmem:[#allocation16 + $0x428] sm:$0xff]  ;;  %v13858_v33 = vld [vmem:[#allocation16 + $0x6c0] sm:$0xff] }
 0x452   :  { %8118 = vmatpush1.bf16.msra.mxu1 %v10452_v48  ;;  %v10525_v3 = vcombine.high %v13699_v0, %v13701_v30  ;;  %v13722_v17 = vld [vmem:[#allocation16 + $0x4a8] sm:$0xff]  ;;  %16161 = vst [vmem:[#allocation43_spill] sm:$0xff] %v13858_v33 }
 0x453   :  { %3823 = vmatmul.mubr.bf16.gmra.mrb[96].mxu0 %v13433_v59  ;;  %8119 = vmatprep.subr.bf16.mxu1 %v10461_v44  ;;  %v1831_v44 = vld [vmem:[#allocation14] sm:$0xff]  ;;  %v13830_v28 = vld [vmem:[#allocation16 + $0x648] sm:$0xff] }
 0x454   :  { %3832 = vmatprep.mubr.bf16.mxu0 %v13495_v42  ;;  %7668 = vmatpush1.bf16.msra.mxu0 %v10458_v45  ;;  %v13708_v45 = vld [vmem:[#allocation16 + $0x440] sm:$0xff]  ;;  %16155 = vst [vmem:[#allocation56_spill] sm:$0xff] %v13830_v28 }
 0x455   :  { %4049 = vmatmul.mubr.bf16.gmra.mrb[112].mxu1 %v13433_v59  ;;  %7669 = vmatprep.subr.bf16.mxu0 %v10467_v7  ;;  %v4573_v59 = vld [vmem:[#allocation16 + $0x320] sm:$0xff] }
 0x456   :  { %4058 = vmatprep.mubr.bf16.mxu1 %v13495_v42  ;;  %8120 = vmatpush1.bf16.msra.mxu1 %v10460_v8  ;;  %v10485_v42 = vcombine.high %v4562_v51, %v4566_v24  ;;  %v10491_v10 = vcombine.high %v4569_v50, %v4573_v59  ;;  %v10490_v16 = vcombine.low %v4569_v50, %v4573_v59  ;;  %v13716_v7 = vld [vmem:[#allocation16 + $0x480] sm:$0xff]  ;;  %v16148_v50 = vld [vmem:[#allocation31_spill] sm:$0xff] }
 0x457   :  { %8121 = vmatprep.subr.bf16.mxu1 %v10469_v29  ;;  %v13718_v8 = vld [vmem:[#allocation16 + $0x4a0] sm:$0xff]  ;;  %v13750_v59 = vrot.slane %v1831_v44, %v16148_v50  ;;  %v13896_v50 = vld [vmem:[#allocation16 + $0x728] sm:$0xff] }
 0x458   :  { %7670 = vmatpush1.bf16.msra.mxu0 %v10466_v20  ;;  %v13724_v29 = vld [vmem:[#allocation16 + $0x4c0] sm:$0xff]  ;;  %16168 = vst [vmem:[#allocation52_spill] sm:$0xff] %v13896_v50 }
 0x459   :  { %7671 = vmatprep.subr.bf16.mxu0 %v10475_v4  ;;  %v13726_v20 = vld [vmem:[#allocation16 + $0x4e0] sm:$0xff]  ;;  %v16145_v4 = vld [vmem:[#allocation28_spill] sm:$0xff] }
 0x45a   :  { %8122 = vmatpush1.bf16.msra.mxu1 %v10468_v55  ;;  %v13733_v55 = vrot.slane %v1831_v44, %v16145_v4  ;;  %v16146_v51 = vld [vmem:[#allocation30_spill] sm:$0xff] }
 0x45b   :  { %3833 = vmatmul.mubr.bf16.gmra.mrb[100].mxu0 %v13481_v38  ;;  %8123 = vmatprep.subr.bf16.mxu1 %v10477_v40  ;;  %v13739_v40 = vld [vmem:[#allocation16 + $0x508] sm:$0xff]  ;;  %v13744_v24 = vrot.slane %v1831_v44, %v16146_v51 }
 0x45c   :  { %3842 = vmatprep.mubr.bf16.mxu0 %v13542_v22  ;;  %7672 = vmatpush1.bf16.msra.mxu0 %v10474_v19  ;;  %v13741_v19 = vld [vmem:[#allocation16 + $0x528] sm:$0xff] }
 0x45d   :  { %4059 = vmatmul.mubr.bf16.gmra.mrb[116].mxu1 %v13481_v38  ;;  %7673 = vmatprep.subr.bf16.mxu0 %v10483_v41  ;;  %v4589_v38 = vld [vmem:[#allocation16 + $0x3a0] sm:$0xff]  ;;  %v16147_v41 = vld [vmem:[#allocation29_spill] sm:$0xff] }
 0x45e   :  { %4068 = vmatprep.mubr.bf16.mxu1 %v13542_v22  ;;  %8124 = vmatpush1.bf16.msra.mxu1 %v10476_v15  ;;  %v10501_v22 = vcombine.high %v4578_v47, %v4582_v57  ;;  %v10507_v58 = vcombine.high %v4585_v35, %v4589_v38  ;;  %v10506_v54 = vcombine.low %v4585_v35, %v4589_v38  ;;  %v13772_v47 = vld [vmem:[#allocation16 + $0x5a0] sm:$0xff]  ;;  %v13774_v57 = vld [vmem:[#allocation16 + $0x588] sm:$0xff] }
 0x45f   :  { %8125 = vmatprep.subr.bf16.mxu1 %v10485_v42  ;;  %v13747_v15 = vrot.slane %v1831_v44, %v16147_v41  ;;  %v13856_v44 = vld [vmem:[#allocation16 + $0x6a8] sm:$0xff] }
 0x460   :  { %7674 = vmatpush1.bf16.msra.mxu0 %v10482_v32  ;;  %v13754_v32 = vld [vmem:[#allocation16 + $0x540] sm:$0xff]  ;;  %16160 = vst [vmem:[#allocation42_spill] sm:$0xff] %v13856_v44  ;;  %v13894_v38 = vld [vmem:[#allocation16 + $0x708] sm:$0xff] }
 0x461   :  { %7675 = vmatprep.subr.bf16.mxu0 %v10491_v10  ;;  %v13760_v10 = vld [vmem:[#allocation16 + $0x568] sm:$0xff]  ;;  %16167 = vst [vmem:[#allocation47_spill] sm:$0xff] %v13894_v38  ;;  %v13919_v44 = vld [vmem:[#allocation16 + $0x740] sm:$0xff] }
 0x462   :  { %8126 = vmatpush1.bf16.msra.mxu1 %v10484_v13 }
 0x463   :  { %3843 = vmatmul.mubr.bf16.gmra.mrb[104].mxu0 %v13531_v46  ;;  %8127 = vmatprep.subr.bf16.mxu1 %v10493_v60 }
 0x464   :  { %3852 = vmatprep.mubr.bf16.mxu0 %v13589_v43  ;;  %7676 = vmatpush1.bf16.msra.mxu0 %v10490_v16  ;;  %v13770_v16 = vld [vmem:[#allocation16 + $0x580] sm:$0xff] }
 0x465   :  { %4069 = vmatmul.mubr.bf16.gmra.mrb[120].mxu1 %v13531_v46  ;;  %7677 = vmatprep.subr.bf16.mxu0 %v10499_v34  ;;  %v13696_v46 = vld [vmem:[#allocation16 + $0x420] sm:$0xff] }
 0x466   :  { %4078 = vmatprep.mubr.bf16.mxu1 %v13589_v43  ;;  %8128 = vmatpush1.bf16.msra.mxu1 %v10492_v5  ;;  %v10517_v43 = vcombine.high %v4594_v52, %v4598_v56  ;;  %v10523_v48 = vcombine.high %v13694_v61, %v13696_v46  ;;  %v13840_v52 = vld [vmem:[#allocation16 + $0x668] sm:$0xff]  ;;  %v13842_v56 = vld [vmem:[#allocation16 + $0x680] sm:$0xff] }
 0x467   :  { %8129 = vmatprep.subr.bf16.mxu1 %v10501_v22  ;;  %v13784_v22 = vld [vmem:[#allocation16 + $0x5a8] sm:$0xff]  ;;  %16156 = vst [vmem:[#allocation38_spill] sm:$0xff] %v13840_v52  ;;  %16157 = vst [vmem:[#allocation39_spill] sm:$0xff] %v13842_v56  ;;  %v13868_v34 = vld [vmem:[#allocation16 + $0x6e0] sm:$0xff] }
 0x468   :  { %7678 = vmatpush1.bf16.msra.mxu0 %v10498_v11  ;;  %v13786_v11 = vld [vmem:[#allocation16 + $0x5c0] sm:$0xff]  ;;  %v13854_v5 = vld [vmem:[#allocation16 + $0x688] sm:$0xff]  ;;  %16162 = vst [vmem:[#allocation44_spill] sm:$0xff] %v13868_v34 }
 0x469   :  { %7679 = vmatprep.subr.bf16.mxu0 %v10507_v58  ;;  %16159 = vst [vmem:[#allocation41_spill] sm:$0xff] %v13854_v5 }
 0x46a   :  { %8130 = vmatpush1.bf16.msra.mxu1 %v10500_v39  ;;  %v13844_v39 = vld [vmem:[#allocation16 + $0x6a0] sm:$0xff] }
 0x46b   :  { %3853 = vmatmul.mubr.bf16.gmra.mrb[108].mxu0 %v13581_v6  ;;  %8131 = vmatprep.subr.bf16.mxu1 %v10509_v36  ;;  %v13800_v36 = vld [vmem:[#allocation16 + $0x5e8] sm:$0xff]  ;;  %16158 = vst [vmem:[#allocation40_spill] sm:$0xff] %v13844_v39  ;;  %v13921_v39 = vld [vmem:[#allocation16 + $0x760] sm:$0xff] }
 0x46c   :  { %7680 = vmatpush1.bf16.msra.mxu0 %v10506_v54  ;;  %v13802_v54 = vld [vmem:[#allocation16 + $0x600] sm:$0xff] }
 0x46d   :  { %4079 = vmatmul.mubr.bf16.gmra.mrb[124].mxu1 %v13581_v6  ;;  %7681 = vmatprep.subr.bf16.mxu0 %v10515_v21  ;;  %v13712_v6 = vld [vmem:[#allocation16 + $0x448] sm:$0xff]  ;;  %16149 = vst [vmem:[#allocation33_spill] sm:$0xff] %v13802_v54  ;;  %v13826_v21 = vld [vmem:[#allocation16 + $0x640] sm:$0xff] }
 0x46e   :  { %8132 = vmatpush1.bf16.msra.mxu1 %v10508_v9  ;;  %16153 = vst [vmem:[#allocation37_spill] sm:$0xff] %v13826_v21  ;;  %v13828_v9 = vld [vmem:[#allocation16 + $0x660] sm:$0xff] }
 0x46f   :  { %8133 = vmatprep.subr.bf16.mxu1 %v10517_v43  ;;  %v13812_v43 = vld [vmem:[#allocation16 + $0x620] sm:$0xff]  ;;  %16154 = vst [vmem:[#allocation57_spill] sm:$0xff] %v13828_v9 }
 0x470   :  { %7682 = vmatpush1.bf16.msra.mxu0 %v10514_v2  ;;  %16150 = vst [vmem:[#allocation34_spill] sm:$0xff] %v13812_v43  ;;  %v13814_v2 = vld [vmem:[#allocation16 + $0x608] sm:$0xff] }
 0x471   :  { %7764 = vmatprep.subr.bf16.mxu0 %v10523_v48  ;;  %16151 = vst [vmem:[#allocation35_spill] sm:$0xff] %v13814_v2  ;;  %v13816_v48 = vld [vmem:[#allocation16 + $0x628] sm:$0xff] }
 0x472   :  { %8134 = vmatpush1.bf16.msra.mxu1 %v10516_v31  ;;  %16152 = vst [vmem:[#allocation36_spill] sm:$0xff] %v13816_v48  ;;  %v13884_v31 = vld [vmem:[#allocation16 + $0x720] sm:$0xff] }
 0x473   :  { %8216 = vmatprep.subr.bf16.mxu1 %v10525_v3  ;;  %v13870_v3 = vld [vmem:[#allocation16 + $0x6c8] sm:$0xff]  ;;  %16166 = vst [vmem:[#allocation46_spill] sm:$0xff] %v13884_v31 }
 0x474   :  { %16163 = vst [vmem:[#allocation45_spill] sm:$0xff] %v13870_v3 }
 0x486   :  { %v3332_v58 = vpop.f32.mrb[48].mxu0 }
 0x487   :  { %v11158_v51 = vadd.f32 %v3332_v58, %v13733_v55  ;;  %v3334_v4 = vpop.f32.mrb[49].mxu0 }
 0x488   :  { %v3558_v35 = vpop.f32.mrb[64].mxu1  ;;  %v11159_v42 = vadd.f32 %v3334_v4, %v13747_v15  ;;  %v3336_v33 = vpop.f32.mrb[50].mxu0 }
 0x489   :  { %v11190_v13 = vadd.f32 %v3558_v35, %v13744_v24  ;;  %v3560_v34 = vpop.f32.mrb[65].mxu1  ;;  %vm4089_vm1 = vcmp.ge.f32.partialorder %v11158_v51, 0.0  ;;  %v4217_v56 = vmul.f32 0.2, %v11158_v51  ;;  %v11160_v35 = vadd.f32 %v3336_v33, %v13733_v55  ;;  %v3338_v4 = vpop.f32.mrb[51].mxu0 }
 0x48a   :  { %v11191_v41 = vadd.f32 %v3560_v34, %v13750_v59  ;;  %v3562_v31 = vpop.f32.mrb[66].mxu1  ;;  %vm4090_vm3 = vcmp.ge.f32.partialorder %v11159_v42, 0.0  ;;  %v4218_v14 = vmul.f32 0.2, %v11159_v42  ;;  %v11161_v28 = vadd.f32 %v3338_v4, %v13747_v15  ;;  %v13942_v4 = vld [vmem:[#allocation16 + $0x768] sm:$0xff] }
 0x48b   :  { %vm4091_vm2 = vcmp.ge.f32.partialorder %v11190_v13, 0.0  ;;  %v4219_v37 = vmul.f32 0.2, %v11190_v13  ;;  %vm4097_vm5 = vcmp.ge.f32.partialorder %v11160_v35, 0.0  ;;  %v3564_v60 = vpop.f32.mrb[67].mxu1  ;;  %v4345_v38 = vsel %vm4089_vm1, %v11158_v51, %v4217_v56 }
 0x48c   :  { %vm4092_vm4 = vcmp.ge.f32.partialorder %v11191_v41, 0.0  ;;  %v4220_v58 = vmul.f32 0.2, %v11191_v41  ;;  %v4225_v3 = vmul.f32 0.2, %v11160_v35  ;;  %v11192_v5 = vadd.f32 %v3562_v31, %v13744_v24 }
 0x48d   :  { %v4347_v33 = vsel %vm4091_vm2, %v11190_v13, %v4219_v37  ;;  %v4346_v52 = vsel %vm4090_vm3, %v11159_v42, %v4218_v14  ;;  %v11193_v9 = vadd.f32 %v3564_v60, %v13750_v59  ;;  %vm4098_vm7 = vcmp.ge.f32.partialorder %v11161_v28, 0.0 }
 0x48e   :  { %v4348_v21 = vsel %vm4092_vm4, %v11191_v41, %v4220_v58  ;;  %v4353_v48 = vsel %vm4097_vm5, %v11160_v35, %v4225_v3  ;;  %vm4099_vm6 = vcmp.ge.f32.partialorder %v11192_v5, 0.0  ;;  %v4227_v2 = vmul.f32 0.2, %v11192_v5  ;;  %v3342_v43 = vpop.f32.mrb[52].mxu0  ;;  %v13940_v35 = vld [vmem:[#allocation16 + $0x748] sm:$0xff] }
 0x48f   :  { %v13932_v54 = vpack.c.bf16 %v4353_v48, %v4345_v38  ;;  %v4226_v51 = vmul.f32 0.2, %v11161_v28  ;;  %vm4100_vm8 = vcmp.ge.f32.partialorder %v11193_v9, 0.0  ;;  %v3344_v31 = vpop.f32.mrb[53].mxu0  ;;  %v4228_v34 = vmul.f32 0.2, %v11193_v9 }
 0x490   :  { %v3568_v56 = vpop.f32.mrb[68].mxu1  ;;  %v4355_v50 = vsel %vm4099_vm6, %v11192_v5, %v4227_v2  ;;  %v11162_v42 = vadd.f32 %v3342_v43, %v13733_v55  ;;  %v3346_v37 = vpop.f32.mrb[54].mxu0  ;;  %v11163_v3 = vadd.f32 %v3344_v31, %v13747_v15 }
 0x491   :  { %16169 = vst [vmem:[#allocation53_spill] sm:$0xff] %v13932_v54  ;;  %v11194_v13 = vadd.f32 %v3568_v56, %v13744_v24  ;;  %v3570_v14 = vpop.f32.mrb[69].mxu1  ;;  %v13936_v41 = vpack.c.bf16 %v4355_v50, %v4347_v33  ;;  %v4354_v60 = vsel %vm4098_vm7, %v11161_v28, %v4226_v51  ;;  %v3348_v58 = vpop.f32.mrb[55].mxu0  ;;  %v4356_v43 = vsel %vm4100_vm8, %v11193_v9, %v4228_v34 }
 0x492   :  { %v11195_v38 = vadd.f32 %v3570_v14, %v13750_v59  ;;  %v3572_v48 = vpop.f32.mrb[70].mxu1  ;;  %v13944_v5 = vpack.c.bf16 %v4354_v60, %v4346_v52  ;;  %vm4105_vm9 = vcmp.ge.f32.partialorder %v11162_v42, 0.0  ;;  %v4233_v2 = vmul.f32 0.2, %v11162_v42 }
 0x493   :  { %16170 = vst [vmem:[#allocation50_spill] sm:$0xff] %v13936_v41  ;;  %v3574_v56 = vpop.f32.mrb[71].mxu1  ;;  %v13947_v50 = vpack.c.bf16 %v4356_v43, %v4348_v21  ;;  %vm4107_vm10 = vcmp.ge.f32.partialorder %v11194_v13, 0.0  ;;  %v4235_v28 = vmul.f32 0.2, %v11194_v13  ;;  %vm4106_vm11 = vcmp.ge.f32.partialorder %v11163_v3, 0.0 }
 0x494   :  { %16171 = vst [vmem:[#allocation51_spill] sm:$0xff] %v13944_v5  ;;  %v4361_v33 = vsel %vm4105_vm9, %v11162_v42, %v4233_v2  ;;  %v4234_v51 = vmul.f32 0.2, %v11163_v3  ;;  %7683 = vmatprep.mubr.bf16.mxu0 %v13944_v5  ;;  %8135 = vmatprep.mubr.bf16.mxu1 %v13944_v5  ;;  %v4236_v34 = vmul.f32 0.2, %v11195_v38  ;;  %v11164_v31 = vadd.f32 %v3346_v37, %v13733_v55 }
 0x495   :  { %16172 = vst [vmem:[#allocation54_spill] sm:$0xff] %v13947_v50  ;;  %v11196_v21 = vadd.f32 %v3572_v48, %v13744_v24  ;;  %v11165_v14 = vadd.f32 %v3348_v58, %v13747_v15  ;;  %7684 = vmatmul.mubr.bf16.vlgmr.msra.gmra.mrb[112].mxu0 %v13932_v54  ;;  %v4363_v42 = vsel %vm4107_vm10, %v11194_v13, %v4235_v28  ;;  %vm4108_vm12 = vcmp.ge.f32.partialorder %v11195_v38, 0.0 }
 0x496   :  { %v4362_v60 = vsel %vm4106_vm11, %v11163_v3, %v4234_v51  ;;  %v11197_v43 = vadd.f32 %v3574_v56, %v13750_v59  ;;  %v16173_v2 = vcombine.low %v13694_v61, %v13696_v46  ;;  %8136 = vmatmul.mubr.bf16.vlgmr.msra.gmra.mrb[128].mxu1 %v13932_v54  ;;  %v3352_v52 = vpop.f32.mrb[56].mxu0  ;;  %vm4113_vm13 = vcmp.ge.f32.partialorder %v11164_v31, 0.0 }
 0x497   :  { %v4241_v37 = vmul.f32 0.2, %v11164_v31  ;;  %vm4115_vm14 = vcmp.ge.f32.partialorder %v11196_v21, 0.0  ;;  %v4243_v48 = vmul.f32 0.2, %v11196_v21  ;;  %v16174_v58 = vcombine.low %v13699_v0, %v13701_v30  ;;  %v3354_v30 = vpop.f32.mrb[57].mxu0 }
 0x498   :  { %7765 = vmatpush1.bf16.msra.mxu0 %v16173_v2  ;;  %v16175_v13 = vcombine.high %v13708_v45, %v13710_v12  ;;  %vm4114_vm15 = vcmp.ge.f32.partialorder %v11165_v14, 0.0  ;;  %v4242_v3 = vmul.f32 0.2, %v11165_v14  ;;  %vm4116_vm0 = vcmp.ge.f32.partialorder %v11197_v43, 0.0  ;;  %v3578_v0 = vpop.f32.mrb[72].mxu1 }
 0x499   :  { %8217 = vmatpush1.bf16.msra.mxu1 %v16174_v58  ;;  %v4244_v61 = vmul.f32 0.2, %v11197_v43  ;;  %v16176_v46 = vcombine.high %v13712_v6, %v13714_v23  ;;  %v4364_v56 = vsel %vm4108_vm12, %v11195_v38, %v4236_v34  ;;  %v4369_v28 = vsel %vm4113_vm13, %v11164_v31, %v4241_v37  ;;  %v3580_v41 = vpop.f32.mrb[73].mxu1 }
 0x49a   :  { %7766 = vmatprep.subr.bf16.mxu0 %v16175_v13  ;;  %v4371_v51 = vsel %vm4115_vm14, %v11196_v21, %v4243_v48  ;;  %v11166_v2 = vadd.f32 %v3352_v52, %v13733_v55  ;;  %v13975_v58 = vpack.c.bf16 %v4369_v28, %v4361_v33  ;;  %v4370_v13 = vsel %vm4114_vm15, %v11165_v14, %v4242_v3  ;;  %v3582_v34 = vpop.f32.mrb[74].mxu1 }
 0x49b   :  { %8218 = vmatprep.subr.bf16.mxu1 %v16176_v46  ;;  %v13977_v9 = vpack.c.bf16 %v4371_v51, %v4363_v42  ;;  %v4372_v54 = vsel %vm4116_vm0, %v11197_v43, %v4244_v61  ;;  %v16179_v5 = vcombine.low %v13708_v45, %v13710_v12  ;;  %v3356_v46 = vpop.f32.mrb[58].mxu0  ;;  %v13982_v50 = vpack.c.bf16 %v4370_v13, %v4362_v60  ;;  %v3584_v14 = vpop.f32.mrb[75].mxu1 }
 0x49c   :  { %16177 = vst [vmem:[#allocation55_spill] sm:$0xff] %v13975_v58  ;;  %v13984_v38 = vpack.c.bf16 %v4372_v54, %v4364_v56  ;;  %vm4121_vm1 = vcmp.ge.f32.partialorder %v11166_v2, 0.0  ;;  %v4249_v52 = vmul.f32 0.2, %v11166_v2  ;;  %v16182_v33 = vcombine.low %v13712_v6, %v13714_v23  ;;  %v3358_v31 = vpop.f32.mrb[59].mxu0 }
 0x49d   :  { %16178 = vst [vmem:[#allocation32_spill] sm:$0xff] %v13977_v9  ;;  %7767 = vmatpush1.bf16.msra.mxu0 %v16179_v5  ;;  %16180 = vst [vmem:[#allocation58_spill] sm:$0xff] %v13982_v50  ;;  %v16183_v21 = vcombine.high %v13716_v7, %v13718_v8  ;;  %v11198_v45 = vadd.f32 %v3578_v0, %v13744_v24  ;;  %v11167_v12 = vadd.f32 %v3354_v30, %v13747_v15 }
 0x49e   :  { %16181 = vst [vmem:[#allocation59_spill] sm:$0xff] %v13984_v38  ;;  %8219 = vmatpush1.bf16.msra.mxu1 %v16182_v33  ;;  %v11199_v5 = vadd.f32 %v3580_v41, %v13750_v59  ;;  %v11168_v54 = vadd.f32 %v3356_v46, %v13733_v55  ;;  %v16184_v42 = vcombine.high %v13720_v1, %v13722_v17  ;;  %v3362_v30 = vpop.f32.mrb[60].mxu0 }
 0x49f   :  { %7768 = vmatprep.subr.bf16.mxu0 %v16183_v21  ;;  %v4377_v6 = vsel %vm4121_vm1, %v11166_v2, %v4249_v52  ;;  %v11200_v23 = vadd.f32 %v3582_v34, %v13744_v24  ;;  %v11169_v60 = vadd.f32 %v3358_v31, %v13747_v15  ;;  %v11201_v43 = vadd.f32 %v3584_v14, %v13750_v59  ;;  %v3364_v33 = vpop.f32.mrb[61].mxu0 }
 0x4a0   :  { %8220 = vmatprep.subr.bf16.mxu1 %v16184_v42  ;;  %7693 = vmatprep.mubr.bf16.mxu0 %v13982_v50  ;;  %vm4123_vm2 = vcmp.ge.f32.partialorder %v11198_v45, 0.0  ;;  %v4251_v37 = vmul.f32 0.2, %v11198_v45  ;;  %vm4122_vm3 = vcmp.ge.f32.partialorder %v11167_v12, 0.0  ;;  %v4250_v41 = vmul.f32 0.2, %v11167_v12 }
 0x4a1   :  { %8145 = vmatprep.mubr.bf16.mxu1 %v13982_v50  ;;  %7694 = vmatmul.mubr.bf16.gmra.mrb[116].mxu0 %v13975_v58  ;;  %vm4124_vm4 = vcmp.ge.f32.partialorder %v11199_v5, 0.0  ;;  %v4252_v48 = vmul.f32 0.2, %v11199_v5  ;;  %vm4129_vm5 = vcmp.ge.f32.partialorder %v11168_v54, 0.0  ;;  %v4257_v3 = vmul.f32 0.2, %v11168_v54 }
 0x4a2   :  { %v16185_v61 = vcombine.low %v13716_v7, %v13718_v8  ;;  %8146 = vmatmul.mubr.bf16.gmra.mrb[132].mxu1 %v13975_v58  ;;  %v4379_v56 = vsel %vm4123_vm2, %v11198_v45, %v4251_v37  ;;  %v4378_v28 = vsel %vm4122_vm3, %v11167_v12, %v4250_v41  ;;  %vm4131_vm6 = vcmp.ge.f32.partialorder %v11200_v23, 0.0  ;;  %v3588_v13 = vpop.f32.mrb[76].mxu1  ;;  %v3366_v21 = vpop.f32.mrb[62].mxu0  ;;  %v14495_v58 = vld [vmem:[#allocation16 + $0xc60] sm:$0xff] }
 0x4a3   :  { %v4259_v51 = vmul.f32 0.2, %v11200_v23  ;;  %v16186_v2 = vcombine.low %v13720_v1, %v13722_v17  ;;  %v16187_v0 = vcombine.high %v13724_v29, %v13726_v20  ;;  %v4380_v46 = vsel %vm4124_vm4, %v11199_v5, %v4252_v48  ;;  %v3590_v34 = vpop.f32.mrb[77].mxu1  ;;  %v3368_v37 = vpop.f32.mrb[63].mxu0  ;;  %16292 = vst [vmem:[#allocation73_spill] sm:$0xff] %v14495_v58  ;;  %v14513_v50 = vld [vmem:[#allocation16 + $0xca0] sm:$0xff] }
 0x4a4   :  { %7769 = vmatpush1.bf16.msra.mxu0 %v16185_v61  ;;  %v4385_v52 = vsel %vm4129_vm5, %v11168_v54, %v4257_v3  ;;  %vm4130_vm7 = vcmp.ge.f32.partialorder %v11169_v60, 0.0  ;;  %v4258_v7 = vmul.f32 0.2, %v11169_v60  ;;  %v16188_v8 = vcombine.high %v13728_v27, %v13730_v49  ;;  %v3592_v45 = vpop.f32.mrb[78].mxu1  ;;  %16294 = vst [vmem:[#allocation74_spill] sm:$0xff] %v14513_v50  ;;  %v14597_v58 = vld [vmem:[#allocation16 + $0xd48] sm:$0xff] }
 0x4a5   :  { %8221 = vmatpush1.bf16.msra.mxu1 %v16186_v2  ;;  %7770 = vmatprep.subr.bf16.mxu0 %v16187_v0  ;;  %v14018_v31 = vpack.c.bf16 %v4385_v52, %v4377_v6  ;;  %v4387_v1 = vsel %vm4131_vm6, %v11200_v23, %v4259_v51  ;;  %vm4132_vm8 = vcmp.ge.f32.partialorder %v11201_v43, 0.0  ;;  %v4260_v17 = vmul.f32 0.2, %v11201_v43  ;;  %v3594_v41 = vpop.f32.mrb[79].mxu1 }
 0x4a6   :  { %8222 = vmatprep.subr.bf16.mxu1 %v16188_v8  ;;  %v14020_v12 = vpack.c.bf16 %v4387_v1, %v4379_v56  ;;  %v4386_v14 = vsel %vm4130_vm7, %v11169_v60, %v4258_v7  ;;  %v11170_v5 = vadd.f32 %v3362_v30, %v13733_v55  ;;  %v11202_v54 = vadd.f32 %v3588_v13, %v13744_v24  ;;  %v3372_v0 = vpop.f32.mrb[64].mxu0 }
 0x4a7   :  { %16189 = vst [vmem:[#allocation60_spill] sm:$0xff] %v14018_v31  ;;  %v16191_v42 = vcombine.low %v13724_v29, %v13726_v20  ;;  %v14027_v6 = vpack.c.bf16 %v4386_v14, %v4378_v28  ;;  %v4388_v23 = vsel %vm4132_vm8, %v11201_v43, %v4260_v17  ;;  %v11171_v48 = vadd.f32 %v3364_v33, %v13747_v15  ;;  %v3374_v33 = vpop.f32.mrb[65].mxu0 }
 0x4a8   :  { %16190 = vst [vmem:[#allocation61_spill] sm:$0xff] %v14020_v12  ;;  %v11203_v3 = vadd.f32 %v3590_v34, %v13750_v59  ;;  %v16193_v60 = vcombine.low %v13728_v27, %v13730_v49  ;;  %v14034_v61 = vpack.c.bf16 %v4388_v23, %v4380_v46  ;;  %vm4137_vm9 = vcmp.ge.f32.partialorder %v11170_v5, 0.0  ;;  %v3598_v30 = vpop.f32.mrb[80].mxu1  ;;  %v3376_v14 = vpop.f32.mrb[66].mxu0 }
 0x4a9   :  { %7771 = vmatpush1.bf16.msra.mxu0 %v16191_v42  ;;  %16192 = vst [vmem:[#allocation62_spill] sm:$0xff] %v14027_v6  ;;  %v4265_v56 = vmul.f32 0.2, %v11170_v5  ;;  %vm4139_vm10 = vcmp.ge.f32.partialorder %v11202_v54, 0.0  ;;  %v16195_v29 = vcombine.high %v13735_v53, %v13737_v62  ;;  %v16196_v20 = vcombine.high %v13739_v40, %v13741_v19  ;;  %7703 = vmatprep.mubr.bf16.mxu0 %v14027_v6  ;;  %v3600_v34 = vpop.f32.mrb[81].mxu1 }
 0x4aa   :  { %8223 = vmatpush1.bf16.msra.mxu1 %v16193_v60  ;;  %16194 = vst [vmem:[#allocation63_spill] sm:$0xff] %v14034_v61  ;;  %v4267_v43 = vmul.f32 0.2, %v11202_v54  ;;  %vm4138_vm11 = vcmp.ge.f32.partialorder %v11171_v48, 0.0  ;;  %v4266_v28 = vmul.f32 0.2, %v11171_v48  ;;  %8155 = vmatprep.mubr.bf16.mxu1 %v14027_v6  ;;  %v11172_v51 = vadd.f32 %v3366_v21, %v13733_v55 }
 0x4ab   :  { %7772 = vmatprep.subr.bf16.mxu0 %v16195_v29  ;;  %8224 = vmatprep.subr.bf16.mxu1 %v16196_v20  ;;  %vm4140_vm12 = vcmp.ge.f32.partialorder %v11203_v3, 0.0  ;;  %v4393_v27 = vsel %vm4137_vm9, %v11170_v5, %v4265_v56  ;;  %v4268_v49 = vmul.f32 0.2, %v11203_v3  ;;  %v11204_v2 = vadd.f32 %v3592_v45, %v13744_v24  ;;  %v3602_v5 = vpop.f32.mrb[82].mxu1  ;;  %v14493_v6 = vld [vmem:[#allocation16 + $0xc40] sm:$0xff] }
 0x4ac   :  { %7704 = vmatmul.mubr.bf16.gmra.mrb[120].mxu0 %v14018_v31  ;;  %8156 = vmatmul.mubr.bf16.gmra.mrb[136].mxu1 %v14018_v31  ;;  %v4395_v13 = vsel %vm4139_vm10, %v11202_v54, %v4267_v43  ;;  %v4394_v46 = vsel %vm4138_vm11, %v11171_v48, %v4266_v28  ;;  %v11173_v52 = vadd.f32 %v3368_v37, %v13747_v15  ;;  %vm4145_vm13 = vcmp.ge.f32.partialorder %v11172_v51, 0.0  ;;  %v3604_v23 = vpop.f32.mrb[83].mxu1  ;;  %v14509_v31 = vld [vmem:[#allocation16 + $0xc68] sm:$0xff] }
 0x4ad   :  { %v11205_v7 = vadd.f32 %v3594_v41, %v13750_v59  ;;  %v16197_v8 = vcombine.low %v13735_v53, %v13737_v62  ;;  %v4396_v1 = vsel %vm4140_vm12, %v11203_v3, %v4268_v49  ;;  %v4273_v17 = vmul.f32 0.2, %v11172_v51  ;;  %16291 = vst [vmem:[#allocation72_spill] sm:$0xff] %v14493_v6  ;;  %v14599_v6 = vld [vmem:[#allocation16 + $0xd68] sm:$0xff] }
 0x4ae   :  { %vm4147_vm14 = vcmp.ge.f32.partialorder %v11204_v2, 0.0  ;;  %v16198_v21 = vcombine.low %v13739_v40, %v13741_v19  ;;  %v16199_v45 = vcombine.high %v13754_v32, %v13756_v63  ;;  %v4275_v54 = vmul.f32 0.2, %v11204_v2  ;;  %v3378_v19 = vpop.f32.mrb[67].mxu0  ;;  %16308 = vst [vmem:[#allocation81_spill] sm:$0xff] %v14599_v6  ;;  %v14699_v6 = vld [vmem:[#allocation16 + $0xe88] sm:$0xff] }
 0x4af   :  { %7773 = vmatpush1.bf16.msra.mxu0 %v16197_v8  ;;  %vm4146_vm15 = vcmp.ge.f32.partialorder %v11173_v52, 0.0  ;;  %v4274_v53 = vmul.f32 0.2, %v11173_v52  ;;  %vm4148_vm0 = vcmp.ge.f32.partialorder %v11205_v7, 0.0  ;;  %v16200_v62 = vcombine.high %v13758_v26, %v13760_v10 }
 0x4b0   :  { %8225 = vmatpush1.bf16.msra.mxu1 %v16198_v21  ;;  %7774 = vmatprep.subr.bf16.mxu0 %v16199_v45  ;;  %v4401_v42 = vsel %vm4145_vm13, %v11172_v51, %v4273_v17  ;;  %v4276_v37 = vmul.f32 0.2, %v11205_v7  ;;  %v11174_v41 = vadd.f32 %v3372_v0, %v13733_v55  ;;  %v11206_v40 = vadd.f32 %v3598_v30, %v13744_v24  ;;  %v3382_v0 = vpop.f32.mrb[68].mxu0 }
 0x4b1   :  { %8226 = vmatprep.subr.bf16.mxu1 %v16200_v62  ;;  %v14066_v48 = vpack.c.bf16 %v4401_v42, %v4393_v27  ;;  %v4403_v3 = vsel %vm4147_vm14, %v11204_v2, %v4275_v54  ;;  %v4402_v60 = vsel %vm4146_vm15, %v11173_v52, %v4274_v53  ;;  %v16202_v56 = vcombine.low %v13754_v32, %v13756_v63 }
 0x4b2   :  { %v11175_v29 = vadd.f32 %v3374_v33, %v13747_v15  ;;  %v14073_v20 = vpack.c.bf16 %v4403_v3, %v4395_v13  ;;  %v14075_v43 = vpack.c.bf16 %v4402_v60, %v4394_v46  ;;  %v4404_v28 = vsel %vm4148_vm0, %v11205_v7, %v4276_v37  ;;  %v3384_v46 = vpop.f32.mrb[69].mxu0 }
 0x4b3   :  { %16201 = vst [vmem:[#allocation64_spill] sm:$0xff] %v14066_v48  ;;  %7775 = vmatpush1.bf16.msra.mxu0 %v16202_v56  ;;  %vm4153_vm1 = vcmp.ge.f32.partialorder %v11174_v41, 0.0  ;;  %v16205_v49 = vcombine.low %v13758_v26, %v13760_v10  ;;  %v16206_v27 = vcombine.high %v13770_v16, %v13772_v47  ;;  %v14083_v51 = vpack.c.bf16 %v4404_v28, %v4396_v1  ;;  %v3608_v10 = vpop.f32.mrb[84].mxu1  ;;  %v3386_v17 = vpop.f32.mrb[70].mxu0 }
 0x4b4   :  { %16203 = vst [vmem:[#allocation65_spill] sm:$0xff] %v14073_v20  ;;  %16204 = vst [vmem:[#allocation66_spill] sm:$0xff] %v14075_v43  ;;  %v4281_v32 = vmul.f32 0.2, %v11174_v41  ;;  %vm4155_vm2 = vcmp.ge.f32.partialorder %v11206_v40, 0.0  ;;  %v16208_v2 = vcombine.high %v13774_v57, %v13784_v22  ;;  %vm4154_vm3 = vcmp.ge.f32.partialorder %v11175_v29, 0.0  ;;  %7713 = vmatprep.mubr.bf16.mxu0 %v14075_v43  ;;  %8165 = vmatprep.mubr.bf16.mxu1 %v14075_v43 }
 0x4b5   :  { %8227 = vmatpush1.bf16.msra.mxu1 %v16205_v49  ;;  %7776 = vmatprep.subr.bf16.mxu0 %v16206_v27  ;;  %16207 = vst [vmem:[#allocation67_spill] sm:$0xff] %v14083_v51  ;;  %v4283_v63 = vmul.f32 0.2, %v11206_v40  ;;  %v4282_v30 = vmul.f32 0.2, %v11175_v29  ;;  %v11207_v13 = vadd.f32 %v3600_v34, %v13750_v59  ;;  %v11176_v26 = vadd.f32 %v3376_v14, %v13733_v55  ;;  %v3610_v1 = vpop.f32.mrb[85].mxu1 }
 0x4b6   :  { %8228 = vmatprep.subr.bf16.mxu1 %v16208_v2  ;;  %v4409_v52 = vsel %vm4153_vm1, %v11174_v41, %v4281_v32  ;;  %v11208_v8 = vadd.f32 %v3602_v5, %v13744_v24  ;;  %v11177_v33 = vadd.f32 %v3378_v19, %v13747_v15  ;;  %7714 = vmatmul.mubr.bf16.gmra.mrb[124].mxu0 %v14066_v48  ;;  %v3612_v14 = vpop.f32.mrb[86].mxu1  ;;  %v3388_v54 = vpop.f32.mrb[71].mxu0  ;;  %v16218_v2 = vld [vmem:[#allocation33_spill] sm:$0xff] }
 0x4b7   :  { %v4411_v7 = vsel %vm4155_vm2, %v11206_v40, %v4283_v63  ;;  %v4410_v34 = vsel %vm4154_vm3, %v11175_v29, %v4282_v30  ;;  %vm4156_vm4 = vcmp.ge.f32.partialorder %v11207_v13, 0.0  ;;  %v4284_v21 = vmul.f32 0.2, %v11207_v13  ;;  %8166 = vmatmul.mubr.bf16.gmra.mrb[140].mxu1 %v14066_v48  ;;  %v3614_v19 = vpop.f32.mrb[87].mxu1 }
 0x4b8   :  { %vm4161_vm5 = vcmp.ge.f32.partialorder %v11176_v26, 0.0  ;;  %v16209_v45 = vcombine.low %v13770_v16, %v13772_v47  ;;  %v4289_v53 = vmul.f32 0.2, %v11176_v26  ;;  %vm4163_vm6 = vcmp.ge.f32.partialorder %v11208_v8, 0.0 }
 0x4b9   :  { %v4291_v5 = vmul.f32 0.2, %v11208_v8  ;;  %vm4162_vm7 = vcmp.ge.f32.partialorder %v11177_v33, 0.0  ;;  %v16210_v62 = vcombine.low %v13774_v57, %v13784_v22  ;;  %v16211_v42 = vcombine.high %v13786_v11, %v13788_v25 }
 0x4ba   :  { %7777 = vmatpush1.bf16.msra.mxu0 %v16209_v45  ;;  %v4412_v37 = vsel %vm4156_vm4, %v11207_v13, %v4284_v21  ;;  %v4290_v41 = vmul.f32 0.2, %v11177_v33  ;;  %v11209_v16 = vadd.f32 %v3604_v23, %v13750_v59  ;;  %v11178_v47 = vadd.f32 %v3382_v0, %v13733_v55  ;;  %v16219_v0 = vld [vmem:[#allocation34_spill] sm:$0xff]  ;;  %v3392_v13 = vpop.f32.mrb[72].mxu0 }
 0x4bb   :  { %8229 = vmatpush1.bf16.msra.mxu1 %v16210_v62  ;;  %7778 = vmatprep.subr.bf16.mxu0 %v16211_v42  ;;  %v16212_v40 = vcombine.high %v13798_v18, %v13800_v36  ;;  %v4417_v3 = vsel %vm4161_vm5, %v11176_v26, %v4289_v53  ;;  %v4419_v60 = vsel %vm4163_vm6, %v11208_v8, %v4291_v5 }
 0x4bc   :  { %v11210_v57 = vadd.f32 %v3608_v10, %v13744_v24  ;;  %v11179_v22 = vadd.f32 %v3384_v46, %v13747_v15  ;;  %v14114_v56 = vpack.c.bf16 %v4417_v3, %v4409_v52  ;;  %v14116_v29 = vpack.c.bf16 %v4419_v60, %v4411_v7 }
 0x4bd   :  { %8230 = vmatprep.subr.bf16.mxu1 %v16212_v40  ;;  %v4418_v28 = vsel %vm4162_vm7, %v11177_v33, %v4290_v41  ;;  %vm4164_vm8 = vcmp.ge.f32.partialorder %v11209_v16, 0.0  ;;  %v16215_v23 = vcombine.low %v13786_v11, %v13788_v25  ;;  %v4292_v27 = vmul.f32 0.2, %v11209_v16  ;;  %v16221_v11 = vld [vmem:[#allocation35_spill] sm:$0xff]  ;;  %v16222_v25 = vld [vmem:[#allocation36_spill] sm:$0xff]  ;;  %v3394_v33 = vpop.f32.mrb[73].mxu0 }
 0x4be   :  { %16213 = vst [vmem:[#allocation68_spill] sm:$0xff] %v14114_v56  ;;  %16214 = vst [vmem:[#allocation69_spill] sm:$0xff] %v14116_v29  ;;  %v14121_v49 = vpack.c.bf16 %v4418_v28, %v4410_v34  ;;  %vm4169_vm9 = vcmp.ge.f32.partialorder %v11178_v47, 0.0  ;;  %v4297_v32 = vmul.f32 0.2, %v11178_v47  ;;  %v16217_v63 = vcombine.low %v13798_v18, %v13800_v36  ;;  %v3618_v36 = vpop.f32.mrb[88].mxu1 }
 0x4bf   :  { %7779 = vmatpush1.bf16.msra.mxu0 %v16215_v23  ;;  %v16220_v30 = vcombine.high %v16218_v2, %v16219_v0  ;;  %vm4171_vm10 = vcmp.ge.f32.partialorder %v11210_v57, 0.0  ;;  %v4299_v26 = vmul.f32 0.2, %v11210_v57  ;;  %vm4170_vm11 = vcmp.ge.f32.partialorder %v11179_v22, 0.0  ;;  %v3620_v5 = vpop.f32.mrb[89].mxu1  ;;  %v3396_v62 = vpop.f32.mrb[74].mxu0 }
 0x4c0   :  { %16216 = vst [vmem:[#allocation70_spill] sm:$0xff] %v14121_v49  ;;  %8231 = vmatpush1.bf16.msra.mxu1 %v16217_v63  ;;  %v4298_v10 = vmul.f32 0.2, %v11179_v22  ;;  %v16223_v46 = vcombine.high %v16221_v11, %v16222_v25  ;;  %v4420_v52 = vsel %vm4164_vm8, %v11209_v16, %v4292_v27  ;;  %v4425_v7 = vsel %vm4169_vm9, %v11178_v47, %v4297_v32  ;;  %v3622_v47 = vpop.f32.mrb[90].mxu1  ;;  %v3398_v40 = vpop.f32.mrb[75].mxu0 }
 0x4c1   :  { %7780 = vmatprep.subr.bf16.mxu0 %v16220_v30  ;;  %v11211_v8 = vadd.f32 %v3610_v1, %v13750_v59  ;;  %v11180_v18 = vadd.f32 %v3386_v17, %v13733_v55  ;;  %7723 = vmatprep.mubr.bf16.mxu0 %v14121_v49  ;;  %v14135_v34 = vpack.c.bf16 %v4420_v52, %v4412_v37  ;;  %v3624_v23 = vpop.f32.mrb[91].mxu1 }
 0x4c2   :  { %8232 = vmatprep.subr.bf16.mxu1 %v16223_v46  ;;  %v4427_v21 = vsel %vm4171_vm10, %v11210_v57, %v4299_v26  ;;  %v4426_v45 = vsel %vm4170_vm11, %v11179_v22, %v4298_v10  ;;  %v11212_v53 = vadd.f32 %v3612_v14, %v13744_v24  ;;  %8175 = vmatprep.mubr.bf16.mxu1 %v14121_v49  ;;  %v16227_v57 = vld [vmem:[#allocation37_spill] sm:$0xff]  ;;  %v14477_v49 = vld [vmem:[#allocation16 + $0xc28] sm:$0xff] }
 0x4c3   :  { %16224 = vst [vmem:[#allocation33_spill] sm:$0xff] %v14135_v34  ;;  %vm4172_vm12 = vcmp.ge.f32.partialorder %v11211_v8, 0.0  ;;  %v4300_v42 = vmul.f32 0.2, %v11211_v8  ;;  %vm4177_vm13 = vcmp.ge.f32.partialorder %v11180_v18, 0.0  ;;  %7724 = vmatmul.mubr.bf16.gmra.mrb[128].mxu0 %v14114_v56  ;;  %8176 = vmatmul.mubr.bf16.gmra.mrb[144].mxu1 %v14114_v56  ;;  %v11181_v37 = vadd.f32 %v3388_v54, %v13747_v15  ;;  %v16228_v22 = vld [vmem:[#allocation57_spill] sm:$0xff] }
 0x4c4   :  { %v4305_v1 = vmul.f32 0.2, %v11180_v18  ;;  %vm4179_vm14 = vcmp.ge.f32.partialorder %v11212_v53, 0.0  ;;  %v4307_v17 = vmul.f32 0.2, %v11212_v53  ;;  %v11213_v41 = vadd.f32 %v3614_v19, %v13750_v59  ;;  %v14459_v56 = vld [vmem:[#allocation16 + $0xbe8] sm:$0xff] }
 0x4c5   :  { %v16225_v14 = vcombine.low %v16218_v2, %v16219_v0  ;;  %v16226_v16 = vcombine.low %v16221_v11, %v16222_v25  ;;  %v4428_v3 = vsel %vm4172_vm12, %v11211_v8, %v4300_v42  ;;  %v16229_v28 = vcombine.high %v16227_v57, %v16228_v22  ;;  %v16231_v2 = vld [vmem:[#allocation56_spill] sm:$0xff]  ;;  %v16232_v0 = vld [vmem:[#allocation38_spill] sm:$0xff]  ;;  %v3402_v11 = vpop.f32.mrb[76].mxu0  ;;  %v3628_v8 = vpop.f32.mrb[92].mxu1  ;;  %v16238_v42 = vld [vmem:[#allocation39_spill] sm:$0xff]  ;;  %16287 = vst [vmem:[#allocation71_spill] sm:$0xff] %v14477_v49 }
 0x4c6   :  { %v4433_v60 = vsel %vm4177_vm13, %v11180_v18, %v4305_v1  ;;  %v11182_v54 = vadd.f32 %v3392_v13, %v13733_v55  ;;  %v11214_v19 = vadd.f32 %v3618_v36, %v13744_v24  ;;  %v4435_v32 = vsel %vm4179_vm14, %v11212_v53, %v4307_v17  ;;  %v16239_v1 = vld [vmem:[#allocation40_spill] sm:$0xff]  ;;  %v14601_v49 = vld [vmem:[#allocation16 + $0xd80] sm:$0xff] }
 0x4c7   :  { %7781 = vmatpush1.bf16.msra.mxu0 %v16225_v14  ;;  %8233 = vmatpush1.bf16.msra.mxu1 %v16226_v16  ;;  %v14154_v27 = vpack.c.bf16 %v4433_v60, %v4425_v7  ;;  %vm4178_vm15 = vcmp.ge.f32.partialorder %v11181_v37, 0.0  ;;  %v4306_v63 = vmul.f32 0.2, %v11181_v37  ;;  %v16233_v30 = vcombine.high %v16231_v2, %v16232_v0  ;;  %v3630_v14 = vpop.f32.mrb[93].mxu1  ;;  %16309 = vst [vmem:[#allocation82_spill] sm:$0xff] %v14601_v49  ;;  %v14697_v49 = vld [vmem:[#allocation16 + $0xea0] sm:$0xff] }
 0x4c8   :  { %7782 = vmatprep.subr.bf16.mxu0 %v16229_v28  ;;  %v14159_v26 = vpack.c.bf16 %v4435_v32, %v4427_v21  ;;  %vm4180_vm0 = vcmp.ge.f32.partialorder %v11213_v41, 0.0  ;;  %v4308_v10 = vmul.f32 0.2, %v11213_v41  ;;  %vm4185_vm1 = vcmp.ge.f32.partialorder %v11182_v54, 0.0  ;;  %v16243_v28 = vld [vmem:[#allocation42_spill] sm:$0xff]  ;;  %v3632_v32 = vpop.f32.mrb[94].mxu1 }
 0x4c9   :  { %16230 = vst [vmem:[#allocation34_spill] sm:$0xff] %v14154_v27  ;;  %8234 = vmatprep.subr.bf16.mxu1 %v16233_v30  ;;  %v4434_v25 = vsel %vm4178_vm15, %v11181_v37, %v4306_v63  ;;  %v4313_v13 = vmul.f32 0.2, %v11182_v54  ;;  %vm4187_vm2 = vcmp.ge.f32.partialorder %v11214_v19, 0.0  ;;  %v4315_v46 = vmul.f32 0.2, %v11214_v19 }
 0x4ca   :  { %16234 = vst [vmem:[#allocation35_spill] sm:$0xff] %v14159_v26  ;;  %v16235_v52 = vcombine.low %v16227_v57, %v16228_v22  ;;  %v16236_v7 = vcombine.low %v16231_v2, %v16232_v0  ;;  %v14167_v18 = vpack.c.bf16 %v4434_v25, %v4426_v45  ;;  %v4436_v36 = vsel %vm4180_vm0, %v11213_v41, %v4308_v10  ;;  %v3404_v37 = vpop.f32.mrb[77].mxu0  ;;  %v16242_v45 = vld [vmem:[#allocation41_spill] sm:$0xff]  ;;  %v3634_v2 = vpop.f32.mrb[95].mxu1 }
 0x4cb   :  { %v11183_v21 = vadd.f32 %v3394_v33, %v13747_v15  ;;  %v11215_v53 = vadd.f32 %v3620_v5, %v13750_v59  ;;  %v16240_v17 = vcombine.high %v16238_v42, %v16239_v1  ;;  %v14174_v16 = vpack.c.bf16 %v4436_v36, %v4428_v3  ;;  %v3406_v33 = vpop.f32.mrb[78].mxu0  ;;  %v16250_v36 = vld [vmem:[#allocation45_spill] sm:$0xff]  ;;  %16322 = vst [vmem:[#allocation89_spill] sm:$0xff] %v14697_v49  ;;  %v14761_v49 = vld [vmem:[#allocation16 + $0xf40] sm:$0xff] }
 0x4cc   :  { %7783 = vmatpush1.bf16.msra.mxu0 %v16235_v52  ;;  %8235 = vmatpush1.bf16.msra.mxu1 %v16236_v7  ;;  %16237 = vst [vmem:[#allocation36_spill] sm:$0xff] %v14167_v18  ;;  %v4441_v60 = vsel %vm4185_vm1, %v11182_v54, %v4313_v13  ;;  %v4443_v57 = vsel %vm4187_vm2, %v11214_v19, %v4315_v46  ;;  %v3408_v19 = vpop.f32.mrb[79].mxu0  ;;  %v16247_v46 = vld [vmem:[#allocation43_spill] sm:$0xff]  ;;  %v16248_v52 = vld [vmem:[#allocation44_spill] sm:$0xff] }
 0x4cd   :  { %7784 = vmatprep.subr.bf16.mxu0 %v16240_v17  ;;  %16241 = vst [vmem:[#allocation37_spill] sm:$0xff] %v14174_v16  ;;  %v11184_v22 = vadd.f32 %v3396_v62, %v13733_v55  ;;  %v16244_v41 = vcombine.high %v16242_v45, %v16243_v28  ;;  %vm4186_vm3 = vcmp.ge.f32.partialorder %v11183_v21, 0.0  ;;  %v4314_v5 = vmul.f32 0.2, %v11183_v21  ;;  %7733 = vmatprep.mubr.bf16.mxu0 %v14167_v18  ;;  %v14202_v17 = vld [vmem:[#allocation16 + $0x780] sm:$0xff] }
 0x4ce   :  { %vm4188_vm4 = vcmp.ge.f32.partialorder %v11215_v53, 0.0  ;;  %v4316_v63 = vmul.f32 0.2, %v11215_v53  ;;  %8185 = vmatprep.mubr.bf16.mxu1 %v14167_v18  ;;  %v11216_v54 = vadd.f32 %v3622_v47, %v13744_v24  ;;  %v11185_v62 = vadd.f32 %v3398_v40, %v13747_v15  ;;  %7734 = vmatmul.mubr.bf16.gmra.mrb[132].mxu0 %v14154_v27  ;;  %v14457_v18 = vld [vmem:[#allocation16 + $0xbc8] sm:$0xff] }
 0x4cf   :  { %8236 = vmatprep.subr.bf16.mxu1 %v16244_v41  ;;  %vm4193_vm5 = vcmp.ge.f32.partialorder %v11184_v22, 0.0  ;;  %v4321_v3 = vmul.f32 0.2, %v11184_v22  ;;  %8186 = vmatmul.mubr.bf16.gmra.mrb[148].mxu1 %v14154_v27  ;;  %v4442_v0 = vsel %vm4186_vm3, %v11183_v21, %v4314_v5  ;;  %v11217_v10 = vadd.f32 %v3624_v23, %v13750_v59  ;;  %v16251_v21 = vld [vmem:[#allocation48_spill] sm:$0xff]  ;;  %v14207_v5 = vld [vmem:[#allocation16 + $0x7a0] sm:$0xff] }
 0x4d0   :  { %v4444_v30 = vsel %vm4188_vm4, %v11215_v53, %v4316_v63  ;;  %v16245_v25 = vcombine.low %v16238_v42, %v16239_v1  ;;  %v16246_v13 = vcombine.low %v16242_v45, %v16243_v28  ;;  %vm4195_vm6 = vcmp.ge.f32.partialorder %v11216_v54, 0.0  ;;  %v14209_v63 = vld [vmem:[#allocation16 + $0x788] sm:$0xff]  ;;  %v14455_v27 = vld [vmem:[#allocation16 + $0xbe0] sm:$0xff] }
 0x4d1   :  { %v4449_v47 = vsel %vm4193_vm5, %v11184_v22, %v4321_v3  ;;  %v4323_v40 = vmul.f32 0.2, %v11216_v54  ;;  %vm4194_vm7 = vcmp.ge.f32.partialorder %v11185_v62, 0.0  ;;  %v16249_v7 = vcombine.high %v16247_v46, %v16248_v52  ;;  %v14211_v3 = vld [vmem:[#allocation16 + $0x7a8] sm:$0xff] }
 0x4d2   :  { %7785 = vmatpush1.bf16.msra.mxu0 %v16245_v25  ;;  %8237 = vmatpush1.bf16.msra.mxu1 %v16246_v13  ;;  %v16252_v53 = vcombine.high %v16250_v36, %v16251_v21  ;;  %v14200_v23 = vpack.c.bf16 %v4449_v47, %v4441_v60  ;;  %v4322_v42 = vmul.f32 0.2, %v11185_v62  ;;  %vm4196_vm8 = vcmp.ge.f32.partialorder %v11217_v10, 0.0 }
 0x4d3   :  { %7786 = vmatprep.subr.bf16.mxu0 %v16249_v7  ;;  %v4324_v1 = vmul.f32 0.2, %v11217_v10  ;;  %v4451_v45 = vsel %vm4195_vm6, %v11216_v54, %v4323_v40  ;;  %v11186_v22 = vadd.f32 %v3402_v11, %v13733_v55  ;;  %v11218_v28 = vadd.f32 %v3628_v8, %v13744_v24  ;;  %v16260_v7 = vld [vmem:[#allocation46_spill] sm:$0xff] }
 0x4d4   :  { %8238 = vmatprep.subr.bf16.mxu1 %v16252_v53  ;;  %16253 = vst [vmem:[#allocation57_spill] sm:$0xff] %v14200_v23  ;;  %v11187_v41 = vadd.f32 %v3404_v37, %v13747_v15  ;;  %v14213_v60 = vpack.c.bf16 %v4451_v45, %v4443_v57  ;;  %v4450_v25 = vsel %vm4194_vm7, %v11185_v62, %v4322_v42  ;;  %v16259_v57 = vld [vmem:[#allocation49_spill] sm:$0xff] }
 0x4d5   :  { %v4452_v13 = vsel %vm4196_vm8, %v11217_v10, %v4324_v1  ;;  %v16255_v54 = vcombine.low %v16247_v46, %v16248_v52  ;;  %v11219_v11 = vadd.f32 %v3630_v14, %v13750_v59  ;;  %v14220_v8 = vpack.c.bf16 %v4450_v25, %v4442_v0  ;;  %v16262_v10 = vld [vmem:[#allocation47_spill] sm:$0xff]  ;;  %v16263_v46 = vld [vmem:[#allocation52_spill] sm:$0xff] }
 0x4d6   :  { %16254 = vst [vmem:[#allocation56_spill] sm:$0xff] %v14213_v60  ;;  %v14222_v37 = vpack.c.bf16 %v4452_v13, %v4444_v30  ;;  %vm4201_vm9 = vcmp.ge.f32.partialorder %v11186_v22, 0.0  ;;  %v4329_v47 = vmul.f32 0.2, %v11186_v22  ;;  %v16258_v40 = vcombine.low %v16250_v36, %v16251_v21  ;;  %16284 = vst [vmem:[#allocation47_spill] sm:$0xff] %v14455_v27  ;;  %v14563_v27 = vld [vmem:[#allocation16 + $0xd00] sm:$0xff] }
 0x4d7   :  { %7787 = vmatpush1.bf16.msra.mxu0 %v16255_v54  ;;  %16256 = vst [vmem:[#allocation38_spill] sm:$0xff] %v14220_v8  ;;  %v16261_v62 = vcombine.high %v16259_v57, %v16260_v7  ;;  %vm4203_vm10 = vcmp.ge.f32.partialorder %v11218_v28, 0.0  ;;  %v16264_v52 = vcombine.high %v16262_v10, %v16263_v46  ;;  %v10634_v14 = vcombine.low %v14202_v17, %v14207_v5 }
 0x4d8   :  { %16257 = vst [vmem:[#allocation39_spill] sm:$0xff] %v14222_v37  ;;  %8239 = vmatpush1.bf16.msra.mxu1 %v16258_v40  ;;  %v10635_v0 = vcombine.high %v14202_v17, %v14207_v5  ;;  %v10637_v30 = vcombine.high %v14209_v63, %v14211_v3  ;;  %v4331_v36 = vmul.f32 0.2, %v11218_v28  ;;  %vm4202_vm11 = vcmp.ge.f32.partialorder %v11187_v41, 0.0  ;;  %7743 = vmatprep.mubr.bf16.mxu0 %v14220_v8 }
 0x4d9   :  { %7788 = vmatprep.subr.bf16.mxu0 %v16261_v62  ;;  %8240 = vmatprep.subr.bf16.mxu1 %v16264_v52  ;;  %v4330_v21 = vmul.f32 0.2, %v11187_v41  ;;  %v11188_v53 = vadd.f32 %v3406_v33, %v13733_v55  ;;  %v4457_v42 = vsel %vm4201_vm9, %v11186_v22, %v4329_v47  ;;  %vm4204_vm12 = vcmp.ge.f32.partialorder %v11219_v11, 0.0 }
 0x4da   :  { %8195 = vmatprep.mubr.bf16.mxu1 %v14220_v8  ;;  %v11220_v1 = vadd.f32 %v3632_v32, %v13744_v24  ;;  %v11189_v45 = vadd.f32 %v3408_v19, %v13747_v15  ;;  %7744 = vmatmul.mubr.bf16.gmra.mrb[136].mxu0 %v14200_v23  ;;  %v4332_v17 = vmul.f32 0.2, %v11219_v11  ;;  %v11221_v25 = vadd.f32 %v3634_v2, %v13750_v59  ;;  %v14453_v8 = vld [vmem:[#allocation16 + $0xbc0] sm:$0xff] }
 0x4db   :  { %vm4209_vm13 = vcmp.ge.f32.partialorder %v11188_v53, 0.0  ;;  %v4337_v5 = vmul.f32 0.2, %v11188_v53  ;;  %v16265_v55 = vcombine.low %v16259_v57, %v16260_v7  ;;  %8196 = vmatmul.mubr.bf16.gmra.mrb[152].mxu1 %v14200_v23  ;;  %v16266_v24 = vcombine.low %v16262_v10, %v16263_v46  ;;  %v4721_v57 = vld [vmem:[#allocation16 + $0x7c0] sm:$0xff]  ;;  %v14441_v23 = vld [vmem:[#allocation16 + $0xba8] sm:$0xff]  ;;  %16283 = vst [vmem:[#allocation46_spill] sm:$0xff] %v14453_v8 }
 0x4dc   :  { %vm4211_vm14 = vcmp.ge.f32.partialorder %v11220_v1, 0.0  ;;  %v4339_v33 = vmul.f32 0.2, %v11220_v1  ;;  %vm4210_vm15 = vcmp.ge.f32.partialorder %v11189_v45, 0.0  ;;  %v4338_v22 = vmul.f32 0.2, %v11189_v45 }
 0x4dd   :  { %7789 = vmatpush1.bf16.msra.mxu0 %v16265_v55  ;;  %8241 = vmatpush1.bf16.msra.mxu1 %v16266_v24  ;;  %v16267_v15 = vcombine.high %v13919_v44, %v13921_v39  ;;  %v4459_v59 = vsel %vm4203_vm10, %v11218_v28, %v4331_v36  ;;  %v4465_v32 = vsel %vm4209_vm13, %v11188_v53, %v4337_v5  ;;  %vm4212_vm0 = vcmp.ge.f32.partialorder %v11221_v25, 0.0  ;;  %v4725_v7 = vld [vmem:[#allocation16 + $0x7e0] sm:$0xff]  ;;  %v4722_v36 = vld [vmem:[#allocation16 + $0x7c8] sm:$0xff] }
 0x4de   :  { %v4340_v19 = vmul.f32 0.2, %v11221_v25  ;;  %v16268_v2 = vcombine.high %v13940_v35, %v13942_v4  ;;  %v4458_v13 = vsel %vm4202_vm11, %v11187_v41, %v4330_v21  ;;  %v14261_v54 = vpack.c.bf16 %v4465_v32, %v4457_v42  ;;  %v4726_v53 = vld [vmem:[#allocation16 + $0x7e8] sm:$0xff]  ;;  %v4737_v5 = vld [vmem:[#allocation16 + $0x840] sm:$0xff]  ;;  %16281 = vst [vmem:[#allocation49_spill] sm:$0xff] %v14441_v23 }
 0x4df   :  { %7790 = vmatprep.subr.bf16.mxu0 %v16267_v15  ;;  %v4467_v47 = vsel %vm4211_vm14, %v11220_v1, %v4339_v33  ;;  %v4466_v40 = vsel %vm4210_vm15, %v11189_v45, %v4338_v22  ;;  %v4460_v62 = vsel %vm4204_vm12, %v11219_v11, %v4332_v17  ;;  %v16272_v52 = vcombine.low %v13919_v44, %v13921_v39  ;;  %v4729_v1 = vld [vmem:[#allocation16 + $0x800] sm:$0xff]  ;;  %v4730_v45 = vld [vmem:[#allocation16 + $0x808] sm:$0xff] }
 0x4e0   :  { %8242 = vmatprep.subr.bf16.mxu1 %v16268_v2  ;;  %16269 = vst [vmem:[#allocation40_spill] sm:$0xff] %v14261_v54  ;;  %v14264_v10 = vpack.c.bf16 %v4467_v47, %v4459_v59  ;;  %v14266_v28 = vpack.c.bf16 %v4466_v40, %v4458_v13  ;;  %v4468_v46 = vsel %vm4212_vm0, %v11221_v25, %v4340_v19  ;;  %v4733_v39 = vld [vmem:[#allocation16 + $0x820] sm:$0xff]  ;;  %v4734_v17 = vld [vmem:[#allocation16 + $0x828] sm:$0xff] }
 0x4e1   :  { %7791 = vmatpush1.bf16.msra.mxu0 %v16272_v52  ;;  %v14271_v41 = vpack.c.bf16 %v4468_v46, %v4460_v62  ;;  %v16274_v21 = vcombine.low %v13940_v35, %v13942_v4  ;;  %v10636_v11 = vcombine.low %v14209_v63, %v14211_v3  ;;  %v10643_v42 = vcombine.high %v4721_v57, %v4725_v7  ;;  %v16275_v4 = vld [vmem:[#allocation54_spill] sm:$0xff]  ;;  %v4738_v55 = vld [vmem:[#allocation16 + $0x848] sm:$0xff] }
 0x4e2   :  { %16270 = vst [vmem:[#allocation41_spill] sm:$0xff] %v14264_v10  ;;  %16271 = vst [vmem:[#allocation42_spill] sm:$0xff] %v14266_v28  ;;  %7792 = vmatprep.subr.bf16.mxu0 %v10635_v0  ;;  %7753 = vmatprep.mubr.bf16.mxu0 %v14266_v28  ;;  %v10645_v44 = vcombine.high %v4722_v36, %v4726_v53  ;;  %v10642_v35 = vcombine.low %v4721_v57, %v4725_v7  ;;  %v4741_v25 = vld [vmem:[#allocation16 + $0x860] sm:$0xff]  ;;  %v4742_v33 = vld [vmem:[#allocation16 + $0x868] sm:$0xff] }
 0x4e3   :  { %16273 = vst [vmem:[#allocation43_spill] sm:$0xff] %v14271_v41  ;;  %8243 = vmatpush1.bf16.msra.mxu1 %v16274_v21  ;;  %8205 = vmatprep.mubr.bf16.mxu1 %v14266_v28  ;;  %v10644_v63 = vcombine.low %v4722_v36, %v4726_v53  ;;  %v10651_v3 = vcombine.high %v4729_v1, %v4733_v39  ;;  %v4745_v24 = vld [vmem:[#allocation16 + $0x880] sm:$0xff]  ;;  %v4746_v2 = vld [vmem:[#allocation16 + $0x888] sm:$0xff] }
 0x4e4   :  { %7754 = vmatmul.mubr.bf16.gmra.mrb[140].mxu0 %v14261_v54  ;;  %8244 = vmatprep.subr.bf16.mxu1 %v10637_v30  ;;  %v10653_v0 = vcombine.high %v4730_v45, %v4734_v17  ;;  %v10650_v30 = vcombine.low %v4729_v1, %v4733_v39  ;;  %v10659_v22 = vcombine.high %v4737_v5, %v4741_v25  ;;  %v4749_v15 = vld [vmem:[#allocation16 + $0x8a0] sm:$0xff]  ;;  %v4750_v13 = vld [vmem:[#allocation16 + $0x8a8] sm:$0xff] }
 0x4e5   :  { %7793 = vmatpush1.bf16.msra.mxu0 %v10634_v14  ;;  %8206 = vmatmul.mubr.bf16.gmra.mrb[156].mxu1 %v14261_v54  ;;  %v10652_v14 = vcombine.low %v4730_v45, %v4734_v17  ;;  %v16276_v59 = vld [vmem:[#allocation50_spill] sm:$0xff]  ;;  %v10661_v32 = vcombine.high %v4738_v55, %v4742_v33  ;;  %v10658_v19 = vcombine.low %v4737_v5, %v4741_v25  ;;  %v4754_v52 = vld [vmem:[#allocation16 + $0x8c8] sm:$0xff] }
 0x4e6   :  { %7796 = vmatprep.mubr.bf16.mxu0 %v16275_v4  ;;  %8248 = vmatprep.mubr.bf16.mxu1 %v16275_v4  ;;  %v10667_v47 = vcombine.high %v4745_v24, %v4749_v15  ;;  %v10660_v40 = vcombine.low %v4738_v55, %v4742_v33  ;;  %v10669_v57 = vcombine.high %v4746_v2, %v4750_v13  ;;  %v4753_v7 = vld [vmem:[#allocation16 + $0x8c0] sm:$0xff]  ;;  %v4758_v36 = vld [vmem:[#allocation16 + $0x8e8] sm:$0xff] }
 0x4e7   :  { %8245 = vmatpush1.bf16.msra.mxu1 %v10636_v11  ;;  %7794 = vmatprep.subr.bf16.mxu0 %v10643_v42  ;;  %v4757_v62 = vld [vmem:[#allocation16 + $0x8e0] sm:$0xff]  ;;  %v10666_v46 = vcombine.low %v4745_v24, %v4749_v15  ;;  %v10668_v53 = vcombine.low %v4746_v2, %v4750_v13  ;;  %v10677_v1 = vcombine.high %v4754_v52, %v4758_v36  ;;  %v14292_v45 = vld [vmem:[#allocation16 + $0x928] sm:$0xff] }
 0x4e8   :  { %8246 = vmatprep.subr.bf16.mxu1 %v10645_v44  ;;  %v10675_v21 = vcombine.high %v4753_v7, %v4757_v62  ;;  %v4761_v11 = vld [vmem:[#allocation16 + $0x900] sm:$0xff]  ;;  %v10674_v39 = vcombine.low %v4753_v7, %v4757_v62  ;;  %v14290_v44 = vld [vmem:[#allocation16 + $0x908] sm:$0xff]  ;;  %v10676_v5 = vcombine.low %v4754_v52, %v4758_v36 }
 0x4e9   :  { %7795 = vmatpush1.bf16.msra.mxu0 %v10642_v35  ;;  %v4765_v42 = vld [vmem:[#allocation16 + $0x920] sm:$0xff]  ;;  %v14308_v55 = vld [vmem:[#allocation16 + $0x988] sm:$0xff]  ;;  %v10685_v33 = vcombine.high %v14290_v44, %v14292_v45  ;;  %v10684_v13 = vcombine.low %v14290_v44, %v14292_v45 }
 0x4ea   :  { %7877 = vmatprep.subr.bf16.mxu0 %v10651_v3  ;;  %v14294_v17 = vld [vmem:[#allocation16 + $0x940] sm:$0xff]  ;;  %v10683_v35 = vcombine.high %v4761_v11, %v4765_v42  ;;  %v14300_v3 = vld [vmem:[#allocation16 + $0x948] sm:$0xff]  ;;  %v10682_v15 = vcombine.low %v4761_v11, %v4765_v42 }
 0x4eb   :  { %8247 = vmatpush1.bf16.msra.mxu1 %v10644_v63  ;;  %v14298_v63 = vld [vmem:[#allocation16 + $0x960] sm:$0xff]  ;;  %v14334_v62 = vld [vmem:[#allocation16 + $0xa08] sm:$0xff] }
 0x4ec   :  { %8329 = vmatprep.subr.bf16.mxu1 %v10653_v0  ;;  %7797 = vmatmul.mubr.bf16.vlgmr.msra.gmra.mrb[112].mxu0 %v16276_v59  ;;  %v14302_v0 = vld [vmem:[#allocation16 + $0x968] sm:$0xff]  ;;  %v14304_v25 = vld [vmem:[#allocation16 + $0x980] sm:$0xff] }
 0x4ed   :  { %7878 = vmatpush1.bf16.msra.mxu0 %v10650_v30  ;;  %7806 = vmatprep.mubr.bf16.mxu0 %v13984_v38  ;;  %v14306_v30 = vld [vmem:[#allocation16 + $0x9a0] sm:$0xff]  ;;  %v10693_v52 = vcombine.high %v14300_v3, %v14302_v0  ;;  %v14374_v45 = vld [vmem:[#allocation16 + $0xaa8] sm:$0xff] }
 0x4ee   :  { %8249 = vmatmul.mubr.bf16.vlgmr.msra.gmra.mrb[128].mxu1 %v16276_v59  ;;  %7879 = vmatprep.subr.bf16.mxu0 %v10659_v22  ;;  %v14314_v22 = vld [vmem:[#allocation16 + $0x9c0] sm:$0xff]  ;;  %v14424_v4 = vld [vmem:[#allocation16 + $0xb48] sm:$0xff] }
 0x4ef   :  { %8258 = vmatprep.mubr.bf16.mxu1 %v13984_v38  ;;  %8330 = vmatpush1.bf16.msra.mxu1 %v10652_v14  ;;  %v14312_v14 = vld [vmem:[#allocation16 + $0x9a8] sm:$0xff]  ;;  %v14316_v24 = vld [vmem:[#allocation16 + $0x9e0] sm:$0xff]  ;;  %16279 = vst [vmem:[#allocation45_spill] sm:$0xff] %v14424_v4 }
 0x4f0   :  { %8331 = vmatprep.subr.bf16.mxu1 %v10661_v32  ;;  %v14318_v32 = vld [vmem:[#allocation16 + $0x9c8] sm:$0xff]  ;;  %v14322_v2 = vld [vmem:[#allocation16 + $0xa00] sm:$0xff]  ;;  %v16295_v10 = vcombine.low %v14308_v55, %v14312_v14 }
 0x4f1   :  { %7880 = vmatpush1.bf16.msra.mxu0 %v10658_v19  ;;  %v14320_v19 = vld [vmem:[#allocation16 + $0x9e8] sm:$0xff]  ;;  %v14332_v7 = vld [vmem:[#allocation16 + $0xa20] sm:$0xff] }
 0x4f2   :  { %7881 = vmatprep.subr.bf16.mxu0 %v10667_v47  ;;  %v10690_v47 = vcombine.low %v14294_v17, %v14298_v63  ;;  %v14346_v11 = vld [vmem:[#allocation16 + $0xa40] sm:$0xff]  ;;  %v14475_v59 = vld [vmem:[#allocation16 + $0xc08] sm:$0xff]  ;;  %v16312_v50 = vcombine.low %v14322_v2, %v14332_v7 }
 0x4f3   :  { %8332 = vmatpush1.bf16.msra.mxu1 %v10660_v40  ;;  %v10691_v40 = vcombine.high %v14294_v17, %v14298_v63  ;;  %v14348_v42 = vld [vmem:[#allocation16 + $0xa60] sm:$0xff]  ;;  %v14359_v17 = vld [vmem:[#allocation16 + $0xa68] sm:$0xff] }
 0x4f4   :  { %7807 = vmatmul.mubr.bf16.gmra.mrb[116].mxu0 %v13977_v9  ;;  %8333 = vmatprep.subr.bf16.mxu1 %v10669_v57  ;;  %v14363_v63 = vld [vmem:[#allocation16 + $0xaa0] sm:$0xff]  ;;  %v14390_v57 = vld [vmem:[#allocation16 + $0xae8] sm:$0xff] }
 0x4f5   :  { %7882 = vmatpush1.bf16.msra.mxu0 %v10666_v46  ;;  %7816 = vmatprep.mubr.bf16.mxu0 %v14034_v61  ;;  %v14336_v46 = vld [vmem:[#allocation16 + $0xa28] sm:$0xff]  ;;  %v14376_v36 = vld [vmem:[#allocation16 + $0xac0] sm:$0xff] }
 0x4f6   :  { %8259 = vmatmul.mubr.bf16.gmra.mrb[132].mxu1 %v13977_v9  ;;  %7883 = vmatprep.subr.bf16.mxu0 %v10675_v21  ;;  %v14372_v21 = vld [vmem:[#allocation16 + $0xa88] sm:$0xff]  ;;  %v14386_v44 = vld [vmem:[#allocation16 + $0xae0] sm:$0xff] }
 0x4f7   :  { %8268 = vmatprep.mubr.bf16.mxu1 %v14034_v61  ;;  %8334 = vmatpush1.bf16.msra.mxu1 %v10668_v53  ;;  %v10699_v53 = vcombine.high %v14304_v25, %v14306_v30  ;;  %v14402_v61 = vld [vmem:[#allocation16 + $0xb08] sm:$0xff]  ;;  %v14414_v9 = vld [vmem:[#allocation16 + $0xb40] sm:$0xff] }
 0x4f8   :  { %8335 = vmatprep.subr.bf16.mxu1 %v10677_v1  ;;  %v14350_v1 = vld [vmem:[#allocation16 + $0xa48] sm:$0xff]  ;;  %v14416_v38 = vld [vmem:[#allocation16 + $0xb60] sm:$0xff] }
 0x4f9   :  { %7884 = vmatpush1.bf16.msra.mxu0 %v10674_v39  ;;  %v14388_v39 = vld [vmem:[#allocation16 + $0xac8] sm:$0xff]  ;;  %16277 = vst [vmem:[#allocation44_spill] sm:$0xff] %v14416_v38  ;;  %v14428_v54 = vld [vmem:[#allocation16 + $0xb80] sm:$0xff] }
 0x4fa   :  { %7885 = vmatprep.subr.bf16.mxu0 %v10683_v35  ;;  %v14361_v35 = vld [vmem:[#allocation16 + $0xa80] sm:$0xff]  ;;  %v14529_v4 = vld [vmem:[#allocation16 + $0xc88] sm:$0xff] }
 0x4fb   :  { %8336 = vmatpush1.bf16.msra.mxu1 %v10676_v5  ;;  %v14412_v5 = vld [vmem:[#allocation16 + $0xb28] sm:$0xff]  ;;  %v14437_v28 = vld [vmem:[#allocation16 + $0xba0] sm:$0xff] }
 0x4fc   :  { %7817 = vmatmul.mubr.bf16.gmra.mrb[120].mxu0 %v14020_v12  ;;  %8337 = vmatprep.subr.bf16.mxu1 %v10685_v33  ;;  %v14400_v33 = vld [vmem:[#allocation16 + $0xb20] sm:$0xff]  ;;  %v14531_v38 = vld [vmem:[#allocation16 + $0xca8] sm:$0xff] }
 0x4fd   :  { %7886 = vmatpush1.bf16.msra.mxu0 %v10682_v15  ;;  %7826 = vmatprep.mubr.bf16.mxu0 %v14083_v51  ;;  %v14426_v15 = vld [vmem:[#allocation16 + $0xb68] sm:$0xff]  ;;  %v14565_v8 = vld [vmem:[#allocation16 + $0xd20] sm:$0xff] }
 0x4fe   :  { %8269 = vmatmul.mubr.bf16.gmra.mrb[136].mxu1 %v14020_v12  ;;  %7887 = vmatprep.subr.bf16.mxu0 %v10691_v40  ;;  %v14398_v12 = vld [vmem:[#allocation16 + $0xb00] sm:$0xff]  ;;  %v16278_v40 = vld [vmem:[#allocation27_spill] sm:$0xff]  ;;  %16280 = vst [vmem:[#allocation48_spill] sm:$0xff] %v14426_v15  ;;  %16302 = vst [vmem:[#allocation77_spill] sm:$0xff] %v14565_v8 }
 0x4ff   :  { %8278 = vmatprep.mubr.bf16.mxu1 %v14083_v51  ;;  %8338 = vmatpush1.bf16.msra.mxu1 %v10684_v13  ;;  %v14439_v51 = vld [vmem:[#allocation16 + $0xb88] sm:$0xff]  ;;  %v16290_v13 = vsub.s32 6, %v16278_v40  ;;  %v14546_v15 = vld [vmem:[#allocation16 + $0xce0] sm:$0xff] }
 0x500   :  { %8339 = vmatprep.subr.bf16.mxu1 %v10693_v52  ;;  %v14473_v52 = vld [vmem:[#allocation16 + $0xc20] sm:$0xff]  ;;  %16300 = vst [vmem:[#allocation76_spill] sm:$0xff] %v14546_v15  ;;  %v14567_v23 = vld [vmem:[#allocation16 + $0xd08] sm:$0xff] }
 0x501   :  { %7888 = vmatpush1.bf16.msra.mxu0 %v10690_v47  ;;  %v14471_v47 = vld [vmem:[#allocation16 + $0xc00] sm:$0xff]  ;;  %16286 = vst [vmem:[#allocation52_spill] sm:$0xff] %v14473_v52  ;;  %16303 = vst [vmem:[#allocation78_spill] sm:$0xff] %v14567_v23  ;;  %v14663_v23 = vld [vmem:[#allocation16 + $0xe28] sm:$0xff] }
 0x502   :  { %7889 = vmatprep.subr.bf16.mxu0 %v10699_v53  ;;  %v16282_v53 = vcombine.low %v14300_v3, %v14302_v0  ;;  %v16285_v3 = vcombine.high %v14308_v55, %v14312_v14  ;;  %v12296_v0 = vld [vmem:[#allocation14] sm:$0xff]  ;;  %v14533_v55 = vld [vmem:[#allocation16 + $0xcc0] sm:$0xff] }
 0x503   :  { %v14489_v43 = vrot.slane %v12296_v0, %v16290_v13  ;;  %16298 = vst [vmem:[#allocation75_spill] sm:$0xff] %v14533_v55  ;;  %v14582_v14 = vld [vmem:[#allocation16 + $0xd40] sm:$0xff]  ;;  %v14633_v55 = vld [vmem:[#allocation16 + $0xdc8] sm:$0xff] }
 0x504   :  { %8340 = vmatpush1.bf16.msra.mxu1 %v16282_v53  ;;  %7827 = vmatmul.mubr.bf16.gmra.mrb[124].mxu0 %v14073_v20  ;;  %v16289_v53 = vsub.s32 4, %v16278_v40  ;;  %v14584_v52 = vld [vmem:[#allocation16 + $0xd60] sm:$0xff] }
 0x505   :  { %8341 = vmatprep.subr.bf16.mxu1 %v16285_v3  ;;  %v16288_v3 = vcombine.low %v14304_v25, %v14306_v30  ;;  %v14497_v25 = vld [vmem:[#allocation16 + $0xc48] sm:$0xff]  ;;  %7836 = vmatprep.mubr.bf16.mxu0 %v14135_v34  ;;  %v16296_v30 = vcombine.high %v14314_v22, %v14316_v24  ;;  %16306 = vst [vmem:[#allocation80_spill] sm:$0xff] %v14584_v52  ;;  %v14631_v15 = vld [vmem:[#allocation16 + $0xde0] sm:$0xff] }
 0x506   :  { %8279 = vmatmul.mubr.bf16.gmra.mrb[140].mxu1 %v14073_v20  ;;  %v14485_v48 = vrot.slane %v12296_v0, %v16289_v53  ;;  %v16293_v53 = vsub.s32 5, %v16278_v40  ;;  %v14511_v20 = vld [vmem:[#allocation16 + $0xc80] sm:$0xff]  ;;  %16313 = vst [vmem:[#allocation84_spill] sm:$0xff] %v14631_v15  ;;  %v14682_v52 = vld [vmem:[#allocation16 + $0xe68] sm:$0xff] }
 0x507   :  { %7890 = vmatpush1.bf16.msra.mxu0 %v16288_v3  ;;  %8288 = vmatprep.mubr.bf16.mxu1 %v14135_v34  ;;  %v14548_v3 = vld [vmem:[#allocation16 + $0xcc8] sm:$0xff]  ;;  %v14665_v8 = vld [vmem:[#allocation16 + $0xe40] sm:$0xff] }
 0x508   :  { %v14505_v13 = vrot.slane %v12296_v0, %v16293_v53  ;;  %8342 = vmatpush1.bf16.msra.mxu1 %v16295_v10  ;;  %7891 = vmatprep.subr.bf16.mxu0 %v16296_v30  ;;  %v16297_v53 = vsub.s32 7, %v16278_v40  ;;  %v16299_v10 = vcombine.high %v14318_v32, %v14320_v19  ;;  %v14550_v40 = vld [vmem:[#allocation16 + $0xce8] sm:$0xff]  ;;  %v14716_v15 = vld [vmem:[#allocation16 + $0xee0] sm:$0xff] }
 0x509   :  { %v14580_v30 = vld [vmem:[#allocation16 + $0xd28] sm:$0xff] }
 0x50a   :  { %v14523_v34 = vrot.slane %v12296_v0, %v16297_v53  ;;  %8343 = vmatprep.subr.bf16.mxu1 %v16299_v10  ;;  %v16301_v10 = vcombine.low %v14314_v22, %v14316_v24  ;;  %v16304_v22 = vcombine.high %v14322_v2, %v14332_v7  ;;  %16305 = vst [vmem:[#allocation79_spill] sm:$0xff] %v14580_v30  ;;  %v14615_v0 = vld [vmem:[#allocation16 + $0xd88] sm:$0xff]  ;;  %v14678_v2 = vld [vmem:[#allocation16 + $0xe60] sm:$0xff] }
 0x50b   :  { %v14617_v24 = vld [vmem:[#allocation16 + $0xda8] sm:$0xff]  ;;  %16319 = vst [vmem:[#allocation87_spill] sm:$0xff] %v14678_v2  ;;  %v16331_v2 = vcombine.low %v14361_v35, %v14363_v63 }
 0x50c   :  { %7892 = vmatpush1.bf16.msra.mxu0 %v16301_v10  ;;  %v14613_v10 = vld [vmem:[#allocation16 + $0xda0] sm:$0xff]  ;;  %v14643_v53 = vld [vmem:[#allocation16 + $0xde8] sm:$0xff] }
 0x50d   :  { %7893 = vmatprep.subr.bf16.mxu0 %v16304_v22  ;;  %v16307_v22 = vcombine.low %v14318_v32, %v14320_v19  ;;  %7837 = vmatmul.mubr.bf16.gmra.mrb[128].mxu0 %v14116_v29  ;;  %v16310_v32 = vcombine.high %v14334_v62, %v14336_v46  ;;  %16311 = vst [vmem:[#allocation83_spill] sm:$0xff] %v14613_v10  ;;  %v14629_v19 = vld [vmem:[#allocation16 + $0xdc0] sm:$0xff]  ;;  %v14661_v30 = vld [vmem:[#allocation16 + $0xe08] sm:$0xff] }
 0x50e   :  { %8289 = vmatmul.mubr.bf16.gmra.mrb[144].mxu1 %v14116_v29  ;;  %7846 = vmatprep.mubr.bf16.mxu0 %v14174_v16  ;;  %v16316_v29 = vcombine.low %v14334_v62, %v14336_v46  ;;  %v14680_v7 = vld [vmem:[#allocation16 + $0xe48] sm:$0xff]  ;;  %v14695_v10 = vld [vmem:[#allocation16 + $0xe80] sm:$0xff] }
 0x50f   :  { %8344 = vmatpush1.bf16.msra.mxu1 %v16307_v22  ;;  %8298 = vmatprep.mubr.bf16.mxu1 %v14174_v16  ;;  %v14647_v22 = vld [vmem:[#allocation16 + $0xe20] sm:$0xff]  ;;  %v16317_v16 = vcombine.high %v14346_v11, %v14348_v42  ;;  %16321 = vst [vmem:[#allocation88_spill] sm:$0xff] %v14695_v10  ;;  %v14712_v46 = vld [vmem:[#allocation16 + $0xea8] sm:$0xff] }
 0x510   :  { %8345 = vmatprep.subr.bf16.mxu1 %v16310_v32  ;;  %7894 = vmatpush1.bf16.msra.mxu0 %v16312_v50  ;;  %v14645_v32 = vld [vmem:[#allocation16 + $0xe00] sm:$0xff]  ;;  %16315 = vst [vmem:[#allocation86_spill] sm:$0xff] %v14647_v22  ;;  %v14729_v22 = vld [vmem:[#allocation16 + $0xec8] sm:$0xff] }
 0x511   :  { %16314 = vst [vmem:[#allocation85_spill] sm:$0xff] %v14645_v32  ;;  %7895 = vmatprep.subr.bf16.mxu0 %v16317_v16  ;;  %v14714_v16 = vld [vmem:[#allocation16 + $0xec0] sm:$0xff]  ;;  %16325 = vst [vmem:[#allocation90_spill] sm:$0xff] %v14729_v22  ;;  %v14731_v32 = vld [vmem:[#allocation16 + $0xee8] sm:$0xff] }
 0x512   :  { %16326 = vst [vmem:[#allocation91_spill] sm:$0xff] %v14731_v32  ;;  %v14743_v50 = vld [vmem:[#allocation16 + $0xf00] sm:$0xff]  ;;  %v4010_v32 = vpop.f32.mrb[96].mxu1 }
 0x513   :  { %8346 = vmatpush1.bf16.msra.mxu1 %v16316_v29  ;;  %v16318_v29 = vcombine.high %v14350_v1, %v14359_v17  ;;  %16328 = vst [vmem:[#allocation92_spill] sm:$0xff] %v14743_v50  ;;  %v14745_v62 = vld [vmem:[#allocation16 + $0xf20] sm:$0xff] }
 0x514   :  { %16329 = vst [vmem:[#allocation93_spill] sm:$0xff] %v14745_v62  ;;  %v14763_v10 = vld [vmem:[#allocation16 + $0xf60] sm:$0xff]  ;;  %v4012_v62 = vpop.f32.mrb[97].mxu1 }
 0x515   :  { %8347 = vmatprep.subr.bf16.mxu1 %v16318_v29  ;;  %v16320_v29 = vcombine.low %v14346_v11, %v14348_v42  ;;  %v16323_v11 = vcombine.high %v14361_v35, %v14363_v63  ;;  %7847 = vmatmul.mubr.bf16.gmra.mrb[132].mxu0 %v14159_v26  ;;  %v14747_v42 = vld [vmem:[#allocation16 + $0xf08] sm:$0xff]  ;;  %v3784_v35 = vpop.f32.mrb[80].mxu0  ;;  %v16336_v63 = vcombine.low %v14376_v36, %v14386_v44 }
 0x516   :  { %16330 = vst [vmem:[#allocation94_spill] sm:$0xff] %v14747_v42  ;;  %8299 = vmatmul.mubr.bf16.gmra.mrb[148].mxu1 %v14159_v26  ;;  %7856 = vmatprep.mubr.bf16.mxu0 %v14222_v37  ;;  %v3786_v26 = vpop.f32.mrb[81].mxu0 }
 0x517   :  { %7896 = vmatpush1.bf16.msra.mxu0 %v16320_v29  ;;  %8308 = vmatprep.mubr.bf16.mxu1 %v14222_v37  ;;  %v11222_v37 = vadd.f32 %v3784_v35, %v14485_v48  ;;  %v16335_v29 = vcombine.high %v14388_v39, %v14390_v57  ;;  %v11255_v35 = vadd.f32 %v4012_v62, %v14523_v34 }
 0x518   :  { %7897 = vmatprep.subr.bf16.mxu0 %v16323_v11  ;;  %v16324_v11 = vcombine.low %v14350_v1, %v14359_v17  ;;  %v16327_v1 = vcombine.high %v14372_v21, %v14374_v45  ;;  %v14759_v17 = vld [vmem:[#allocation16 + $0xf28] sm:$0xff] }
 0x519   :  { %16332 = vst [vmem:[#allocation95_spill] sm:$0xff] %v14759_v17  ;;  %vm4093_vm1 = vcmp.ge.f32.partialorder %v11222_v37, 0.0  ;;  %v4014_v17 = vpop.f32.mrb[98].mxu1  ;;  %vm4096_vm5 = vcmp.ge.f32.partialorder %v11255_v35, 0.0  ;;  %v4224_v62 = vmul.f32 0.2, %v11255_v35 }
 0x51a   :  { %8348 = vmatpush1.bf16.msra.mxu1 %v16324_v11  ;;  %v16334_v11 = vcombine.high %v14376_v36, %v14386_v44  ;;  %v16338_v44 = vcombine.low %v14388_v39, %v14390_v57  ;;  %v11256_v57 = vadd.f32 %v4014_v17, %v14489_v43 }
 0x51b   :  { %8349 = vmatprep.subr.bf16.mxu1 %v16327_v1  ;;  %7898 = vmatpush1.bf16.msra.mxu0 %v16331_v2  ;;  %v16333_v1 = vcombine.low %v14372_v21, %v14374_v45  ;;  %v11223_v21 = vadd.f32 %v3786_v26, %v14505_v13  ;;  %v3788_v45 = vpop.f32.mrb[82].mxu0  ;;  %v4221_v2 = vmul.f32 0.2, %v11222_v37 }
 0x51c   :  { %7899 = vmatprep.subr.bf16.mxu0 %v16334_v11  ;;  %v11224_v26 = vadd.f32 %v3788_v45, %v14485_v48  ;;  %v3790_v50 = vpop.f32.mrb[83].mxu0  ;;  %v16337_v11 = vcombine.high %v14398_v12, %v14400_v33  ;;  %v4016_v45 = vpop.f32.mrb[99].mxu1  ;;  %vm4103_vm7 = vcmp.ge.f32.partialorder %v11256_v57, 0.0 }
 0x51d   :  { %vm4094_vm2 = vcmp.ge.f32.partialorder %v11223_v21, 0.0  ;;  %v11225_v36 = vadd.f32 %v3790_v50, %v14505_v13  ;;  %7857 = vmatmul.mubr.bf16.gmra.mrb[136].mxu0 %v14213_v60  ;;  %v16340_v50 = vcombine.low %v14398_v12, %v14400_v33  ;;  %v16341_v12 = vcombine.low %v14402_v61, %v14412_v5  ;;  %v16342_v33 = vld [vmem:[#allocation44_spill] sm:$0xff] }
 0x51e   :  { %8350 = vmatpush1.bf16.msra.mxu1 %v16333_v1  ;;  %v4222_v1 = vmul.f32 0.2, %v11223_v21  ;;  %vm4101_vm4 = vcmp.ge.f32.partialorder %v11224_v26, 0.0  ;;  %v4229_v22 = vmul.f32 0.2, %v11224_v26  ;;  %7866 = vmatprep.mubr.bf16.mxu0 %v14271_v41 }
 0x51f   :  { %8351 = vmatprep.subr.bf16.mxu1 %v16335_v29  ;;  %7900 = vmatpush1.bf16.msra.mxu0 %v16336_v63  ;;  %v11254_v29 = vadd.f32 %v4010_v32, %v14489_v43  ;;  %v4349_v32 = vsel %vm4093_vm1, %v11222_v37, %v4221_v2  ;;  %vm4102_vm6 = vcmp.ge.f32.partialorder %v11225_v36, 0.0  ;;  %v4230_v39 = vmul.f32 0.2, %v11225_v36 }
 0x520   :  { %7901 = vmatprep.subr.bf16.mxu0 %v16337_v11  ;;  %v16339_v11 = vcombine.high %v14402_v61, %v14412_v5  ;;  %v4350_v42 = vsel %vm4094_vm2, %v11223_v21, %v4222_v1  ;;  %8309 = vmatmul.mubr.bf16.gmra.mrb[152].mxu1 %v14213_v60  ;;  %v4352_v2 = vsel %vm4096_vm5, %v11255_v35, %v4224_v62  ;;  %v16344_v35 = vld [vmem:[#allocation45_spill] sm:$0xff]  ;;  %v16345_v62 = vld [vmem:[#allocation48_spill] sm:$0xff]  ;;  %v4020_v5 = vpop.f32.mrb[100].mxu1 }
 0x521   :  { %vm4095_vm3 = vcmp.ge.f32.partialorder %v11254_v29, 0.0  ;;  %v4223_v63 = vmul.f32 0.2, %v11254_v29  ;;  %8318 = vmatprep.mubr.bf16.mxu1 %v14271_v41  ;;  %v4357_v21 = vsel %vm4101_vm4, %v11224_v26, %v4229_v22  ;;  %v11257_v1 = vadd.f32 %v4016_v45, %v14523_v34 }
 0x522   :  { %8352 = vmatpush1.bf16.msra.mxu1 %v16338_v44  ;;  %v3794_v44 = vpop.f32.mrb[84].mxu0  ;;  %v14826_v17 = vpack.c.bf16 %v4357_v21, %v4349_v32  ;;  %v16346_v22 = vcombine.high %v16344_v35, %v16345_v62  ;;  %v16348_v32 = vcombine.low %v14414_v9, %v16342_v33 }
 0x523   :  { %8353 = vmatprep.subr.bf16.mxu1 %v16339_v11  ;;  %7902 = vmatpush1.bf16.msra.mxu0 %v16340_v50  ;;  %v4351_v37 = vsel %vm4095_vm3, %v11254_v29, %v4223_v63  ;;  %v16343_v29 = vcombine.high %v14414_v9, %v16342_v33  ;;  %v4231_v63 = vmul.f32 0.2, %v11256_v57  ;;  %v4358_v11 = vsel %vm4102_vm6, %v11225_v36, %v4230_v39  ;;  %v3796_v50 = vpop.f32.mrb[85].mxu0 }
 0x524   :  { %v14831_v26 = vpack.c.bf16 %v4358_v11, %v4350_v42  ;;  %vm4104_vm8 = vcmp.ge.f32.partialorder %v11257_v1, 0.0  ;;  %v4232_v45 = vmul.f32 0.2, %v11257_v1  ;;  %v11226_v61 = vadd.f32 %v3794_v44, %v14485_v48 }
 0x525   :  { %7903 = vmatprep.subr.bf16.mxu0 %v16343_v29  ;;  %v4359_v21 = vsel %vm4103_vm7, %v11256_v57, %v4231_v63  ;;  %v11258_v36 = vadd.f32 %v4020_v5, %v14489_v43  ;;  %v11227_v39 = vadd.f32 %v3796_v50, %v14505_v13  ;;  %v4022_v29 = vpop.f32.mrb[101].mxu1  ;;  %v16349_v44 = vcombine.high %v14428_v54, %v14437_v28 }
 0x526   :  { %8354 = vmatpush1.bf16.msra.mxu1 %v16341_v12  ;;  %16347 = vst [vmem:[#allocation44_spill] sm:$0xff] %v14831_v26  ;;  %v3798_v12 = vpop.f32.mrb[86].mxu0  ;;  %v14840_v11 = vpack.c.bf16 %v4359_v21, %v4351_v37  ;;  %v4360_v41 = vsel %vm4104_vm8, %v11257_v1, %v4232_v45  ;;  %vm4109_vm9 = vcmp.ge.f32.partialorder %v11226_v61, 0.0  ;;  %v4237_v60 = vmul.f32 0.2, %v11226_v61  ;;  %v4024_v9 = vpop.f32.mrb[102].mxu1 }
 0x527   :  { %8355 = vmatprep.subr.bf16.mxu1 %v16346_v22  ;;  %7904 = vmatpush1.bf16.msra.mxu0 %v16348_v32  ;;  %v11228_v22 = vadd.f32 %v3798_v12, %v14485_v48  ;;  %v3800_v42 = vpop.f32.mrb[87].mxu0  ;;  %v16350_v57 = vcombine.low %v16344_v35, %v16345_v62  ;;  %v14848_v33 = vpack.c.bf16 %v4360_v41, %v4352_v2  ;;  %vm4111_vm10 = vcmp.ge.f32.partialorder %v11258_v36, 0.0  ;;  %v4026_v50 = vpop.f32.mrb[103].mxu1  ;;  %v16351_v37 = vld [vmem:[#allocation41_spill] sm:$0xff] }
 0x528   :  { %7905 = vmatprep.subr.bf16.mxu0 %v16349_v44  ;;  %v4239_v63 = vmul.f32 0.2, %v11258_v36  ;;  %vm4110_vm11 = vcmp.ge.f32.partialorder %v11227_v39, 0.0  ;;  %7867 = vmatmul.mubr.bf16.gmra.mrb[140].mxu0 %v16351_v37  ;;  %v16352_v1 = vld [vmem:[#allocation49_spill] sm:$0xff]  ;;  %v4365_v5 = vsel %vm4109_vm9, %v11226_v61, %v4237_v60  ;;  %v4238_v12 = vmul.f32 0.2, %v11227_v39 }
 0x529   :  { %v16353_v45 = vcombine.high %v14439_v51, %v16352_v1  ;;  %v11259_v32 = vadd.f32 %v4022_v29, %v14523_v34  ;;  %vm4117_vm12 = vcmp.ge.f32.partialorder %v11228_v22, 0.0  ;;  %v16354_v35 = vcombine.low %v14428_v54, %v14437_v28  ;;  %8319 = vmatmul.mubr.bf16.gmra.mrb[156].mxu1 %v16351_v37  ;;  %v16355_v44 = vld [vmem:[#allocation46_spill] sm:$0xff]  ;;  %7909 = vmatprep.mubr.bf16.mxu0 %v14831_v26  ;;  %v3804_v54 = vpop.f32.mrb[88].mxu0 }
 0x52a   :  { %8356 = vmatpush1.bf16.msra.mxu1 %v16350_v57  ;;  %v4367_v41 = vsel %vm4111_vm10, %v11258_v36, %v4239_v63  ;;  %v4245_v2 = vmul.f32 0.2, %v11228_v22  ;;  %v11260_v62 = vadd.f32 %v4024_v9, %v14489_v43  ;;  %v11229_v21 = vadd.f32 %v3800_v42, %v14505_v13  ;;  %v16356_v57 = vld [vmem:[#allocation47_spill] sm:$0xff]  ;;  %8361 = vmatprep.mubr.bf16.mxu1 %v14831_v26  ;;  %v3806_v42 = vpop.f32.mrb[89].mxu0 }
 0x52b   :  { %8357 = vmatprep.subr.bf16.mxu1 %v16353_v45  ;;  %7906 = vmatpush1.bf16.msra.mxu0 %v16354_v35  ;;  %v16357_v45 = vcombine.high %v16355_v44, %v16356_v57  ;;  %v4366_v60 = vsel %vm4110_vm11, %v11227_v39, %v4238_v12  ;;  %vm4112_vm13 = vcmp.ge.f32.partialorder %v11259_v32, 0.0  ;;  %v4240_v61 = vmul.f32 0.2, %v11259_v32  ;;  %v4030_v35 = vpop.f32.mrb[104].mxu1 }
 0x52c   :  { %v11261_v29 = vadd.f32 %v4026_v50, %v14523_v34  ;;  %v16358_v28 = vcombine.low %v14439_v51, %v16352_v1  ;;  %v4373_v36 = vsel %vm4117_vm12, %v11228_v22, %v4245_v2  ;;  %vm4119_vm14 = vcmp.ge.f32.partialorder %v11260_v62, 0.0  ;;  %v4032_v26 = vpop.f32.mrb[105].mxu1 }
 0x52d   :  { %7907 = vmatprep.subr.bf16.mxu0 %v16357_v45  ;;  %v4247_v9 = vmul.f32 0.2, %v11260_v62  ;;  %vm4118_vm15 = vcmp.ge.f32.partialorder %v11229_v21, 0.0  ;;  %v16359_v39 = vcombine.high %v14457_v18, %v14459_v56  ;;  %v4368_v63 = vsel %vm4112_vm13, %v11259_v32, %v4240_v61  ;;  %v3808_v45 = vpop.f32.mrb[90].mxu0  ;;  %v16361_v32 = vld [vmem:[#allocation52_spill] sm:$0xff] }
 0x52e   :  { %8358 = vmatpush1.bf16.msra.mxu1 %v16358_v28  ;;  %v14873_v50 = vpack.c.bf16 %v4373_v36, %v4365_v5  ;;  %v4246_v12 = vmul.f32 0.2, %v11229_v21  ;;  %vm4120_vm0 = vcmp.ge.f32.partialorder %v11261_v29, 0.0  ;;  %v16360_v51 = vcombine.low %v16355_v44, %v16356_v57  ;;  %v3810_v37 = vpop.f32.mrb[91].mxu0 }
 0x52f   :  { %8359 = vmatprep.subr.bf16.mxu1 %v16359_v39  ;;  %v4375_v22 = vsel %vm4119_vm14, %v11260_v62, %v4247_v9  ;;  %v4248_v1 = vmul.f32 0.2, %v11261_v29  ;;  %v11230_v2 = vadd.f32 %v3804_v54, %v14485_v48  ;;  %v11262_v28 = vadd.f32 %v4030_v35, %v14489_v43  ;;  %v4034_v62 = vpop.f32.mrb[106].mxu1 }
 0x530   :  { %7908 = vmatpush1.bf16.msra.mxu0 %v16360_v51  ;;  %v14880_v39 = vpack.c.bf16 %v4375_v22, %v4367_v41  ;;  %v4374_v5 = vsel %vm4118_vm15, %v11229_v21, %v4246_v12  ;;  %v16362_v61 = vcombine.high %v14471_v47, %v16361_v32  ;;  %v11231_v36 = vadd.f32 %v3806_v42, %v14505_v13  ;;  %v4036_v21 = vpop.f32.mrb[107].mxu1  ;;  %v16364_v42 = vld [vmem:[#allocation71_spill] sm:$0xff]  ;;  %v16368_v51 = vld [vmem:[#allocation73_spill] sm:$0xff] }
 0x531   :  { %v11263_v44 = vadd.f32 %v4032_v26, %v14523_v34  ;;  %v16363_v57 = vcombine.low %v14457_v18, %v14459_v56  ;;  %v14891_v54 = vpack.c.bf16 %v4374_v5, %v4366_v60  ;;  %v4376_v41 = vsel %vm4120_vm0, %v11261_v29, %v4248_v1 }
 0x532   :  { %7990 = vmatprep.subr.bf16.mxu0 %v16362_v61  ;;  %vm4125_vm1 = vcmp.ge.f32.partialorder %v11230_v2, 0.0  ;;  %v4253_v9 = vmul.f32 0.2, %v11230_v2  ;;  %v14894_v12 = vpack.c.bf16 %v4376_v41, %v4368_v63  ;;  %v16365_v35 = vcombine.high %v14475_v59, %v16364_v42  ;;  %v16367_v63 = vld [vmem:[#allocation72_spill] sm:$0xff] }
 0x533   :  { %8360 = vmatpush1.bf16.msra.mxu1 %v16363_v57  ;;  %7910 = vmatmul.mubr.bf16.vlgmr.msra.gmra.mrb[112].mxu0 %v14826_v17  ;;  %vm4127_vm2 = vcmp.ge.f32.partialorder %v11262_v28, 0.0  ;;  %v4255_v26 = vmul.f32 0.2, %v11262_v28  ;;  %vm4126_vm3 = vcmp.ge.f32.partialorder %v11231_v36, 0.0  ;;  %v16366_v56 = vcombine.low %v14471_v47, %v16361_v32  ;;  %v3814_v57 = vpop.f32.mrb[92].mxu0 }
 0x534   :  { %8442 = vmatprep.subr.bf16.mxu1 %v16365_v35  ;;  %v4381_v18 = vsel %vm4125_vm1, %v11230_v2, %v4253_v9  ;;  %v4254_v60 = vmul.f32 0.2, %v11231_v36  ;;  %vm4128_vm4 = vcmp.ge.f32.partialorder %v11263_v44, 0.0  ;;  %v4256_v29 = vmul.f32 0.2, %v11263_v44  ;;  %7919 = vmatprep.mubr.bf16.mxu0 %v14891_v54  ;;  %v3816_v35 = vpop.f32.mrb[93].mxu0 }
 0x535   :  { %7991 = vmatpush1.bf16.msra.mxu0 %v16366_v56  ;;  %v16369_v22 = vcombine.high %v16367_v63, %v16368_v51  ;;  %v4383_v1 = vsel %vm4127_vm2, %v11262_v28, %v4255_v26  ;;  %v11232_v5 = vadd.f32 %v3808_v45, %v14485_v48  ;;  %v11264_v61 = vadd.f32 %v4034_v62, %v14489_v43 }
 0x536   :  { %8362 = vmatmul.mubr.bf16.vlgmr.msra.gmra.mrb[128].mxu1 %v14826_v17  ;;  %v16370_v47 = vcombine.low %v14475_v59, %v16364_v42  ;;  %v4382_v2 = vsel %vm4126_vm3, %v11231_v36, %v4254_v60  ;;  %v4384_v32 = vsel %vm4128_vm4, %v11263_v44, %v4256_v29  ;;  %v11233_v41 = vadd.f32 %v3810_v37, %v14505_v13  ;;  %v4040_v60 = vpop.f32.mrb[108].mxu1 }
 0x537   :  { %7992 = vmatprep.subr.bf16.mxu0 %v16369_v22  ;;  %v11265_v9 = vadd.f32 %v4036_v21, %v14523_v34  ;;  %v16371_v56 = vcombine.high %v14497_v25, %v14509_v31  ;;  %vm4133_vm5 = vcmp.ge.f32.partialorder %v11232_v5, 0.0  ;;  %v4261_v45 = vmul.f32 0.2, %v11232_v5  ;;  %8371 = vmatprep.mubr.bf16.mxu1 %v14891_v54  ;;  %v16373_v21 = vld [vmem:[#allocation74_spill] sm:$0xff]  ;;  %v3818_v22 = vpop.f32.mrb[94].mxu0 }
 0x538   :  { %8443 = vmatpush1.bf16.msra.mxu1 %v16370_v47  ;;  %vm4135_vm6 = vcmp.ge.f32.partialorder %v11264_v61, 0.0  ;;  %v4263_v28 = vmul.f32 0.2, %v11264_v61  ;;  %v16372_v59 = vcombine.low %v16367_v63, %v16368_v51  ;;  %vm4134_vm7 = vcmp.ge.f32.partialorder %v11233_v41, 0.0 }
 0x539   :  { %8444 = vmatprep.subr.bf16.mxu1 %v16371_v56  ;;  %v4262_v36 = vmul.f32 0.2, %v11233_v41  ;;  %vm4136_vm8 = vcmp.ge.f32.partialorder %v11265_v9, 0.0  ;;  %v4264_v37 = vmul.f32 0.2, %v11265_v9  ;;  %v4389_v44 = vsel %vm4133_vm5, %v11232_v5, %v4261_v45  ;;  %v4042_v56 = vpop.f32.mrb[109].mxu1 }
 0x53a   :  { %7993 = vmatpush1.bf16.msra.mxu0 %v16372_v59  ;;  %v4391_v62 = vsel %vm4135_vm6, %v11264_v61, %v4263_v28  ;;  %v16374_v42 = vcombine.high %v14511_v20, %v16373_v21  ;;  %v11234_v26 = vadd.f32 %v3814_v57, %v14485_v48  ;;  %v11235_v29 = vadd.f32 %v3816_v35, %v14505_v13  ;;  %v3820_v45 = vpop.f32.mrb[95].mxu0  ;;  %v16380_v35 = vld [vmem:[#allocation76_spill] sm:$0xff] }
 0x53b   :  { %v16375_v63 = vcombine.low %v14497_v25, %v14509_v31  ;;  %v14930_v51 = vpack.c.bf16 %v4389_v44, %v4381_v18  ;;  %v14932_v47 = vpack.c.bf16 %v4391_v62, %v4383_v1  ;;  %v4390_v5 = vsel %vm4134_vm7, %v11233_v41, %v4262_v36  ;;  %7920 = vmatmul.mubr.bf16.gmra.mrb[116].mxu0 %v14873_v50  ;;  %v4044_v25 = vpop.f32.mrb[110].mxu1 }
 0x53c   :  { %7994 = vmatprep.subr.bf16.mxu0 %v16374_v42  ;;  %v4392_v61 = vsel %vm4136_vm8, %v11265_v9, %v4264_v37  ;;  %v14934_v28 = vpack.c.bf16 %v4390_v5, %v4382_v2  ;;  %v16377_v57 = vcombine.high %v14529_v4, %v14531_v38  ;;  %vm4141_vm9 = vcmp.ge.f32.partialorder %v11234_v26, 0.0  ;;  %v4046_v41 = vpop.f32.mrb[111].mxu1  ;;  %v16379_v9 = vld [vmem:[#allocation75_spill] sm:$0xff] }
 0x53d   :  { %8445 = vmatpush1.bf16.msra.mxu1 %v16375_v63  ;;  %16376 = vst [vmem:[#allocation45_spill] sm:$0xff] %v14930_v51  ;;  %v14936_v59 = vpack.c.bf16 %v4392_v61, %v4384_v32  ;;  %v4269_v31 = vmul.f32 0.2, %v11234_v26  ;;  %v16378_v18 = vcombine.low %v14511_v20, %v16373_v21  ;;  %v11266_v1 = vadd.f32 %v4040_v60, %v14489_v43  ;;  %v3824_v20 = vpop.f32.mrb[96].mxu0 }
 0x53e   :  { %8446 = vmatprep.subr.bf16.mxu1 %v16377_v57  ;;  %vm4142_vm10 = vcmp.ge.f32.partialorder %v11235_v29, 0.0  ;;  %v4270_v2 = vmul.f32 0.2, %v11235_v29  ;;  %v11267_v32 = vadd.f32 %v4042_v56, %v14523_v34  ;;  %8372 = vmatmul.mubr.bf16.gmra.mrb[132].mxu1 %v14873_v50  ;;  %v16381_v36 = vcombine.high %v16379_v9, %v16380_v35  ;;  %v3826_v63 = vpop.f32.mrb[97].mxu0  ;;  %v4050_v57 = vpop.f32.mrb[112].mxu1 }
 0x53f   :  { %7995 = vmatpush1.bf16.msra.mxu0 %v16378_v18  ;;  %v4397_v37 = vsel %vm4141_vm9, %v11234_v26, %v4269_v31  ;;  %v11236_v44 = vadd.f32 %v3818_v22, %v14485_v48  ;;  %v11268_v62 = vadd.f32 %v4044_v25, %v14489_v43  ;;  %v16382_v21 = vcombine.low %v14529_v4, %v14531_v38  ;;  %v3828_v31 = vpop.f32.mrb[98].mxu0 }
 0x540   :  { %7996 = vmatprep.subr.bf16.mxu0 %v16381_v36  ;;  %vm4143_vm11 = vcmp.ge.f32.partialorder %v11266_v1, 0.0  ;;  %v4271_v42 = vmul.f32 0.2, %v11266_v1  ;;  %v4398_v60 = vsel %vm4142_vm10, %v11235_v29, %v4270_v2  ;;  %vm4144_vm12 = vcmp.ge.f32.partialorder %v11267_v32, 0.0  ;;  %7929 = vmatprep.mubr.bf16.mxu0 %v14934_v28  ;;  %v16385_v2 = vld [vmem:[#allocation77_spill] sm:$0xff] }
 0x541   :  { %8447 = vmatpush1.bf16.msra.mxu1 %v16382_v21  ;;  %v16383_v5 = vcombine.high %v14548_v3, %v14550_v40  ;;  %v4272_v26 = vmul.f32 0.2, %v11267_v32  ;;  %vm4149_vm13 = vcmp.ge.f32.partialorder %v11236_v44, 0.0  ;;  %v4277_v22 = vmul.f32 0.2, %v11236_v44  ;;  %8381 = vmatprep.mubr.bf16.mxu1 %v14934_v28 }
 0x542   :  { %vm4151_vm14 = vcmp.ge.f32.partialorder %v11268_v62, 0.0  ;;  %v4399_v61 = vsel %vm4143_vm11, %v11266_v1, %v4271_v42  ;;  %v16384_v38 = vcombine.low %v16379_v9, %v16380_v35  ;;  %v4279_v4 = vmul.f32 0.2, %v11268_v62  ;;  %v4052_v9 = vpop.f32.mrb[113].mxu1  ;;  %v3830_v35 = vpop.f32.mrb[99].mxu0 }
 0x543   :  { %8448 = vmatprep.subr.bf16.mxu1 %v16383_v5  ;;  %v11237_v29 = vadd.f32 %v3820_v45, %v14505_v13  ;;  %v11269_v56 = vadd.f32 %v4046_v41, %v14523_v34  ;;  %v4400_v25 = vsel %vm4144_vm12, %v11267_v32, %v4272_v26  ;;  %v4405_v18 = vsel %vm4149_vm13, %v11236_v44, %v4277_v22  ;;  %v4054_v44 = vpop.f32.mrb[114].mxu1  ;;  %v16389_v22 = vld [vmem:[#allocation79_spill] sm:$0xff] }
 0x544   :  { %7997 = vmatpush1.bf16.msra.mxu0 %v16384_v38  ;;  %v16386_v36 = vcombine.high %v14563_v27, %v16385_v2  ;;  %v11238_v1 = vadd.f32 %v3824_v20, %v14485_v48  ;;  %v11270_v21 = vadd.f32 %v4050_v57, %v14489_v43  ;;  %v16387_v45 = vcombine.low %v14548_v3, %v14550_v40  ;;  %v16388_v20 = vld [vmem:[#allocation78_spill] sm:$0xff]  ;;  %v4056_v40 = vpop.f32.mrb[115].mxu1 }
 0x545   :  { %v14975_v41 = vpack.c.bf16 %v4405_v18, %v4397_v37  ;;  %v4407_v42 = vsel %vm4151_vm14, %v11268_v62, %v4279_v4  ;;  %vm4150_vm15 = vcmp.ge.f32.partialorder %v11237_v29, 0.0  ;;  %v4278_v32 = vmul.f32 0.2, %v11237_v29  ;;  %7930 = vmatmul.mubr.bf16.gmra.mrb[120].mxu0 %v14930_v51  ;;  %v16393_v18 = vld [vmem:[#allocation80_spill] sm:$0xff] }
 0x546   :  { %7998 = vmatprep.subr.bf16.mxu0 %v16386_v36  ;;  %8449 = vmatpush1.bf16.msra.mxu1 %v16387_v45  ;;  %v14978_v5 = vpack.c.bf16 %v4407_v42, %v4399_v61  ;;  %vm4152_vm0 = vcmp.ge.f32.partialorder %v11269_v56, 0.0  ;;  %v4280_v26 = vmul.f32 0.2, %v11269_v56  ;;  %v16390_v38 = vcombine.high %v16388_v20, %v16389_v22  ;;  %v3834_v42 = vpop.f32.mrb[100].mxu0 }
 0x547   :  { %vm4157_vm1 = vcmp.ge.f32.partialorder %v11238_v1, 0.0  ;;  %v4406_v3 = vsel %vm4150_vm15, %v11237_v29, %v4278_v32  ;;  %v16391_v37 = vcombine.low %v14563_v27, %v16385_v2  ;;  %v4285_v62 = vmul.f32 0.2, %v11238_v1  ;;  %8382 = vmatmul.mubr.bf16.gmra.mrb[136].mxu1 %v14930_v51 }
 0x548   :  { %8450 = vmatprep.subr.bf16.mxu1 %v16390_v38  ;;  %vm4159_vm2 = vcmp.ge.f32.partialorder %v11270_v21, 0.0  ;;  %v4287_v4 = vmul.f32 0.2, %v11270_v21  ;;  %v14987_v61 = vpack.c.bf16 %v4406_v3, %v4398_v60  ;;  %v4408_v57 = vsel %vm4152_vm0, %v11269_v56, %v4280_v26  ;;  %v3836_v56 = vpop.f32.mrb[101].mxu0  ;;  %v16396_v26 = vld [vmem:[#allocation81_spill] sm:$0xff] }
 0x549   :  { %7999 = vmatpush1.bf16.msra.mxu0 %v16391_v37  ;;  %v16394_v36 = vcombine.high %v14582_v14, %v16393_v18  ;;  %v11239_v45 = vadd.f32 %v3826_v63, %v14505_v13  ;;  %v14994_v29 = vpack.c.bf16 %v4408_v57, %v4400_v25  ;;  %v16395_v27 = vcombine.low %v16388_v20, %v16389_v22  ;;  %v4060_v37 = vpop.f32.mrb[116].mxu1  ;;  %v3838_v20 = vpop.f32.mrb[102].mxu0  ;;  %v16399_v57 = vld [vmem:[#allocation82_spill] sm:$0xff] }
 0x54a   :  { %16392 = vst [vmem:[#allocation48_spill] sm:$0xff] %v14987_v61  ;;  %v4413_v2 = vsel %vm4157_vm1, %v11238_v1, %v4285_v62  ;;  %v4415_v32 = vsel %vm4159_vm2, %v11270_v21, %v4287_v4  ;;  %v11271_v60 = vadd.f32 %v4052_v9, %v14523_v34  ;;  %v16397_v38 = vcombine.high %v14597_v58, %v16396_v26  ;;  %v4062_v62 = vpop.f32.mrb[117].mxu1 }
 0x54b   :  { %8000 = vmatprep.subr.bf16.mxu0 %v16394_v36  ;;  %8451 = vmatpush1.bf16.msra.mxu1 %v16395_v27  ;;  %vm4158_vm3 = vcmp.ge.f32.partialorder %v11239_v45, 0.0  ;;  %v4286_v3 = vmul.f32 0.2, %v11239_v45  ;;  %v11240_v63 = vadd.f32 %v3828_v31, %v14485_v48  ;;  %v11272_v25 = vadd.f32 %v4054_v44, %v14489_v43  ;;  %v3840_v31 = vpop.f32.mrb[103].mxu0  ;;  %v16400_v36 = vld [vmem:[#allocation83_spill] sm:$0xff] }
 0x54c   :  { %8452 = vmatprep.subr.bf16.mxu1 %v16397_v38  ;;  %7939 = vmatprep.mubr.bf16.mxu0 %v14987_v61  ;;  %v16398_v1 = vcombine.low %v14582_v14, %v16393_v18  ;;  %vm4160_vm4 = vcmp.ge.f32.partialorder %v11271_v60, 0.0  ;;  %v4288_v21 = vmul.f32 0.2, %v11271_v60  ;;  %v11241_v9 = vadd.f32 %v3830_v35, %v14505_v13  ;;  %v4064_v14 = vpop.f32.mrb[118].mxu1 }
 0x54d   :  { %v11273_v22 = vadd.f32 %v4056_v40, %v14523_v34  ;;  %8391 = vmatprep.mubr.bf16.mxu1 %v14987_v61  ;;  %v4414_v4 = vsel %vm4158_vm3, %v11239_v45, %v4286_v3  ;;  %vm4165_vm5 = vcmp.ge.f32.partialorder %v11240_v63, 0.0  ;;  %v4293_v44 = vmul.f32 0.2, %v11240_v63  ;;  %7940 = vmatmul.mubr.bf16.gmra.mrb[124].mxu0 %v14975_v41 }
 0x54e   :  { %8001 = vmatpush1.bf16.msra.mxu0 %v16398_v1  ;;  %vm4167_vm6 = vcmp.ge.f32.partialorder %v11272_v25, 0.0  ;;  %v16401_v27 = vcombine.high %v16399_v57, %v16400_v36  ;;  %v4416_v18 = vsel %vm4160_vm4, %v11271_v60, %v4288_v21  ;;  %v16402_v38 = vcombine.low %v14597_v58, %v16396_v26  ;;  %v4066_v1 = vpop.f32.mrb[119].mxu1 }
 0x54f   :  { %v4295_v35 = vmul.f32 0.2, %v11272_v25  ;;  %vm4166_vm7 = vcmp.ge.f32.partialorder %v11241_v9, 0.0  ;;  %v4294_v40 = vmul.f32 0.2, %v11241_v9  ;;  %v4421_v61 = vsel %vm4165_vm5, %v11240_v63, %v4293_v44  ;;  %8392 = vmatmul.mubr.bf16.gmra.mrb[140].mxu1 %v14975_v41 }
 0x550   :  { %8002 = vmatprep.subr.bf16.mxu0 %v16401_v27  ;;  %8453 = vmatpush1.bf16.msra.mxu1 %v16402_v38  ;;  %vm4168_vm8 = vcmp.ge.f32.partialorder %v11273_v22, 0.0  ;;  %v4296_v45 = vmul.f32 0.2, %v11273_v22  ;;  %v16403_v3 = vcombine.high %v14615_v0, %v14617_v24  ;;  %v11242_v27 = vadd.f32 %v3834_v42, %v14485_v48  ;;  %v16405_v42 = vld [vmem:[#allocation84_spill] sm:$0xff] }
 0x551   :  { %v15023_v60 = vpack.c.bf16 %v4421_v61, %v4413_v2  ;;  %v4423_v58 = vsel %vm4167_vm6, %v11272_v25, %v4295_v35  ;;  %v4422_v26 = vsel %vm4166_vm7, %v11241_v9, %v4294_v40  ;;  %v16404_v21 = vcombine.low %v16399_v57, %v16400_v36  ;;  %v3844_v2 = vpop.f32.mrb[104].mxu0 }
 0x552   :  { %8454 = vmatprep.subr.bf16.mxu1 %v16403_v3  ;;  %v11274_v63 = vadd.f32 %v4060_v37, %v14489_v43  ;;  %v15030_v44 = vpack.c.bf16 %v4423_v58, %v4415_v32  ;;  %v15032_v38 = vpack.c.bf16 %v4422_v26, %v4414_v4  ;;  %v4424_v51 = vsel %vm4168_vm8, %v11273_v22, %v4296_v45  ;;  %v3846_v4 = vpop.f32.mrb[105].mxu0 }
 0x553   :  { %8003 = vmatpush1.bf16.msra.mxu0 %v16404_v21  ;;  %v16406_v61 = vcombine.high %v14629_v19, %v16405_v42  ;;  %vm4173_vm9 = vcmp.ge.f32.partialorder %v11242_v27, 0.0  ;;  %v15038_v25 = vpack.c.bf16 %v4424_v51, %v4416_v18  ;;  %v16407_v9 = vcombine.low %v14615_v0, %v14617_v24  ;;  %v4070_v18 = vpop.f32.mrb[120].mxu1  ;;  %v3848_v40 = vpop.f32.mrb[106].mxu0 }
 0x554   :  { %v4301_v37 = vmul.f32 0.2, %v11242_v27  ;;  %vm4175_vm10 = vcmp.ge.f32.partialorder %v11274_v63, 0.0  ;;  %v4303_v32 = vmul.f32 0.2, %v11274_v63  ;;  %v16408_v22 = vcombine.high %v14633_v55, %v14643_v53  ;;  %v4072_v26 = vpop.f32.mrb[121].mxu1  ;;  %7949 = vmatprep.mubr.bf16.mxu0 %v15032_v38  ;;  %8401 = vmatprep.mubr.bf16.mxu1 %v15032_v38 }
 0x555   :  { %8004 = vmatprep.subr.bf16.mxu0 %v16406_v61  ;;  %8455 = vmatpush1.bf16.msra.mxu1 %v16407_v9  ;;  %v11243_v57 = vadd.f32 %v3836_v56, %v14505_v13  ;;  %v11275_v36 = vadd.f32 %v4062_v62, %v14523_v34  ;;  %v11244_v35 = vadd.f32 %v3838_v20, %v14485_v48  ;;  %v15055_v56 = vpop.f32.mrb[107].mxu0 }
 0x556   :  { %8456 = vmatprep.subr.bf16.mxu1 %v16408_v22  ;;  %v11276_v51 = vadd.f32 %v4064_v14, %v14489_v43  ;;  %v4429_v0 = vsel %vm4173_vm9, %v11242_v27, %v4301_v37  ;;  %v4431_v24 = vsel %vm4175_vm10, %v11274_v63, %v4303_v32  ;;  %v16409_v45 = vcombine.low %v14629_v19, %v16405_v42  ;;  %v16410_v14 = vld [vmem:[#allocation85_spill] sm:$0xff]  ;;  %v16411_v27 = vld [vmem:[#allocation86_spill] sm:$0xff]  ;;  %v4074_v37 = vpop.f32.mrb[122].mxu1 }
 0x557   :  { %v11245_v3 = vadd.f32 %v3840_v31, %v14505_v13  ;;  %v11277_v58 = vadd.f32 %v4066_v1, %v14523_v34  ;;  %vm4174_vm11 = vcmp.ge.f32.partialorder %v11243_v57, 0.0  ;;  %v4302_v62 = vmul.f32 0.2, %v11243_v57  ;;  %7950 = vmatmul.mubr.bf16.gmra.mrb[128].mxu0 %v15023_v60  ;;  %8402 = vmatmul.mubr.bf16.gmra.mrb[144].mxu1 %v15023_v60 }
 0x558   :  { %8005 = vmatpush1.bf16.msra.mxu0 %v16409_v45  ;;  %vm4176_vm12 = vcmp.ge.f32.partialorder %v11275_v36, 0.0  ;;  %v4304_v20 = vmul.f32 0.2, %v11275_v36  ;;  %v16412_v21 = vcombine.high %v16410_v14, %v16411_v27  ;;  %v16413_v19 = vcombine.low %v14633_v55, %v14643_v53  ;;  %v4076_v45 = vpop.f32.mrb[123].mxu1 }
 0x559   :  { %vm4181_vm13 = vcmp.ge.f32.partialorder %v11244_v35, 0.0  ;;  %v4309_v31 = vmul.f32 0.2, %v11244_v35  ;;  %vm4183_vm14 = vcmp.ge.f32.partialorder %v11276_v51, 0.0  ;;  %v4311_v1 = vmul.f32 0.2, %v11276_v51 }
 0x55a   :  { %8006 = vmatprep.subr.bf16.mxu0 %v16412_v21  ;;  %8457 = vmatpush1.bf16.msra.mxu1 %v16413_v19  ;;  %v4430_v63 = vsel %vm4174_vm11, %v11243_v57, %v4302_v62  ;;  %v4432_v42 = vsel %vm4176_vm12, %v11275_v36, %v4304_v20  ;;  %vm4182_vm15 = vcmp.ge.f32.partialorder %v11245_v3, 0.0  ;;  %v4310_v61 = vmul.f32 0.2, %v11245_v3  ;;  %v16418_v20 = vld [vmem:[#allocation87_spill] sm:$0xff] }
 0x55b   :  { %v16414_v9 = vcombine.high %v14661_v30, %v14663_v23  ;;  %v4437_v32 = vsel %vm4181_vm13, %v11244_v35, %v4309_v31  ;;  %v4439_v55 = vsel %vm4183_vm14, %v11276_v51, %v4311_v1  ;;  %vm4184_vm0 = vcmp.ge.f32.partialorder %v11277_v58, 0.0  ;;  %v3854_v35 = vpop.f32.mrb[108].mxu0 }
 0x55c   :  { %v4312_v53 = vmul.f32 0.2, %v11277_v58  ;;  %v16415_v22 = vcombine.low %v16410_v14, %v16411_v27  ;;  %v15072_v57 = vpack.c.bf16 %v4437_v32, %v4429_v0  ;;  %v15074_v36 = vpack.c.bf16 %v4439_v55, %v4431_v24  ;;  %v3856_v27 = vpop.f32.mrb[109].mxu0  ;;  %v16424_v32 = vld [vmem:[#allocation89_spill] sm:$0xff] }
 0x55d   :  { %8458 = vmatprep.subr.bf16.mxu1 %v16414_v9  ;;  %v4438_v62 = vsel %vm4182_vm15, %v11245_v3, %v4310_v61  ;;  %v16419_v21 = vcombine.high %v14665_v8, %v16418_v20  ;;  %v16420_v14 = vcombine.low %v14661_v30, %v14663_v23  ;;  %v11246_v0 = vadd.f32 %v3844_v2, %v14485_v48  ;;  %v4080_v61 = vpop.f32.mrb[124].mxu1  ;;  %v15095_v23 = vpop.f32.mrb[110].mxu0  ;;  %v15097_v30 = vld [vmem:[#allocation16 + $0xf48] sm:$0xff] }
 0x55e   :  { %8007 = vmatpush1.bf16.msra.mxu0 %v16415_v22  ;;  %16416 = vst [vmem:[#allocation49_spill] sm:$0xff] %v15072_v57  ;;  %16417 = vst [vmem:[#allocation46_spill] sm:$0xff] %v15074_v36  ;;  %v15080_v51 = vpack.c.bf16 %v4438_v62, %v4430_v63  ;;  %v4440_v19 = vsel %vm4184_vm0, %v11277_v58, %v4312_v53  ;;  %v11278_v24 = vadd.f32 %v4070_v18, %v14489_v43  ;;  %v15099_v2 = vld [vmem:[#allocation16 + $0xf68] sm:$0xff]  ;;  %v4082_v62 = vpop.f32.mrb[125].mxu1 }
 0x55f   :  { %8008 = vmatprep.subr.bf16.mxu0 %v16419_v21  ;;  %8459 = vmatpush1.bf16.msra.mxu1 %v16420_v14  ;;  %v15087_v3 = vpack.c.bf16 %v4440_v19, %v4432_v42  ;;  %v16421_v31 = vcombine.high %v14680_v7, %v14682_v52  ;;  %v11247_v1 = vadd.f32 %v3846_v4, %v14505_v13  ;;  %vm4189_vm1 = vcmp.ge.f32.partialorder %v11246_v0, 0.0  ;;  %v15152_v53 = vld [vmem:[#allocation16 + $0xf88] sm:$0xff] }
 0x560   :  { %v11279_v63 = vadd.f32 %v4072_v26, %v14523_v34  ;;  %v11248_v58 = vadd.f32 %v3848_v40, %v14485_v48  ;;  %v4317_v18 = vmul.f32 0.2, %v11246_v0  ;;  %vm4191_vm2 = vcmp.ge.f32.partialorder %v11278_v24, 0.0  ;;  %7959 = vmatprep.mubr.bf16.mxu0 %v15080_v51  ;;  %v16423_v26 = vld [vmem:[#allocation88_spill] sm:$0xff]  ;;  %8411 = vmatprep.mubr.bf16.mxu1 %v15080_v51 }
 0x561   :  { %8460 = vmatprep.subr.bf16.mxu1 %v16421_v31  ;;  %v4319_v42 = vmul.f32 0.2, %v11278_v24  ;;  %v16422_v9 = vcombine.low %v14665_v8, %v16418_v20  ;;  %vm4190_vm3 = vcmp.ge.f32.partialorder %v11247_v1, 0.0  ;;  %v4318_v4 = vmul.f32 0.2, %v11247_v1  ;;  %v3860_v20 = vpop.f32.mrb[111].mxu0  ;;  %7960 = vmatmul.mubr.bf16.gmra.mrb[132].mxu0 %v15072_v57 }
 0x562   :  { %v4320_v40 = vmul.f32 0.2, %v11279_v63  ;;  %v16425_v55 = vcombine.high %v16423_v26, %v16424_v32  ;;  %v16426_v22 = vcombine.low %v14680_v7, %v14682_v52  ;;  %vm4197_vm4 = vcmp.ge.f32.partialorder %v11248_v58, 0.0  ;;  %v4084_v7 = vpop.f32.mrb[126].mxu1  ;;  %8412 = vmatmul.mubr.bf16.gmra.mrb[148].mxu1 %v15072_v57  ;;  %v15154_v57 = vld [vmem:[#allocation16 + $0xfa8] sm:$0xff] }
 0x563   :  { %8009 = vmatpush1.bf16.msra.mxu0 %v16422_v9  ;;  %v4325_v8 = vmul.f32 0.2, %v11248_v58  ;;  %v4445_v14 = vsel %vm4189_vm1, %v11246_v0, %v4317_v18  ;;  %v4447_v31 = vsel %vm4191_vm2, %v11278_v24, %v4319_v42  ;;  %v11280_v9 = vadd.f32 %v4074_v37, %v14489_v43  ;;  %v4086_v37 = vpop.f32.mrb[127].mxu1 }
 0x564   :  { %8010 = vmatprep.subr.bf16.mxu0 %v16425_v55  ;;  %8461 = vmatpush1.bf16.msra.mxu1 %v16426_v22  ;;  %v11249_v52 = vadd.f32 %v15055_v56, %v14505_v13  ;;  %v4446_v55 = vsel %vm4190_vm3, %v11247_v1, %v4318_v4  ;;  %vm4192_vm5 = vcmp.ge.f32.partialorder %v11279_v63, 0.0  ;;  %v11281_v21 = vadd.f32 %v4076_v45, %v14523_v34  ;;  %v15138_v45 = vld [vmem:[#allocation16 + $0xf80] sm:$0xff] }
 0x565   :  { %v4453_v22 = vsel %vm4197_vm4, %v11248_v58, %v4325_v8  ;;  %v16427_v19 = vcombine.low %v16423_v26, %v16424_v32  ;;  %v16428_v0 = vcombine.high %v14699_v6, %v14712_v46  ;;  %vm4199_vm6 = vcmp.ge.f32.partialorder %v11280_v9, 0.0  ;;  %v15144_v26 = vld [vmem:[#allocation16 + $0xfa0] sm:$0xff] }
 0x566   :  { %v15132_v24 = vpack.c.bf16 %v4453_v22, %v4445_v14  ;;  %v4327_v56 = vmul.f32 0.2, %v11280_v9  ;;  %vm4198_vm7 = vcmp.ge.f32.partialorder %v11249_v52, 0.0  ;;  %v16429_v1 = vcombine.high %v14714_v16, %v14716_v15  ;;  %v16431_v14 = vld [vmem:[#allocation90_spill] sm:$0xff]  ;;  %v16432_v22 = vld [vmem:[#allocation91_spill] sm:$0xff] }
 0x567   :  { %8011 = vmatpush1.bf16.msra.mxu0 %v16427_v19  ;;  %8462 = vmatprep.subr.bf16.mxu1 %v16428_v0  ;;  %v4326_v58 = vmul.f32 0.2, %v11249_v52  ;;  %vm4200_vm8 = vcmp.ge.f32.partialorder %v11281_v21, 0.0  ;;  %v4328_v18 = vmul.f32 0.2, %v11281_v21  ;;  %v16430_v42 = vcombine.low %v14699_v6, %v14712_v46 }
 0x568   :  { %8012 = vmatprep.subr.bf16.mxu0 %v16429_v1  ;;  %v11250_v4 = vadd.f32 %v3854_v35, %v14485_v48  ;;  %v4448_v32 = vsel %vm4192_vm5, %v11279_v63, %v4320_v40  ;;  %v4455_v8 = vsel %vm4199_vm6, %v11280_v9, %v4327_v56  ;;  %v11282_v19 = vadd.f32 %v4080_v61, %v14489_v43  ;;  %v16438_v56 = vld [vmem:[#allocation93_spill] sm:$0xff] }
 0x569   :  { %8463 = vmatpush1.bf16.msra.mxu1 %v16430_v42  ;;  %v16433_v0 = vcombine.high %v16431_v14, %v16432_v22  ;;  %v11251_v1 = vadd.f32 %v3856_v27, %v14505_v13  ;;  %v15156_v6 = vpack.c.bf16 %v4455_v8, %v4447_v31  ;;  %v4454_v46 = vsel %vm4198_vm7, %v11249_v52, %v4326_v58  ;;  %v16437_v27 = vld [vmem:[#allocation92_spill] sm:$0xff]  ;;  %v16442_v8 = vld [vmem:[#allocation95_spill] sm:$0xff] }
 0x56a   :  { %v4456_v35 = vsel %vm4200_vm8, %v11281_v21, %v4328_v18  ;;  %v16435_v63 = vcombine.low %v14714_v16, %v14716_v15  ;;  %v11283_v61 = vadd.f32 %v4082_v62, %v14523_v34  ;;  %v15163_v40 = vpack.c.bf16 %v4454_v46, %v4446_v55 }
 0x56b   :  { %8464 = vmatprep.subr.bf16.mxu1 %v16433_v0  ;;  %16434 = vst [vmem:[#allocation47_spill] sm:$0xff] %v15156_v6  ;;  %v15165_v9 = vpack.c.bf16 %v4456_v35, %v4448_v32  ;;  %v16439_v42 = vcombine.high %v16437_v27, %v16438_v56  ;;  %v10890_v31 = vcombine.low %v15138_v45, %v15144_v26  ;;  %vm4205_vm9 = vcmp.ge.f32.partialorder %v11250_v4, 0.0  ;;  %v16441_v32 = vld [vmem:[#allocation94_spill] sm:$0xff] }
 0x56c   :  { %8013 = vmatpush1.bf16.msra.mxu0 %v16435_v63  ;;  %v10891_v21 = vcombine.high %v15138_v45, %v15144_v26  ;;  %v4333_v52 = vmul.f32 0.2, %v11250_v4  ;;  %vm4207_vm10 = vcmp.ge.f32.partialorder %v11282_v19, 0.0  ;;  %v16440_v15 = vcombine.low %v16431_v14, %v16432_v22  ;;  %7969 = vmatprep.mubr.bf16.mxu0 %v15163_v40 }
 0x56d   :  { %16436 = vst [vmem:[#allocation52_spill] sm:$0xff] %v15165_v9  ;;  %8014 = vmatprep.subr.bf16.mxu0 %v16439_v42  ;;  %v10893_v16 = vcombine.high %v15152_v53, %v15154_v57  ;;  %v4335_v62 = vmul.f32 0.2, %v11282_v19  ;;  %v11252_v55 = vadd.f32 %v15095_v23, %v14485_v48  ;;  %v11284_v58 = vadd.f32 %v4084_v7, %v14489_v43 }
 0x56e   :  { %8465 = vmatpush1.bf16.msra.mxu1 %v16440_v15  ;;  %v11253_v18 = vadd.f32 %v3860_v20, %v14505_v13  ;;  %8421 = vmatprep.mubr.bf16.mxu1 %v15163_v40  ;;  %vm4206_vm11 = vcmp.ge.f32.partialorder %v11251_v1, 0.0  ;;  %v4334_v45 = vmul.f32 0.2, %v11251_v1  ;;  %vm4208_vm12 = vcmp.ge.f32.partialorder %v11283_v61, 0.0  ;;  %v4977_v15 = vld [vmem:[#allocation16 + $0xfc0] sm:$0xff] }
 0x56f   :  { %v11285_v26 = vadd.f32 %v4086_v37, %v14523_v34  ;;  %7970 = vmatmul.mubr.bf16.gmra.mrb[136].mxu0 %v15132_v24  ;;  %v16443_v14 = vcombine.high %v16441_v32, %v16442_v8  ;;  %v4336_v48 = vmul.f32 0.2, %v11283_v61  ;;  %vm4213_vm13 = vcmp.ge.f32.partialorder %v11252_v55, 0.0  ;;  %8422 = vmatmul.mubr.bf16.gmra.mrb[152].mxu1 %v15132_v24 }
 0x570   :  { %v4341_v43 = vmul.f32 0.2, %v11252_v55  ;;  %vm4215_vm14 = vcmp.ge.f32.partialorder %v11284_v58, 0.0  ;;  %v16444_v13 = vcombine.low %v16437_v27, %v16438_v56  ;;  %v4343_v23 = vmul.f32 0.2, %v11284_v58 }
 0x571   :  { %8466 = vmatprep.subr.bf16.mxu1 %v16443_v14  ;;  %vm4214_vm15 = vcmp.ge.f32.partialorder %v11253_v18, 0.0  ;;  %v4342_v20 = vmul.f32 0.2, %v11253_v18  ;;  %vm4216_vm0 = vcmp.ge.f32.partialorder %v11285_v26, 0.0  ;;  %v16445_v34 = vcombine.low %v16441_v32, %v16442_v8  ;;  %v4981_v32 = vld [vmem:[#allocation16 + $0xfe0] sm:$0xff]  ;;  %v4476_v14 = vld [vmem:[#allocation16 + $0x18] sm:$0xff] }
 0x572   :  { %8015 = vmatpush1.bf16.msra.mxu0 %v16444_v13  ;;  %v16446_v7 = vcombine.high %v14761_v49, %v14763_v10  ;;  %v4461_v37 = vsel %vm4205_vm9, %v11250_v4, %v4333_v52  ;;  %v4463_v22 = vsel %vm4207_vm10, %v11282_v19, %v4335_v62  ;;  %v4469_v0 = vsel %vm4213_vm13, %v11252_v55, %v4341_v43  ;;  %v4982_v55 = vld [vmem:[#allocation16 + $0xfe8] sm:$0xff]  ;;  %v4487_v43 = vld [vmem:[#allocation16 + $0x70] sm:$0xff]  ;;  %v4484_v13 = vld [vmem:[#allocation16 + $0x58] sm:$0xff] }
 0x573   :  { %8467 = vmatpush1.bf16.msra.mxu1 %v16445_v34  ;;  %v4344_v46 = vmul.f32 0.2, %v11285_v26  ;;  %v16447_v35 = vcombine.high %v15097_v30, %v15099_v2  ;;  %v4462_v63 = vsel %vm4206_vm11, %v11251_v1, %v4334_v45  ;;  %v15206_v27 = vpack.c.bf16 %v4469_v0, %v4461_v37  ;;  %v4978_v1 = vld [vmem:[#allocation16 + $0xfc8] sm:$0xff]  ;;  %v4491_v34 = vld [vmem:[#allocation16 + $0x90] sm:$0xff]  ;;  %v4492_v0 = vld [vmem:[#allocation16 + $0x98] sm:$0xff] }
 0x574   :  { %8016 = vmatprep.subr.bf16.mxu0 %v16446_v7  ;;  %v4471_v56 = vsel %vm4215_vm14, %v11284_v58, %v4343_v23  ;;  %v4470_v42 = vsel %vm4214_vm15, %v11253_v18, %v4342_v20  ;;  %v4464_v8 = vsel %vm4208_vm12, %v11283_v61, %v4336_v48  ;;  %v16449_v62 = vcombine.low %v14761_v49, %v14763_v10  ;;  %v4479_v49 = vld [vmem:[#allocation16 + $0x30] sm:$0xff]  ;;  %v4480_v48 = vld [vmem:[#allocation16 + $0x38] sm:$0xff] }
 0x575   :  { %8468 = vmatprep.subr.bf16.mxu1 %v16447_v35  ;;  %v15210_v4 = vpack.c.bf16 %v4471_v56, %v4463_v22  ;;  %v15212_v19 = vpack.c.bf16 %v4470_v42, %v4462_v63  ;;  %v4472_v52 = vsel %vm4216_vm0, %v11285_v26, %v4344_v46  ;;  %v16451_v58 = vcombine.low %v15097_v30, %v15099_v2  ;;  %v4475_v26 = vld [vmem:[#allocation16 + $0x10] sm:$0xff]  ;;  %v4488_v23 = vld [vmem:[#allocation16 + $0x78] sm:$0xff] }
 0x576   :  { %8017 = vmatpush1.bf16.msra.mxu0 %v16449_v62  ;;  %v15218_v45 = vpack.c.bf16 %v4472_v52, %v4464_v8  ;;  %v10892_v61 = vcombine.low %v15152_v53, %v15154_v57  ;;  %v10899_v18 = vcombine.high %v4977_v15, %v4981_v32  ;;  %v10901_v10 = vcombine.high %v4978_v1, %v4982_v55  ;;  %v4495_v7 = vld [vmem:[#allocation16 + $0xb0] sm:$0xff]  ;;  %v4496_v46 = vld [vmem:[#allocation16 + $0xb8] sm:$0xff] }
 0x577   :  { %16448 = vst [vmem:[#allocation71_spill] sm:$0xff] %v15210_v4  ;;  %8469 = vmatpush1.bf16.msra.mxu1 %v16451_v58  ;;  %8018 = vmatprep.subr.bf16.mxu0 %v10891_v21  ;;  %v10898_v30 = vcombine.low %v4977_v15, %v4981_v32  ;;  %v10900_v57 = vcombine.low %v4978_v1, %v4982_v55  ;;  %v4483_v21 = vld [vmem:[#allocation16 + $0x50] sm:$0xff]  ;;  %v4500_v8 = vld [vmem:[#allocation16 + $0xd8] sm:$0xff] }
 0x578   :  { %16450 = vst [vmem:[#allocation72_spill] sm:$0xff] %v15218_v45  ;;  %7979 = vmatprep.mubr.bf16.mxu0 %v15212_v19  ;;  %8431 = vmatprep.mubr.bf16.mxu1 %v15212_v19  ;;  %v10399_v2 = vcombine.high %v4475_v26, %v4479_v49  ;;  %v10401_v53 = vcombine.high %v4476_v14, %v4480_v48  ;;  %v4499_v42 = vld [vmem:[#allocation16 + $0xd0] sm:$0xff]  ;;  %v4504_v52 = vld [vmem:[#allocation16 + $0xf8] sm:$0xff] }
 0x579   :  { %7980 = vmatmul.mubr.bf16.gmra.mrb[140].mxu0 %v15206_v27  ;;  %8470 = vmatprep.subr.bf16.mxu1 %v10893_v16  ;;  %v10398_v16 = vcombine.low %v4475_v26, %v4479_v49  ;;  %v10407_v20 = vcombine.high %v4483_v21, %v4487_v43  ;;  %v10409_v37 = vcombine.high %v4484_v13, %v4488_v23  ;;  %v4503_v15 = vld [vmem:[#allocation16 + $0xf0] sm:$0xff]  ;;  %v4508_v26 = vld [vmem:[#allocation16 + $0x118] sm:$0xff] }
 0x57a   :  { %8019 = vmatpush1.bf16.msra.mxu0 %v10890_v31  ;;  %8432 = vmatmul.mubr.bf16.gmra.mrb[156].mxu1 %v15206_v27  ;;  %v10400_v31 = vcombine.low %v4476_v14, %v4480_v48  ;;  %v10406_v22 = vcombine.low %v4483_v21, %v4487_v43  ;;  %v10415_v35 = vcombine.high %v4491_v34, %v4495_v7  ;;  %v4507_v55 = vld [vmem:[#allocation16 + $0x110] sm:$0xff]  ;;  %v4512_v49 = vld [vmem:[#allocation16 + $0x138] sm:$0xff] }
 0x57b   :  { %8022 = vmatprep.mubr.bf16.mxu0 %v14848_v33  ;;  %8471 = vmatpush1.bf16.msra.mxu1 %v10892_v61  ;;  %v10408_v63 = vcombine.low %v4484_v13, %v4488_v23  ;;  %v10417_v56 = vcombine.high %v4492_v0, %v4496_v46  ;;  %v10414_v32 = vcombine.low %v4491_v34, %v4495_v7  ;;  %v4511_v58 = vld [vmem:[#allocation16 + $0x130] sm:$0xff]  ;;  %v4520_v21 = vld [vmem:[#allocation16 + $0x178] sm:$0xff] }
 0x57c   :  { %8474 = vmatprep.mubr.bf16.mxu1 %v14848_v33  ;;  %8020 = vmatprep.subr.bf16.mxu0 %v10899_v18  ;;  %v10416_v62 = vcombine.low %v4492_v0, %v4496_v46  ;;  %v10423_v1 = vcombine.high %v4499_v42, %v4503_v15  ;;  %v10425_v61 = vcombine.high %v4500_v8, %v4504_v52  ;;  %v4523_v13 = vld [vmem:[#allocation16 + $0x190] sm:$0xff]  ;;  %v4524_v34 = vld [vmem:[#allocation16 + $0x198] sm:$0xff] }
 0x57d   :  { %8472 = vmatprep.subr.bf16.mxu1 %v10901_v10  ;;  %v10422_v18 = vcombine.low %v4499_v42, %v4503_v15  ;;  %v10431_v10 = vcombine.high %v4507_v55, %v4511_v58  ;;  %v10424_v14 = vcombine.low %v4500_v8, %v4504_v52  ;;  %v10433_v48 = vcombine.high %v4508_v26, %v4512_v49  ;;  %v4527_v23 = vld [vmem:[#allocation16 + $0x1b0] sm:$0xff]  ;;  %v4528_v7 = vld [vmem:[#allocation16 + $0x1b8] sm:$0xff] }
 0x57e   :  { %8021 = vmatpush1.bf16.msra.mxu0 %v10898_v30  ;;  %v4515_v30 = vld [vmem:[#allocation16 + $0x150] sm:$0xff]  ;;  %v10432_v43 = vcombine.low %v4508_v26, %v4512_v49  ;;  %v10449_v0 = vcombine.high %v4524_v34, %v4528_v7  ;;  %v4536_v42 = vld [vmem:[#allocation16 + $0x1f8] sm:$0xff]  ;;  %v10448_v15 = vcombine.low %v4524_v34, %v4528_v7 }
 0x57f   :  { %8473 = vmatpush1.bf16.msra.mxu1 %v10900_v57  ;;  %8555 = vmatprep.subr.bf16.mxu0 %v10399_v2  ;;  %v4519_v57 = vld [vmem:[#allocation16 + $0x170] sm:$0xff]  ;;  %v10430_v2 = vcombine.low %v4507_v55, %v4511_v58  ;;  %v4540_v55 = vld [vmem:[#allocation16 + $0x218] sm:$0xff] }
 0x580   :  { %9007 = vmatprep.subr.bf16.mxu1 %v10401_v53  ;;  %v4516_v53 = vld [vmem:[#allocation16 + $0x158] sm:$0xff]  ;;  %v4531_v46 = vld [vmem:[#allocation16 + $0x1d0] sm:$0xff] }
 0x581   :  { %8023 = vmatmul.mubr.bf16.vlgmr.msra.gmra.mrb[112].mxu0 %v14840_v11  ;;  %v4539_v8 = vld [vmem:[#allocation16 + $0x210] sm:$0xff]  ;;  %v4544_v58 = vld [vmem:[#allocation16 + $0x238] sm:$0xff] }
 0x582   :  { %8475 = vmatmul.mubr.bf16.vlgmr.msra.gmra.mrb[128].mxu1 %v14840_v11  ;;  %8556 = vmatpush1.bf16.msra.mxu0 %v10398_v16  ;;  %v10439_v16 = vcombine.high %v4515_v30, %v4519_v57  ;;  %v4543_v52 = vld [vmem:[#allocation16 + $0x230] sm:$0xff]  ;;  %v10465_v26 = vcombine.high %v4540_v55, %v4544_v58 }
 0x583   :  { %8032 = vmatprep.mubr.bf16.mxu0 %v14894_v12  ;;  %8484 = vmatprep.mubr.bf16.mxu1 %v14894_v12  ;;  %v4547_v49 = vld [vmem:[#allocation16 + $0x250] sm:$0xff] }
 0x584   :  { %9008 = vmatpush1.bf16.msra.mxu1 %v10400_v31  ;;  %8557 = vmatprep.subr.bf16.mxu0 %v10407_v20  ;;  %v10441_v31 = vcombine.high %v4516_v53, %v4520_v21  ;;  %v10438_v20 = vcombine.low %v4515_v30, %v4519_v57  ;;  %v4552_v30 = vld [vmem:[#allocation16 + $0x278] sm:$0xff]  ;;  %v10464_v57 = vcombine.low %v4540_v55, %v4544_v58  ;;  %v4563_v7 = vld [vmem:[#allocation16 + $0x2d0] sm:$0xff] }
 0x585   :  { %9009 = vmatprep.subr.bf16.mxu1 %v10409_v37  ;;  %v10447_v37 = vcombine.high %v4523_v13, %v4527_v23  ;;  %v4579_v58 = vld [vmem:[#allocation16 + $0x350] sm:$0xff] }
 0x586   :  { %8558 = vmatpush1.bf16.msra.mxu0 %v10406_v22  ;;  %v10440_v22 = vcombine.low %v4516_v53, %v4520_v21  ;;  %v4555_v53 = vld [vmem:[#allocation16 + $0x290] sm:$0xff] }
 0x587   :  { %8559 = vmatprep.subr.bf16.mxu0 %v10415_v35  ;;  %v4535_v35 = vld [vmem:[#allocation16 + $0x1f0] sm:$0xff] }
 0x588   :  { %9010 = vmatpush1.bf16.msra.mxu1 %v10408_v63  ;;  %v10446_v63 = vcombine.low %v4523_v13, %v4527_v23  ;;  %v4559_v21 = vld [vmem:[#allocation16 + $0x2b0] sm:$0xff]  ;;  %v4556_v13 = vld [vmem:[#allocation16 + $0x298] sm:$0xff] }
 0x589   :  { %8033 = vmatmul.mubr.bf16.gmra.mrb[116].mxu0 %v14880_v39  ;;  %9011 = vmatprep.subr.bf16.mxu1 %v10417_v56  ;;  %v4532_v56 = vld [vmem:[#allocation16 + $0x1d8] sm:$0xff] }
 0x58a   :  { %8485 = vmatmul.mubr.bf16.gmra.mrb[132].mxu1 %v14880_v39  ;;  %8560 = vmatpush1.bf16.msra.mxu0 %v10414_v32  ;;  %v10455_v32 = vcombine.high %v4531_v46, %v4535_v35  ;;  %v4560_v23 = vld [vmem:[#allocation16 + $0x2b8] sm:$0xff] }
 0x58b   :  { %8042 = vmatprep.mubr.bf16.mxu0 %v14936_v59  ;;  %8494 = vmatprep.mubr.bf16.mxu1 %v14936_v59  ;;  %v10481_v34 = vcombine.high %v4556_v13, %v4560_v23 }
 0x58c   :  { %9012 = vmatpush1.bf16.msra.mxu1 %v10416_v62  ;;  %8561 = vmatprep.subr.bf16.mxu0 %v10423_v1  ;;  %v10457_v62 = vcombine.high %v4532_v56, %v4536_v42  ;;  %v10454_v1 = vcombine.low %v4531_v46, %v4535_v35  ;;  %v4568_v46 = vld [vmem:[#allocation16 + $0x2f8] sm:$0xff]  ;;  %v10480_v35 = vcombine.low %v4556_v13, %v4560_v23  ;;  %v4595_v23 = vld [vmem:[#allocation16 + $0x3d0] sm:$0xff] }
 0x58d   :  { %9013 = vmatprep.subr.bf16.mxu1 %v10425_v61  ;;  %v10463_v61 = vcombine.high %v4539_v8, %v4543_v52 }
 0x58e   :  { %8562 = vmatpush1.bf16.msra.mxu0 %v10422_v18  ;;  %v10456_v18 = vcombine.low %v4532_v56, %v4536_v42  ;;  %v4571_v56 = vld [vmem:[#allocation16 + $0x310] sm:$0xff] }
 0x58f   :  { %8563 = vmatprep.subr.bf16.mxu0 %v10431_v10  ;;  %v4551_v10 = vld [vmem:[#allocation16 + $0x270] sm:$0xff] }
 0x590   :  { %9014 = vmatpush1.bf16.msra.mxu1 %v10424_v14  ;;  %v10462_v14 = vcombine.low %v4539_v8, %v4543_v52  ;;  %v4575_v42 = vld [vmem:[#allocation16 + $0x330] sm:$0xff]  ;;  %v4572_v8 = vld [vmem:[#allocation16 + $0x318] sm:$0xff] }
 0x591   :  { %8043 = vmatmul.mubr.bf16.gmra.mrb[120].mxu0 %v14932_v47  ;;  %9015 = vmatprep.subr.bf16.mxu1 %v10433_v48  ;;  %v4548_v48 = vld [vmem:[#allocation16 + $0x258] sm:$0xff] }
 0x592   :  { %8495 = vmatmul.mubr.bf16.gmra.mrb[136].mxu1 %v14932_v47  ;;  %8564 = vmatpush1.bf16.msra.mxu0 %v10430_v2  ;;  %v10471_v2 = vcombine.high %v4547_v49, %v4551_v10  ;;  %v4576_v52 = vld [vmem:[#allocation16 + $0x338] sm:$0xff] }
 0x593   :  { %8052 = vmatprep.mubr.bf16.mxu0 %v14994_v29  ;;  %8504 = vmatprep.mubr.bf16.mxu1 %v14994_v29  ;;  %v10497_v55 = vcombine.high %v4572_v8, %v4576_v52 }
 0x594   :  { %9016 = vmatpush1.bf16.msra.mxu1 %v10432_v43  ;;  %8565 = vmatprep.subr.bf16.mxu0 %v10439_v16  ;;  %v10473_v43 = vcombine.high %v4548_v48, %v4552_v30  ;;  %v10470_v16 = vcombine.low %v4547_v49, %v4551_v10  ;;  %v4584_v49 = vld [vmem:[#allocation16 + $0x378] sm:$0xff]  ;;  %v10496_v10 = vcombine.low %v4572_v8, %v4576_v52  ;;  %v4611_v52 = vld [vmem:[#allocation16 + $0x450] sm:$0xff] }
 0x595   :  { %9017 = vmatprep.subr.bf16.mxu1 %v10441_v31  ;;  %v10479_v31 = vcombine.high %v4555_v53, %v4559_v21 }
 0x596   :  { %8566 = vmatpush1.bf16.msra.mxu0 %v10438_v20  ;;  %v10472_v20 = vcombine.low %v4548_v48, %v4552_v30  ;;  %v4587_v48 = vld [vmem:[#allocation16 + $0x390] sm:$0xff] }
 0x597   :  { %8567 = vmatprep.subr.bf16.mxu0 %v10447_v37  ;;  %v4567_v37 = vld [vmem:[#allocation16 + $0x2f0] sm:$0xff] }
 0x598   :  { %9018 = vmatpush1.bf16.msra.mxu1 %v10440_v22  ;;  %v10478_v22 = vcombine.low %v4555_v53, %v4559_v21  ;;  %v4591_v30 = vld [vmem:[#allocation16 + $0x3b0] sm:$0xff]  ;;  %v4588_v53 = vld [vmem:[#allocation16 + $0x398] sm:$0xff] }
 0x599   :  { %8053 = vmatmul.mubr.bf16.gmra.mrb[124].mxu0 %v14978_v5  ;;  %9019 = vmatprep.subr.bf16.mxu1 %v10449_v0  ;;  %v4564_v0 = vld [vmem:[#allocation16 + $0x2d8] sm:$0xff] }
 0x59a   :  { %8505 = vmatmul.mubr.bf16.gmra.mrb[140].mxu1 %v14978_v5  ;;  %8568 = vmatpush1.bf16.msra.mxu0 %v10446_v63  ;;  %v10487_v63 = vcombine.high %v4563_v7, %v4567_v37  ;;  %v4592_v21 = vld [vmem:[#allocation16 + $0x3b8] sm:$0xff] }
 0x59b   :  { %8062 = vmatprep.mubr.bf16.mxu0 %v15038_v25  ;;  %8514 = vmatprep.mubr.bf16.mxu1 %v15038_v25  ;;  %v10513_v13 = vcombine.high %v4588_v53, %v4592_v21 }
 0x59c   :  { %9020 = vmatpush1.bf16.msra.mxu1 %v10448_v15  ;;  %8569 = vmatprep.subr.bf16.mxu0 %v10455_v32  ;;  %v10489_v15 = vcombine.high %v4564_v0, %v4568_v46  ;;  %v10486_v32 = vcombine.low %v4563_v7, %v4567_v37  ;;  %v4600_v7 = vld [vmem:[#allocation16 + $0x3f8] sm:$0xff]  ;;  %v10512_v37 = vcombine.low %v4588_v53, %v4592_v21 }
 0x59d   :  { %9021 = vmatprep.subr.bf16.mxu1 %v10457_v62  ;;  %v10495_v62 = vcombine.high %v4571_v56, %v4575_v42  ;;  %v4624_v53 = vld [vmem:[#allocation16 + $0x4b8] sm:$0xff] }
 0x59e   :  { %8570 = vmatpush1.bf16.msra.mxu0 %v10454_v1  ;;  %v10488_v1 = vcombine.low %v4564_v0, %v4568_v46  ;;  %v4603_v0 = vld [vmem:[#allocation16 + $0x410] sm:$0xff] }
 0x59f   :  { %8571 = vmatprep.subr.bf16.mxu0 %v10463_v61  ;;  %v4583_v61 = vld [vmem:[#allocation16 + $0x370] sm:$0xff] }
 0x5a0   :  { %9022 = vmatpush1.bf16.msra.mxu1 %v10456_v18  ;;  %v10494_v18 = vcombine.low %v4571_v56, %v4575_v42  ;;  %v4607_v46 = vld [vmem:[#allocation16 + $0x430] sm:$0xff]  ;;  %v4604_v56 = vld [vmem:[#allocation16 + $0x418] sm:$0xff] }
 0x5a1   :  { %8063 = vmatmul.mubr.bf16.gmra.mrb[128].mxu0 %v15030_v44  ;;  %9023 = vmatprep.subr.bf16.mxu1 %v10465_v26  ;;  %v4580_v26 = vld [vmem:[#allocation16 + $0x358] sm:$0xff] }
 0x5a2   :  { %8515 = vmatmul.mubr.bf16.gmra.mrb[144].mxu1 %v15030_v44  ;;  %8572 = vmatpush1.bf16.msra.mxu0 %v10462_v14  ;;  %v10503_v14 = vcombine.high %v4579_v58, %v4583_v61  ;;  %v4608_v42 = vld [vmem:[#allocation16 + $0x438] sm:$0xff] }
 0x5a3   :  { %8072 = vmatprep.mubr.bf16.mxu0 %v15087_v3  ;;  %8524 = vmatprep.mubr.bf16.mxu1 %v15087_v3 }
 0x5a4   :  { %9024 = vmatpush1.bf16.msra.mxu1 %v10464_v57  ;;  %8573 = vmatprep.subr.bf16.mxu0 %v10471_v2  ;;  %v10505_v57 = vcombine.high %v4580_v26, %v4584_v49  ;;  %v10502_v2 = vcombine.low %v4579_v58, %v4583_v61  ;;  %v4612_v58 = vld [vmem:[#allocation16 + $0x458] sm:$0xff] }
 0x5a5   :  { %9025 = vmatprep.subr.bf16.mxu1 %v10473_v43  ;;  %v10511_v43 = vcombine.high %v4587_v48, %v4591_v30  ;;  %v4616_v61 = vld [vmem:[#allocation16 + $0x478] sm:$0xff] }
 0x5a6   :  { %8574 = vmatpush1.bf16.msra.mxu0 %v10470_v16  ;;  %v10504_v16 = vcombine.low %v4580_v26, %v4584_v49  ;;  %v10528_v26 = vcombine.low %v4604_v56, %v4608_v42  ;;  %v4619_v49 = vld [vmem:[#allocation16 + $0x490] sm:$0xff] }
 0x5a7   :  { %8575 = vmatprep.subr.bf16.mxu0 %v10479_v31  ;;  %v4599_v31 = vld [vmem:[#allocation16 + $0x3f0] sm:$0xff] }
 0x5a8   :  { %9026 = vmatpush1.bf16.msra.mxu1 %v10472_v20  ;;  %v10510_v20 = vcombine.low %v4587_v48, %v4591_v30  ;;  %v10537_v48 = vcombine.high %v4612_v58, %v4616_v61  ;;  %v16454_v30 = vld [vmem:[#allocation58_spill] sm:$0xff] }
 0x5a9   :  { %8073 = vmatmul.mubr.bf16.gmra.mrb[132].mxu0 %v15074_v36  ;;  %9027 = vmatprep.subr.bf16.mxu1 %v10481_v34  ;;  %v4596_v34 = vld [vmem:[#allocation16 + $0x3d8] sm:$0xff] }
 0x5aa   :  { %8525 = vmatmul.mubr.bf16.gmra.mrb[148].mxu1 %v15074_v36  ;;  %8576 = vmatpush1.bf16.msra.mxu0 %v10478_v22  ;;  %v10519_v22 = vcombine.high %v4595_v23, %v4599_v31  ;;  %v10520_v8 = vcombine.low %v4596_v34, %v4600_v7 }
 0x5ab   :  { %8082 = vmatprep.mubr.bf16.mxu0 %v15165_v9  ;;  %8534 = vmatprep.mubr.bf16.mxu1 %v15165_v9 }
 0x5ac   :  { %9028 = vmatpush1.bf16.msra.mxu1 %v10480_v35  ;;  %8577 = vmatprep.subr.bf16.mxu0 %v10487_v63  ;;  %v10521_v35 = vcombine.high %v4596_v34, %v4600_v7  ;;  %v10518_v63 = vcombine.low %v4595_v23, %v4599_v31  ;;  %v4632_v34 = vld [vmem:[#allocation16 + $0x4f8] sm:$0xff] }
 0x5ad   :  { %9029 = vmatprep.subr.bf16.mxu1 %v10489_v15  ;;  %v16452_v15 = vld [vmem:[#allocation51_spill] sm:$0xff] }
 0x5ae   :  { %8578 = vmatpush1.bf16.msra.mxu0 %v10486_v32  ;;  %v10527_v32 = vcombine.high %v4603_v0, %v4607_v46 }
 0x5af   :  { %8579 = vmatprep.subr.bf16.mxu0 %v10495_v62  ;;  %v4615_v62 = vld [vmem:[#allocation16 + $0x470] sm:$0xff] }
 0x5b0   :  { %9030 = vmatpush1.bf16.msra.mxu1 %v10488_v1  ;;  %v10529_v1 = vcombine.high %v4604_v56, %v4608_v42  ;;  %v4636_v42 = vld [vmem:[#allocation16 + $0x518] sm:$0xff] }
 0x5b1   :  { %8083 = vmatmul.mubr.bf16.gmra.mrb[136].mxu0 %v15156_v6  ;;  %9031 = vmatprep.subr.bf16.mxu1 %v10497_v55  ;;  %v10526_v55 = vcombine.low %v4603_v0, %v4607_v46  ;;  %v4639_v0 = vld [vmem:[#allocation16 + $0x530] sm:$0xff]  ;;  %v16455_v46 = vld [vmem:[#allocation55_spill] sm:$0xff] }
 0x5b2   :  { %8535 = vmatmul.mubr.bf16.gmra.mrb[152].mxu1 %v15156_v6  ;;  %8580 = vmatpush1.bf16.msra.mxu0 %v10494_v18  ;;  %v10535_v18 = vcombine.high %v4611_v52, %v4615_v62 }
 0x5b3   :  { %8092 = vmatprep.mubr.bf16.mxu0 %v15218_v45  ;;  %8544 = vmatprep.mubr.bf16.mxu1 %v15218_v45 }
 0x5b4   :  { %9032 = vmatpush1.bf16.msra.mxu1 %v10496_v10  ;;  %8581 = vmatprep.subr.bf16.mxu0 %v10503_v14  ;;  %v4623_v10 = vld [vmem:[#allocation16 + $0x4b0] sm:$0xff]  ;;  %v16453_v14 = vld [vmem:[#allocation53_spill] sm:$0xff] }
 0x5b5   :  { %9033 = vmatprep.subr.bf16.mxu1 %v10505_v57  ;;  %v10534_v57 = vcombine.low %v4611_v52, %v4615_v62  ;;  %v10543_v21 = vcombine.high %v4619_v49, %v4623_v10  ;;  %v10542_v31 = vcombine.low %v4619_v49, %v4623_v10  ;;  %v4643_v52 = vld [vmem:[#allocation16 + $0x550] sm:$0xff] }
 0x5b6   :  { %8582 = vmatpush1.bf16.msra.mxu0 %v10502_v2  ;;  %v4620_v2 = vld [vmem:[#allocation16 + $0x498] sm:$0xff]  ;;  %v4647_v62 = vld [vmem:[#allocation16 + $0x570] sm:$0xff] }
 0x5b7   :  { %8583 = vmatprep.subr.bf16.mxu0 %v10511_v43  ;;  %v10536_v43 = vcombine.low %v4612_v58, %v4616_v61  ;;  %v10545_v23 = vcombine.high %v4620_v2, %v4624_v53  ;;  %v4644_v58 = vld [vmem:[#allocation16 + $0x558] sm:$0xff]  ;;  %v4651_v49 = vld [vmem:[#allocation16 + $0x590] sm:$0xff] }
 0x5b8   :  { %9034 = vmatpush1.bf16.msra.mxu1 %v10504_v16  ;;  %v4627_v16 = vld [vmem:[#allocation16 + $0x4d0] sm:$0xff]  ;;  %v4648_v61 = vld [vmem:[#allocation16 + $0x578] sm:$0xff] }
 0x5b9   :  { %8093 = vmatmul.mubr.bf16.gmra.mrb[140].mxu0 %v15210_v4  ;;  %9035 = vmatprep.subr.bf16.mxu1 %v10513_v13  ;;  %v4631_v13 = vld [vmem:[#allocation16 + $0x4f0] sm:$0xff] }
 0x5ba   :  { %8545 = vmatmul.mubr.bf16.gmra.mrb[156].mxu1 %v15210_v4  ;;  %8584 = vmatpush1.bf16.msra.mxu0 %v10510_v20  ;;  %v4628_v20 = vld [vmem:[#allocation16 + $0x4d8] sm:$0xff]  ;;  %v10551_v7 = vcombine.high %v4627_v16, %v4631_v13  ;;  %v10550_v56 = vcombine.low %v4627_v16, %v4631_v13  ;;  %v4655_v10 = vld [vmem:[#allocation16 + $0x5b0] sm:$0xff] }
 0x5bb   :  { %8587 = vmatprep.mubr.bf16.mxu0 %v16452_v15  ;;  %9039 = vmatprep.mubr.bf16.mxu1 %v16452_v15  ;;  %v4640_v15 = vld [vmem:[#allocation16 + $0x538] sm:$0xff]  ;;  %v4659_v16 = vld [vmem:[#allocation16 + $0x5d0] sm:$0xff] }
 0x5bc   :  { %9036 = vmatpush1.bf16.msra.mxu1 %v10512_v37  ;;  %8585 = vmatprep.subr.bf16.mxu0 %v10519_v22  ;;  %v10544_v37 = vcombine.low %v4620_v2, %v4624_v53  ;;  %v4635_v22 = vld [vmem:[#allocation16 + $0x510] sm:$0xff]  ;;  %v4652_v2 = vld [vmem:[#allocation16 + $0x598] sm:$0xff] }
 0x5bd   :  { %9037 = vmatprep.subr.bf16.mxu1 %v10521_v35  ;;  %v10553_v35 = vcombine.high %v4628_v20, %v4632_v34  ;;  %v4656_v53 = vld [vmem:[#allocation16 + $0x5b8] sm:$0xff]  ;;  %v4663_v13 = vld [vmem:[#allocation16 + $0x5f0] sm:$0xff] }
 0x5be   :  { %8586 = vmatpush1.bf16.msra.mxu0 %v10518_v63  ;;  %v16456_v63 = vld [vmem:[#allocation62_spill] sm:$0xff] }
 0x5bf   :  { %8668 = vmatprep.subr.bf16.mxu0 %v10527_v32  ;;  %v10559_v32 = vcombine.high %v4635_v22, %v4639_v0 }
 0x5c0   :  { %9038 = vmatpush1.bf16.msra.mxu1 %v10520_v8  ;;  %v10552_v8 = vcombine.low %v4628_v20, %v4632_v34  ;;  %v4660_v20 = vld [vmem:[#allocation16 + $0x5d8] sm:$0xff] }
 0x5c1   :  { %8588 = vmatmul.mubr.bf16.vlgmr.msra.gmra.mrb[144].mxu0 %v16453_v14  ;;  %9120 = vmatprep.subr.bf16.mxu1 %v10529_v1  ;;  %v10561_v1 = vcombine.high %v4636_v42, %v4640_v15  ;;  %v4664_v34 = vld [vmem:[#allocation16 + $0x5f8] sm:$0xff] }
 0x5c2   :  { %8669 = vmatpush1.bf16.msra.mxu0 %v10526_v55  ;;  %8597 = vmatprep.mubr.bf16.mxu0 %v16454_v30  ;;  %v10558_v55 = vcombine.low %v4635_v22, %v4639_v0  ;;  %v4667_v22 = vld [vmem:[#allocation16 + $0x610] sm:$0xff] }
 0x5c3   :  { %9040 = vmatmul.mubr.bf16.vlgmr.msra.gmra.mrb[160].mxu1 %v16453_v14  ;;  %8670 = vmatprep.subr.bf16.mxu0 %v10535_v18  ;;  %v10567_v18 = vcombine.high %v4643_v52, %v4647_v62  ;;  %v16457_v14 = vld [vmem:[#allocation60_spill] sm:$0xff] }
 0x5c4   :  { %9049 = vmatprep.mubr.bf16.mxu1 %v16454_v30  ;;  %9121 = vmatpush1.bf16.msra.mxu1 %v10528_v26  ;;  %v10560_v26 = vcombine.low %v4636_v42, %v4640_v15  ;;  %v16458_v30 = vld [vmem:[#allocation66_spill] sm:$0xff]  ;;  %v4671_v0 = vld [vmem:[#allocation16 + $0x630] sm:$0xff]  ;;  %v4668_v42 = vld [vmem:[#allocation16 + $0x618] sm:$0xff] }
 0x5c5   :  { %9122 = vmatprep.subr.bf16.mxu1 %v10537_v48  ;;  %v10569_v48 = vcombine.high %v4644_v58, %v4648_v61  ;;  %v4672_v15 = vld [vmem:[#allocation16 + $0x638] sm:$0xff] }
 0x5c6   :  { %8671 = vmatpush1.bf16.msra.mxu0 %v10534_v57  ;;  %v10566_v57 = vcombine.low %v4643_v52, %v4647_v62  ;;  %v4675_v52 = vld [vmem:[#allocation16 + $0x650] sm:$0xff] }
 0x5c7   :  { %8672 = vmatprep.subr.bf16.mxu0 %v10543_v21  ;;  %v10575_v21 = vcombine.high %v4651_v49, %v4655_v10  ;;  %v4679_v62 = vld [vmem:[#allocation16 + $0x670] sm:$0xff] }
 0x5c8   :  { %9123 = vmatpush1.bf16.msra.mxu1 %v10536_v43  ;;  %v10568_v43 = vcombine.low %v4644_v58, %v4648_v61  ;;  %v4676_v58 = vld [vmem:[#allocation16 + $0x658] sm:$0xff] }
 0x5c9   :  { %8598 = vmatmul.mubr.bf16.gmra.mrb[148].mxu0 %v16455_v46  ;;  %9124 = vmatprep.subr.bf16.mxu1 %v10545_v23  ;;  %v10577_v23 = vcombine.high %v4652_v2, %v4656_v53  ;;  %v4680_v61 = vld [vmem:[#allocation16 + $0x678] sm:$0xff] }
 0x5ca   :  { %8673 = vmatpush1.bf16.msra.mxu0 %v10542_v31  ;;  %8607 = vmatprep.mubr.bf16.mxu0 %v16456_v63  ;;  %v10574_v31 = vcombine.low %v4651_v49, %v4655_v10  ;;  %v4683_v49 = vld [vmem:[#allocation16 + $0x690] sm:$0xff] }
 0x5cb   :  { %9050 = vmatmul.mubr.bf16.gmra.mrb[164].mxu1 %v16455_v46  ;;  %8674 = vmatprep.subr.bf16.mxu0 %v10551_v7  ;;  %v10583_v7 = vcombine.high %v4659_v16, %v4663_v13  ;;  %v16459_v46 = vld [vmem:[#allocation64_spill] sm:$0xff] }
 0x5cc   :  { %9059 = vmatprep.mubr.bf16.mxu1 %v16456_v63  ;;  %9125 = vmatpush1.bf16.msra.mxu1 %v10544_v37  ;;  %v10576_v37 = vcombine.low %v4652_v2, %v4656_v53  ;;  %v16460_v63 = vld [vmem:[#allocation70_spill] sm:$0xff]  ;;  %v4687_v10 = vld [vmem:[#allocation16 + $0x6b0] sm:$0xff]  ;;  %v4684_v2 = vld [vmem:[#allocation16 + $0x698] sm:$0xff] }
 0x5cd   :  { %9126 = vmatprep.subr.bf16.mxu1 %v10553_v35  ;;  %v10585_v35 = vcombine.high %v4660_v20, %v4664_v34  ;;  %v4688_v53 = vld [vmem:[#allocation16 + $0x6b8] sm:$0xff] }
 0x5ce   :  { %8675 = vmatpush1.bf16.msra.mxu0 %v10550_v56  ;;  %v10582_v56 = vcombine.low %v4659_v16, %v4663_v13  ;;  %v4691_v16 = vld [vmem:[#allocation16 + $0x6d0] sm:$0xff] }
 0x5cf   :  { %8676 = vmatprep.subr.bf16.mxu0 %v10559_v32  ;;  %v10591_v32 = vcombine.high %v4667_v22, %v4671_v0  ;;  %v4695_v13 = vld [vmem:[#allocation16 + $0x6f0] sm:$0xff] }
 0x5d0   :  { %9127 = vmatpush1.bf16.msra.mxu1 %v10552_v8  ;;  %v10584_v8 = vcombine.low %v4660_v20, %v4664_v34  ;;  %v4692_v20 = vld [vmem:[#allocation16 + $0x6d8] sm:$0xff] }
 0x5d1   :  { %8608 = vmatmul.mubr.bf16.gmra.mrb[152].mxu0 %v16457_v14  ;;  %9128 = vmatprep.subr.bf16.mxu1 %v10561_v1  ;;  %v10593_v1 = vcombine.high %v4668_v42, %v4672_v15  ;;  %v4696_v34 = vld [vmem:[#allocation16 + $0x6f8] sm:$0xff] }
 0x5d2   :  { %8677 = vmatpush1.bf16.msra.mxu0 %v10558_v55  ;;  %8617 = vmatprep.mubr.bf16.mxu0 %v16458_v30  ;;  %v10590_v55 = vcombine.low %v4667_v22, %v4671_v0  ;;  %v4699_v22 = vld [vmem:[#allocation16 + $0x710] sm:$0xff] }
 0x5d3   :  { %9060 = vmatmul.mubr.bf16.gmra.mrb[168].mxu1 %v16457_v14  ;;  %8678 = vmatprep.subr.bf16.mxu0 %v10567_v18  ;;  %v10599_v18 = vcombine.high %v4675_v52, %v4679_v62  ;;  %v16461_v14 = vld [vmem:[#allocation68_spill] sm:$0xff] }
 0x5d4   :  { %9069 = vmatprep.mubr.bf16.mxu1 %v16458_v30  ;;  %9129 = vmatpush1.bf16.msra.mxu1 %v10560_v26  ;;  %v10592_v26 = vcombine.low %v4668_v42, %v4672_v15  ;;  %v16462_v30 = vld [vmem:[#allocation36_spill] sm:$0xff]  ;;  %v4700_v42 = vld [vmem:[#allocation16 + $0x718] sm:$0xff] }
 0x5d5   :  { %9130 = vmatprep.subr.bf16.mxu1 %v10569_v48  ;;  %v10601_v48 = vcombine.high %v4676_v58, %v4680_v61  ;;  %v4703_v0 = vld [vmem:[#allocation16 + $0x730] sm:$0xff]  ;;  %v4704_v15 = vld [vmem:[#allocation16 + $0x738] sm:$0xff] }
 0x5d6   :  { %8679 = vmatpush1.bf16.msra.mxu0 %v10566_v57  ;;  %v10598_v57 = vcombine.low %v4675_v52, %v4679_v62  ;;  %v4707_v52 = vld [vmem:[#allocation16 + $0x750] sm:$0xff] }
 0x5d7   :  { %8680 = vmatprep.subr.bf16.mxu0 %v10575_v21  ;;  %v10607_v21 = vcombine.high %v4683_v49, %v4687_v10  ;;  %v4711_v62 = vld [vmem:[#allocation16 + $0x770] sm:$0xff] }
 0x5d8   :  { %9131 = vmatpush1.bf16.msra.mxu1 %v10568_v43  ;;  %v10600_v43 = vcombine.low %v4676_v58, %v4680_v61  ;;  %v4708_v58 = vld [vmem:[#allocation16 + $0x758] sm:$0xff] }
 0x5d9   :  { %8618 = vmatmul.mubr.bf16.gmra.mrb[156].mxu0 %v16459_v46  ;;  %9132 = vmatprep.subr.bf16.mxu1 %v10577_v23  ;;  %v10609_v23 = vcombine.high %v4684_v2, %v4688_v53  ;;  %v4712_v61 = vld [vmem:[#allocation16 + $0x778] sm:$0xff] }
 0x5da   :  { %8681 = vmatpush1.bf16.msra.mxu0 %v10574_v31  ;;  %8627 = vmatprep.mubr.bf16.mxu0 %v16460_v63  ;;  %v10606_v31 = vcombine.low %v4683_v49, %v4687_v10  ;;  %v4715_v49 = vld [vmem:[#allocation16 + $0x790] sm:$0xff] }
 0x5db   :  { %9070 = vmatmul.mubr.bf16.gmra.mrb[172].mxu1 %v16459_v46  ;;  %8682 = vmatprep.subr.bf16.mxu0 %v10583_v7  ;;  %v10615_v7 = vcombine.high %v4691_v16, %v4695_v13  ;;  %v16463_v46 = vld [vmem:[#allocation34_spill] sm:$0xff]  ;;  %v4719_v10 = vld [vmem:[#allocation16 + $0x7b0] sm:$0xff] }
 0x5dc   :  { %9079 = vmatprep.mubr.bf16.mxu1 %v16460_v63  ;;  %9133 = vmatpush1.bf16.msra.mxu1 %v10576_v37  ;;  %v10608_v37 = vcombine.low %v4684_v2, %v4688_v53  ;;  %v16464_v63 = vld [vmem:[#allocation38_spill] sm:$0xff]  ;;  %v4716_v2 = vld [vmem:[#allocation16 + $0x798] sm:$0xff] }
 0x5dd   :  { %9134 = vmatprep.subr.bf16.mxu1 %v10585_v35  ;;  %v10617_v35 = vcombine.high %v4692_v20, %v4696_v34  ;;  %v4720_v53 = vld [vmem:[#allocation16 + $0x7b8] sm:$0xff] }
 0x5de   :  { %8683 = vmatpush1.bf16.msra.mxu0 %v10582_v56  ;;  %v10614_v56 = vcombine.low %v4691_v16, %v4695_v13  ;;  %v4723_v16 = vld [vmem:[#allocation16 + $0x7d0] sm:$0xff] }
 0x5df   :  { %8684 = vmatprep.subr.bf16.mxu0 %v10591_v32  ;;  %v10623_v32 = vcombine.high %v4699_v22, %v4703_v0  ;;  %v4727_v13 = vld [vmem:[#allocation16 + $0x7f0] sm:$0xff] }
 0x5e0   :  { %9135 = vmatpush1.bf16.msra.mxu1 %v10584_v8  ;;  %v10616_v8 = vcombine.low %v4692_v20, %v4696_v34  ;;  %v4724_v20 = vld [vmem:[#allocation16 + $0x7d8] sm:$0xff] }
 0x5e1   :  { %8628 = vmatmul.mubr.bf16.gmra.mrb[160].mxu0 %v16461_v14  ;;  %9136 = vmatprep.subr.bf16.mxu1 %v10593_v1  ;;  %v10625_v1 = vcombine.high %v4700_v42, %v4704_v15  ;;  %v4728_v34 = vld [vmem:[#allocation16 + $0x7f8] sm:$0xff] }
 0x5e2   :  { %8685 = vmatpush1.bf16.msra.mxu0 %v10590_v55  ;;  %8637 = vmatprep.mubr.bf16.mxu0 %v16462_v30  ;;  %v10622_v55 = vcombine.low %v4699_v22, %v4703_v0  ;;  %v4731_v22 = vld [vmem:[#allocation16 + $0x810] sm:$0xff] }
 0x5e3   :  { %9080 = vmatmul.mubr.bf16.gmra.mrb[176].mxu1 %v16461_v14  ;;  %8686 = vmatprep.subr.bf16.mxu0 %v10599_v18  ;;  %v10631_v18 = vcombine.high %v4707_v52, %v4711_v62  ;;  %v16465_v14 = vld [vmem:[#allocation57_spill] sm:$0xff]  ;;  %v4735_v0 = vld [vmem:[#allocation16 + $0x830] sm:$0xff] }
 0x5e4   :  { %9089 = vmatprep.mubr.bf16.mxu1 %v16462_v30  ;;  %9137 = vmatpush1.bf16.msra.mxu1 %v10592_v26  ;;  %v10624_v26 = vcombine.low %v4700_v42, %v4704_v15  ;;  %v16466_v30 = vld [vmem:[#allocation42_spill] sm:$0xff]  ;;  %v4732_v42 = vld [vmem:[#allocation16 + $0x818] sm:$0xff] }
 0x5e5   :  { %9138 = vmatprep.subr.bf16.mxu1 %v10601_v48  ;;  %v10633_v48 = vcombine.high %v4708_v58, %v4712_v61  ;;  %v4736_v15 = vld [vmem:[#allocation16 + $0x838] sm:$0xff] }
 0x5e6   :  { %8687 = vmatpush1.bf16.msra.mxu0 %v10598_v57  ;;  %v10630_v57 = vcombine.low %v4707_v52, %v4711_v62  ;;  %v4739_v52 = vld [vmem:[#allocation16 + $0x850] sm:$0xff] }
 0x5e7   :  { %8688 = vmatprep.subr.bf16.mxu0 %v10607_v21  ;;  %v10639_v21 = vcombine.high %v4715_v49, %v4719_v10  ;;  %v4743_v62 = vld [vmem:[#allocation16 + $0x870] sm:$0xff] }
 0x5e8   :  { %9139 = vmatpush1.bf16.msra.mxu1 %v10600_v43  ;;  %v10632_v43 = vcombine.low %v4708_v58, %v4712_v61  ;;  %v4740_v58 = vld [vmem:[#allocation16 + $0x858] sm:$0xff] }
 0x5e9   :  { %8638 = vmatmul.mubr.bf16.gmra.mrb[164].mxu0 %v16463_v46  ;;  %9140 = vmatprep.subr.bf16.mxu1 %v10609_v23  ;;  %v10641_v23 = vcombine.high %v4716_v2, %v4720_v53  ;;  %v4744_v61 = vld [vmem:[#allocation16 + $0x878] sm:$0xff] }
 0x5ea   :  { %8689 = vmatpush1.bf16.msra.mxu0 %v10606_v31  ;;  %8647 = vmatprep.mubr.bf16.mxu0 %v16464_v63  ;;  %v10638_v31 = vcombine.low %v4715_v49, %v4719_v10  ;;  %v4747_v49 = vld [vmem:[#allocation16 + $0x890] sm:$0xff] }
 0x5eb   :  { %9090 = vmatmul.mubr.bf16.gmra.mrb[180].mxu1 %v16463_v46  ;;  %8690 = vmatprep.subr.bf16.mxu0 %v10615_v7  ;;  %v10647_v7 = vcombine.high %v4723_v16, %v4727_v13  ;;  %v16467_v46 = vld [vmem:[#allocation40_spill] sm:$0xff] }
 0x5ec   :  { %9099 = vmatprep.mubr.bf16.mxu1 %v16464_v63  ;;  %9141 = vmatpush1.bf16.msra.mxu1 %v10608_v37  ;;  %v10640_v37 = vcombine.low %v4716_v2, %v4720_v53  ;;  %v16468_v63 = vld [vmem:[#allocation54_spill] sm:$0xff]  ;;  %v4751_v10 = vld [vmem:[#allocation16 + $0x8b0] sm:$0xff]  ;;  %v4748_v2 = vld [vmem:[#allocation16 + $0x898] sm:$0xff] }
 0x5ed   :  { %9142 = vmatprep.subr.bf16.mxu1 %v10617_v35  ;;  %v10649_v35 = vcombine.high %v4724_v20, %v4728_v34  ;;  %v4752_v53 = vld [vmem:[#allocation16 + $0x8b8] sm:$0xff] }
 0x5ee   :  { %8691 = vmatpush1.bf16.msra.mxu0 %v10614_v56  ;;  %v10646_v56 = vcombine.low %v4723_v16, %v4727_v13  ;;  %v4755_v16 = vld [vmem:[#allocation16 + $0x8d0] sm:$0xff] }
 0x5ef   :  { %8692 = vmatprep.subr.bf16.mxu0 %v10623_v32  ;;  %v10655_v32 = vcombine.high %v4731_v22, %v4735_v0  ;;  %v4759_v13 = vld [vmem:[#allocation16 + $0x8f0] sm:$0xff] }
 0x5f0   :  { %9143 = vmatpush1.bf16.msra.mxu1 %v10616_v8  ;;  %v10648_v8 = vcombine.low %v4724_v20, %v4728_v34  ;;  %v4756_v20 = vld [vmem:[#allocation16 + $0x8d8] sm:$0xff] }
 0x5f1   :  { %8648 = vmatmul.mubr.bf16.gmra.mrb[168].mxu0 %v16465_v14  ;;  %9144 = vmatprep.subr.bf16.mxu1 %v10625_v1  ;;  %v10657_v1 = vcombine.high %v4732_v42, %v4736_v15  ;;  %v4760_v34 = vld [vmem:[#allocation16 + $0x8f8] sm:$0xff] }
 0x5f2   :  { %8693 = vmatpush1.bf16.msra.mxu0 %v10622_v55  ;;  %8657 = vmatprep.mubr.bf16.mxu0 %v16466_v30  ;;  %v10654_v55 = vcombine.low %v4731_v22, %v4735_v0  ;;  %v4763_v22 = vld [vmem:[#allocation16 + $0x910] sm:$0xff] }
 0x5f3   :  { %9100 = vmatmul.mubr.bf16.gmra.mrb[184].mxu1 %v16465_v14  ;;  %8694 = vmatprep.subr.bf16.mxu0 %v10631_v18  ;;  %v10663_v18 = vcombine.high %v4739_v52, %v4743_v62  ;;  %v16469_v14 = vld [vmem:[#allocation50_spill] sm:$0xff]  ;;  %v4767_v0 = vld [vmem:[#allocation16 + $0x930] sm:$0xff] }
 0x5f4   :  { %9109 = vmatprep.mubr.bf16.mxu1 %v16466_v30  ;;  %9145 = vmatpush1.bf16.msra.mxu1 %v10624_v26  ;;  %v10656_v26 = vcombine.low %v4732_v42, %v4736_v15  ;;  %v16470_v30 = vld [vmem:[#allocation59_spill] sm:$0xff]  ;;  %v4764_v42 = vld [vmem:[#allocation16 + $0x918] sm:$0xff] }
 0x5f5   :  { %9146 = vmatprep.subr.bf16.mxu1 %v10633_v48  ;;  %v10665_v48 = vcombine.high %v4740_v58, %v4744_v61  ;;  %v4768_v15 = vld [vmem:[#allocation16 + $0x938] sm:$0xff] }
 0x5f6   :  { %8695 = vmatpush1.bf16.msra.mxu0 %v10630_v57  ;;  %v10662_v57 = vcombine.low %v4739_v52, %v4743_v62  ;;  %v4771_v52 = vld [vmem:[#allocation16 + $0x950] sm:$0xff] }
 0x5f7   :  { %8696 = vmatprep.subr.bf16.mxu0 %v10639_v21  ;;  %v10671_v21 = vcombine.high %v4747_v49, %v4751_v10  ;;  %v4775_v62 = vld [vmem:[#allocation16 + $0x970] sm:$0xff] }
 0x5f8   :  { %9147 = vmatpush1.bf16.msra.mxu1 %v10632_v43  ;;  %v10664_v43 = vcombine.low %v4740_v58, %v4744_v61  ;;  %v4772_v58 = vld [vmem:[#allocation16 + $0x958] sm:$0xff] }
 0x5f9   :  { %8658 = vmatmul.mubr.bf16.gmra.mrb[172].mxu0 %v16467_v46  ;;  %9148 = vmatprep.subr.bf16.mxu1 %v10641_v23  ;;  %v10673_v23 = vcombine.high %v4748_v2, %v4752_v53  ;;  %v4776_v61 = vld [vmem:[#allocation16 + $0x978] sm:$0xff] }
 0x5fa   :  { %8697 = vmatpush1.bf16.msra.mxu0 %v10638_v31  ;;  %8700 = vmatprep.mubr.bf16.mxu0 %v16468_v63  ;;  %v10670_v31 = vcombine.low %v4747_v49, %v4751_v10  ;;  %v4779_v49 = vld [vmem:[#allocation16 + $0x990] sm:$0xff] }
 0x5fb   :  { %9110 = vmatmul.mubr.bf16.gmra.mrb[188].mxu1 %v16467_v46  ;;  %8698 = vmatprep.subr.bf16.mxu0 %v10647_v7  ;;  %v10679_v7 = vcombine.high %v4755_v16, %v4759_v13  ;;  %v16471_v46 = vld [vmem:[#allocation32_spill] sm:$0xff] }
 0x5fc   :  { %9149 = vmatpush1.bf16.msra.mxu1 %v10640_v37  ;;  %9152 = vmatprep.mubr.bf16.mxu1 %v16468_v63  ;;  %v10672_v37 = vcombine.low %v4748_v2, %v4752_v53  ;;  %v16472_v63 = vld [vmem:[#allocation63_spill] sm:$0xff]  ;;  %v4783_v10 = vld [vmem:[#allocation16 + $0x9b0] sm:$0xff]  ;;  %v4780_v2 = vld [vmem:[#allocation16 + $0x998] sm:$0xff] }
 0x5fd   :  { %9150 = vmatprep.subr.bf16.mxu1 %v10649_v35  ;;  %v10681_v35 = vcombine.high %v4756_v20, %v4760_v34  ;;  %v4784_v53 = vld [vmem:[#allocation16 + $0x9b8] sm:$0xff] }
 0x5fe   :  { %8699 = vmatpush1.bf16.msra.mxu0 %v10646_v56  ;;  %v10678_v56 = vcombine.low %v4755_v16, %v4759_v13  ;;  %v4787_v16 = vld [vmem:[#allocation16 + $0x9d0] sm:$0xff] }
 0x5ff   :  { %8781 = vmatprep.subr.bf16.mxu0 %v10655_v32  ;;  %v10687_v32 = vcombine.high %v4763_v22, %v4767_v0  ;;  %v4791_v13 = vld [vmem:[#allocation16 + $0x9f0] sm:$0xff] }
 0x600   :  { %9151 = vmatpush1.bf16.msra.mxu1 %v10648_v8  ;;  %v10680_v8 = vcombine.low %v4756_v20, %v4760_v34  ;;  %v4788_v20 = vld [vmem:[#allocation16 + $0x9d8] sm:$0xff] }
 0x601   :  { %8701 = vmatmul.mubr.bf16.vlgmr.msra.gmra.mrb[144].mxu0 %v16469_v14  ;;  %9233 = vmatprep.subr.bf16.mxu1 %v10657_v1  ;;  %v10689_v1 = vcombine.high %v4764_v42, %v4768_v15  ;;  %v4792_v34 = vld [vmem:[#allocation16 + $0x9f8] sm:$0xff] }
 0x602   :  { %8782 = vmatpush1.bf16.msra.mxu0 %v10654_v55  ;;  %8710 = vmatprep.mubr.bf16.mxu0 %v16470_v30  ;;  %v10686_v55 = vcombine.low %v4763_v22, %v4767_v0  ;;  %v4795_v22 = vld [vmem:[#allocation16 + $0xa10] sm:$0xff] }
 0x603   :  { %9153 = vmatmul.mubr.bf16.vlgmr.msra.gmra.mrb[160].mxu1 %v16469_v14  ;;  %8783 = vmatprep.subr.bf16.mxu0 %v10663_v18  ;;  %v10695_v18 = vcombine.high %v4771_v52, %v4775_v62  ;;  %v16473_v14 = vld [vmem:[#allocation61_spill] sm:$0xff]  ;;  %v4799_v0 = vld [vmem:[#allocation16 + $0xa30] sm:$0xff] }
 0x604   :  { %9162 = vmatprep.mubr.bf16.mxu1 %v16470_v30  ;;  %9234 = vmatpush1.bf16.msra.mxu1 %v10656_v26  ;;  %v10688_v26 = vcombine.low %v4764_v42, %v4768_v15  ;;  %v16474_v30 = vld [vmem:[#allocation67_spill] sm:$0xff]  ;;  %v4796_v42 = vld [vmem:[#allocation16 + $0xa18] sm:$0xff] }
 0x605   :  { %9235 = vmatprep.subr.bf16.mxu1 %v10665_v48  ;;  %v10697_v48 = vcombine.high %v4772_v58, %v4776_v61  ;;  %v4800_v15 = vld [vmem:[#allocation16 + $0xa38] sm:$0xff] }
 0x606   :  { %8784 = vmatpush1.bf16.msra.mxu0 %v10662_v57  ;;  %v10694_v57 = vcombine.low %v4771_v52, %v4775_v62  ;;  %v4803_v52 = vld [vmem:[#allocation16 + $0xa50] sm:$0xff] }
 0x607   :  { %8785 = vmatprep.subr.bf16.mxu0 %v10671_v21  ;;  %v10703_v21 = vcombine.high %v4779_v49, %v4783_v10  ;;  %v4807_v62 = vld [vmem:[#allocation16 + $0xa70] sm:$0xff] }
 0x608   :  { %9236 = vmatpush1.bf16.msra.mxu1 %v10664_v43  ;;  %v10696_v43 = vcombine.low %v4772_v58, %v4776_v61  ;;  %v4804_v58 = vld [vmem:[#allocation16 + $0xa58] sm:$0xff] }
 0x609   :  { %8711 = vmatmul.mubr.bf16.gmra.mrb[148].mxu0 %v16471_v46  ;;  %9237 = vmatprep.subr.bf16.mxu1 %v10673_v23  ;;  %v10705_v23 = vcombine.high %v4780_v2, %v4784_v53  ;;  %v4808_v61 = vld [vmem:[#allocation16 + $0xa78] sm:$0xff] }
 0x60a   :  { %8786 = vmatpush1.bf16.msra.mxu0 %v10670_v31  ;;  %8720 = vmatprep.mubr.bf16.mxu0 %v16472_v63  ;;  %v10702_v31 = vcombine.low %v4779_v49, %v4783_v10  ;;  %v4811_v49 = vld [vmem:[#allocation16 + $0xa90] sm:$0xff] }
 0x60b   :  { %9163 = vmatmul.mubr.bf16.gmra.mrb[164].mxu1 %v16471_v46  ;;  %8787 = vmatprep.subr.bf16.mxu0 %v10679_v7  ;;  %v10711_v7 = vcombine.high %v4787_v16, %v4791_v13  ;;  %v16475_v46 = vld [vmem:[#allocation65_spill] sm:$0xff]  ;;  %v4815_v10 = vld [vmem:[#allocation16 + $0xab0] sm:$0xff] }
 0x60c   :  { %9172 = vmatprep.mubr.bf16.mxu1 %v16472_v63  ;;  %9238 = vmatpush1.bf16.msra.mxu1 %v10672_v37  ;;  %v10704_v37 = vcombine.low %v4780_v2, %v4784_v53  ;;  %v16476_v63 = vld [vmem:[#allocation33_spill] sm:$0xff] }
 0x60d   :  { %9239 = vmatprep.subr.bf16.mxu1 %v10681_v35  ;;  %v10713_v35 = vcombine.high %v4788_v20, %v4792_v34  ;;  %v4812_v2 = vld [vmem:[#allocation16 + $0xa98] sm:$0xff] }
 0x60e   :  { %8788 = vmatpush1.bf16.msra.mxu0 %v10678_v56  ;;  %v10710_v56 = vcombine.low %v4787_v16, %v4791_v13  ;;  %v4816_v53 = vld [vmem:[#allocation16 + $0xab8] sm:$0xff]  ;;  %v4819_v16 = vld [vmem:[#allocation16 + $0xad0] sm:$0xff] }
 0x60f   :  { %8789 = vmatprep.subr.bf16.mxu0 %v10687_v32  ;;  %v10719_v32 = vcombine.high %v4795_v22, %v4799_v0  ;;  %v4823_v13 = vld [vmem:[#allocation16 + $0xaf0] sm:$0xff] }
 0x610   :  { %9240 = vmatpush1.bf16.msra.mxu1 %v10680_v8  ;;  %v10712_v8 = vcombine.low %v4788_v20, %v4792_v34  ;;  %v4820_v20 = vld [vmem:[#allocation16 + $0xad8] sm:$0xff] }
 0x611   :  { %8721 = vmatmul.mubr.bf16.gmra.mrb[152].mxu0 %v16473_v14  ;;  %9241 = vmatprep.subr.bf16.mxu1 %v10689_v1  ;;  %v10721_v1 = vcombine.high %v4796_v42, %v4800_v15  ;;  %v4824_v34 = vld [vmem:[#allocation16 + $0xaf8] sm:$0xff] }
 0x612   :  { %8790 = vmatpush1.bf16.msra.mxu0 %v10686_v55  ;;  %8730 = vmatprep.mubr.bf16.mxu0 %v16474_v30  ;;  %v10718_v55 = vcombine.low %v4795_v22, %v4799_v0  ;;  %v4827_v22 = vld [vmem:[#allocation16 + $0xb10] sm:$0xff] }
 0x613   :  { %9173 = vmatmul.mubr.bf16.gmra.mrb[168].mxu1 %v16473_v14  ;;  %8791 = vmatprep.subr.bf16.mxu0 %v10695_v18  ;;  %v10727_v18 = vcombine.high %v4803_v52, %v4807_v62  ;;  %v16477_v14 = vld [vmem:[#allocation69_spill] sm:$0xff]  ;;  %v4831_v0 = vld [vmem:[#allocation16 + $0xb30] sm:$0xff] }
 0x614   :  { %9182 = vmatprep.mubr.bf16.mxu1 %v16474_v30  ;;  %9242 = vmatpush1.bf16.msra.mxu1 %v10688_v26  ;;  %v10720_v26 = vcombine.low %v4796_v42, %v4800_v15  ;;  %v16478_v30 = vld [vmem:[#allocation37_spill] sm:$0xff] }
 0x615   :  { %9243 = vmatprep.subr.bf16.mxu1 %v10697_v48  ;;  %v10729_v48 = vcombine.high %v4804_v58, %v4808_v61  ;;  %v4828_v42 = vld [vmem:[#allocation16 + $0xb18] sm:$0xff] }
 0x616   :  { %8792 = vmatpush1.bf16.msra.mxu0 %v10694_v57  ;;  %v10726_v57 = vcombine.low %v4803_v52, %v4807_v62  ;;  %v4832_v15 = vld [vmem:[#allocation16 + $0xb38] sm:$0xff]  ;;  %v4835_v52 = vld [vmem:[#allocation16 + $0xb50] sm:$0xff] }
 0x617   :  { %8793 = vmatprep.subr.bf16.mxu0 %v10703_v21  ;;  %v10735_v21 = vcombine.high %v4811_v49, %v4815_v10  ;;  %v4839_v62 = vld [vmem:[#allocation16 + $0xb70] sm:$0xff] }
 0x618   :  { %9244 = vmatpush1.bf16.msra.mxu1 %v10696_v43  ;;  %v10728_v43 = vcombine.low %v4804_v58, %v4808_v61  ;;  %v4836_v58 = vld [vmem:[#allocation16 + $0xb58] sm:$0xff] }
 0x619   :  { %8731 = vmatmul.mubr.bf16.gmra.mrb[156].mxu0 %v16475_v46  ;;  %9245 = vmatprep.subr.bf16.mxu1 %v10705_v23  ;;  %v10737_v23 = vcombine.high %v4812_v2, %v4816_v53  ;;  %v4840_v61 = vld [vmem:[#allocation16 + $0xb78] sm:$0xff] }
 0x61a   :  { %8794 = vmatpush1.bf16.msra.mxu0 %v10702_v31  ;;  %8740 = vmatprep.mubr.bf16.mxu0 %v16476_v63  ;;  %v10734_v31 = vcombine.low %v4811_v49, %v4815_v10  ;;  %v4843_v49 = vld [vmem:[#allocation16 + $0xb90] sm:$0xff] }
 0x61b   :  { %9183 = vmatmul.mubr.bf16.gmra.mrb[172].mxu1 %v16475_v46  ;;  %8795 = vmatprep.subr.bf16.mxu0 %v10711_v7  ;;  %v10743_v7 = vcombine.high %v4819_v16, %v4823_v13  ;;  %v16479_v46 = vld [vmem:[#allocation35_spill] sm:$0xff]  ;;  %v4847_v10 = vld [vmem:[#allocation16 + $0xbb0] sm:$0xff] }
 0x61c   :  { %9192 = vmatprep.mubr.bf16.mxu1 %v16476_v63  ;;  %9246 = vmatpush1.bf16.msra.mxu1 %v10704_v37  ;;  %v10736_v37 = vcombine.low %v4812_v2, %v4816_v53  ;;  %v16480_v63 = vld [vmem:[#allocation39_spill] sm:$0xff]  ;;  %v4844_v2 = vld [vmem:[#allocation16 + $0xb98] sm:$0xff] }
 0x61d   :  { %9247 = vmatprep.subr.bf16.mxu1 %v10713_v35  ;;  %v10745_v35 = vcombine.high %v4820_v20, %v4824_v34  ;;  %v4848_v53 = vld [vmem:[#allocation16 + $0xbb8] sm:$0xff] }
 0x61e   :  { %8796 = vmatpush1.bf16.msra.mxu0 %v10710_v56  ;;  %v10742_v56 = vcombine.low %v4819_v16, %v4823_v13  ;;  %v4851_v16 = vld [vmem:[#allocation16 + $0xbd0] sm:$0xff] }
 0x61f   :  { %8797 = vmatprep.subr.bf16.mxu0 %v10719_v32  ;;  %v10751_v32 = vcombine.high %v4827_v22, %v4831_v0  ;;  %v4855_v13 = vld [vmem:[#allocation16 + $0xbf0] sm:$0xff] }
 0x620   :  { %9248 = vmatpush1.bf16.msra.mxu1 %v10712_v8  ;;  %v10744_v8 = vcombine.low %v4820_v20, %v4824_v34  ;;  %v4852_v20 = vld [vmem:[#allocation16 + $0xbd8] sm:$0xff] }
 0x621   :  { %8741 = vmatmul.mubr.bf16.gmra.mrb[160].mxu0 %v16477_v14  ;;  %9249 = vmatprep.subr.bf16.mxu1 %v10721_v1  ;;  %v10753_v1 = vcombine.high %v4828_v42, %v4832_v15  ;;  %v4856_v34 = vld [vmem:[#allocation16 + $0xbf8] sm:$0xff] }
 0x622   :  { %8798 = vmatpush1.bf16.msra.mxu0 %v10718_v55  ;;  %8750 = vmatprep.mubr.bf16.mxu0 %v16478_v30  ;;  %v10750_v55 = vcombine.low %v4827_v22, %v4831_v0  ;;  %v4859_v22 = vld [vmem:[#allocation16 + $0xc10] sm:$0xff] }
 0x623   :  { %9193 = vmatmul.mubr.bf16.gmra.mrb[176].mxu1 %v16477_v14  ;;  %8799 = vmatprep.subr.bf16.mxu0 %v10727_v18  ;;  %v10759_v18 = vcombine.high %v4835_v52, %v4839_v62  ;;  %v16481_v14 = vld [vmem:[#allocation56_spill] sm:$0xff] }
 0x624   :  { %9202 = vmatprep.mubr.bf16.mxu1 %v16478_v30  ;;  %9250 = vmatpush1.bf16.msra.mxu1 %v10720_v26  ;;  %v10752_v26 = vcombine.low %v4828_v42, %v4832_v15  ;;  %v16482_v30 = vld [vmem:[#allocation43_spill] sm:$0xff]  ;;  %v4863_v0 = vld [vmem:[#allocation16 + $0xc30] sm:$0xff]  ;;  %v4860_v42 = vld [vmem:[#allocation16 + $0xc18] sm:$0xff] }
 0x625   :  { %9251 = vmatprep.subr.bf16.mxu1 %v10729_v48  ;;  %v10761_v48 = vcombine.high %v4836_v58, %v4840_v61  ;;  %v4864_v15 = vld [vmem:[#allocation16 + $0xc38] sm:$0xff] }
 0x626   :  { %8800 = vmatpush1.bf16.msra.mxu0 %v10726_v57  ;;  %v10758_v57 = vcombine.low %v4835_v52, %v4839_v62  ;;  %v4867_v52 = vld [vmem:[#allocation16 + $0xc50] sm:$0xff] }
 0x627   :  { %8801 = vmatprep.subr.bf16.mxu0 %v10735_v21  ;;  %v10767_v21 = vcombine.high %v4843_v49, %v4847_v10  ;;  %v4871_v62 = vld [vmem:[#allocation16 + $0xc70] sm:$0xff] }
 0x628   :  { %9252 = vmatpush1.bf16.msra.mxu1 %v10728_v43  ;;  %v10760_v43 = vcombine.low %v4836_v58, %v4840_v61  ;;  %v4868_v58 = vld [vmem:[#allocation16 + $0xc58] sm:$0xff] }
 0x629   :  { %8751 = vmatmul.mubr.bf16.gmra.mrb[164].mxu0 %v16479_v46  ;;  %9253 = vmatprep.subr.bf16.mxu1 %v10737_v23  ;;  %v10769_v23 = vcombine.high %v4844_v2, %v4848_v53  ;;  %v4872_v61 = vld [vmem:[#allocation16 + $0xc78] sm:$0xff] }
 0x62a   :  { %8802 = vmatpush1.bf16.msra.mxu0 %v10734_v31  ;;  %8760 = vmatprep.mubr.bf16.mxu0 %v16480_v63  ;;  %v10766_v31 = vcombine.low %v4843_v49, %v4847_v10  ;;  %v4875_v49 = vld [vmem:[#allocation16 + $0xc90] sm:$0xff] }
 0x62b   :  { %9203 = vmatmul.mubr.bf16.gmra.mrb[180].mxu1 %v16479_v46  ;;  %8803 = vmatprep.subr.bf16.mxu0 %v10743_v7  ;;  %v10775_v7 = vcombine.high %v4851_v16, %v4855_v13  ;;  %v16483_v46 = vld [vmem:[#allocation41_spill] sm:$0xff]  ;;  %v4879_v10 = vld [vmem:[#allocation16 + $0xcb0] sm:$0xff] }
 0x62c   :  { %9212 = vmatprep.mubr.bf16.mxu1 %v16480_v63  ;;  %9254 = vmatpush1.bf16.msra.mxu1 %v10736_v37  ;;  %v10768_v37 = vcombine.low %v4844_v2, %v4848_v53  ;;  %v16484_v63 = vld [vmem:[#allocation44_spill] sm:$0xff]  ;;  %v10799_v2 = vcombine.high %v4875_v49, %v4879_v10  ;;  %v15339_v53 = vcombine.low %v4868_v58, %v4872_v61 }
 0x62d   :  { %9255 = vmatprep.subr.bf16.mxu1 %v10745_v35  ;;  %v10777_v35 = vcombine.high %v4852_v20, %v4856_v34 }
 0x62e   :  { %8804 = vmatpush1.bf16.msra.mxu0 %v10742_v56  ;;  %v10774_v56 = vcombine.low %v4851_v16, %v4855_v13  ;;  %v10798_v13 = vcombine.low %v4875_v49, %v4879_v10  ;;  %v16487_v10 = vld [vmem:[#allocation48_spill] sm:$0xff] }
 0x62f   :  { %8805 = vmatprep.subr.bf16.mxu0 %v10751_v32  ;;  %v10783_v32 = vcombine.high %v4859_v22, %v4863_v0 }
 0x630   :  { %9256 = vmatpush1.bf16.msra.mxu1 %v10744_v8  ;;  %v10776_v8 = vcombine.low %v4852_v20, %v4856_v34  ;;  %v4895_v34 = vld [vmem:[#allocation16 + $0xd30] sm:$0xff] }
 0x631   :  { %8761 = vmatmul.mubr.bf16.gmra.mrb[168].mxu0 %v16481_v14  ;;  %9257 = vmatprep.subr.bf16.mxu1 %v10753_v1  ;;  %v15327_v1 = vcombine.high %v4860_v42, %v4864_v15 }
 0x632   :  { %8806 = vmatpush1.bf16.msra.mxu0 %v10750_v55  ;;  %8770 = vmatprep.mubr.bf16.mxu0 %v16482_v30  ;;  %v10782_v55 = vcombine.low %v4859_v22, %v4863_v0  ;;  %v4892_v22 = vld [vmem:[#allocation16 + $0xd18] sm:$0xff] }
 0x633   :  { %9213 = vmatmul.mubr.bf16.gmra.mrb[184].mxu1 %v16481_v14  ;;  %8807 = vmatprep.subr.bf16.mxu0 %v10759_v18  ;;  %v10791_v18 = vcombine.high %v4867_v52, %v4871_v62  ;;  %v15333_v14 = vcombine.high %v4868_v58, %v4872_v61  ;;  %v4896_v0 = vld [vmem:[#allocation16 + $0xd38] sm:$0xff]  ;;  %v16486_v61 = vld [vmem:[#allocation28_spill] sm:$0xff] }
 0x634   :  { %9222 = vmatprep.mubr.bf16.mxu1 %v16482_v30  ;;  %9258 = vmatpush1.bf16.msra.mxu1 %v10752_v26  ;;  %v15329_v26 = vcombine.low %v4860_v42, %v4864_v15  ;;  %v4876_v30 = vld [vmem:[#allocation16 + $0xc98] sm:$0xff]  ;;  %v15358_v42 = vcombine.high %v4892_v22, %v4896_v0 }
 0x635   :  { %9259 = vmatprep.subr.bf16.mxu1 %v10761_v48  ;;  %v10790_v48 = vcombine.low %v4867_v52, %v4871_v62  ;;  %v4904_v52 = vld [vmem:[#allocation16 + $0xd78] sm:$0xff]  ;;  %v4907_v62 = vld [vmem:[#allocation16 + $0xd90] sm:$0xff] }
 0x636   :  { %8808 = vmatpush1.bf16.msra.mxu0 %v10758_v57  ;;  %v4880_v57 = vld [vmem:[#allocation16 + $0xcb8] sm:$0xff] }
 0x637   :  { %8809 = vmatprep.subr.bf16.mxu0 %v10767_v21  ;;  %v4883_v21 = vld [vmem:[#allocation16 + $0xcd0] sm:$0xff]  ;;  %v15342_v16 = vcombine.high %v4876_v30, %v4880_v57  ;;  %v15345_v20 = vcombine.low %v4876_v30, %v4880_v57  ;;  %v16485_v58 = vld [vmem:[#allocation45_spill] sm:$0xff] }
 0x638   :  { %9260 = vmatpush1.bf16.msra.mxu1 %v10760_v43  ;;  %v4887_v43 = vld [vmem:[#allocation16 + $0xcf0] sm:$0xff] }
 0x639   :  { %8771 = vmatmul.mubr.bf16.gmra.mrb[172].mxu0 %v16483_v46  ;;  %9261 = vmatprep.subr.bf16.mxu1 %v10769_v23  ;;  %v4884_v23 = vld [vmem:[#allocation16 + $0xcd8] sm:$0xff] }
 0x63a   :  { %8810 = vmatpush1.bf16.msra.mxu0 %v10766_v31  ;;  %8813 = vmatprep.mubr.bf16.mxu0 %v16484_v63  ;;  %v4888_v31 = vld [vmem:[#allocation16 + $0xcf8] sm:$0xff] }
 0x63b   :  { %9223 = vmatmul.mubr.bf16.gmra.mrb[188].mxu1 %v16483_v46  ;;  %8811 = vmatprep.subr.bf16.mxu0 %v10775_v7  ;;  %v15349_v7 = vcombine.high %v4884_v23, %v4888_v31 }
 0x63c   :  { %9262 = vmatpush1.bf16.msra.mxu1 %v10768_v37  ;;  %9265 = vmatprep.mubr.bf16.mxu1 %v16484_v63  ;;  %v10806_v37 = vcombine.low %v4883_v21, %v4887_v43  ;;  %v4899_v63 = vld [vmem:[#allocation16 + $0xd50] sm:$0xff] }
 0x63d   :  { %9263 = vmatprep.subr.bf16.mxu1 %v10777_v35  ;;  %v15355_v35 = vcombine.low %v4884_v23, %v4888_v31  ;;  %v16490_v23 = vld [vmem:[#allocation31_spill] sm:$0xff] }
 0x63e   :  { %8812 = vmatpush1.bf16.msra.mxu0 %v10774_v56  ;;  %v4903_v56 = vld [vmem:[#allocation16 + $0xd70] sm:$0xff] }
 0x63f   :  { %8894 = vmatprep.subr.bf16.mxu0 %v10783_v32  ;;  %v4985_v32 = vld [vmem:[#allocation17] sm:$0xff]  ;;  %v10822_v57 = vcombine.low %v4899_v63, %v4903_v56 }
 0x640   :  { %9264 = vmatpush1.bf16.msra.mxu1 %v10776_v8  ;;  %v4900_v8 = vld [vmem:[#allocation16 + $0xd58] sm:$0xff]  ;;  %v15379_v31 = vrot.slane %v4985_v32, %v16490_v23 }
 0x641   :  { %8814 = vmatmul.mubr.bf16.vlgmr.msra.gmra.mrb[144].mxu0 %v14826_v17  ;;  %11126 = vmatprep.subr.bf16.mxu1 %v15327_v1  ;;  %v15368_v49 = vcombine.high %v4900_v8, %v4904_v52 }
 0x642   :  { %8895 = vmatpush1.bf16.msra.mxu0 %v10782_v55  ;;  %8823 = vmatprep.mubr.bf16.mxu0 %v14891_v54  ;;  %v4911_v55 = vld [vmem:[#allocation16 + $0xdb0] sm:$0xff] }
 0x643   :  { %9266 = vmatmul.mubr.bf16.vlgmr.msra.gmra.mrb[160].mxu1 %v14826_v17  ;;  %8896 = vmatprep.subr.bf16.mxu0 %v10791_v18  ;;  %v10807_v17 = vcombine.high %v4883_v21, %v4887_v43  ;;  %v15366_v18 = vrot.slane %v4985_v32, %v16486_v61  ;;  %v4908_v43 = vld [vmem:[#allocation16 + $0xd98] sm:$0xff]  ;;  %v10830_v61 = vcombine.low %v4907_v62, %v4911_v55 }
 0x644   :  { %9275 = vmatprep.mubr.bf16.mxu1 %v14891_v54  ;;  %11142 = vmatpush1.bf16.msra.mxu1 %v15329_v26  ;;  %v4891_v54 = vld [vmem:[#allocation16 + $0xd10] sm:$0xff] }
 0x645   :  { %11127 = vmatprep.subr.bf16.mxu1 %v15333_v14  ;;  %v10815_v46 = vcombine.high %v4891_v54, %v4895_v34  ;;  %v10814_v15 = vcombine.low %v4891_v54, %v4895_v34  ;;  %v15383_v34 = vcombine.low %v4900_v8, %v4904_v52  ;;  %v4916_v8 = vld [vmem:[#allocation16 + $0xdd8] sm:$0xff] }
 0x646   :  { %8897 = vmatpush1.bf16.msra.mxu0 %v10790_v48  ;;  %v16488_v48 = vld [vmem:[#allocation30_spill] sm:$0xff]  ;;  %v4920_v52 = vld [vmem:[#allocation16 + $0xdf8] sm:$0xff] }
 0x647   :  { %8898 = vmatprep.subr.bf16.mxu0 %v10799_v2  ;;  %v15372_v30 = vrot.slane %v4985_v32, %v16488_v48  ;;  %v16489_v2 = vld [vmem:[#allocation29_spill] sm:$0xff] }
 0x648   :  { %11143 = vmatpush1.bf16.msra.mxu1 %v15339_v53  ;;  %v15375_v21 = vrot.slane %v4985_v32, %v16489_v2 }
 0x649   :  { %8824 = vmatmul.mubr.bf16.gmra.mrb[148].mxu0 %v14873_v50  ;;  %11128 = vmatprep.subr.bf16.mxu1 %v15342_v16 }
 0x64a   :  { %8899 = vmatpush1.bf16.msra.mxu0 %v10798_v13  ;;  %8833 = vmatprep.mubr.bf16.mxu0 %v14934_v28  ;;  %v4912_v13 = vld [vmem:[#allocation16 + $0xdb8] sm:$0xff] }
 0x64b   :  { %9276 = vmatmul.mubr.bf16.gmra.mrb[164].mxu1 %v14873_v50  ;;  %8900 = vmatprep.subr.bf16.mxu0 %v10807_v17  ;;  %v10823_v50 = vcombine.high %v4899_v63, %v4903_v56  ;;  %v10831_v17 = vcombine.high %v4907_v62, %v4911_v55  ;;  %v15387_v56 = vcombine.high %v4908_v43, %v4912_v13  ;;  %v15397_v62 = vld [vmem:[#allocation16 + $0xe10] sm:$0xff] }
 0x64c   :  { %9285 = vmatprep.mubr.bf16.mxu1 %v14934_v28  ;;  %11144 = vmatpush1.bf16.msra.mxu1 %v15345_v20  ;;  %v15361_v28 = vcombine.low %v4892_v22, %v4896_v0  ;;  %v4919_v22 = vld [vmem:[#allocation16 + $0xdf0] sm:$0xff] }
 0x64d   :  { %11129 = vmatprep.subr.bf16.mxu1 %v15349_v7  ;;  %v4927_v55 = vld [vmem:[#allocation16 + $0xe30] sm:$0xff] }
 0x64e   :  { %8901 = vmatpush1.bf16.msra.mxu0 %v10806_v37  ;;  %v4915_v37 = vld [vmem:[#allocation16 + $0xdd0] sm:$0xff] }
 0x64f   :  { %8902 = vmatprep.subr.bf16.mxu0 %v10815_v46 }
 0x650   :  { %11145 = vmatpush1.bf16.msra.mxu1 %v15355_v35 }
 0x651   :  { %8834 = vmatmul.mubr.bf16.gmra.mrb[152].mxu0 %v16485_v58  ;;  %11130 = vmatprep.subr.bf16.mxu1 %v15358_v42 }
 0x652   :  { %8903 = vmatpush1.bf16.msra.mxu0 %v10814_v15  ;;  %8843 = vmatprep.mubr.bf16.mxu0 %v16487_v10 }
 0x653   :  { %9286 = vmatmul.mubr.bf16.gmra.mrb[168].mxu1 %v16485_v58  ;;  %8904 = vmatprep.subr.bf16.mxu0 %v10823_v50 }
 0x654   :  { %9295 = vmatprep.mubr.bf16.mxu1 %v16487_v10  ;;  %11146 = vmatpush1.bf16.msra.mxu1 %v15361_v28  ;;  %v8024_v54 = vpop.f32.mrb[112].mxu0 }
 0x655   :  { %v11286_v0 = vadd.f32 %v8024_v54, %v15366_v18  ;;  %v8476_v46 = vpop.f32.mrb[128].mxu1  ;;  %v8026_v63 = vpop.f32.mrb[113].mxu0  ;;  %11131 = vmatprep.subr.bf16.mxu1 %v15368_v49  ;;  %v10839_v54 = vcombine.high %v4915_v37, %v4919_v22 }
 0x656   :  { %v11318_v15 = vadd.f32 %v8476_v46, %v15372_v30  ;;  %v11287_v32 = vadd.f32 %v8026_v63, %v15375_v21  ;;  %v8478_v50 = vpop.f32.mrb[129].mxu1  ;;  %8905 = vmatpush1.bf16.msra.mxu0 %v10822_v57  ;;  %v8028_v58 = vpop.f32.mrb[114].mxu0  ;;  %v15395_v57 = vcombine.low %v4908_v43, %v4912_v13  ;;  %v10838_v43 = vcombine.low %v4915_v37, %v4919_v22  ;;  %v4924_v13 = vld [vmem:[#allocation16 + $0xe18] sm:$0xff] }
 0x657   :  { %12040 = vtanh.f32 %v11286_v0  ;;  %v11319_v10 = vadd.f32 %v8478_v50, %v15379_v31  ;;  %v11288_v48 = vadd.f32 %v8028_v58, %v15366_v18  ;;  %v8480_v2 = vpop.f32.mrb[130].mxu1  ;;  %v8030_v23 = vpop.f32.mrb[115].mxu0  ;;  %8906 = vmatprep.subr.bf16.mxu0 %v10831_v17  ;;  %v15402_v17 = vcombine.high %v4916_v8, %v4920_v52  ;;  %v4928_v50 = vld [vmem:[#allocation16 + $0xe38] sm:$0xff] }
 0x658   :  { %12042 = vtanh.f32 %v11318_v15  ;;  %v11320_v46 = vadd.f32 %v8480_v2, %v15372_v30  ;;  %11147 = vmatpush1.bf16.msra.mxu1 %v15383_v34  ;;  %v8482_v63 = vpop.f32.mrb[131].mxu1  ;;  %v11289_v0 = vadd.f32 %v8030_v23, %v15375_v21  ;;  %v15414_v2 = vld [vmem:[#allocation16 + $0xe70] sm:$0xff] }
 0x659   :  { %12044 = vtanh.f32 %v11287_v32  ;;  %8844 = vmatmul.mubr.bf16.gmra.mrb[156].mxu0 %v14975_v41  ;;  %11132 = vmatprep.subr.bf16.mxu1 %v15387_v56  ;;  %v11321_v15 = vadd.f32 %v8482_v63, %v15379_v31  ;;  %v10847_v32 = vcombine.high %v15397_v62, %v4927_v55  ;;  %v4936_v63 = vld [vmem:[#allocation16 + $0xe78] sm:$0xff] }
 0x65a   :  { %12046 = vtanh.f32 %v11319_v10  ;;  %8907 = vmatpush1.bf16.msra.mxu0 %v10830_v61  ;;  %8853 = vmatprep.mubr.bf16.mxu0 %v15032_v38  ;;  %v15410_v10 = vcombine.low %v4916_v8, %v4920_v52  ;;  %v15412_v61 = vld [vmem:[#allocation16 + $0xe50] sm:$0xff] }
 0x65b   :  { %12048 = vtanh.f32 %v11288_v48  ;;  %9296 = vmatmul.mubr.bf16.gmra.mrb[172].mxu1 %v14975_v41  ;;  %8908 = vmatprep.subr.bf16.mxu0 %v10839_v54  ;;  %v15418_v48 = vcombine.high %v4924_v13, %v4928_v50  ;;  %v10846_v54 = vcombine.low %v15397_v62, %v4927_v55  ;;  %v15429_v62 = vcombine.low %v4924_v13, %v4928_v50  ;;  %v15431_v55 = vld [vmem:[#allocation16 + $0xe90] sm:$0xff]  ;;  %v4940_v50 = vld [vmem:[#allocation16 + $0xe98] sm:$0xff] }
 0x65c   :  { %12050 = vtanh.f32 %v11320_v46  ;;  %9305 = vmatprep.mubr.bf16.mxu1 %v15032_v38  ;;  %11148 = vmatpush1.bf16.msra.mxu1 %v15395_v57  ;;  %v8034_v58 = vpop.f32.mrb[116].mxu0  ;;  %16491 = vst [vmem:[#allocation73_spill] sm:$0xff] %v15410_v10  ;;  %v4932_v46 = vld [vmem:[#allocation16 + $0xe58] sm:$0xff]  ;;  %v10854_v13 = vcombine.low %v15412_v61, %v15414_v2 }
 0x65d   :  { %12052 = vtanh.f32 %v11289_v0  ;;  %v11290_v37 = vadd.f32 %v8034_v58, %v15366_v18  ;;  %v8486_v22 = vpop.f32.mrb[132].mxu1  ;;  %v8036_v41 = vpop.f32.mrb[117].mxu0  ;;  %11133 = vmatprep.subr.bf16.mxu1 %v15402_v17  ;;  %16492 = vst [vmem:[#allocation74_spill] sm:$0xff] %v15418_v48  ;;  %16493 = vst [vmem:[#allocation75_spill] sm:$0xff] %v15429_v62 }
 0x65e   :  { %12054 = vtanh.f32 %v11321_v15  ;;  %v11322_v38 = vadd.f32 %v8486_v22, %v15372_v30  ;;  %v11291_v23 = vadd.f32 %v8036_v41, %v15375_v21  ;;  %v8488_v8 = vpop.f32.mrb[133].mxu1  ;;  %8909 = vmatpush1.bf16.msra.mxu0 %v10838_v43  ;;  %v8038_v52 = vpop.f32.mrb[118].mxu0  ;;  %v10855_v15 = vcombine.high %v15412_v61, %v15414_v2  ;;  %v15451_v61 = vld [vmem:[#allocation16 + $0xed0] sm:$0xff] }
 0x65f   :  { %12056 = vtanh.f32 %v11290_v37  ;;  %v11323_v0 = vadd.f32 %v8488_v8, %v15379_v31  ;;  %v11292_v58 = vadd.f32 %v8038_v52, %v15366_v18  ;;  %v8490_v4 = vpop.f32.mrb[134].mxu1  ;;  %v8040_v45 = vpop.f32.mrb[119].mxu0  ;;  %8910 = vmatprep.subr.bf16.mxu0 %v10847_v32  ;;  %v15433_v37 = vld [vmem:[#allocation16 + $0xeb0] sm:$0xff]  ;;  %v15438_v32 = vcombine.high %v4932_v46, %v4936_v63 }
 0x660   :  { %12058 = vtanh.f32 %v11322_v38  ;;  %v11324_v22 = vadd.f32 %v8490_v4, %v15372_v30  ;;  %11149 = vmatpush1.bf16.msra.mxu1 %v15410_v10  ;;  %v8492_v43 = vpop.f32.mrb[135].mxu1  ;;  %v11293_v8 = vadd.f32 %v8040_v45, %v15375_v21  ;;  %v10863_v45 = vcombine.high %v15431_v55, %v15433_v37  ;;  %v15453_v2 = vld [vmem:[#allocation16 + $0xef0] sm:$0xff]  ;;  %v16496_v10 = vld [vmem:[#allocation49_spill] sm:$0xff] }
 0x661   :  { %v12041_v41 = vpop.eup %12040  ;;  %12060 = vtanh.f32 %v11291_v23  ;;  %8854 = vmatmul.mubr.bf16.gmra.mrb[160].mxu0 %v15023_v60  ;;  %11134 = vmatprep.subr.bf16.mxu1 %v15418_v48  ;;  %16494 = vst [vmem:[#allocation76_spill] sm:$0xff] %v15438_v32  ;;  %v11325_v38 = vadd.f32 %v8492_v43, %v15379_v31  ;;  %v4944_v23 = vld [vmem:[#allocation16 + $0xeb8] sm:$0xff]  ;;  %v15449_v43 = vcombine.low %v4932_v46, %v4936_v63 }
 0x662   :  { %v12043_v4 = vpop.eup %12042  ;;  %12062 = vtanh.f32 %v11323_v0  ;;  %8911 = vmatpush1.bf16.msra.mxu0 %v10846_v54  ;;  %8863 = vmatprep.mubr.bf16.mxu0 %v15080_v51 }
 0x663   :  { %v12045_v52 = vpop.eup %12044  ;;  %12064 = vtanh.f32 %v11292_v58  ;;  %9306 = vmatmul.mubr.bf16.gmra.mrb[176].mxu1 %v15023_v60  ;;  %8912 = vmatprep.subr.bf16.mxu0 %v10855_v15 }
 0x664   :  { %v12047_v6 = vpop.eup %12046  ;;  %v10970_v0 = vpack.c.bf16 %v12045_v52, %v12041_v41  ;;  %12066 = vtanh.f32 %v11324_v22  ;;  %9315 = vmatprep.mubr.bf16.mxu1 %v15080_v51  ;;  %11150 = vmatpush1.bf16.msra.mxu1 %v15429_v62  ;;  %v8044_v54 = vpop.f32.mrb[120].mxu0  ;;  %v15457_v22 = vcombine.high %v4940_v50, %v4944_v23 }
 0x665   :  { %v12049_v58 = vpop.eup %12048  ;;  %v10971_v60 = vpack.c.bf16 %v12047_v6, %v12043_v4  ;;  %12068 = vtanh.f32 %v11293_v8  ;;  %v11294_v15 = vadd.f32 %v8044_v54, %v15366_v18  ;;  %v8496_v9 = vpop.f32.mrb[136].mxu1  ;;  %11135 = vmatprep.subr.bf16.mxu1 %v15438_v32  ;;  %v10862_v6 = vcombine.low %v15431_v55, %v15433_v37  ;;  %v4948_v8 = vld [vmem:[#allocation16 + $0xed8] sm:$0xff] }
 0x666   :  { %v8046_v36 = vpop.f32.mrb[121].mxu0  ;;  %v12051_v51 = vpop.eup %12050  ;;  %9971 = vst [vmem:[#allocation19] sm:$0xff] %v10970_v0  ;;  %12070 = vtanh.f32 %v11325_v38  ;;  %v11326_v46 = vadd.f32 %v8496_v9, %v15372_v30  ;;  %8913 = vmatpush1.bf16.msra.mxu0 %v10854_v13  ;;  %v4952_v4 = vld [vmem:[#allocation16 + $0xef8] sm:$0xff] }
 0x667   :  { %v11295_v63 = vadd.f32 %v8046_v36, %v15375_v21  ;;  %v8498_v41 = vpop.f32.mrb[137].mxu1  ;;  %v8048_v52 = vpop.f32.mrb[122].mxu0  ;;  %9972 = vst [vmem:[#allocation19 + $0x8] sm:$0xff] %v10971_v60  ;;  %12072 = vtanh.f32 %v11294_v15  ;;  %8914 = vmatprep.subr.bf16.mxu0 %v10863_v45  ;;  %v10871_v36 = vcombine.high %v15451_v61, %v15453_v2  ;;  %v15469_v60 = vcombine.low %v4940_v50, %v4944_v23  ;;  %v15471_v15 = vld [vmem:[#allocation16 + $0xf10] sm:$0xff] }
 0x668   :  { %v12053_v54 = vpop.eup %12052  ;;  %v11327_v32 = vadd.f32 %v8498_v41, %v15379_v31  ;;  %v11296_v0 = vadd.f32 %v8048_v52, %v15366_v18  ;;  %v8500_v38 = vpop.f32.mrb[138].mxu1  ;;  %12074 = vtanh.f32 %v11326_v46  ;;  %11151 = vmatpush1.bf16.msra.mxu1 %v15449_v43  ;;  %v15473_v41 = vld [vmem:[#allocation16 + $0xf30] sm:$0xff]  ;;  %v10870_v23 = vcombine.low %v15451_v61, %v15453_v2 }
 0x669   :  { %v8050_v62 = vpop.f32.mrb[123].mxu0  ;;  %v12055_v9 = vpop.eup %12054  ;;  %v10974_v13 = vpack.c.bf16 %v12053_v54, %v12049_v58  ;;  %v11328_v55 = vadd.f32 %v8500_v38, %v15372_v30  ;;  %16495 = vst [vmem:[#allocation77_spill] sm:$0xff] %v15469_v60  ;;  %12076 = vtanh.f32 %v11295_v63  ;;  %8864 = vmatmul.mubr.bf16.gmra.mrb[164].mxu0 %v16496_v10  ;;  %11136 = vmatprep.subr.bf16.mxu1 %v15457_v22  ;;  %v4960_v63 = vld [vmem:[#allocation16 + $0xf38] sm:$0xff]  ;;  %v15491_v2 = vld [vmem:[#allocation16 + $0xf50] sm:$0xff] }
 0x66a   :  { %v8502_v37 = vpop.f32.mrb[139].mxu1  ;;  %v12057_v52 = vpop.eup %12056  ;;  %v10975_v48 = vpack.c.bf16 %v12055_v9, %v12051_v51  ;;  %v11297_v45 = vadd.f32 %v8050_v62, %v15375_v21  ;;  %v15478_v58 = vcombine.high %v4948_v8, %v4952_v4  ;;  %12078 = vtanh.f32 %v11327_v32  ;;  %8915 = vmatpush1.bf16.msra.mxu0 %v10862_v6  ;;  %8873 = vmatprep.mubr.bf16.mxu0 %v15163_v40  ;;  %v4956_v51 = vld [vmem:[#allocation16 + $0xf18] sm:$0xff] }
 0x66b   :  { %v12059_v46 = vpop.eup %12058  ;;  %9975 = vst [vmem:[#allocation19 + $0x20] sm:$0xff] %v10974_v13  ;;  %v11329_v50 = vadd.f32 %v8502_v37, %v15379_v31  ;;  %12080 = vtanh.f32 %v11296_v0  ;;  %9316 = vmatmul.mubr.bf16.gmra.mrb[180].mxu1 %v16496_v10  ;;  %8916 = vmatprep.subr.bf16.mxu0 %v10871_v36  ;;  %v10879_v54 = vcombine.high %v15471_v15, %v15473_v41 }
 0x66c   :  { %16497 = vst [vmem:[#allocation78_spill] sm:$0xff] %v15478_v58  ;;  %v12061_v62 = vpop.eup %12060  ;;  %9976 = vst [vmem:[#allocation19 + $0x28] sm:$0xff] %v10975_v48  ;;  %12082 = vtanh.f32 %v11328_v55  ;;  %9325 = vmatprep.mubr.bf16.mxu1 %v15163_v40  ;;  %11152 = vmatpush1.bf16.msra.mxu1 %v15469_v60  ;;  %v8054_v6 = vpop.f32.mrb[124].mxu0  ;;  %v15489_v61 = vcombine.low %v4948_v8, %v4952_v4  ;;  %v15493_v48 = vld [vmem:[#allocation16 + $0xf70] sm:$0xff]  ;;  %v15497_v55 = vcombine.high %v4956_v51, %v4960_v63 }
 0x66d   :  { %v12063_v32 = vpop.eup %12062  ;;  %v10978_v38 = vpack.c.bf16 %v12061_v62, %v12057_v52  ;;  %12084 = vtanh.f32 %v11297_v45  ;;  %v11298_v36 = vadd.f32 %v8054_v6, %v15366_v18  ;;  %v8506_v9 = vpop.f32.mrb[140].mxu1  ;;  %11137 = vmatprep.subr.bf16.mxu1 %v15478_v58  ;;  %v10878_v45 = vcombine.low %v15471_v15, %v15473_v41  ;;  %v4968_v62 = vld [vmem:[#allocation16 + $0xf78] sm:$0xff] }
 0x66e   :  { %v12065_v0 = vpop.eup %12064  ;;  %v10979_v10 = vpack.c.bf16 %v12063_v32, %v12059_v46  ;;  %v8056_v13 = vpop.f32.mrb[125].mxu0  ;;  %12086 = vtanh.f32 %v11329_v50  ;;  %v11330_v8 = vadd.f32 %v8506_v9, %v15372_v30  ;;  %8917 = vmatpush1.bf16.msra.mxu0 %v10870_v23  ;;  %v4964_v46 = vld [vmem:[#allocation16 + $0xf58] sm:$0xff]  ;;  %v10887_v9 = vcombine.high %v15491_v2, %v15493_v48 }
 0x66f   :  { %v12067_v40 = vpop.eup %12066  ;;  %9979 = vst [vmem:[#allocation19 + $0x40] sm:$0xff] %v10978_v38  ;;  %v11299_v4 = vadd.f32 %v8056_v13, %v15375_v21  ;;  %v8508_v37 = vpop.f32.mrb[141].mxu1  ;;  %12088 = vtanh.f32 %v11298_v36  ;;  %8918 = vmatprep.subr.bf16.mxu0 %v10879_v54  ;;  %v15511_v36 = vld [vmem:[#allocation16 + $0xf90] sm:$0xff] }
 0x670   :  { %v8058_v52 = vpop.f32.mrb[126].mxu0  ;;  %v12069_v32 = vpop.eup %12068  ;;  %9980 = vst [vmem:[#allocation19 + $0x48] sm:$0xff] %v10979_v10  ;;  %v11331_v6 = vadd.f32 %v8508_v37, %v15379_v31  ;;  %12090 = vtanh.f32 %v11330_v8  ;;  %11153 = vmatpush1.bf16.msra.mxu1 %v15489_v61  ;;  %v15509_v10 = vcombine.low %v4956_v51, %v4960_v63  ;;  %v15513_v37 = vld [vmem:[#allocation16 + $0xfb0] sm:$0xff]  ;;  %v10886_v63 = vcombine.low %v15491_v2, %v15493_v48 }
 0x671   :  { %v11300_v38 = vadd.f32 %v8058_v52, %v15366_v18  ;;  %v8510_v50 = vpop.f32.mrb[142].mxu1  ;;  %v8060_v58 = vpop.f32.mrb[127].mxu0  ;;  %v10982_v13 = vpack.c.bf16 %v12069_v32, %v12065_v0  ;;  %12092 = vtanh.f32 %v11299_v4  ;;  %8874 = vmatmul.mubr.bf16.gmra.mrb[168].mxu0 %v15132_v24  ;;  %11138 = vmatprep.subr.bf16.mxu1 %v15497_v55  ;;  %v15518_v0 = vcombine.high %v4964_v46, %v4968_v62  ;;  %v4976_v4 = vld [vmem:[#allocation16 + $0xfb8] sm:$0xff]  ;;  %v15531_v48 = vld [vmem:[#allocation16 + $0xfd0] sm:$0xff] }
 0x672   :  { %v12071_v23 = vpop.eup %12070  ;;  %v11332_v15 = vadd.f32 %v8510_v50, %v15372_v30  ;;  %v8512_v41 = vpop.f32.mrb[143].mxu1  ;;  %v11301_v54 = vadd.f32 %v8060_v58, %v15375_v21  ;;  %12094 = vtanh.f32 %v11331_v6  ;;  %8919 = vmatpush1.bf16.msra.mxu0 %v10878_v45  ;;  %8883 = vmatprep.mubr.bf16.mxu0 %v15212_v19  ;;  %v10895_v32 = vcombine.high %v15511_v36, %v15513_v37 }
 0x673   :  { %v12073_v52 = vpop.eup %12072  ;;  %v10983_v60 = vpack.c.bf16 %v12071_v23, %v12067_v40  ;;  %16498 = vst [vmem:[#allocation79_spill] sm:$0xff] %v15518_v0  ;;  %9983 = vst [vmem:[#allocation19 + $0x60] sm:$0xff] %v10982_v13  ;;  %v11333_v51 = vadd.f32 %v8512_v41, %v15379_v31  ;;  %v4972_v40 = vld [vmem:[#allocation16 + $0xf98] sm:$0xff]  ;;  %12096 = vtanh.f32 %v11300_v38  ;;  %9326 = vmatmul.mubr.bf16.gmra.mrb[184].mxu1 %v15132_v24  ;;  %8920 = vmatprep.subr.bf16.mxu0 %v10887_v9 }
 0x674   :  { %v12075_v8 = vpop.eup %12074  ;;  %12098 = vtanh.f32 %v11332_v15  ;;  %9335 = vmatprep.mubr.bf16.mxu1 %v15212_v19  ;;  %11154 = vmatpush1.bf16.msra.mxu1 %v15509_v10  ;;  %v8064_v45 = vpop.f32.mrb[128].mxu0  ;;  %v15529_v2 = vcombine.low %v4964_v46, %v4968_v62  ;;  %v15537_v15 = vcombine.high %v4972_v40, %v4976_v4 }
 0x675   :  { %v12077_v58 = vpop.eup %12076  ;;  %9984 = vst [vmem:[#allocation19 + $0x68] sm:$0xff] %v10983_v60  ;;  %v15533_v60 = vld [vmem:[#allocation16 + $0xff0] sm:$0xff]  ;;  %12100 = vtanh.f32 %v11301_v54  ;;  %v11302_v9 = vadd.f32 %v8064_v45, %v15366_v18  ;;  %v8516_v23 = vpop.f32.mrb[144].mxu1  ;;  %11139 = vmatprep.subr.bf16.mxu1 %v15518_v0  ;;  %v10894_v54 = vcombine.low %v15511_v36, %v15513_v37 }
 0x676   :  { %v12079_v6 = vpop.eup %12078  ;;  %v10986_v50 = vpack.c.bf16 %v12077_v58, %v12073_v52  ;;  %v8066_v13 = vpop.f32.mrb[129].mxu0  ;;  %12102 = vtanh.f32 %v11333_v51  ;;  %v11334_v46 = vadd.f32 %v8516_v23, %v15372_v30  ;;  %8921 = vmatpush1.bf16.msra.mxu0 %v10886_v63  ;;  %v4984_v58 = vld [vmem:[#allocation16 + $0xff8] sm:$0xff]  ;;  %v10903_v23 = vcombine.high %v15531_v48, %v15533_v60 }
 0x677   :  { %v12081_v38 = vpop.eup %12080  ;;  %v10987_v24 = vpack.c.bf16 %v12079_v6, %v12075_v8  ;;  %v11303_v62 = vadd.f32 %v8066_v13, %v15375_v21  ;;  %v8518_v41 = vpop.f32.mrb[145].mxu1  ;;  %v4980_v8 = vld [vmem:[#allocation16 + $0xfd8] sm:$0xff]  ;;  %12104 = vtanh.f32 %v11302_v9  ;;  %8922 = vmatprep.subr.bf16.mxu0 %v10895_v32 }
 0x678   :  { %v12083_v19 = vpop.eup %12082  ;;  %9987 = vst [vmem:[#allocation19 + $0x80] sm:$0xff] %v10986_v50  ;;  %v8068_v52 = vpop.f32.mrb[130].mxu0  ;;  %v11335_v45 = vadd.f32 %v8518_v41, %v15379_v31  ;;  %12106 = vtanh.f32 %v11334_v46  ;;  %11155 = vmatpush1.bf16.msra.mxu1 %v15529_v2  ;;  %v15554_v32 = vcombine.high %v4980_v8, %v4984_v58 }
 0x679   :  { %v12085_v6 = vpop.eup %12084  ;;  %9988 = vst [vmem:[#allocation19 + $0x88] sm:$0xff] %v10987_v24  ;;  %v11304_v50 = vadd.f32 %v8068_v52, %v15366_v18  ;;  %v8520_v51 = vpop.f32.mrb[146].mxu1  ;;  %v15549_v24 = vcombine.low %v4972_v40, %v4976_v4  ;;  %12108 = vtanh.f32 %v11303_v62  ;;  %8884 = vmatmul.mubr.bf16.gmra.mrb[172].mxu0 %v15206_v27  ;;  %11140 = vmatprep.subr.bf16.mxu1 %v15537_v15 }
 0x67a   :  { %v8070_v0 = vpop.f32.mrb[131].mxu0  ;;  %v12087_v63 = vpop.eup %12086  ;;  %v10990_v13 = vpack.c.bf16 %v12085_v6, %v12081_v38  ;;  %v11336_v36 = vadd.f32 %v8520_v51, %v15372_v30  ;;  %12110 = vtanh.f32 %v11335_v45  ;;  %8923 = vmatpush1.bf16.msra.mxu0 %v10894_v54  ;;  %8926 = vmatprep.mubr.bf16.mxu0 %v14848_v33  ;;  %v10902_v40 = vcombine.low %v15531_v48, %v15533_v60 }
 0x67b   :  { %v8522_v37 = vpop.f32.mrb[147].mxu1  ;;  %v12089_v9 = vpop.eup %12088  ;;  %v10991_v41 = vpack.c.bf16 %v12087_v63, %v12083_v19  ;;  %v11305_v52 = vadd.f32 %v8070_v0, %v15375_v21  ;;  %12112 = vtanh.f32 %v11304_v50  ;;  %9336 = vmatmul.mubr.bf16.gmra.mrb[188].mxu1 %v15206_v27  ;;  %8924 = vmatprep.subr.bf16.mxu0 %v10903_v23  ;;  %v15563_v54 = vcombine.low %v4980_v8, %v4984_v58 }
 0x67c   :  { %v12091_v38 = vpop.eup %12090  ;;  %9991 = vst [vmem:[#allocation19 + $0xa0] sm:$0xff] %v10990_v13  ;;  %v11337_v46 = vadd.f32 %v8522_v37, %v15379_v31  ;;  %12114 = vtanh.f32 %v11336_v36  ;;  %11156 = vmatpush1.bf16.msra.mxu1 %v15549_v24  ;;  %9388 = vmatprep.mubr.bf16.mxu1 %v14894_v12  ;;  %v8074_v62 = vpop.f32.mrb[132].mxu0 }
 0x67d   :  { %v12093_v4 = vpop.eup %12092  ;;  %9992 = vst [vmem:[#allocation19 + $0xa8] sm:$0xff] %v10991_v41  ;;  %12116 = vtanh.f32 %v11305_v52  ;;  %v11306_v48 = vadd.f32 %v8074_v62, %v15366_v18  ;;  %v8526_v60 = vpop.f32.mrb[148].mxu1  ;;  %11141 = vmatprep.subr.bf16.mxu1 %v15554_v32 }
 0x67e   :  { %v12095_v0 = vpop.eup %12094  ;;  %v10994_v19 = vpack.c.bf16 %v12093_v4, %v12089_v9  ;;  %v8076_v50 = vpop.f32.mrb[133].mxu0  ;;  %12118 = vtanh.f32 %v11337_v46  ;;  %v11338_v51 = vadd.f32 %v8526_v60, %v15372_v30  ;;  %8925 = vmatpush1.bf16.msra.mxu0 %v10902_v40 }
 0x67f   :  { %v12097_v6 = vpop.eup %12096  ;;  %v10995_v45 = vpack.c.bf16 %v12095_v0, %v12091_v38  ;;  %v11307_v23 = vadd.f32 %v8076_v50, %v15375_v21  ;;  %v8528_v63 = vpop.f32.mrb[149].mxu1  ;;  %12120 = vtanh.f32 %v11306_v48  ;;  %9346 = vmatprep.subr.bf16.mxu0 %v15327_v1 }
 0x680   :  { %v12099_v27 = vpop.eup %12098  ;;  %9995 = vst [vmem:[#allocation19 + $0xc0] sm:$0xff] %v10994_v19  ;;  %v8078_v8 = vpop.f32.mrb[134].mxu0  ;;  %v11339_v13 = vadd.f32 %v8528_v63, %v15379_v31  ;;  %12122 = vtanh.f32 %v11338_v51  ;;  %11157 = vmatpush1.bf16.msra.mxu1 %v15563_v54 }
 0x681   :  { %v12101_v58 = vpop.eup %12100  ;;  %9996 = vst [vmem:[#allocation19 + $0xc8] sm:$0xff] %v10995_v45  ;;  %v11308_v36 = vadd.f32 %v8078_v8, %v15366_v18  ;;  %v8530_v37 = vpop.f32.mrb[150].mxu1  ;;  %12124 = vtanh.f32 %v11307_v23  ;;  %8927 = vmatmul.mubr.bf16.vlgmr.msra.gmra.mrb[144].mxu0 %v14840_v11 }
 0x682   :  { %v8080_v9 = vpop.f32.mrb[135].mxu0  ;;  %v12103_v41 = vpop.eup %12102  ;;  %v10998_v52 = vpack.c.bf16 %v12101_v58, %v12097_v6  ;;  %v11340_v38 = vadd.f32 %v8530_v37, %v15372_v30  ;;  %12126 = vtanh.f32 %v11339_v13  ;;  %9347 = vmatpush1.bf16.msra.mxu0 %v15329_v26  ;;  %8936 = vmatprep.mubr.bf16.mxu0 %v14894_v12 }
 0x683   :  { %v8532_v46 = vpop.f32.mrb[151].mxu1  ;;  %v12105_v40 = vpop.eup %12104  ;;  %v10999_v4 = vpack.c.bf16 %v12103_v41, %v12099_v27  ;;  %v11309_v0 = vadd.f32 %v8080_v9, %v15375_v21  ;;  %12128 = vtanh.f32 %v11308_v36  ;;  %9389 = vmatmul.mubr.bf16.vlgmr.msra.gmra.mrb[164].mxu1 %v14880_v39  ;;  %9348 = vmatprep.subr.bf16.mxu0 %v15333_v14 }
 0x684   :  { %v12107_v19 = vpop.eup %12106  ;;  %9999 = vst [vmem:[#allocation19 + $0xe0] sm:$0xff] %v10998_v52  ;;  %v11341_v1 = vadd.f32 %v8532_v46, %v15379_v31  ;;  %12130 = vtanh.f32 %v11340_v38  ;;  %9398 = vmatprep.mubr.bf16.mxu1 %v14936_v59  ;;  %v8084_v48 = vpop.f32.mrb[136].mxu0 }
 0x685   :  { %v12109_v62 = vpop.eup %12108  ;;  %10000 = vst [vmem:[#allocation19 + $0xe8] sm:$0xff] %v10999_v4  ;;  %12132 = vtanh.f32 %v11309_v0  ;;  %v11310_v26 = vadd.f32 %v8084_v48, %v15366_v18  ;;  %v8536_v27 = vpop.f32.mrb[152].mxu1 }
 0x686   :  { %v12111_v6 = vpop.eup %12110  ;;  %v11002_v45 = vpack.c.bf16 %v12109_v62, %v12105_v40  ;;  %v8086_v12 = vpop.f32.mrb[137].mxu0  ;;  %12134 = vtanh.f32 %v11341_v1  ;;  %v11342_v23 = vadd.f32 %v8536_v27, %v15372_v30  ;;  %9349 = vmatpush1.bf16.msra.mxu0 %v15339_v53 }
 0x687   :  { %v12113_v60 = vpop.eup %12112  ;;  %v11003_v50 = vpack.c.bf16 %v12111_v6, %v12107_v19  ;;  %v11311_v14 = vadd.f32 %v8086_v12, %v15375_v21  ;;  %v8538_v63 = vpop.f32.mrb[153].mxu1  ;;  %12136 = vtanh.f32 %v11310_v26  ;;  %9350 = vmatprep.subr.bf16.mxu0 %v15342_v16 }
 0x688   :  { %v12115_v51 = vpop.eup %12114  ;;  %10003 = vst [vmem:[#allocation19 + $0x100] sm:$0xff] %v11002_v45  ;;  %v8088_v8 = vpop.f32.mrb[138].mxu0  ;;  %v11343_v13 = vadd.f32 %v8538_v63, %v15379_v31  ;;  %12138 = vtanh.f32 %v11342_v23 }
 0x689   :  { %v12117_v58 = vpop.eup %12116  ;;  %10004 = vst [vmem:[#allocation19 + $0x108] sm:$0xff] %v11003_v50  ;;  %v11312_v36 = vadd.f32 %v8088_v8, %v15366_v18  ;;  %v8540_v37 = vpop.f32.mrb[154].mxu1  ;;  %12140 = vtanh.f32 %v11311_v14  ;;  %8937 = vmatmul.mubr.bf16.gmra.mrb[148].mxu0 %v14880_v39 }
 0x68a   :  { %v8090_v9 = vpop.f32.mrb[139].mxu0  ;;  %v12119_v41 = vpop.eup %12118  ;;  %v11006_v52 = vpack.c.bf16 %v12117_v58, %v12113_v60  ;;  %v11344_v38 = vadd.f32 %v8540_v37, %v15372_v30  ;;  %12142 = vtanh.f32 %v11343_v13  ;;  %9351 = vmatpush1.bf16.msra.mxu0 %v15345_v20  ;;  %8946 = vmatprep.mubr.bf16.mxu0 %v14936_v59 }
 0x68b   :  { %v8542_v46 = vpop.f32.mrb[155].mxu1  ;;  %v12121_v40 = vpop.eup %12120  ;;  %v11007_v53 = vpack.c.bf16 %v12119_v41, %v12115_v51  ;;  %v11313_v4 = vadd.f32 %v8090_v9, %v15375_v21  ;;  %12144 = vtanh.f32 %v11312_v36  ;;  %9399 = vmatmul.mubr.bf16.gmra.mrb[168].mxu1 %v14932_v47  ;;  %9352 = vmatprep.subr.bf16.mxu0 %v15349_v7 }
 0x68c   :  { %v12123_v0 = vpop.eup %12122  ;;  %10007 = vst [vmem:[#allocation19 + $0x120] sm:$0xff] %v11006_v52  ;;  %v11345_v19 = vadd.f32 %v8542_v46, %v15379_v31  ;;  %12146 = vtanh.f32 %v11344_v38  ;;  %9408 = vmatprep.mubr.bf16.mxu1 %v14994_v29  ;;  %v8094_v39 = vpop.f32.mrb[140].mxu0 }
 0x68d   :  { %v12125_v16 = vpop.eup %12124  ;;  %10008 = vst [vmem:[#allocation19 + $0x128] sm:$0xff] %v11007_v53  ;;  %12148 = vtanh.f32 %v11313_v4  ;;  %v11314_v20 = vadd.f32 %v8094_v39, %v15366_v18  ;;  %v8546_v48 = vpop.f32.mrb[156].mxu1  ;;  %v16502_v39 = vld [vmem:[#allocation46_spill] sm:$0xff] }
 0x68e   :  { %v12127_v1 = vpop.eup %12126  ;;  %v11010_v62 = vpack.c.bf16 %v12125_v16, %v12121_v40  ;;  %v8096_v59 = vpop.f32.mrb[141].mxu0  ;;  %12150 = vtanh.f32 %v11345_v19  ;;  %v11346_v50 = vadd.f32 %v8546_v48, %v15372_v30  ;;  %9353 = vmatpush1.bf16.msra.mxu0 %v15355_v35  ;;  %v16508_v48 = vld [vmem:[#allocation72_spill] sm:$0xff] }
 0x68f   :  { %v12129_v6 = vpop.eup %12128  ;;  %v11011_v45 = vpack.c.bf16 %v12127_v1, %v12123_v0  ;;  %v11315_v7 = vadd.f32 %v8096_v59, %v15375_v21  ;;  %v8548_v26 = vpop.f32.mrb[157].mxu1  ;;  %12152 = vtanh.f32 %v11314_v20  ;;  %9354 = vmatprep.subr.bf16.mxu0 %v15358_v42  ;;  %v16505_v20 = vld [vmem:[#allocation77_spill] sm:$0xff]  ;;  %v16511_v59 = vld [vmem:[#allocation27_spill] sm:$0xff] }
 0x690   :  { %v12131_v60 = vpop.eup %12130  ;;  %10011 = vst [vmem:[#allocation19 + $0x140] sm:$0xff] %v11010_v62  ;;  %v8098_v27 = vpop.f32.mrb[142].mxu0  ;;  %v11347_v51 = vadd.f32 %v8548_v26, %v15379_v31  ;;  %12154 = vtanh.f32 %v11346_v50 }
 0x691   :  { %v12133_v12 = vpop.eup %12132  ;;  %10012 = vst [vmem:[#allocation19 + $0x148] sm:$0xff] %v11011_v45  ;;  %v11316_v23 = vadd.f32 %v8098_v27, %v15366_v18  ;;  %v8550_v14 = vpop.f32.mrb[158].mxu1  ;;  %12156 = vtanh.f32 %v11315_v7  ;;  %8947 = vmatmul.mubr.bf16.gmra.mrb[152].mxu0 %v14932_v47  ;;  %v16504_v45 = vld [vmem:[#allocation52_spill] sm:$0xff]  ;;  %v16515_v27 = vsub.s32 7, %v16511_v59 }
 0x692   :  { %v8100_v63 = vpop.f32.mrb[143].mxu0  ;;  %v12135_v8 = vpop.eup %12134  ;;  %v11014_v58 = vpack.c.bf16 %v12133_v12, %v12129_v6  ;;  %v11348_v13 = vadd.f32 %v8550_v14, %v15372_v30  ;;  %12158 = vtanh.f32 %v11347_v51  ;;  %9355 = vmatpush1.bf16.msra.mxu0 %v15361_v28  ;;  %8956 = vmatprep.mubr.bf16.mxu0 %v14994_v29  ;;  %v16503_v6 = vld [vmem:[#allocation76_spill] sm:$0xff] }
 0x693   :  { %v8552_v36 = vpop.f32.mrb[159].mxu1  ;;  %v12137_v37 = vpop.eup %12136  ;;  %v11015_v35 = vpack.c.bf16 %v12135_v8, %v12131_v60  ;;  %v11317_v9 = vadd.f32 %v8100_v63, %v15375_v21  ;;  %12160 = vtanh.f32 %v11316_v23  ;;  %9409 = vmatmul.mubr.bf16.gmra.mrb[172].mxu1 %v14978_v5  ;;  %9356 = vmatprep.subr.bf16.mxu0 %v15368_v49  ;;  %v16512_v60 = vsub.s32 4, %v16511_v59 }
 0x694   :  { %v12139_v41 = vpop.eup %12138  ;;  %10015 = vst [vmem:[#allocation19 + $0x160] sm:$0xff] %v11014_v58  ;;  %v11349_v18 = vadd.f32 %v8552_v36, %v15379_v31  ;;  %12162 = vtanh.f32 %v11348_v13  ;;  %9418 = vmatprep.mubr.bf16.mxu1 %v15038_v25 }
 0x695   :  { %v12141_v42 = vpop.eup %12140  ;;  %10016 = vst [vmem:[#allocation19 + $0x168] sm:$0xff] %v11015_v35  ;;  %12164 = vtanh.f32 %v11317_v9 }
 0x696   :  { %v12143_v30 = vpop.eup %12142  ;;  %v11018_v21 = vpack.c.bf16 %v12141_v42, %v12137_v37  ;;  %12166 = vtanh.f32 %v11349_v18  ;;  %9357 = vmatpush1.bf16.msra.mxu0 %v15383_v34 }
 0x697   :  { %v12145_v47 = vpop.eup %12144  ;;  %v11019_v52 = vpack.c.bf16 %v12143_v30, %v12139_v41  ;;  %9358 = vmatprep.subr.bf16.mxu0 %v15387_v56 }
 0x698   :  { %v12147_v31 = vpop.eup %12146  ;;  %10019 = vst [vmem:[#allocation19 + $0x180] sm:$0xff] %v11018_v21 }
 0x699   :  { %v12149_v29 = vpop.eup %12148  ;;  %10020 = vst [vmem:[#allocation19 + $0x188] sm:$0xff] %v11019_v52  ;;  %8957 = vmatmul.mubr.bf16.gmra.mrb[156].mxu0 %v14978_v5  ;;  %v16499_v5 = vld [vmem:[#allocation73_spill] sm:$0xff] }
 0x69a   :  { %v12151_v28 = vpop.eup %12150  ;;  %v11022_v38 = vpack.c.bf16 %v12149_v29, %v12145_v47  ;;  %9359 = vmatpush1.bf16.msra.mxu0 %v15395_v57  ;;  %8966 = vmatprep.mubr.bf16.mxu0 %v15038_v25  ;;  %v16500_v57 = vld [vmem:[#allocation74_spill] sm:$0xff] }
 0x69b   :  { %v12153_v49 = vpop.eup %12152  ;;  %v11023_v46 = vpack.c.bf16 %v12151_v28, %v12147_v31  ;;  %9419 = vmatmul.mubr.bf16.gmra.mrb[176].mxu1 %v15030_v44  ;;  %9360 = vmatprep.subr.bf16.mxu0 %v15402_v17  ;;  %v16501_v17 = vld [vmem:[#allocation75_spill] sm:$0xff] }
 0x69c   :  { %v12155_v40 = vpop.eup %12154  ;;  %10023 = vst [vmem:[#allocation19 + $0x1a0] sm:$0xff] %v11022_v38  ;;  %9428 = vmatprep.mubr.bf16.mxu1 %v15087_v3 }
 0x69d   :  { %v12157_v53 = vpop.eup %12156  ;;  %10024 = vst [vmem:[#allocation19 + $0x1a8] sm:$0xff] %v11023_v46 }
 0x69e   :  { %v12159_v34 = vpop.eup %12158  ;;  %v11026_v56 = vpack.c.bf16 %v12157_v53, %v12153_v49  ;;  %9361 = vmatpush1.bf16.msra.mxu0 %v16499_v5 }
 0x69f   :  { %v12161_v4 = vpop.eup %12160  ;;  %v11027_v0 = vpack.c.bf16 %v12159_v34, %v12155_v40  ;;  %9362 = vmatprep.subr.bf16.mxu0 %v16500_v57 }
 0x6a0   :  { %v12163_v19 = vpop.eup %12162  ;;  %10027 = vst [vmem:[#allocation19 + $0x1c0] sm:$0xff] %v11026_v56 }
 0x6a1   :  { %v12165_v16 = vpop.eup %12164  ;;  %10028 = vst [vmem:[#allocation19 + $0x1c8] sm:$0xff] %v11027_v0  ;;  %8967 = vmatmul.mubr.bf16.gmra.mrb[160].mxu0 %v15030_v44  ;;  %v16506_v44 = vld [vmem:[#allocation47_spill] sm:$0xff] }
 0x6a2   :  { %v12167_v25 = vpop.eup %12166  ;;  %v11030_v1 = vpack.c.bf16 %v12165_v16, %v12161_v4  ;;  %9363 = vmatpush1.bf16.msra.mxu0 %v16501_v17  ;;  %8976 = vmatprep.mubr.bf16.mxu0 %v15087_v3  ;;  %v16507_v3 = vld [vmem:[#allocation78_spill] sm:$0xff] }
 0x6a3   :  { %v11031_v62 = vpack.c.bf16 %v12167_v25, %v12163_v19  ;;  %9429 = vmatmul.mubr.bf16.gmra.mrb[180].mxu1 %v16502_v39  ;;  %9364 = vmatprep.subr.bf16.mxu0 %v16503_v6 }
 0x6a4   :  { %10031 = vst [vmem:[#allocation19 + $0x1e0] sm:$0xff] %v11030_v1  ;;  %9438 = vmatprep.mubr.bf16.mxu1 %v16504_v45 }
 0x6a5   :  { %10032 = vst [vmem:[#allocation19 + $0x1e8] sm:$0xff] %v11031_v62 }
 0x6a6   :  { %9365 = vmatpush1.bf16.msra.mxu0 %v15449_v43  ;;  %v16509_v43 = vld [vmem:[#allocation71_spill] sm:$0xff] }
 0x6a7   :  { %9366 = vmatprep.subr.bf16.mxu0 %v15457_v22  ;;  %v16510_v22 = vld [vmem:[#allocation79_spill] sm:$0xff] }
 0x6a9   :  { %8977 = vmatmul.mubr.bf16.gmra.mrb[164].mxu0 %v16502_v39 }
 0x6aa   :  { %9367 = vmatpush1.bf16.msra.mxu0 %v16505_v20  ;;  %8986 = vmatprep.mubr.bf16.mxu0 %v16504_v45 }
 0x6ab   :  { %9439 = vmatmul.mubr.bf16.gmra.mrb[184].mxu1 %v16506_v44  ;;  %9368 = vmatprep.subr.bf16.mxu0 %v16507_v3 }
 0x6ac   :  { %9448 = vmatprep.mubr.bf16.mxu1 %v16508_v48 }
 0x6ae   :  { %9369 = vmatpush1.bf16.msra.mxu0 %v15489_v61 }
 0x6af   :  { %9370 = vmatprep.subr.bf16.mxu0 %v15497_v55 }
 0x6b1   :  { %8987 = vmatmul.mubr.bf16.gmra.mrb[168].mxu0 %v16506_v44 }
 0x6b2   :  { %9371 = vmatpush1.bf16.msra.mxu0 %v15509_v10  ;;  %8996 = vmatprep.mubr.bf16.mxu0 %v16508_v48 }
 0x6b3   :  { %9449 = vmatmul.mubr.bf16.gmra.mrb[188].mxu1 %v16509_v43  ;;  %9372 = vmatprep.subr.bf16.mxu0 %v16510_v22 }
 0x6b6   :  { %9373 = vmatpush1.bf16.msra.mxu0 %v15529_v2 }
 0x6b7   :  { %9374 = vmatprep.subr.bf16.mxu0 %v15537_v15  ;;  %v12297_v15 = vld [vmem:[#allocation17] sm:$0xff] }
 0x6b8   :  { %v15676_v12 = vrot.slane %v12297_v15, %v16515_v27 }
 0x6b9   :  { %8997 = vmatmul.mubr.bf16.gmra.mrb[172].mxu0 %v16509_v43 }
 0x6ba   :  { %9375 = vmatpush1.bf16.msra.mxu0 %v15549_v24  ;;  %9378 = vmatprep.mubr.bf16.mxu0 %v14848_v33  ;;  %v15663_v24 = vrot.slane %v12297_v15, %v16512_v60  ;;  %v16513_v33 = vsub.s32 5, %v16511_v59 }
 0x6bb   :  { %9376 = vmatprep.subr.bf16.mxu0 %v15554_v32 }
 0x6bc   :  { %v15667_v32 = vrot.slane %v12297_v15, %v16513_v33 }
 0x6be   :  { %9377 = vmatpush1.bf16.msra.mxu0 %v15563_v54 }
 0x6c1   :  { %9379 = vmatmul.mubr.bf16.vlgmr.msra.gmra.mrb[176].mxu0 %v14840_v11  ;;  %v16514_v11 = vsub.s32 6, %v16511_v59 }
 0x6c3   :  { %v15671_v50 = vrot.slane %v12297_v15, %v16514_v11 }
 0x716   :  { %v15653_v61 = vpop.f32.mrb[160].mxu1 }
 0x717   :  { %v15655_v55 = vpop.f32.mrb[161].mxu1 }
 0x718   :  { %v15657_v10 = vpop.f32.mrb[162].mxu1 }
 0x719   :  { %v15659_v2 = vpop.f32.mrb[163].mxu1 }
 0x754   :  { %v8928_v54 = vpop.f32.mrb[144].mxu0 }
 0x755   :  { %v11350_v7 = vadd.f32 %v8928_v54, %v15663_v24  ;;  %v8930_v26 = vpop.f32.mrb[145].mxu0 }
 0x756   :  { %v9390_v51 = vpop.f32.mrb[164].mxu1  ;;  %v11351_v23 = vadd.f32 %v8930_v26, %v15667_v32  ;;  %v8932_v14 = vpop.f32.mrb[146].mxu0 }
 0x757   :  { %12168 = vtanh.f32 %v11350_v7  ;;  %v11390_v63 = vadd.f32 %v9390_v51, %v15671_v50  ;;  %v9392_v8 = vpop.f32.mrb[165].mxu1  ;;  %v11352_v58 = vadd.f32 %v8932_v14, %v15663_v24  ;;  %v8934_v13 = vpop.f32.mrb[147].mxu0 }
 0x758   :  { %12170 = vtanh.f32 %v11351_v23  ;;  %v11391_v36 = vadd.f32 %v9392_v8, %v15676_v12  ;;  %v9394_v37 = vpop.f32.mrb[166].mxu1  ;;  %v11353_v9 = vadd.f32 %v8934_v13, %v15667_v32 }
 0x759   :  { %12172 = vtanh.f32 %v11390_v63  ;;  %v11392_v35 = vadd.f32 %v9394_v37, %v15671_v50  ;;  %v9396_v41 = vpop.f32.mrb[167].mxu1 }
 0x75a   :  { %12174 = vtanh.f32 %v11391_v36  ;;  %v11393_v18 = vadd.f32 %v9396_v41, %v15676_v12 }
 0x75b   :  { %12176 = vtanh.f32 %v11352_v58 }
 0x75c   :  { %12178 = vtanh.f32 %v11392_v35  ;;  %v8938_v42 = vpop.f32.mrb[148].mxu0 }
 0x75d   :  { %12180 = vtanh.f32 %v11353_v9  ;;  %v11354_v30 = vadd.f32 %v8938_v42, %v15663_v24  ;;  %v8940_v21 = vpop.f32.mrb[149].mxu0 }
 0x75e   :  { %12182 = vtanh.f32 %v11393_v18  ;;  %v9400_v47 = vpop.f32.mrb[168].mxu1  ;;  %v11355_v52 = vadd.f32 %v8940_v21, %v15667_v32  ;;  %v8942_v31 = vpop.f32.mrb[150].mxu0 }
 0x75f   :  { %12184 = vtanh.f32 %v11354_v30  ;;  %v11394_v29 = vadd.f32 %v9400_v47, %v15671_v50  ;;  %v9402_v28 = vpop.f32.mrb[169].mxu1  ;;  %v11356_v38 = vadd.f32 %v8942_v31, %v15663_v24  ;;  %v8944_v49 = vpop.f32.mrb[151].mxu0 }
 0x760   :  { %12186 = vtanh.f32 %v11355_v52  ;;  %v11395_v46 = vadd.f32 %v9402_v28, %v15676_v12  ;;  %v9404_v40 = vpop.f32.mrb[170].mxu1  ;;  %v11357_v56 = vadd.f32 %v8944_v49, %v15667_v32 }
 0x761   :  { %v12169_v53 = vpop.eup %12168  ;;  %12188 = vtanh.f32 %v11394_v29  ;;  %v11396_v34 = vadd.f32 %v9404_v40, %v15671_v50  ;;  %v9406_v4 = vpop.f32.mrb[171].mxu1 }
 0x762   :  { %v12171_v0 = vpop.eup %12170  ;;  %12190 = vtanh.f32 %v11395_v46  ;;  %v11397_v19 = vadd.f32 %v9406_v4, %v15676_v12 }
 0x763   :  { %v12173_v5 = vpop.eup %12172  ;;  %v10972_v16 = vpack.c.bf16 %v12171_v0, %v12169_v53  ;;  %12192 = vtanh.f32 %v11356_v38 }
 0x764   :  { %v12175_v57 = vpop.eup %12174  ;;  %12194 = vtanh.f32 %v11396_v34  ;;  %v8948_v25 = vpop.f32.mrb[152].mxu0 }
 0x765   :  { %v12177_v1 = vpop.eup %12176  ;;  %9973 = vst [vmem:[#allocation19 + $0x10] sm:$0xff] %v10972_v16  ;;  %v10981_v62 = vpack.c.bf16 %v12175_v57, %v12173_v5  ;;  %12196 = vtanh.f32 %v11357_v56  ;;  %v11358_v17 = vadd.f32 %v8948_v25, %v15663_v24  ;;  %v8950_v39 = vpop.f32.mrb[153].mxu0 }
 0x766   :  { %v12179_v6 = vpop.eup %12178  ;;  %12198 = vtanh.f32 %v11397_v19  ;;  %v9410_v45 = vpop.f32.mrb[172].mxu1  ;;  %v11359_v20 = vadd.f32 %v8950_v39, %v15667_v32 }
 0x767   :  { %v8952_v44 = vpop.f32.mrb[154].mxu0  ;;  %v12181_v3 = vpop.eup %12180  ;;  %9982 = vst [vmem:[#allocation19 + $0x58] sm:$0xff] %v10981_v62  ;;  %12200 = vtanh.f32 %v11358_v17  ;;  %v11398_v48 = vadd.f32 %v9410_v45, %v15671_v50 }
 0x768   :  { %v9412_v43 = vpop.f32.mrb[173].mxu1  ;;  %v11360_v22 = vadd.f32 %v8952_v44, %v15663_v24  ;;  %v8954_v15 = vpop.f32.mrb[155].mxu0  ;;  %v10976_v60 = vpack.c.bf16 %v12181_v3, %v12177_v1  ;;  %12202 = vtanh.f32 %v11359_v20 }
 0x769   :  { %v12183_v59 = vpop.eup %12182  ;;  %v11399_v33 = vadd.f32 %v9412_v43, %v15676_v12  ;;  %v9414_v54 = vpop.f32.mrb[174].mxu1  ;;  %12204 = vtanh.f32 %v11398_v48  ;;  %v11361_v27 = vadd.f32 %v8954_v15, %v15667_v32 }
 0x76a   :  { %v12185_v11 = vpop.eup %12184  ;;  %v10985_v7 = vpack.c.bf16 %v12183_v59, %v12179_v6  ;;  %v11400_v26 = vadd.f32 %v9414_v54, %v15671_v50  ;;  %v9416_v51 = vpop.f32.mrb[175].mxu1  ;;  %9977 = vst [vmem:[#allocation19 + $0x30] sm:$0xff] %v10976_v60 }
 0x76b   :  { %v12187_v23 = vpop.eup %12186  ;;  %12206 = vtanh.f32 %v11399_v33  ;;  %v11401_v14 = vadd.f32 %v9416_v51, %v15676_v12 }
 0x76c   :  { %v12189_v63 = vpop.eup %12188  ;;  %9986 = vst [vmem:[#allocation19 + $0x78] sm:$0xff] %v10985_v7  ;;  %v10980_v8 = vpack.c.bf16 %v12187_v23, %v12185_v11  ;;  %12208 = vtanh.f32 %v11360_v22  ;;  %v8958_v13 = vpop.f32.mrb[156].mxu0 }
 0x76d   :  { %v12191_v58 = vpop.eup %12190  ;;  %12210 = vtanh.f32 %v11400_v26  ;;  %v11362_v35 = vadd.f32 %v8958_v13, %v15663_v24  ;;  %v8960_v9 = vpop.f32.mrb[157].mxu0 }
 0x76e   :  { %v12193_v36 = vpop.eup %12192  ;;  %9981 = vst [vmem:[#allocation19 + $0x50] sm:$0xff] %v10980_v8  ;;  %v10989_v37 = vpack.c.bf16 %v12191_v58, %v12189_v63  ;;  %12212 = vtanh.f32 %v11361_v27  ;;  %v9420_v18 = vpop.f32.mrb[176].mxu1  ;;  %v11363_v42 = vadd.f32 %v8960_v9, %v15667_v32 }
 0x76f   :  { %v12195_v41 = vpop.eup %12194  ;;  %12214 = vtanh.f32 %v11401_v14  ;;  %v8962_v30 = vpop.f32.mrb[158].mxu0  ;;  %v11402_v47 = vadd.f32 %v9420_v18, %v15671_v50 }
 0x770   :  { %v12197_v21 = vpop.eup %12196  ;;  %9990 = vst [vmem:[#allocation19 + $0x98] sm:$0xff] %v10989_v37  ;;  %12216 = vtanh.f32 %v11362_v35  ;;  %v9422_v52 = vpop.f32.mrb[177].mxu1  ;;  %v11364_v31 = vadd.f32 %v8962_v30, %v15663_v24 }
 0x771   :  { %v8964_v29 = vpop.f32.mrb[159].mxu0  ;;  %v12199_v28 = vpop.eup %12198  ;;  %v10984_v38 = vpack.c.bf16 %v12197_v21, %v12193_v36  ;;  %12218 = vtanh.f32 %v11363_v42  ;;  %v11403_v49 = vadd.f32 %v9422_v52, %v15676_v12 }
 0x772   :  { %v9424_v46 = vpop.f32.mrb[178].mxu1  ;;  %v12201_v40 = vpop.eup %12200  ;;  %v10993_v53 = vpack.c.bf16 %v12199_v28, %v12195_v41  ;;  %12220 = vtanh.f32 %v11402_v47  ;;  %v11365_v56 = vadd.f32 %v8964_v29, %v15667_v32 }
 0x773   :  { %v11404_v34 = vadd.f32 %v9424_v46, %v15671_v50  ;;  %v9426_v4 = vpop.f32.mrb[179].mxu1  ;;  %v12203_v0 = vpop.eup %12202  ;;  %9985 = vst [vmem:[#allocation19 + $0x70] sm:$0xff] %v10984_v38  ;;  %12222 = vtanh.f32 %v11403_v49 }
 0x774   :  { %v11405_v19 = vadd.f32 %v9426_v4, %v15676_v12  ;;  %v12205_v5 = vpop.eup %12204  ;;  %9994 = vst [vmem:[#allocation19 + $0xb8] sm:$0xff] %v10993_v53  ;;  %v10988_v16 = vpack.c.bf16 %v12203_v0, %v12201_v40  ;;  %12224 = vtanh.f32 %v11364_v31  ;;  %v8968_v25 = vpop.f32.mrb[160].mxu0 }
 0x775   :  { %v12207_v57 = vpop.eup %12206  ;;  %12226 = vtanh.f32 %v11404_v34  ;;  %v11366_v17 = vadd.f32 %v8968_v25, %v15663_v24  ;;  %v8970_v39 = vpop.f32.mrb[161].mxu0 }
 0x776   :  { %v12209_v1 = vpop.eup %12208  ;;  %9989 = vst [vmem:[#allocation19 + $0x90] sm:$0xff] %v10988_v16  ;;  %v10997_v62 = vpack.c.bf16 %v12207_v57, %v12205_v5  ;;  %12228 = vtanh.f32 %v11365_v56  ;;  %v9430_v45 = vpop.f32.mrb[180].mxu1  ;;  %v11367_v20 = vadd.f32 %v8970_v39, %v15667_v32 }
 0x777   :  { %v12211_v6 = vpop.eup %12210  ;;  %12230 = vtanh.f32 %v11405_v19  ;;  %v8972_v44 = vpop.f32.mrb[162].mxu0  ;;  %v11406_v48 = vadd.f32 %v9430_v45, %v15671_v50 }
 0x778   :  { %v12213_v3 = vpop.eup %12212  ;;  %9998 = vst [vmem:[#allocation19 + $0xd8] sm:$0xff] %v10997_v62  ;;  %12232 = vtanh.f32 %v11366_v17  ;;  %v9432_v43 = vpop.f32.mrb[181].mxu1  ;;  %v11368_v22 = vadd.f32 %v8972_v44, %v15663_v24 }
 0x779   :  { %v8974_v15 = vpop.f32.mrb[163].mxu0  ;;  %v12215_v59 = vpop.eup %12214  ;;  %v10992_v60 = vpack.c.bf16 %v12213_v3, %v12209_v1  ;;  %12234 = vtanh.f32 %v11367_v20  ;;  %v11407_v33 = vadd.f32 %v9432_v43, %v15676_v12 }
 0x77a   :  { %v9434_v54 = vpop.f32.mrb[182].mxu1  ;;  %v12217_v11 = vpop.eup %12216  ;;  %v11001_v7 = vpack.c.bf16 %v12215_v59, %v12211_v6  ;;  %12236 = vtanh.f32 %v11406_v48  ;;  %v11369_v27 = vadd.f32 %v8974_v15, %v15667_v32 }
 0x77b   :  { %v11408_v26 = vadd.f32 %v9434_v54, %v15671_v50  ;;  %v9436_v51 = vpop.f32.mrb[183].mxu1  ;;  %v12219_v23 = vpop.eup %12218  ;;  %9993 = vst [vmem:[#allocation19 + $0xb0] sm:$0xff] %v10992_v60  ;;  %12238 = vtanh.f32 %v11407_v33 }
 0x77c   :  { %v11409_v14 = vadd.f32 %v9436_v51, %v15676_v12  ;;  %v12221_v63 = vpop.eup %12220  ;;  %10002 = vst [vmem:[#allocation19 + $0xf8] sm:$0xff] %v11001_v7  ;;  %v10996_v8 = vpack.c.bf16 %v12219_v23, %v12217_v11  ;;  %12240 = vtanh.f32 %v11368_v22  ;;  %v8978_v13 = vpop.f32.mrb[164].mxu0 }
 0x77d   :  { %v12223_v58 = vpop.eup %12222  ;;  %12242 = vtanh.f32 %v11408_v26  ;;  %v11370_v35 = vadd.f32 %v8978_v13, %v15663_v24  ;;  %v8980_v9 = vpop.f32.mrb[165].mxu0 }
 0x77e   :  { %v12225_v36 = vpop.eup %12224  ;;  %9997 = vst [vmem:[#allocation19 + $0xd0] sm:$0xff] %v10996_v8  ;;  %v11005_v37 = vpack.c.bf16 %v12223_v58, %v12221_v63  ;;  %12244 = vtanh.f32 %v11369_v27  ;;  %v9440_v18 = vpop.f32.mrb[184].mxu1  ;;  %v11371_v42 = vadd.f32 %v8980_v9, %v15667_v32 }
 0x77f   :  { %v12227_v41 = vpop.eup %12226  ;;  %12246 = vtanh.f32 %v11409_v14  ;;  %v8982_v30 = vpop.f32.mrb[166].mxu0  ;;  %v11410_v47 = vadd.f32 %v9440_v18, %v15671_v50 }
 0x780   :  { %v12229_v21 = vpop.eup %12228  ;;  %10006 = vst [vmem:[#allocation19 + $0x118] sm:$0xff] %v11005_v37  ;;  %12248 = vtanh.f32 %v11370_v35  ;;  %v9442_v52 = vpop.f32.mrb[185].mxu1  ;;  %v11372_v31 = vadd.f32 %v8982_v30, %v15663_v24 }
 0x781   :  { %v8984_v29 = vpop.f32.mrb[167].mxu0  ;;  %v12231_v28 = vpop.eup %12230  ;;  %v11000_v38 = vpack.c.bf16 %v12229_v21, %v12225_v36  ;;  %12250 = vtanh.f32 %v11371_v42  ;;  %v11411_v49 = vadd.f32 %v9442_v52, %v15676_v12 }
 0x782   :  { %v9444_v46 = vpop.f32.mrb[186].mxu1  ;;  %v12233_v40 = vpop.eup %12232  ;;  %v11009_v53 = vpack.c.bf16 %v12231_v28, %v12227_v41  ;;  %12252 = vtanh.f32 %v11410_v47  ;;  %v11373_v56 = vadd.f32 %v8984_v29, %v15667_v32 }
 0x783   :  { %v11412_v34 = vadd.f32 %v9444_v46, %v15671_v50  ;;  %v9446_v4 = vpop.f32.mrb[187].mxu1  ;;  %v12235_v0 = vpop.eup %12234  ;;  %10001 = vst [vmem:[#allocation19 + $0xf0] sm:$0xff] %v11000_v38  ;;  %12254 = vtanh.f32 %v11411_v49 }
 0x784   :  { %v11413_v19 = vadd.f32 %v9446_v4, %v15676_v12  ;;  %v12237_v5 = vpop.eup %12236  ;;  %10010 = vst [vmem:[#allocation19 + $0x138] sm:$0xff] %v11009_v53  ;;  %v11004_v16 = vpack.c.bf16 %v12235_v0, %v12233_v40  ;;  %12256 = vtanh.f32 %v11372_v31  ;;  %v8988_v25 = vpop.f32.mrb[168].mxu0  ;;  %v11382_v40 = vadd.f32 %v15653_v61, %v15671_v50 }
 0x785   :  { %v12239_v57 = vpop.eup %12238  ;;  %12258 = vtanh.f32 %v11412_v34  ;;  %v11374_v17 = vadd.f32 %v8988_v25, %v15663_v24  ;;  %v8990_v39 = vpop.f32.mrb[169].mxu0 }
 0x786   :  { %v12241_v1 = vpop.eup %12240  ;;  %10005 = vst [vmem:[#allocation19 + $0x110] sm:$0xff] %v11004_v16  ;;  %v11013_v62 = vpack.c.bf16 %v12239_v57, %v12237_v5  ;;  %12260 = vtanh.f32 %v11373_v56  ;;  %v9450_v45 = vpop.f32.mrb[188].mxu1  ;;  %v11375_v20 = vadd.f32 %v8990_v39, %v15667_v32  ;;  %v11388_v57 = vadd.f32 %v15659_v2, %v15676_v12 }
 0x787   :  { %v12243_v6 = vpop.eup %12242  ;;  %12262 = vtanh.f32 %v11413_v19  ;;  %v8992_v44 = vpop.f32.mrb[170].mxu0  ;;  %v11414_v48 = vadd.f32 %v9450_v45, %v15671_v50 }
 0x788   :  { %v12245_v3 = vpop.eup %12244  ;;  %10014 = vst [vmem:[#allocation19 + $0x158] sm:$0xff] %v11013_v62  ;;  %12264 = vtanh.f32 %v11374_v17  ;;  %v9452_v43 = vpop.f32.mrb[189].mxu1  ;;  %v11376_v22 = vadd.f32 %v8992_v44, %v15663_v24 }
 0x789   :  { %v8994_v15 = vpop.f32.mrb[171].mxu0  ;;  %v12247_v59 = vpop.eup %12246  ;;  %v11008_v60 = vpack.c.bf16 %v12245_v3, %v12241_v1  ;;  %12266 = vtanh.f32 %v11375_v20  ;;  %v11415_v33 = vadd.f32 %v9452_v43, %v15676_v12 }
 0x78a   :  { %v9454_v54 = vpop.f32.mrb[190].mxu1  ;;  %v12249_v11 = vpop.eup %12248  ;;  %v11017_v7 = vpack.c.bf16 %v12247_v59, %v12243_v6  ;;  %12268 = vtanh.f32 %v11414_v48  ;;  %v11377_v27 = vadd.f32 %v8994_v15, %v15667_v32 }
 0x78b   :  { %v11416_v26 = vadd.f32 %v9454_v54, %v15671_v50  ;;  %v9456_v51 = vpop.f32.mrb[191].mxu1  ;;  %v12251_v23 = vpop.eup %12250  ;;  %10009 = vst [vmem:[#allocation19 + $0x130] sm:$0xff] %v11008_v60  ;;  %12270 = vtanh.f32 %v11415_v33 }
 0x78c   :  { %v11417_v14 = vadd.f32 %v9456_v51, %v15676_v12  ;;  %v12253_v63 = vpop.eup %12252  ;;  %10018 = vst [vmem:[#allocation19 + $0x178] sm:$0xff] %v11017_v7  ;;  %v11012_v8 = vpack.c.bf16 %v12251_v23, %v12249_v11  ;;  %12272 = vtanh.f32 %v11376_v22  ;;  %v8998_v13 = vpop.f32.mrb[172].mxu0 }
 0x78d   :  { %v12255_v58 = vpop.eup %12254  ;;  %12274 = vtanh.f32 %v11416_v26  ;;  %v11378_v35 = vadd.f32 %v8998_v13, %v15663_v24  ;;  %v9000_v9 = vpop.f32.mrb[173].mxu0 }
 0x78e   :  { %v12257_v36 = vpop.eup %12256  ;;  %10013 = vst [vmem:[#allocation19 + $0x150] sm:$0xff] %v11012_v8  ;;  %v11021_v37 = vpack.c.bf16 %v12255_v58, %v12253_v63  ;;  %12276 = vtanh.f32 %v11377_v27  ;;  %v11379_v18 = vadd.f32 %v9000_v9, %v15667_v32  ;;  %v9002_v42 = vpop.f32.mrb[174].mxu0 }
 0x78f   :  { %v12259_v41 = vpop.eup %12258  ;;  %12278 = vtanh.f32 %v11417_v14  ;;  %v11380_v21 = vadd.f32 %v9002_v42, %v15663_v24  ;;  %v9004_v47 = vpop.f32.mrb[175].mxu0  ;;  %v11384_v24 = vadd.f32 %v15655_v55, %v15676_v12 }
 0x790   :  { %v12261_v30 = vpop.eup %12260  ;;  %10022 = vst [vmem:[#allocation19 + $0x198] sm:$0xff] %v11021_v37  ;;  %12280 = vtanh.f32 %v11378_v35  ;;  %v11381_v29 = vadd.f32 %v9004_v47, %v15667_v32  ;;  %v11386_v32 = vadd.f32 %v15657_v10, %v15671_v50 }
 0x791   :  { %v12263_v52 = vpop.eup %12262  ;;  %v11016_v31 = vpack.c.bf16 %v12261_v30, %v12257_v36  ;;  %12282 = vtanh.f32 %v11379_v18 }
 0x792   :  { %v12265_v28 = vpop.eup %12264  ;;  %v11025_v38 = vpack.c.bf16 %v12263_v52, %v12259_v41  ;;  %12284 = vtanh.f32 %v11380_v21 }
 0x793   :  { %v12267_v49 = vpop.eup %12266  ;;  %10017 = vst [vmem:[#allocation19 + $0x170] sm:$0xff] %v11016_v31  ;;  %12286 = vtanh.f32 %v11381_v29 }
 0x794   :  { %v12269_v46 = vpop.eup %12268  ;;  %10026 = vst [vmem:[#allocation19 + $0x1b8] sm:$0xff] %v11025_v38  ;;  %v11020_v53 = vpack.c.bf16 %v12267_v49, %v12265_v28  ;;  %v9380_v56 = vpop.f32.mrb[176].mxu0 }
 0x795   :  { %v12271_v34 = vpop.eup %12270  ;;  %v11383_v19 = vadd.f32 %v11382_v40, %v9380_v56  ;;  %v9382_v5 = vpop.f32.mrb[177].mxu0 }
 0x796   :  { %v12273_v4 = vpop.eup %12272  ;;  %10021 = vst [vmem:[#allocation19 + $0x190] sm:$0xff] %v11020_v53  ;;  %v11029_v0 = vpack.c.bf16 %v12271_v34, %v12269_v46  ;;  %v11385_v61 = vadd.f32 %v11384_v24, %v9382_v5  ;;  %v9384_v25 = vpop.f32.mrb[178].mxu0 }
 0x797   :  { %v12275_v16 = vpop.eup %12274  ;;  %12288 = vtanh.f32 %v11383_v19  ;;  %v11387_v62 = vadd.f32 %v11386_v32, %v9384_v25  ;;  %v9386_v55 = vpop.f32.mrb[179].mxu0 }
 0x798   :  { %v12277_v1 = vpop.eup %12276  ;;  %10030 = vst [vmem:[#allocation19 + $0x1d8] sm:$0xff] %v11029_v0  ;;  %12290 = vtanh.f32 %v11385_v61  ;;  %v11389_v6 = vadd.f32 %v11388_v57, %v9386_v55 }
 0x799   :  { %v12279_v17 = vpop.eup %12278  ;;  %v11024_v39 = vpack.c.bf16 %v12277_v1, %v12273_v4  ;;  %12292 = vtanh.f32 %v11387_v62 }
 0x79a   :  { %v12281_v10 = vpop.eup %12280  ;;  %v11033_v50 = vpack.c.bf16 %v12279_v17, %v12275_v16  ;;  %12294 = vtanh.f32 %v11389_v6 }
 0x79b   :  { %v12283_v45 = vpop.eup %12282  ;;  %10025 = vst [vmem:[#allocation19 + $0x1b0] sm:$0xff] %v11024_v39 }
 0x79c   :  { %v12285_v20 = vpop.eup %12284  ;;  %10034 = vst [vmem:[#allocation19 + $0x1f8] sm:$0xff] %v11033_v50  ;;  %v11028_v2 = vpack.c.bf16 %v12283_v45, %v12281_v10 }
 0x79d   :  { %v12287_v12 = vpop.eup %12286 }
 0x79e   :  { %10029 = vst [vmem:[#allocation19 + $0x1d0] sm:$0xff] %v11028_v2  ;;  %v11032_v44 = vpack.c.bf16 %v12287_v12, %v12285_v20 }
 0x7a0   :  { %10033 = vst [vmem:[#allocation19 + $0x1f0] sm:$0xff] %v11032_v44 }
 0x7a1   :  { %v12289_v3 = vpop.eup %12288 }
 0x7a2   :  { %v12291_v48 = vpop.eup %12290 }
 0x7a3   :  { %v12293_v43 = vpop.eup %12292  ;;  %v10973_v22 = vpack.c.bf16 %v12291_v48, %v12289_v3 }
 0x7a4   :  { %v12295_v15 = vpop.eup %12294 }
 0x7a5   :  { %9974 = vst [vmem:[#allocation19 + $0x18] sm:$0xff] %v10973_v22  ;;  %v10977_v59 = vpack.c.bf16 %v12295_v15, %v12293_v43 }
 0x7a7   :  { %9978 = vst [vmem:[#allocation19 + $0x38] sm:$0xff] %v10977_v59 }
 0x7a8   :  { %12529 = shalt.err (!%p12526_p0)
}
 0x7a9   :  { %s12530_s26 = scalar_lea.hbm %s15771_s11, 8192 }
 0x7aa   :  { %p12531_p1 = scmp.ne.s32.totalorder %s15771_s11, %s12530_s26  ;;  %p12534_p2 = scmp.lt.u32.totalorder %s12530_s26, %s15771_s11 }
 0x7ac   :  { %p12536_p3 = pnand %p12534_p2, %p12531_p1 }
 0x7ae   :  { %12539 = shalt.err (!%p12536_p3)
}
 0x7af   :  { %10046 = dma.vmem_to_hbm [thread:$0]  %s10041_s13, 8192, %s15771_s11, [#allocation4], %s12566_s5, %s12566_s5, %s12567_s1  }
 0x7b0   :  { %12552 = dma.done.wait [#allocation4], 8192  }
 0x7b1   :  { %12553 = vsyncadd [#allocation4], 4294959104 }
 0x7b2   :  { %10050 = vsyncpa [#allocation3], 1 }
 0x7b3   :  { %10051 = vsyncpa [#allocation6], 1 }
 0x7b4   :  { %10052 = vsyncpa [#allocation9], 1 }
 0x7b5   :  { %10053 = vsyncpa [#allocation12], 1 }
 0x7b6   :  { %10054 = vsyncpa [#allocation15], 1 }
 0x7b7   :  { %10055 = vsyncpa [#allocation18], 1 }
 0x7b8   :  { %10056 = vsyncpa [#allocation4], 1 }

</bundles_post_ra>
